<compile_context>
chip_gen: v6e
topology: v6e:2x2x1
jax: 0.10.0
libtpu: 0.0.40
codegen_flags: <defaults>
</compile_context>

<pallas_src>
import jax
import jax.numpy as jnp
from jax.experimental import pallas as pl
from jax.experimental.pallas import tpu as pltpu

BN_EPS = 1e-5


def _pick_tile(dim, candidates):
    for c in candidates:
        if dim >= c and dim % c == 0:
            return c
    return dim


# ----------------- grouped matmul + fused BatchNorm statistics ----------------

def _gmm_stats_kernel(a_ref, b_ref, y_ref, s1_ref, s2_ref):
    prod = jnp.dot(a_ref[0], b_ref[0], preferred_element_type=jnp.float32)
    y_ref[0] = prod.astype(y_ref.dtype)
    s1 = jnp.sum(prod, axis=0, keepdims=True)
    s2 = jnp.sum(prod * prod, axis=0, keepdims=True)
    is_first = (pl.program_id(0) == 0) & (pl.program_id(1) == 0)

    @pl.when(is_first)
    def _():
        s1_ref[...] = s1
        s2_ref[...] = s2

    @pl.when(jnp.logical_not(is_first))
    def _():
        s1_ref[...] += s1
        s2_ref[...] += s2


def pallas_grouped_matmul_stats(a, b, *, broadcast_lhs=False,
                                out_dtype=jnp.bfloat16):
    """a: (Pa, M, K) bf16 (Pa == 1 if broadcast_lhs else P), b: (P, K, C) bf16.
    Returns (P, M, C) activations (out_dtype) plus per-channel f32 sum(x) and
    sum(x^2) accumulated over all P*M rows (fused BatchNorm statistics)."""
    P, K, C = b.shape
    _, M, Ka = a.shape
    assert Ka == K
    tm = _pick_tile(M, (512, 256, 128, 64, 32, 16, 8))
    a_idx = (lambda p, i: (0, i, 0)) if broadcast_lhs else (lambda p, i: (p, i, 0))
    y, s1, s2 = pl.pallas_call(
        _gmm_stats_kernel,
        out_shape=(jax.ShapeDtypeStruct((P, M, C), out_dtype),
                   jax.ShapeDtypeStruct((1, C), jnp.float32),
                   jax.ShapeDtypeStruct((1, C), jnp.float32)),
        grid=(P, M // tm),
        in_specs=[pl.BlockSpec((1, tm, K), a_idx),
                  pl.BlockSpec((1, K, C), lambda p, i: (p, 0, 0))],
        out_specs=(pl.BlockSpec((1, tm, C), lambda p, i: (p, i, 0)),
                   pl.BlockSpec((1, C), lambda p, i: (0, 0)),
                   pl.BlockSpec((1, C), lambda p, i: (0, 0))),
        compiler_params=pltpu.CompilerParams(
            dimension_semantics=("arbitrary", "arbitrary")),
    )(a, b)
    return y, (s1, s2)


# ------------------------- BatchNorm (training mode) --------------------------

def bn_scale_shift(stats, rows, gamma, beta):
    """Fold batch mean / biased variance + affine params into scale & shift."""
    s1, s2 = stats
    mean = s1[0] / rows
    var = jnp.maximum(s2[0] / rows - mean * mean, 0.0)
    inv = jax.lax.rsqrt(var + BN_EPS)
    scale = gamma * inv
    shift = beta - mean * scale
    return scale, shift


def _bn_apply_relu_kernel(x_ref, s_ref, t_ref, o_ref):
    y = jnp.maximum(x_ref[...] * s_ref[...] + t_ref[...], 0.0)
    o_ref[...] = y.astype(o_ref.dtype)


def pallas_bn_apply_relu(x2d, scale, shift, out_dtype=jnp.bfloat16):
    M, C = x2d.shape
    tm = _pick_tile(M, (1024, 512, 256, 128, 64, 32, 16, 8))
    return pl.pallas_call(
        _bn_apply_relu_kernel,
        out_shape=jax.ShapeDtypeStruct((M, C), out_dtype),
        grid=(M // tm,),
        in_specs=[pl.BlockSpec((tm, C), lambda i: (i, 0)),
                  pl.BlockSpec((1, C), lambda i: (0, 0)),
                  pl.BlockSpec((1, C), lambda i: (0, 0))],
        out_specs=pl.BlockSpec((tm, C), lambda i: (i, 0)),
        compiler_params=pltpu.CompilerParams(
            dimension_semantics=("parallel",)),
    )(x2d, scale.reshape(1, C), shift.reshape(1, C))


def _bn_relu_proj_tanh_kernel(x_ref, s_ref, t_ref, w_ref, o_ref):
    y = jnp.maximum(x_ref[...] * s_ref[...] + t_ref[...], 0.0)   # BN + ReLU
    p = jnp.sum(y * w_ref[...], axis=-1, keepdims=True)          # 1x1 conv C->1
    o_ref[...] = jnp.tanh(p)


def pallas_bn_relu_proj_tanh(x2d, scale, shift, w_proj):
    """Fused layer-4 BN/ReLU + layer-5 1x1 conv + Tanh (per-row)."""
    M, C = x2d.shape
    tm = _pick_tile(M, (1024, 512, 256, 128, 64, 32, 16, 8))
    return pl.pallas_call(
        _bn_relu_proj_tanh_kernel,
        out_shape=jax.ShapeDtypeStruct((M, 1), jnp.float32),
        grid=(M // tm,),
        in_specs=[pl.BlockSpec((tm, C), lambda i: (i, 0)),
                  pl.BlockSpec((1, C), lambda i: (0, 0)),
                  pl.BlockSpec((1, C), lambda i: (0, 0)),
                  pl.BlockSpec((1, C), lambda i: (0, 0))],
        out_specs=pl.BlockSpec((tm, 1), lambda i: (i, 0)),
        compiler_params=pltpu.CompilerParams(
            dimension_semantics=("parallel",)),
    )(x2d, scale.reshape(1, C), shift.reshape(1, C), w_proj.reshape(1, C))


# -------------- ConvTranspose2d(k=4, s=2, p=1) by output parity ---------------
# out[2u + py, 2v + px] uses exactly 2x2 input taps and 2x2 kernel taps:
#   parity 0 along an axis: input offsets {u-1, u}, kernel indices {3, 1}
#   parity 1 along an axis: input offsets {u, u+1}, kernel indices {2, 0}

_TAPS = ((3, 1), (2, 0))   # kernel tap indices per parity
_OFFS = (0, 1)             # starting offset into the 1-padded input per parity


def _build_parity_patches(x_nhwc):
    """(N, H, W, Cin) bf16 -> (4, N*H*W, 4*Cin) bf16 parity im2col patches."""
    N, H, W, Cin = x_nhwc.shape
    xp = jnp.pad(x_nhwc, ((0, 0), (1, 1), (1, 1), (0, 0)))
    parities = []
    for py in (0, 1):
        for px in (0, 1):
            cols = []
            for a in (0, 1):
                for b in (0, 1):
                    dy, dx = _OFFS[py] + a, _OFFS[px] + b
                    cols.append(xp[:, dy:dy + H, dx:dx + W, :])
            parities.append(
                jnp.concatenate(cols, axis=-1).reshape(N * H * W, 4 * Cin))
    return jnp.stack(parities, axis=0)


def _parity_weights(w_t):
    """PyTorch ConvTranspose weight (Cin, Cout, 4, 4) -> (4, 4*Cin, Cout) bf16."""
    w_bf = w_t.astype(jnp.bfloat16)
    mats = []
    for py in (0, 1):
        for px in (0, 1):
            rows = [w_bf[:, :, _TAPS[py][a], _TAPS[px][b]]
                    for a in (0, 1) for b in (0, 1)]
            mats.append(jnp.concatenate(rows, axis=0))
    return jnp.stack(mats, axis=0)


def _interleave_parity(y):
    """(4, N, H, W, C) parity images -> (N, 2H, 2W, C)."""
    P, N, H, W, C = y.shape
    y = y.reshape(2, 2, N, H, W, C)
    y = jnp.transpose(y, (2, 3, 0, 4, 1, 5))
    return y.reshape(N, 2 * H, 2 * W, C)


# --------------------------------- forward ------------------------------------

def generator_forward(z_nchw, params):
    N = z_nchw.shape[0]
    z = z_nchw.reshape(1, N, 100).astype(jnp.bfloat16)

    # layer 1: ConvTranspose2d(100, 512, k=4, s=1, p=0) on a 1x1 input ->
    # 16 tap-matmuls against z, expressed as a 16-group matmul with the latent
    # LHS broadcast across groups; BN stats fused into the same kernel.
    w1 = jnp.transpose(params["w1"], (2, 3, 0, 1)).reshape(16, 100, 512)
    y, stats = pallas_grouped_matmul_stats(z, w1.astype(jnp.bfloat16),
                                           broadcast_lhs=True)   # (16, N, 512)
    s, t = bn_scale_shift(stats, 16 * N, params["g1"], params["b1"])
    act = pallas_bn_apply_relu(y.reshape(16 * N, 512), s, t)
    x = jnp.transpose(act.reshape(16, N, 512), (1, 0, 2)).reshape(N, 4, 4, 512)

    # layers 2 & 3: stride-2 transposed conv + BN + ReLU
    for wk, gk, bk, cout in (("w2", "g2", "b2", 256), ("w3", "g3", "b3", 128)):
        Nn, H, W, _ = x.shape
        patches = _build_parity_patches(x)                  # (4, N*H*W, 4*Cin)
        wmat = _parity_weights(params[wk])                  # (4, 4*Cin, Cout)
        y, stats = pallas_grouped_matmul_stats(patches, wmat)
        rows = 4 * Nn * H * W
        s, t = bn_scale_shift(stats, rows, params[gk], params[bk])
        act = pallas_bn_apply_relu(y.reshape(rows, cout), s, t)
        x = _interleave_parity(act.reshape(4, Nn, H, W, cout))

    # layer 4: (N, 16, 16, 128) -> (N, 32, 32, 64) with Cout zero-padded to 128
    # so all matmul / BN / projection stores stay lane-dense; fused with layer
    # 5's 1x1 conv (64 -> 1) + Tanh.  Layer 5's padding=2 is the trailing crop.
    C4 = 128
    Nn, H, W, _ = x.shape
    w4 = jnp.pad(params["w4"], ((0, 0), (0, C4 - 64), (0, 0), (0, 0)))
    patches = _build_parity_patches(x)                      # (4, N*256, 512)
    wmat = _parity_weights(w4)                              # (4, 512, 128)
    y, stats = pallas_grouped_matmul_stats(patches, wmat)   # (4, N*256, 128)
    rows = 4 * Nn * H * W
    g4 = jnp.pad(params["g4"], (0, C4 - 64))
    b4 = jnp.pad(params["b4"], (0, C4 - 64))
    s, t = bn_scale_shift(stats, rows, g4, b4)
    w5 = jnp.pad(params["w5"].reshape(64), (0, C4 - 64))
    p = pallas_bn_relu_proj_tanh(y.reshape(rows, C4), s, t, w5)  # (rows, 1)
    img = _interleave_parity(p.reshape(4, Nn, H, W, 1)).reshape(Nn, 2 * H, 2 * W)
    img = img[:, 2:2 * H - 2, 2:2 * W - 2]                  # padding=2 crop -> 28x28
    return img.reshape(N, 1, 28, 28)


def init_params(key):
    ks = jax.random.split(key, 9)

    def w(k, shape):
        return (0.02 * jax.random.normal(k, shape)).astype(jnp.float32)

    return {
        # ConvTranspose2d weights: (Cin, Cout, kH, kW), bias=False
        "w1": w(ks[0], (100, 512, 4, 4)),
        "w2": w(ks[1], (512, 256, 4, 4)),
        "w3": w(ks[2], (256, 128, 4, 4)),
        "w4": w(ks[3], (128, 64, 4, 4)),
        "w5": w(ks[4], (64, 1, 1, 1)),
        # BatchNorm affine params (non-trivial but deterministic)
        "g1": (1.0 + 0.1 * jax.random.normal(ks[5], (512,))).astype(jnp.float32),
        "b1": jnp.zeros((512,), jnp.float32),
        "g2": (1.0 + 0.1 * jax.random.normal(ks[6], (256,))).astype(jnp.float32),
        "b2": jnp.zeros((256,), jnp.float32),
        "g3": (1.0 + 0.1 * jax.random.normal(ks[7], (128,))).astype(jnp.float32),
        "b3": jnp.zeros((128,), jnp.float32),
        "g4": (1.0 + 0.1 * jax.random.normal(ks[8], (64,))).astype(jnp.float32),
        "b4": jnp.zeros((64,), jnp.float32),
    }


if __name__ == "__main__":
    key = jax.random.PRNGKey(0)
    pkey, zkey = jax.random.split(key)
    params = init_params(pkey)

    # latent noise, PyTorch NCHW: (batch=2, 100, 1, 1)
    z = jax.random.normal(zkey, (2, 100, 1, 1), dtype=jnp.float32)

    fwd = jax.jit(generator_forward)
    out = jax.block_until_ready(fwd(z, params))

    assert out.shape == (2, 1, 28, 28), out.shape
    assert bool(jnp.all(jnp.isfinite(out)))
    assert bool(jnp.all(jnp.abs(out) <= 1.0 + 1e-6))   # tanh range
    print("KERNEL_OK")
</pallas_src>

<mosaic_0001>
module attributes {stable_mosaic.version = 11 : i64} {
  func.func @_gmm_stats_kernel(%arg0: i32, %arg1: i32, %arg2: memref<1x2x100xbf16, #tpu.memory_space<vmem>>, %arg3: memref<1x100x512xbf16, #tpu.memory_space<vmem>>, %arg4: memref<1x2x512xbf16, #tpu.memory_space<vmem>>, %arg5: memref<1x512xf32, #tpu.memory_space<vmem>>, %arg6: memref<1x512xf32, #tpu.memory_space<vmem>>) attributes {dimension_semantics = [#tpu.dimension_semantics<arbitrary>, #tpu.dimension_semantics<arbitrary>], iteration_bounds = array<i64: 16, 1>, scalar_prefetch = 0 : i64, scratch_operands = 0 : i64, tpu.core_type = #tpu.core_type<tc>, window_params = [{transform_indices = @transform_0, window_bounds = array<i64: 1, 2, 100>}, {transform_indices = @transform_1, window_bounds = array<i64: 1, 100, 512>}, {transform_indices = @transform_2, window_bounds = array<i64: 1, 2, 512>}, {pipeline_mode = #tpu.pipeline_mode<synchronous>, transform_indices = @transform_3, window_bounds = array<i64: 1, 512>}, {pipeline_mode = #tpu.pipeline_mode<synchronous>, transform_indices = @transform_4, window_bounds = array<i64: 1, 512>}]} {
    %c0 = arith.constant 0 : index
    %c0_0 = arith.constant 0 : index
    %c0_1 = arith.constant 0 : index
    %0 = vector.load %arg2[%c0, %c0_0, %c0_1] : memref<1x2x100xbf16, #tpu.memory_space<vmem>>, vector<1x2x100xbf16>
    %1 = vector.shape_cast %0 : vector<1x2x100xbf16> to vector<2x100xbf16>
    %c0_2 = arith.constant 0 : index
    %c0_3 = arith.constant 0 : index
    %c0_4 = arith.constant 0 : index
    %2 = vector.load %arg3[%c0_2, %c0_3, %c0_4] : memref<1x100x512xbf16, #tpu.memory_space<vmem>>, vector<1x100x512xbf16>
    %3 = vector.shape_cast %2 : vector<1x100x512xbf16> to vector<100x512xbf16>
    %cst = arith.constant dense<0.000000e+00> : vector<2x512xf32>
    %4 = tpu.matmul %1, %3, %cst {dimension_numbers = #tpu.dot_dimension_numbers<[1], [0], [0], [1], [0, 0, 1, 1], [], []>} : vector<2x100xbf16>, vector<100x512xbf16>, vector<2x512xf32> -> vector<2x512xf32>
    %5 = arith.truncf %4 : vector<2x512xf32> to vector<2x512xbf16>
    %c0_5 = arith.constant 0 : index
    %c0_6 = arith.constant 0 : index
    %c0_7 = arith.constant 0 : index
    %6 = vector.load %arg4[%c0_5, %c0_6, %c0_7] : memref<1x2x512xbf16, #tpu.memory_space<vmem>>, vector<1x2x512xbf16>
    %7 = vector.shape_cast %6 : vector<1x2x512xbf16> to vector<2x512xbf16>
    %8 = vector.shape_cast %5 : vector<2x512xbf16> to vector<1x2x512xbf16>
    tpu.vector_store %arg4[%c0_5, %c0_6, %c0_7], %8 {strides = array<i32>} : memref<1x2x512xbf16, #tpu.memory_space<vmem>>, vector<1x2x512xbf16>,
    %cst_8 = arith.constant dense<0.000000e+00> : vector<512xf32>
    %9 = vector.multi_reduction <add>, %4, %cst_8 [0] : vector<2x512xf32> to vector<512xf32>
    %10 = vector.shape_cast %9 : vector<512xf32> to vector<1x512xf32>
    %11 = arith.mulf %4, %4 : vector<2x512xf32>
    %cst_9 = arith.constant dense<0.000000e+00> : vector<512xf32>
    %12 = vector.multi_reduction <add>, %11, %cst_9 [0] : vector<2x512xf32> to vector<512xf32>
    %13 = vector.shape_cast %12 : vector<512xf32> to vector<1x512xf32>
    %c0_i32 = arith.constant 0 : i32
    %14 = arith.cmpi eq, %arg0, %c0_i32 : i32
    %c0_i32_10 = arith.constant 0 : i32
    %15 = arith.cmpi eq, %arg1, %c0_i32_10 : i32
    %16 = arith.andi %14, %15 : i1
    %17 = arith.extui %16 : i1 to i32
    %c0_i32_11 = arith.constant 0 : i32
    %18 = arith.cmpi ne, %17, %c0_i32_11 : i32
    scf.if %18 {
      %c0_13 = arith.constant 0 : index
      %c0_14 = arith.constant 0 : index
      %22 = vector.load %arg5[%c0_13, %c0_14] : memref<1x512xf32, #tpu.memory_space<vmem>>, vector<1x512xf32>
      tpu.vector_store %arg5[%c0_13, %c0_14], %10 {strides = array<i32>} : memref<1x512xf32, #tpu.memory_space<vmem>>, vector<1x512xf32>,
      %c0_15 = arith.constant 0 : index
      %c0_16 = arith.constant 0 : index
      %23 = vector.load %arg6[%c0_15, %c0_16] : memref<1x512xf32, #tpu.memory_space<vmem>>, vector<1x512xf32>
      tpu.vector_store %arg6[%c0_15, %c0_16], %13 {strides = array<i32>} : memref<1x512xf32, #tpu.memory_space<vmem>>, vector<1x512xf32>,
    } else {
    }
    %true = arith.constant true
    %19 = arith.xori %16, %true : i1
    %20 = arith.extui %19 : i1 to i32
    %c0_i32_12 = arith.constant 0 : i32
    %21 = arith.cmpi ne, %20, %c0_i32_12 : i32
    scf.if %21 {
      %c0_13 = arith.constant 0 : index
      %c0_14 = arith.constant 0 : index
      %22 = vector.load %arg5[%c0_13, %c0_14] : memref<1x512xf32, #tpu.memory_space<vmem>>, vector<1x512xf32>
      %23 = arith.addf %22, %10 : vector<1x512xf32>
      %c0_15 = arith.constant 0 : index
      %c0_16 = arith.constant 0 : index
      %24 = vector.load %arg5[%c0_15, %c0_16] : memref<1x512xf32, #tpu.memory_space<vmem>>, vector<1x512xf32>
      tpu.vector_store %arg5[%c0_15, %c0_16], %23 {strides = array<i32>} : memref<1x512xf32, #tpu.memory_space<vmem>>, vector<1x512xf32>,
      %c0_17 = arith.constant 0 : index
      %c0_18 = arith.constant 0 : index
      %25 = vector.load %arg6[%c0_17, %c0_18] : memref<1x512xf32, #tpu.memory_space<vmem>>, vector<1x512xf32>
      %26 = arith.addf %25, %13 : vector<1x512xf32>
      %c0_19 = arith.constant 0 : index
      %c0_20 = arith.constant 0 : index
      %27 = vector.load %arg6[%c0_19, %c0_20] : memref<1x512xf32, #tpu.memory_space<vmem>>, vector<1x512xf32>
      tpu.vector_store %arg6[%c0_19, %c0_20], %26 {strides = array<i32>} : memref<1x512xf32, #tpu.memory_space<vmem>>, vector<1x512xf32>,
    } else {
    }
    return
  }
  func.func @transform_0(%arg0: i32, %arg1: i32) -> (i32, i32, i32) {
    %c0_i32 = arith.constant 0 : i32
    %c0_i32_0 = arith.constant 0 : i32
    %c0_i32_1 = arith.constant 0 : i32
    return %c0_i32, %arg1, %c0_i32_0 : i32, i32, i32
  }
  func.func @transform_1(%arg0: i32, %arg1: i32) -> (i32, i32, i32) {
    %c0_i32 = arith.constant 0 : i32
    %c0_i32_0 = arith.constant 0 : i32
    %c0_i32_1 = arith.constant 0 : i32
    return %arg0, %c0_i32, %c0_i32_0 : i32, i32, i32
  }
  func.func @transform_2(%arg0: i32, %arg1: i32) -> (i32, i32, i32) {
    %c0_i32 = arith.constant 0 : i32
    %c0_i32_0 = arith.constant 0 : i32
    return %arg0, %arg1, %c0_i32 : i32, i32, i32
  }
  func.func @transform_3(%arg0: i32, %arg1: i32) -> (i32, i32) {
    %c0_i32 = arith.constant 0 : i32
    %c0_i32_0 = arith.constant 0 : i32
    %c0_i32_1 = arith.constant 0 : i32
    return %c0_i32, %c0_i32_0 : i32, i32
  }
  func.func @transform_4(%arg0: i32, %arg1: i32) -> (i32, i32) {
    %c0_i32 = arith.constant 0 : i32
    %c0_i32_0 = arith.constant 0 : i32
    %c0_i32_1 = arith.constant 0 : i32
    return %c0_i32, %c0_i32_0 : i32, i32
  }
}

module attributes {stable_mosaic.version = 11 : i64} {
  func.func @_bn_apply_relu_kernel(%arg0: i32, %arg1: memref<32x512xbf16, #tpu.memory_space<vmem>>, %arg2: memref<1x512xf32, #tpu.memory_space<vmem>>, %arg3: memref<1x512xf32, #tpu.memory_space<vmem>>, %arg4: memref<32x512xbf16, #tpu.memory_space<vmem>>) attributes {dimension_semantics = [#tpu.dimension_semantics<parallel>], iteration_bounds = array<i64: 1>, scalar_prefetch = 0 : i64, scratch_operands = 0 : i64, tpu.core_type = #tpu.core_type<tc>, window_params = [{transform_indices = @transform_0, window_bounds = array<i64: 32, 512>}, {pipeline_mode = #tpu.pipeline_mode<synchronous>, transform_indices = @transform_1, window_bounds = array<i64: 1, 512>}, {pipeline_mode = #tpu.pipeline_mode<synchronous>, transform_indices = @transform_2, window_bounds = array<i64: 1, 512>}, {transform_indices = @transform_3, window_bounds = array<i64: 32, 512>}]} {
    %c0 = arith.constant 0 : index
    %c0_0 = arith.constant 0 : index
    %0 = vector.load %arg1[%c0, %c0_0] : memref<32x512xbf16, #tpu.memory_space<vmem>>, vector<32x512xbf16>
    %c0_1 = arith.constant 0 : index
    %c0_2 = arith.constant 0 : index
    %1 = vector.load %arg2[%c0_1, %c0_2] : memref<1x512xf32, #tpu.memory_space<vmem>>, vector<1x512xf32>
    %2 = arith.extf %0 : vector<32x512xbf16> to vector<32x512xf32>
    %3 = vector.broadcast %1 : vector<1x512xf32> to vector<32x512xf32>
    %4 = arith.mulf %2, %3 : vector<32x512xf32>
    %c0_3 = arith.constant 0 : index
    %c0_4 = arith.constant 0 : index
    %5 = vector.load %arg3[%c0_3, %c0_4] : memref<1x512xf32, #tpu.memory_space<vmem>>, vector<1x512xf32>
    %6 = vector.broadcast %5 : vector<1x512xf32> to vector<32x512xf32>
    %7 = arith.addf %4, %6 : vector<32x512xf32>
    %cst = arith.constant 0.000000e+00 : f32
    %8 = vector.broadcast %cst : f32 to vector<32x512xf32>
    %9 = arith.maximumf %7, %8 : vector<32x512xf32>
    %10 = arith.truncf %9 : vector<32x512xf32> to vector<32x512xbf16>
    %c0_5 = arith.constant 0 : index
    %c0_6 = arith.constant 0 : index
    %11 = vector.load %arg4[%c0_5, %c0_6] : memref<32x512xbf16, #tpu.memory_space<vmem>>, vector<32x512xbf16>
    tpu.vector_store %arg4[%c0_5, %c0_6], %10 {strides = array<i32>} : memref<32x512xbf16, #tpu.memory_space<vmem>>, vector<32x512xbf16>,
    return
  }
  func.func @transform_0(%arg0: i32) -> (i32, i32) {
    %c0_i32 = arith.constant 0 : i32
    %c0_i32_0 = arith.constant 0 : i32
    return %arg0, %c0_i32 : i32, i32
  }
  func.func @transform_1(%arg0: i32) -> (i32, i32) {
    %c0_i32 = arith.constant 0 : i32
    %c0_i32_0 = arith.constant 0 : i32
    %c0_i32_1 = arith.constant 0 : i32
    return %c0_i32, %c0_i32_0 : i32, i32
  }
  func.func @transform_2(%arg0: i32) -> (i32, i32) {
    %c0_i32 = arith.constant 0 : i32
    %c0_i32_0 = arith.constant 0 : i32
    %c0_i32_1 = arith.constant 0 : i32
    return %c0_i32, %c0_i32_0 : i32, i32
  }
  func.func @transform_3(%arg0: i32) -> (i32, i32) {
    %c0_i32 = arith.constant 0 : i32
    %c0_i32_0 = arith.constant 0 : i32
    return %arg0, %c0_i32 : i32, i32
  }
}

module attributes {stable_mosaic.version = 11 : i64} {
  func.func @_gmm_stats_kernel(%arg0: i32, %arg1: i32, %arg2: memref<1x32x2048xbf16, #tpu.memory_space<vmem>>, %arg3: memref<1x2048x256xbf16, #tpu.memory_space<vmem>>, %arg4: memref<1x32x256xbf16, #tpu.memory_space<vmem>>, %arg5: memref<1x256xf32, #tpu.memory_space<vmem>>, %arg6: memref<1x256xf32, #tpu.memory_space<vmem>>) attributes {dimension_semantics = [#tpu.dimension_semantics<arbitrary>, #tpu.dimension_semantics<arbitrary>], iteration_bounds = array<i64: 4, 1>, scalar_prefetch = 0 : i64, scratch_operands = 0 : i64, tpu.core_type = #tpu.core_type<tc>, window_params = [{transform_indices = @transform_0, window_bounds = array<i64: 1, 32, 2048>}, {transform_indices = @transform_1, window_bounds = array<i64: 1, 2048, 256>}, {transform_indices = @transform_2, window_bounds = array<i64: 1, 32, 256>}, {pipeline_mode = #tpu.pipeline_mode<synchronous>, transform_indices = @transform_3, window_bounds = array<i64: 1, 256>}, {pipeline_mode = #tpu.pipeline_mode<synchronous>, transform_indices = @transform_4, window_bounds = array<i64: 1, 256>}]} {
    %c0 = arith.constant 0 : index
    %c0_0 = arith.constant 0 : index
    %c0_1 = arith.constant 0 : index
    %0 = vector.load %arg2[%c0, %c0_0, %c0_1] : memref<1x32x2048xbf16, #tpu.memory_space<vmem>>, vector<1x32x2048xbf16>
    %1 = vector.shape_cast %0 : vector<1x32x2048xbf16> to vector<32x2048xbf16>
    %c0_2 = arith.constant 0 : index
    %c0_3 = arith.constant 0 : index
    %c0_4 = arith.constant 0 : index
    %2 = vector.load %arg3[%c0_2, %c0_3, %c0_4] : memref<1x2048x256xbf16, #tpu.memory_space<vmem>>, vector<1x2048x256xbf16>
    %3 = vector.shape_cast %2 : vector<1x2048x256xbf16> to vector<2048x256xbf16>
    %cst = arith.constant dense<0.000000e+00> : vector<32x256xf32>
    %4 = tpu.matmul %1, %3, %cst {dimension_numbers = #tpu.dot_dimension_numbers<[1], [0], [0], [1], [0, 0, 1, 1], [], []>} : vector<32x2048xbf16>, vector<2048x256xbf16>, vector<32x256xf32> -> vector<32x256xf32>
    %5 = arith.truncf %4 : vector<32x256xf32> to vector<32x256xbf16>
    %c0_5 = arith.constant 0 : index
    %c0_6 = arith.constant 0 : index
    %c0_7 = arith.constant 0 : index
    %6 = vector.load %arg4[%c0_5, %c0_6, %c0_7] : memref<1x32x256xbf16, #tpu.memory_space<vmem>>, vector<1x32x256xbf16>
    %7 = vector.shape_cast %6 : vector<1x32x256xbf16> to vector<32x256xbf16>
    %8 = vector.shape_cast %5 : vector<32x256xbf16> to vector<1x32x256xbf16>
    tpu.vector_store %arg4[%c0_5, %c0_6, %c0_7], %8 {strides = array<i32>} : memref<1x32x256xbf16, #tpu.memory_space<vmem>>, vector<1x32x256xbf16>,
    %cst_8 = arith.constant dense<0.000000e+00> : vector<256xf32>
    %9 = vector.multi_reduction <add>, %4, %cst_8 [0] : vector<32x256xf32> to vector<256xf32>
    %10 = vector.shape_cast %9 : vector<256xf32> to vector<1x256xf32>
    %11 = arith.mulf %4, %4 : vector<32x256xf32>
    %cst_9 = arith.constant dense<0.000000e+00> : vector<256xf32>
    %12 = vector.multi_reduction <add>, %11, %cst_9 [0] : vector<32x256xf32> to vector<256xf32>
    %13 = vector.shape_cast %12 : vector<256xf32> to vector<1x256xf32>
    %c0_i32 = arith.constant 0 : i32
    %14 = arith.cmpi eq, %arg0, %c0_i32 : i32
    %c0_i32_10 = arith.constant 0 : i32
    %15 = arith.cmpi eq, %arg1, %c0_i32_10 : i32
    %16 = arith.andi %14, %15 : i1
    %17 = arith.extui %16 : i1 to i32
    %c0_i32_11 = arith.constant 0 : i32
    %18 = arith.cmpi ne, %17, %c0_i32_11 : i32
    scf.if %18 {
      %c0_13 = arith.constant 0 : index
      %c0_14 = arith.constant 0 : index
      %22 = vector.load %arg5[%c0_13, %c0_14] : memref<1x256xf32, #tpu.memory_space<vmem>>, vector<1x256xf32>
      tpu.vector_store %arg5[%c0_13, %c0_14], %10 {strides = array<i32>} : memref<1x256xf32, #tpu.memory_space<vmem>>, vector<1x256xf32>,
      %c0_15 = arith.constant 0 : index
      %c0_16 = arith.constant 0 : index
      %23 = vector.load %arg6[%c0_15, %c0_16] : memref<1x256xf32, #tpu.memory_space<vmem>>, vector<1x256xf32>
      tpu.vector_store %arg6[%c0_15, %c0_16], %13 {strides = array<i32>} : memref<1x256xf32, #tpu.memory_space<vmem>>, vector<1x256xf32>,
    } else {
    }
    %true = arith.constant true
    %19 = arith.xori %16, %true : i1
    %20 = arith.extui %19 : i1 to i32
    %c0_i32_12 = arith.constant 0 : i32
    %21 = arith.cmpi ne, %20, %c0_i32_12 : i32
    scf.if %21 {
      %c0_13 = arith.constant 0 : index
      %c0_14 = arith.constant 0 : index
      %22 = vector.load %arg5[%c0_13, %c0_14] : memref<1x256xf32, #tpu.memory_space<vmem>>, vector<1x256xf32>
      %23 = arith.addf %22, %10 : vector<1x256xf32>
      %c0_15 = arith.constant 0 : index
      %c0_16 = arith.constant 0 : index
      %24 = vector.load %arg5[%c0_15, %c0_16] : memref<1x256xf32, #tpu.memory_space<vmem>>, vector<1x256xf32>
      tpu.vector_store %arg5[%c0_15, %c0_16], %23 {strides = array<i32>} : memref<1x256xf32, #tpu.memory_space<vmem>>, vector<1x256xf32>,
      %c0_17 = arith.constant 0 : index
      %c0_18 = arith.constant 0 : index
      %25 = vector.load %arg6[%c0_17, %c0_18] : memref<1x256xf32, #tpu.memory_space<vmem>>, vector<1x256xf32>
      %26 = arith.addf %25, %13 : vector<1x256xf32>
      %c0_19 = arith.constant 0 : index
      %c0_20 = arith.constant 0 : index
      %27 = vector.load %arg6[%c0_19, %c0_20] : memref<1x256xf32, #tpu.memory_space<vmem>>, vector<1x256xf32>
      tpu.vector_store %arg6[%c0_19, %c0_20], %26 {strides = array<i32>} : memref<1x256xf32, #tpu.memory_space<vmem>>, vector<1x256xf32>,
    } else {
    }
    return
  }
  func.func @transform_0(%arg0: i32, %arg1: i32) -> (i32, i32, i32) {
    %c0_i32 = arith.constant 0 : i32
    %c0_i32_0 = arith.constant 0 : i32
    return %arg0, %arg1, %c0_i32 : i32, i32, i32
  }
  func.func @transform_1(%arg0: i32, %arg1: i32) -> (i32, i32, i32) {
    %c0_i32 = arith.constant 0 : i32
    %c0_i32_0 = arith.constant 0 : i32
    %c0_i32_1 = arith.constant 0 : i32
    return %arg0, %c0_i32, %c0_i32_0 : i32, i32, i32
  }
  func.func @transform_2(%arg0: i32, %arg1: i32) -> (i32, i32, i32) {
    %c0_i32 = arith.constant 0 : i32
    %c0_i32_0 = arith.constant 0 : i32
    return %arg0, %arg1, %c0_i32 : i32, i32, i32
  }
  func.func @transform_3(%arg0: i32, %arg1: i32) -> (i32, i32) {
    %c0_i32 = arith.constant 0 : i32
    %c0_i32_0 = arith.constant 0 : i32
    %c0_i32_1 = arith.constant 0 : i32
    return %c0_i32, %c0_i32_0 : i32, i32
  }
  func.func @transform_4(%arg0: i32, %arg1: i32) -> (i32, i32) {
    %c0_i32 = arith.constant 0 : i32
    %c0_i32_0 = arith.constant 0 : i32
    %c0_i32_1 = arith.constant 0 : i32
    return %c0_i32, %c0_i32_0 : i32, i32
  }
}

module attributes {stable_mosaic.version = 11 : i64} {
  func.func @_bn_apply_relu_kernel(%arg0: i32, %arg1: memref<128x256xbf16, #tpu.memory_space<vmem>>, %arg2: memref<1x256xf32, #tpu.memory_space<vmem>>, %arg3: memref<1x256xf32, #tpu.memory_space<vmem>>, %arg4: memref<128x256xbf16, #tpu.memory_space<vmem>>) attributes {dimension_semantics = [#tpu.dimension_semantics<parallel>], iteration_bounds = array<i64: 1>, scalar_prefetch = 0 : i64, scratch_operands = 0 : i64, tpu.core_type = #tpu.core_type<tc>, window_params = [{transform_indices = @transform_0, window_bounds = array<i64: 128, 256>}, {pipeline_mode = #tpu.pipeline_mode<synchronous>, transform_indices = @transform_1, window_bounds = array<i64: 1, 256>}, {pipeline_mode = #tpu.pipeline_mode<synchronous>, transform_indices = @transform_2, window_bounds = array<i64: 1, 256>}, {transform_indices = @transform_3, window_bounds = array<i64: 128, 256>}]} {
    %c0 = arith.constant 0 : index
    %c0_0 = arith.constant 0 : index
    %0 = vector.load %arg1[%c0, %c0_0] : memref<128x256xbf16, #tpu.memory_space<vmem>>, vector<128x256xbf16>
    %c0_1 = arith.constant 0 : index
    %c0_2 = arith.constant 0 : index
    %1 = vector.load %arg2[%c0_1, %c0_2] : memref<1x256xf32, #tpu.memory_space<vmem>>, vector<1x256xf32>
    %2 = arith.extf %0 : vector<128x256xbf16> to vector<128x256xf32>
    %3 = vector.broadcast %1 : vector<1x256xf32> to vector<128x256xf32>
    %4 = arith.mulf %2, %3 : vector<128x256xf32>
    %c0_3 = arith.constant 0 : index
    %c0_4 = arith.constant 0 : index
    %5 = vector.load %arg3[%c0_3, %c0_4] : memref<1x256xf32, #tpu.memory_space<vmem>>, vector<1x256xf32>
    %6 = vector.broadcast %5 : vector<1x256xf32> to vector<128x256xf32>
    %7 = arith.addf %4, %6 : vector<128x256xf32>
    %cst = arith.constant 0.000000e+00 : f32
    %8 = vector.broadcast %cst : f32 to vector<128x256xf32>
    %9 = arith.maximumf %7, %8 : vector<128x256xf32>
    %10 = arith.truncf %9 : vector<128x256xf32> to vector<128x256xbf16>
    %c0_5 = arith.constant 0 : index
    %c0_6 = arith.constant 0 : index
    %11 = vector.load %arg4[%c0_5, %c0_6] : memref<128x256xbf16, #tpu.memory_space<vmem>>, vector<128x256xbf16>
    tpu.vector_store %arg4[%c0_5, %c0_6], %10 {strides = array<i32>} : memref<128x256xbf16, #tpu.memory_space<vmem>>, vector<128x256xbf16>,
    return
  }
  func.func @transform_0(%arg0: i32) -> (i32, i32) {
    %c0_i32 = arith.constant 0 : i32
    %c0_i32_0 = arith.constant 0 : i32
    return %arg0, %c0_i32 : i32, i32
  }
  func.func @transform_1(%arg0: i32) -> (i32, i32) {
    %c0_i32 = arith.constant 0 : i32
    %c0_i32_0 = arith.constant 0 : i32
    %c0_i32_1 = arith.constant 0 : i32
    return %c0_i32, %c0_i32_0 : i32, i32
  }
  func.func @transform_2(%arg0: i32) -> (i32, i32) {
    %c0_i32 = arith.constant 0 : i32
    %c0_i32_0 = arith.constant 0 : i32
    %c0_i32_1 = arith.constant 0 : i32
    return %c0_i32, %c0_i32_0 : i32, i32
  }
  func.func @transform_3(%arg0: i32) -> (i32, i32) {
    %c0_i32 = arith.constant 0 : i32
    %c0_i32_0 = arith.constant 0 : i32
    return %arg0, %c0_i32 : i32, i32
  }
}

module attributes {stable_mosaic.version = 11 : i64} {
  func.func @_gmm_stats_kernel(%arg0: i32, %arg1: i32, %arg2: memref<1x128x1024xbf16, #tpu.memory_space<vmem>>, %arg3: memref<1x1024x128xbf16, #tpu.memory_space<vmem>>, %arg4: memref<1x128x128xbf16, #tpu.memory_space<vmem>>, %arg5: memref<1x128xf32, #tpu.memory_space<vmem>>, %arg6: memref<1x128xf32, #tpu.memory_space<vmem>>) attributes {dimension_semantics = [#tpu.dimension_semantics<arbitrary>, #tpu.dimension_semantics<arbitrary>], iteration_bounds = array<i64: 4, 1>, scalar_prefetch = 0 : i64, scratch_operands = 0 : i64, tpu.core_type = #tpu.core_type<tc>, window_params = [{transform_indices = @transform_0, window_bounds = array<i64: 1, 128, 1024>}, {transform_indices = @transform_1, window_bounds = array<i64: 1, 1024, 128>}, {transform_indices = @transform_2, window_bounds = array<i64: 1, 128, 128>}, {pipeline_mode = #tpu.pipeline_mode<synchronous>, transform_indices = @transform_3, window_bounds = array<i64: 1, 128>}, {pipeline_mode = #tpu.pipeline_mode<synchronous>, transform_indices = @transform_4, window_bounds = array<i64: 1, 128>}]} {
    %c0 = arith.constant 0 : index
    %c0_0 = arith.constant 0 : index
    %c0_1 = arith.constant 0 : index
    %0 = vector.load %arg2[%c0, %c0_0, %c0_1] : memref<1x128x1024xbf16, #tpu.memory_space<vmem>>, vector<1x128x1024xbf16>
    %1 = vector.shape_cast %0 : vector<1x128x1024xbf16> to vector<128x1024xbf16>
    %c0_2 = arith.constant 0 : index
    %c0_3 = arith.constant 0 : index
    %c0_4 = arith.constant 0 : index
    %2 = vector.load %arg3[%c0_2, %c0_3, %c0_4] : memref<1x1024x128xbf16, #tpu.memory_space<vmem>>, vector<1x1024x128xbf16>
    %3 = vector.shape_cast %2 : vector<1x1024x128xbf16> to vector<1024x128xbf16>
    %cst = arith.constant dense<0.000000e+00> : vector<128x128xf32>
    %4 = tpu.matmul %1, %3, %cst {dimension_numbers = #tpu.dot_dimension_numbers<[1], [0], [0], [1], [0, 0, 1, 1], [], []>} : vector<128x1024xbf16>, vector<1024x128xbf16>, vector<128x128xf32> -> vector<128x128xf32>
    %5 = arith.truncf %4 : vector<128x128xf32> to vector<128x128xbf16>
    %c0_5 = arith.constant 0 : index
    %c0_6 = arith.constant 0 : index
    %c0_7 = arith.constant 0 : index
    %6 = vector.load %arg4[%c0_5, %c0_6, %c0_7] : memref<1x128x128xbf16, #tpu.memory_space<vmem>>, vector<1x128x128xbf16>
    %7 = vector.shape_cast %6 : vector<1x128x128xbf16> to vector<128x128xbf16>
    %8 = vector.shape_cast %5 : vector<128x128xbf16> to vector<1x128x128xbf16>
    tpu.vector_store %arg4[%c0_5, %c0_6, %c0_7], %8 {strides = array<i32>} : memref<1x128x128xbf16, #tpu.memory_space<vmem>>, vector<1x128x128xbf16>,
    %cst_8 = arith.constant dense<0.000000e+00> : vector<128xf32>
    %9 = vector.multi_reduction <add>, %4, %cst_8 [0] : vector<128x128xf32> to vector<128xf32>
    %10 = vector.shape_cast %9 : vector<128xf32> to vector<1x128xf32>
    %11 = arith.mulf %4, %4 : vector<128x128xf32>
    %cst_9 = arith.constant dense<0.000000e+00> : vector<128xf32>
    %12 = vector.multi_reduction <add>, %11, %cst_9 [0] : vector<128x128xf32> to vector<128xf32>
    %13 = vector.shape_cast %12 : vector<128xf32> to vector<1x128xf32>
    %c0_i32 = arith.constant 0 : i32
    %14 = arith.cmpi eq, %arg0, %c0_i32 : i32
    %c0_i32_10 = arith.constant 0 : i32
    %15 = arith.cmpi eq, %arg1, %c0_i32_10 : i32
    %16 = arith.andi %14, %15 : i1
    %17 = arith.extui %16 : i1 to i32
    %c0_i32_11 = arith.constant 0 : i32
    %18 = arith.cmpi ne, %17, %c0_i32_11 : i32
    scf.if %18 {
      %c0_13 = arith.constant 0 : index
      %c0_14 = arith.constant 0 : index
      %22 = vector.load %arg5[%c0_13, %c0_14] : memref<1x128xf32, #tpu.memory_space<vmem>>, vector<1x128xf32>
      tpu.vector_store %arg5[%c0_13, %c0_14], %10 {strides = array<i32>} : memref<1x128xf32, #tpu.memory_space<vmem>>, vector<1x128xf32>,
      %c0_15 = arith.constant 0 : index
      %c0_16 = arith.constant 0 : index
      %23 = vector.load %arg6[%c0_15, %c0_16] : memref<1x128xf32, #tpu.memory_space<vmem>>, vector<1x128xf32>
      tpu.vector_store %arg6[%c0_15, %c0_16], %13 {strides = array<i32>} : memref<1x128xf32, #tpu.memory_space<vmem>>, vector<1x128xf32>,
    } else {
    }
    %true = arith.constant true
    %19 = arith.xori %16, %true : i1
    %20 = arith.extui %19 : i1 to i32
    %c0_i32_12 = arith.constant 0 : i32
    %21 = arith.cmpi ne, %20, %c0_i32_12 : i32
    scf.if %21 {
      %c0_13 = arith.constant 0 : index
      %c0_14 = arith.constant 0 : index
      %22 = vector.load %arg5[%c0_13, %c0_14] : memref<1x128xf32, #tpu.memory_space<vmem>>, vector<1x128xf32>
      %23 = arith.addf %22, %10 : vector<1x128xf32>
      %c0_15 = arith.constant 0 : index
      %c0_16 = arith.constant 0 : index
      %24 = vector.load %arg5[%c0_15, %c0_16] : memref<1x128xf32, #tpu.memory_space<vmem>>, vector<1x128xf32>
      tpu.vector_store %arg5[%c0_15, %c0_16], %23 {strides = array<i32>} : memref<1x128xf32, #tpu.memory_space<vmem>>, vector<1x128xf32>,
      %c0_17 = arith.constant 0 : index
      %c0_18 = arith.constant 0 : index
      %25 = vector.load %arg6[%c0_17, %c0_18] : memref<1x128xf32, #tpu.memory_space<vmem>>, vector<1x128xf32>
      %26 = arith.addf %25, %13 : vector<1x128xf32>
      %c0_19 = arith.constant 0 : index
      %c0_20 = arith.constant 0 : index
      %27 = vector.load %arg6[%c0_19, %c0_20] : memref<1x128xf32, #tpu.memory_space<vmem>>, vector<1x128xf32>
      tpu.vector_store %arg6[%c0_19, %c0_20], %26 {strides = array<i32>} : memref<1x128xf32, #tpu.memory_space<vmem>>, vector<1x128xf32>,
    } else {
    }
    return
  }
  func.func @transform_0(%arg0: i32, %arg1: i32) -> (i32, i32, i32) {
    %c0_i32 = arith.constant 0 : i32
    %c0_i32_0 = arith.constant 0 : i32
    return %arg0, %arg1, %c0_i32 : i32, i32, i32
  }
  func.func @transform_1(%arg0: i32, %arg1: i32) -> (i32, i32, i32) {
    %c0_i32 = arith.constant 0 : i32
    %c0_i32_0 = arith.constant 0 : i32
    %c0_i32_1 = arith.constant 0 : i32
    return %arg0, %c0_i32, %c0_i32_0 : i32, i32, i32
  }
  func.func @transform_2(%arg0: i32, %arg1: i32) -> (i32, i32, i32) {
    %c0_i32 = arith.constant 0 : i32
    %c0_i32_0 = arith.constant 0 : i32
    return %arg0, %arg1, %c0_i32 : i32, i32, i32
  }
  func.func @transform_3(%arg0: i32, %arg1: i32) -> (i32, i32) {
    %c0_i32 = arith.constant 0 : i32
    %c0_i32_0 = arith.constant 0 : i32
    %c0_i32_1 = arith.constant 0 : i32
    return %c0_i32, %c0_i32_0 : i32, i32
  }
  func.func @transform_4(%arg0: i32, %arg1: i32) -> (i32, i32) {
    %c0_i32 = arith.constant 0 : i32
    %c0_i32_0 = arith.constant 0 : i32
    %c0_i32_1 = arith.constant 0 : i32
    return %c0_i32, %c0_i32_0 : i32, i32
  }
}

module attributes {stable_mosaic.version = 11 : i64} {
  func.func @_bn_apply_relu_kernel(%arg0: i32, %arg1: memref<512x128xbf16, #tpu.memory_space<vmem>>, %arg2: memref<1x128xf32, #tpu.memory_space<vmem>>, %arg3: memref<1x128xf32, #tpu.memory_space<vmem>>, %arg4: memref<512x128xbf16, #tpu.memory_space<vmem>>) attributes {dimension_semantics = [#tpu.dimension_semantics<parallel>], iteration_bounds = array<i64: 1>, scalar_prefetch = 0 : i64, scratch_operands = 0 : i64, tpu.core_type = #tpu.core_type<tc>, window_params = [{transform_indices = @transform_0, window_bounds = array<i64: 512, 128>}, {pipeline_mode = #tpu.pipeline_mode<synchronous>, transform_indices = @transform_1, window_bounds = array<i64: 1, 128>}, {pipeline_mode = #tpu.pipeline_mode<synchronous>, transform_indices = @transform_2, window_bounds = array<i64: 1, 128>}, {transform_indices = @transform_3, window_bounds = array<i64: 512, 128>}]} {
    %c0 = arith.constant 0 : index
    %c0_0 = arith.constant 0 : index
    %0 = vector.load %arg1[%c0, %c0_0] : memref<512x128xbf16, #tpu.memory_space<vmem>>, vector<512x128xbf16>
    %c0_1 = arith.constant 0 : index
    %c0_2 = arith.constant 0 : index
    %1 = vector.load %arg2[%c0_1, %c0_2] : memref<1x128xf32, #tpu.memory_space<vmem>>, vector<1x128xf32>
    %2 = arith.extf %0 : vector<512x128xbf16> to vector<512x128xf32>
    %3 = vector.broadcast %1 : vector<1x128xf32> to vector<512x128xf32>
    %4 = arith.mulf %2, %3 : vector<512x128xf32>
    %c0_3 = arith.constant 0 : index
    %c0_4 = arith.constant 0 : index
    %5 = vector.load %arg3[%c0_3, %c0_4] : memref<1x128xf32, #tpu.memory_space<vmem>>, vector<1x128xf32>
    %6 = vector.broadcast %5 : vector<1x128xf32> to vector<512x128xf32>
    %7 = arith.addf %4, %6 : vector<512x128xf32>
    %cst = arith.constant 0.000000e+00 : f32
    %8 = vector.broadcast %cst : f32 to vector<512x128xf32>
    %9 = arith.maximumf %7, %8 : vector<512x128xf32>
    %10 = arith.truncf %9 : vector<512x128xf32> to vector<512x128xbf16>
    %c0_5 = arith.constant 0 : index
    %c0_6 = arith.constant 0 : index
    %11 = vector.load %arg4[%c0_5, %c0_6] : memref<512x128xbf16, #tpu.memory_space<vmem>>, vector<512x128xbf16>
    tpu.vector_store %arg4[%c0_5, %c0_6], %10 {strides = array<i32>} : memref<512x128xbf16, #tpu.memory_space<vmem>>, vector<512x128xbf16>,
    return
  }
  func.func @transform_0(%arg0: i32) -> (i32, i32) {
    %c0_i32 = arith.constant 0 : i32
    %c0_i32_0 = arith.constant 0 : i32
    return %arg0, %c0_i32 : i32, i32
  }
  func.func @transform_1(%arg0: i32) -> (i32, i32) {
    %c0_i32 = arith.constant 0 : i32
    %c0_i32_0 = arith.constant 0 : i32
    %c0_i32_1 = arith.constant 0 : i32
    return %c0_i32, %c0_i32_0 : i32, i32
  }
  func.func @transform_2(%arg0: i32) -> (i32, i32) {
    %c0_i32 = arith.constant 0 : i32
    %c0_i32_0 = arith.constant 0 : i32
    %c0_i32_1 = arith.constant 0 : i32
    return %c0_i32, %c0_i32_0 : i32, i32
  }
  func.func @transform_3(%arg0: i32) -> (i32, i32) {
    %c0_i32 = arith.constant 0 : i32
    %c0_i32_0 = arith.constant 0 : i32
    return %arg0, %c0_i32 : i32, i32
  }
}

module attributes {stable_mosaic.version = 11 : i64} {
  func.func @_gmm_stats_kernel(%arg0: i32, %arg1: i32, %arg2: memref<1x512x512xbf16, #tpu.memory_space<vmem>>, %arg3: memref<1x512x128xbf16, #tpu.memory_space<vmem>>, %arg4: memref<1x512x128xbf16, #tpu.memory_space<vmem>>, %arg5: memref<1x128xf32, #tpu.memory_space<vmem>>, %arg6: memref<1x128xf32, #tpu.memory_space<vmem>>) attributes {dimension_semantics = [#tpu.dimension_semantics<arbitrary>, #tpu.dimension_semantics<arbitrary>], iteration_bounds = array<i64: 4, 1>, scalar_prefetch = 0 : i64, scratch_operands = 0 : i64, tpu.core_type = #tpu.core_type<tc>, window_params = [{transform_indices = @transform_0, window_bounds = array<i64: 1, 512, 512>}, {transform_indices = @transform_1, window_bounds = array<i64: 1, 512, 128>}, {transform_indices = @transform_2, window_bounds = array<i64: 1, 512, 128>}, {pipeline_mode = #tpu.pipeline_mode<synchronous>, transform_indices = @transform_3, window_bounds = array<i64: 1, 128>}, {pipeline_mode = #tpu.pipeline_mode<synchronous>, transform_indices = @transform_4, window_bounds = array<i64: 1, 128>}]} {
    %c0 = arith.constant 0 : index
    %c0_0 = arith.constant 0 : index
    %c0_1 = arith.constant 0 : index
    %0 = vector.load %arg2[%c0, %c0_0, %c0_1] : memref<1x512x512xbf16, #tpu.memory_space<vmem>>, vector<1x512x512xbf16>
    %1 = vector.shape_cast %0 : vector<1x512x512xbf16> to vector<512x512xbf16>
    %c0_2 = arith.constant 0 : index
    %c0_3 = arith.constant 0 : index
    %c0_4 = arith.constant 0 : index
    %2 = vector.load %arg3[%c0_2, %c0_3, %c0_4] : memref<1x512x128xbf16, #tpu.memory_space<vmem>>, vector<1x512x128xbf16>
    %3 = vector.shape_cast %2 : vector<1x512x128xbf16> to vector<512x128xbf16>
    %cst = arith.constant dense<0.000000e+00> : vector<512x128xf32>
    %4 = tpu.matmul %1, %3, %cst {dimension_numbers = #tpu.dot_dimension_numbers<[1], [0], [0], [1], [0, 0, 1, 1], [], []>} : vector<512x512xbf16>, vector<512x128xbf16>, vector<512x128xf32> -> vector<512x128xf32>
    %5 = arith.truncf %4 : vector<512x128xf32> to vector<512x128xbf16>
    %c0_5 = arith.constant 0 : index
    %c0_6 = arith.constant 0 : index
    %c0_7 = arith.constant 0 : index
    %6 = vector.load %arg4[%c0_5, %c0_6, %c0_7] : memref<1x512x128xbf16, #tpu.memory_space<vmem>>, vector<1x512x128xbf16>
    %7 = vector.shape_cast %6 : vector<1x512x128xbf16> to vector<512x128xbf16>
    %8 = vector.shape_cast %5 : vector<512x128xbf16> to vector<1x512x128xbf16>
    tpu.vector_store %arg4[%c0_5, %c0_6, %c0_7], %8 {strides = array<i32>} : memref<1x512x128xbf16, #tpu.memory_space<vmem>>, vector<1x512x128xbf16>,
    %cst_8 = arith.constant dense<0.000000e+00> : vector<128xf32>
    %9 = vector.multi_reduction <add>, %4, %cst_8 [0] : vector<512x128xf32> to vector<128xf32>
    %10 = vector.shape_cast %9 : vector<128xf32> to vector<1x128xf32>
    %11 = arith.mulf %4, %4 : vector<512x128xf32>
    %cst_9 = arith.constant dense<0.000000e+00> : vector<128xf32>
    %12 = vector.multi_reduction <add>, %11, %cst_9 [0] : vector<512x128xf32> to vector<128xf32>
    %13 = vector.shape_cast %12 : vector<128xf32> to vector<1x128xf32>
    %c0_i32 = arith.constant 0 : i32
    %14 = arith.cmpi eq, %arg0, %c0_i32 : i32
    %c0_i32_10 = arith.constant 0 : i32
    %15 = arith.cmpi eq, %arg1, %c0_i32_10 : i32
    %16 = arith.andi %14, %15 : i1
    %17 = arith.extui %16 : i1 to i32
    %c0_i32_11 = arith.constant 0 : i32
    %18 = arith.cmpi ne, %17, %c0_i32_11 : i32
    scf.if %18 {
      %c0_13 = arith.constant 0 : index
      %c0_14 = arith.constant 0 : index
      %22 = vector.load %arg5[%c0_13, %c0_14] : memref<1x128xf32, #tpu.memory_space<vmem>>, vector<1x128xf32>
      tpu.vector_store %arg5[%c0_13, %c0_14], %10 {strides = array<i32>} : memref<1x128xf32, #tpu.memory_space<vmem>>, vector<1x128xf32>,
      %c0_15 = arith.constant 0 : index
      %c0_16 = arith.constant 0 : index
      %23 = vector.load %arg6[%c0_15, %c0_16] : memref<1x128xf32, #tpu.memory_space<vmem>>, vector<1x128xf32>
      tpu.vector_store %arg6[%c0_15, %c0_16], %13 {strides = array<i32>} : memref<1x128xf32, #tpu.memory_space<vmem>>, vector<1x128xf32>,
    } else {
    }
    %true = arith.constant true
    %19 = arith.xori %16, %true : i1
    %20 = arith.extui %19 : i1 to i32
    %c0_i32_12 = arith.constant 0 : i32
    %21 = arith.cmpi ne, %20, %c0_i32_12 : i32
    scf.if %21 {
      %c0_13 = arith.constant 0 : index
      %c0_14 = arith.constant 0 : index
      %22 = vector.load %arg5[%c0_13, %c0_14] : memref<1x128xf32, #tpu.memory_space<vmem>>, vector<1x128xf32>
      %23 = arith.addf %22, %10 : vector<1x128xf32>
      %c0_15 = arith.constant 0 : index
      %c0_16 = arith.constant 0 : index
      %24 = vector.load %arg5[%c0_15, %c0_16] : memref<1x128xf32, #tpu.memory_space<vmem>>, vector<1x128xf32>
      tpu.vector_store %arg5[%c0_15, %c0_16], %23 {strides = array<i32>} : memref<1x128xf32, #tpu.memory_space<vmem>>, vector<1x128xf32>,
      %c0_17 = arith.constant 0 : index
      %c0_18 = arith.constant 0 : index
      %25 = vector.load %arg6[%c0_17, %c0_18] : memref<1x128xf32, #tpu.memory_space<vmem>>, vector<1x128xf32>
      %26 = arith.addf %25, %13 : vector<1x128xf32>
      %c0_19 = arith.constant 0 : index
      %c0_20 = arith.constant 0 : index
      %27 = vector.load %arg6[%c0_19, %c0_20] : memref<1x128xf32, #tpu.memory_space<vmem>>, vector<1x128xf32>
      tpu.vector_store %arg6[%c0_19, %c0_20], %26 {strides = array<i32>} : memref<1x128xf32, #tpu.memory_space<vmem>>, vector<1x128xf32>,
    } else {
    }
    return
  }
  func.func @transform_0(%arg0: i32, %arg1: i32) -> (i32, i32, i32) {
    %c0_i32 = arith.constant 0 : i32
    %c0_i32_0 = arith.constant 0 : i32
    return %arg0, %arg1, %c0_i32 : i32, i32, i32
  }
  func.func @transform_1(%arg0: i32, %arg1: i32) -> (i32, i32, i32) {
    %c0_i32 = arith.constant 0 : i32
    %c0_i32_0 = arith.constant 0 : i32
    %c0_i32_1 = arith.constant 0 : i32
    return %arg0, %c0_i32, %c0_i32_0 : i32, i32, i32
  }
  func.func @transform_2(%arg0: i32, %arg1: i32) -> (i32, i32, i32) {
    %c0_i32 = arith.constant 0 : i32
    %c0_i32_0 = arith.constant 0 : i32
    return %arg0, %arg1, %c0_i32 : i32, i32, i32
  }
  func.func @transform_3(%arg0: i32, %arg1: i32) -> (i32, i32) {
    %c0_i32 = arith.constant 0 : i32
    %c0_i32_0 = arith.constant 0 : i32
    %c0_i32_1 = arith.constant 0 : i32
    return %c0_i32, %c0_i32_0 : i32, i32
  }
  func.func @transform_4(%arg0: i32, %arg1: i32) -> (i32, i32) {
    %c0_i32 = arith.constant 0 : i32
    %c0_i32_0 = arith.constant 0 : i32
    %c0_i32_1 = arith.constant 0 : i32
    return %c0_i32, %c0_i32_0 : i32, i32
  }
}

module attributes {stable_mosaic.version = 11 : i64} {
  func.func @_bn_relu_proj_tanh_kernel(%arg0: i32, %arg1: memref<1024x128xbf16, #tpu.memory_space<vmem>>, %arg2: memref<1x128xf32, #tpu.memory_space<vmem>>, %arg3: memref<1x128xf32, #tpu.memory_space<vmem>>, %arg4: memref<1x128xf32, #tpu.memory_space<vmem>>, %arg5: memref<1024x1xf32, #tpu.memory_space<vmem>>) attributes {dimension_semantics = [#tpu.dimension_semantics<parallel>], iteration_bounds = array<i64: 2>, scalar_prefetch = 0 : i64, scratch_operands = 0 : i64, tpu.core_type = #tpu.core_type<tc>, window_params = [{transform_indices = @transform_0, window_bounds = array<i64: 1024, 128>}, {pipeline_mode = #tpu.pipeline_mode<synchronous>, transform_indices = @transform_1, window_bounds = array<i64: 1, 128>}, {pipeline_mode = #tpu.pipeline_mode<synchronous>, transform_indices = @transform_2, window_bounds = array<i64: 1, 128>}, {pipeline_mode = #tpu.pipeline_mode<synchronous>, transform_indices = @transform_3, window_bounds = array<i64: 1, 128>}, {transform_indices = @transform_4, window_bounds = array<i64: 1024, 1>}]} {
    %c0 = arith.constant 0 : index
    %c0_0 = arith.constant 0 : index
    %0 = vector.load %arg1[%c0, %c0_0] : memref<1024x128xbf16, #tpu.memory_space<vmem>>, vector<1024x128xbf16>
    %c0_1 = arith.constant 0 : index
    %c0_2 = arith.constant 0 : index
    %1 = vector.load %arg2[%c0_1, %c0_2] : memref<1x128xf32, #tpu.memory_space<vmem>>, vector<1x128xf32>
    %2 = arith.extf %0 : vector<1024x128xbf16> to vector<1024x128xf32>
    %3 = vector.broadcast %1 : vector<1x128xf32> to vector<1024x128xf32>
    %4 = arith.mulf %2, %3 : vector<1024x128xf32>
    %c0_3 = arith.constant 0 : index
    %c0_4 = arith.constant 0 : index
    %5 = vector.load %arg3[%c0_3, %c0_4] : memref<1x128xf32, #tpu.memory_space<vmem>>, vector<1x128xf32>
    %6 = vector.broadcast %5 : vector<1x128xf32> to vector<1024x128xf32>
    %7 = arith.addf %4, %6 : vector<1024x128xf32>
    %cst = arith.constant 0.000000e+00 : f32
    %8 = vector.broadcast %cst : f32 to vector<1024x128xf32>
    %9 = arith.maximumf %7, %8 : vector<1024x128xf32>
    %c0_5 = arith.constant 0 : index
    %c0_6 = arith.constant 0 : index
    %10 = vector.load %arg4[%c0_5, %c0_6] : memref<1x128xf32, #tpu.memory_space<vmem>>, vector<1x128xf32>
    %11 = vector.broadcast %10 : vector<1x128xf32> to vector<1024x128xf32>
    %12 = arith.mulf %9, %11 : vector<1024x128xf32>
    %cst_7 = arith.constant dense<0.000000e+00> : vector<1024xf32>
    %13 = vector.multi_reduction <add>, %12, %cst_7 [1] : vector<1024x128xf32> to vector<1024xf32>
    %14 = vector.shape_cast %13 : vector<1024xf32> to vector<1024x1xf32>
    %15 = math.tanh %14 : vector<1024x1xf32>
    %c0_8 = arith.constant 0 : index
    %c0_9 = arith.constant 0 : index
    %16 = vector.load %arg5[%c0_8, %c0_9] : memref<1024x1xf32, #tpu.memory_space<vmem>>, vector<1024x1xf32>
    tpu.vector_store %arg5[%c0_8, %c0_9], %15 {strides = array<i32>} : memref<1024x1xf32, #tpu.memory_space<vmem>>, vector<1024x1xf32>,
    return
  }
  func.func @transform_0(%arg0: i32) -> (i32, i32) {
    %c0_i32 = arith.constant 0 : i32
    %c0_i32_0 = arith.constant 0 : i32
    return %arg0, %c0_i32 : i32, i32
  }
  func.func @transform_1(%arg0: i32) -> (i32, i32) {
    %c0_i32 = arith.constant 0 : i32
    %c0_i32_0 = arith.constant 0 : i32
    %c0_i32_1 = arith.constant 0 : i32
    return %c0_i32, %c0_i32_0 : i32, i32
  }
  func.func @transform_2(%arg0: i32) -> (i32, i32) {
    %c0_i32 = arith.constant 0 : i32
    %c0_i32_0 = arith.constant 0 : i32
    %c0_i32_1 = arith.constant 0 : i32
    return %c0_i32, %c0_i32_0 : i32, i32
  }
  func.func @transform_3(%arg0: i32) -> (i32, i32) {
    %c0_i32 = arith.constant 0 : i32
    %c0_i32_0 = arith.constant 0 : i32
    %c0_i32_1 = arith.constant 0 : i32
    return %c0_i32, %c0_i32_0 : i32, i32
  }
  func.func @transform_4(%arg0: i32) -> (i32, i32) {
    %c0_i32 = arith.constant 0 : i32
    %c0_i32_0 = arith.constant 0 : i32
    return %arg0, %c0_i32 : i32, i32
  }
}

</mosaic_0001>

<bundles_post_ra>
// kernel: generator_forward.8
= control target key start
LH: loop header
LB: loop body
LE: loop exit
PB: predicated region body
PF: predicated region fallthrough
CT: control target
= control target key end

     0   :  { %s986_s15 = smov 0   ;;  %s988_s16 = smov 0   ;;  %s1112_s0 = inlined_call_operand.vmem [shape: bf16[1,2,100], index: 0, kind: input, shape index: {}]   ;;  %s1113_s1 = inlined_call_operand.vmem [shape: bf16[16,100,512], index: 1, kind: input, shape index: {}]   ;;  %s1114_s2 = inlined_call_operand.vmem [shape: bf16[16,2,512], index: 2, kind: output, shape index: {0}]   ;;  %s1115_s3 = inlined_call_operand.vmem [shape: f32[1,512], index: 3, kind: output, shape index: {1}]   ;;  %s1116_s4 = inlined_call_operand.vmem [shape: f32[1,512], index: 4, kind: output, shape index: {2}]  }
   0x1   :  { %s990_s17 = smov 0  }
   0x2 LB: > { %s27_s18 = sadd.s32 1, %s953_s16  ;;  %p826_p0 = scmp.ge.s32.totalorder %s957_s17, 1  ;;  %s957_s17 = sphi %s990_s17, %s15_s17   ;;  %s953_s16 = sphi %s988_s16, %s1118_s16   ;;  %s949_s15 = sphi %s986_s15, %s1117_s15  }
   0x3   : > { %p29_p1 = scmp.ge.s32.totalorder %s27_s18, 16  ;;  %p179_p2 = scmp.lt.s32.totalorder %s957_s17, 17 }
   0x5   : > { %s1120_s18 = smov (%p29_p1, %s27_s18), 0  ;;  %p180_p3 = pnand %p826_p0, %p179_p2 }
   0x6   : > { %p214_p4 = scmp.lt.s32.totalorder (!%p180_p3), %s949_s15, 15  ;;  %p578_p5 = scmp.eq.s32.totalorder (!%p180_p3), %s949_s15, 0 }
   0x7   : > { %183 = sbr.rel (%p180_p3) target bundleno = 291 (0x123), region = 28 }
   0xc   : > { %v959_v0 = vmov 0   ;;  %s1008_s19 = scalar_select %p214_p4, %s949_s15, 15  ;;  %vm389_vm0 = vcmask 1041408   ;;  %v228_v33 = vld [vmem:[%s1112_s0] sm:$0x1]  ;;  %vm385_vm1 = vcmask 818176   ;;  %v497_v36 = vlaneseq }
   0xd   : > { %434 = vmatprep.mubr.bf16.mxu0 %v959_v0  ;;  %475 = vmatprep.mubr.bf16.mxu1 %v959_v0  ;;  %v960_v34 = vmov 1966171168  }
   0xe   : > { %s868_s20 = smul.u32 208, %s1008_s19  ;;  %v495_v35 = vunpack.c.l.s4 %v960_v34  ;;  %v498_v38 = vshrl.u32 %v497_v36, 7  ;;  %s828_s26 = sshll.u32 %s1008_s19, 2  ;;  %vm615_vm2 = vcmp.lt.s32.totalorder (%p578_p5), %v497_v36, 512 }
   0xf   : > { %s226_s29 = scalar_lea.vmem %s1114_s2, %s828_s26 }
  0x10   : > { %s1014_s23 = scalar_lea.vmem %s1113_s1, %s868_s20  ;;  %v496_v37 = vunpack.c.0.s8 %v495_v35 }
  0x11   : > { %v253_v1 = vld [vmem:[%s1014_s23 + $0xc0] sm:$0x33]  ;;  %v254_v2 = vld [vmem:[%s1014_s23 + $0xc8] sm:$0x33] }
  0x12   : > { %v854_v3 = vcombine.high %v253_v1, %v253_v1  ;;  %v856_v4 = vcombine.high %v254_v2, %v254_v2  ;;  %v853_v5 = vcombine.low %v253_v1, %v253_v1  ;;  %v855_v6 = vcombine.low %v254_v2, %v254_v2  ;;  %v899_v7 = vld [vmem:[%s1014_s23 + $0xa4] ss:$16 sps:$4 sm:$0xff]   ;;  %v901_v8 = vld [vmem:[%s1014_s23 + $0xac] ss:$16 sps:$4 sm:$0xff]   ;;  %v903_v11 = vld [vmem:[%s1014_s23 + $0xa0] ss:$16 sps:$4 sm:$0xff]  }
  0x13   : > { %v904_v12 = vld [vmem:[%s1014_s23 + $0xa8] ss:$16 sps:$4 sm:$0xff]   ;;  %v905_v13 = vld [vmem:[%s1014_s23 + $0x84] ss:$16 sps:$4 sm:$0xff]   ;;  %v907_v14 = vld [vmem:[%s1014_s23 + $0x8c] ss:$16 sps:$4 sm:$0xff]   ;;  %v1051_v41 = vsub.s32 %v496_v37, %v498_v38 }
  0x14   : > { %857 = vmatprep.subr.msk.bf16.mxu0 %vm389_vm0, %v854_v3  ;;  %859 = vmatprep.subr.msk.bf16.mxu1 %vm389_vm0, %v856_v4  ;;  %v391_v9 = vsel %vm389_vm0, %v853_v5, 0  ;;  %v397_v10 = vsel %vm389_vm0, %v855_v6, 0  ;;  %v909_v15 = vld [vmem:[%s1014_s23 + $0x80] ss:$16 sps:$4 sm:$0xff]   ;;  %v910_v16 = vld [vmem:[%s1014_s23 + $0x88] ss:$16 sps:$4 sm:$0xff]  }
  0x15   : > { %405 = vmatpush1.bf16.msra.mxu0 %v391_v9  ;;  %446 = vmatpush1.bf16.msra.mxu1 %v397_v10  ;;  %v911_v17 = vld [vmem:[%s1014_s23 + $0x64] ss:$16 sps:$4 sm:$0xff]   ;;  %v913_v18 = vld [vmem:[%s1014_s23 + $0x6c] ss:$16 sps:$4 sm:$0xff]   ;;  %v915_v19 = vld [vmem:[%s1014_s23 + $0x60] ss:$16 sps:$4 sm:$0xff]  }
  0x16   : > { %406 = vmatprep.subr.bf16.mxu0 %v899_v7  ;;  %447 = vmatprep.subr.bf16.mxu1 %v901_v8  ;;  %v916_v20 = vld [vmem:[%s1014_s23 + $0x68] ss:$16 sps:$4 sm:$0xff]   ;;  %v917_v21 = vld [vmem:[%s1014_s23 + $0x44] ss:$16 sps:$4 sm:$0xff]   ;;  %v919_v22 = vld [vmem:[%s1014_s23 + $0x4c] ss:$16 sps:$4 sm:$0xff]  }
  0x17   : > { %v921_v23 = vld [vmem:[%s1014_s23 + $0x40] ss:$16 sps:$4 sm:$0xff]   ;;  %v922_v24 = vld [vmem:[%s1014_s23 + $0x48] ss:$16 sps:$4 sm:$0xff]   ;;  %v923_v25 = vld [vmem:[%s1014_s23 + $0x24] ss:$16 sps:$4 sm:$0xff]  }
  0x18   : > { %v925_v26 = vld [vmem:[%s1014_s23 + $0x2c] ss:$16 sps:$4 sm:$0xff]   ;;  %v927_v27 = vld [vmem:[%s1014_s23 + $0x20] ss:$16 sps:$4 sm:$0xff]   ;;  %v928_v28 = vld [vmem:[%s1014_s23 + $0x28] ss:$16 sps:$4 sm:$0xff]  }
  0x19   : > { %407 = vmatpush1.bf16.msra.mxu0 %v903_v11  ;;  %448 = vmatpush1.bf16.msra.mxu1 %v904_v12  ;;  %v929_v29 = vld [vmem:[%s1014_s23 + $0x4] ss:$16 sps:$4 sm:$0xff]   ;;  %v931_v30 = vld [vmem:[%s1014_s23 + $0xc] ss:$16 sps:$4 sm:$0xff]   ;;  %v933_v31 = vld [vmem:[%s1014_s23] ss:$16 sps:$4 sm:$0xff]  }
  0x1a   : > { %408 = vmatprep.subr.bf16.mxu0 %v905_v13  ;;  %449 = vmatprep.subr.bf16.mxu1 %v907_v14  ;;  %v934_v32 = vld [vmem:[%s1014_s23 + $0x8] ss:$16 sps:$4 sm:$0xff]  }
  0x1d   : > { %409 = vmatpush1.bf16.msra.mxu0 %v909_v15  ;;  %450 = vmatpush1.bf16.msra.mxu1 %v910_v16 }
  0x1e   : > { %410 = vmatprep.subr.bf16.mxu0 %v911_v17  ;;  %451 = vmatprep.subr.bf16.mxu1 %v913_v18 }
  0x21   : > { %411 = vmatpush1.bf16.msra.mxu0 %v915_v19  ;;  %452 = vmatpush1.bf16.msra.mxu1 %v916_v20 }
  0x22   : > { %412 = vmatprep.subr.bf16.mxu0 %v917_v21  ;;  %453 = vmatprep.subr.bf16.mxu1 %v919_v22 }
  0x25   : > { %413 = vmatpush1.bf16.msra.mxu0 %v921_v23  ;;  %454 = vmatpush1.bf16.msra.mxu1 %v922_v24 }
  0x26   : > { %414 = vmatprep.subr.bf16.mxu0 %v923_v25  ;;  %455 = vmatprep.subr.bf16.mxu1 %v925_v26 }
  0x29   : > { %415 = vmatpush1.bf16.msra.mxu0 %v927_v27  ;;  %456 = vmatpush1.bf16.msra.mxu1 %v928_v28 }
  0x2a   : > { %416 = vmatprep.subr.bf16.mxu0 %v929_v29  ;;  %457 = vmatprep.subr.bf16.mxu1 %v931_v30 }
  0x2d   : > { %417 = vmatpush1.bf16.msra.mxu0 %v933_v31  ;;  %458 = vmatpush1.bf16.msra.mxu1 %v934_v32 }
  0x30   : > { %858 = vmatmul.mubr.msk.bf16.vlgmr.msra.gmra.mxu0 %vm385_vm1, %v228_v33  ;;  %860 = vmatmul.mubr.msk.bf16.vlgmr.msra.gmra.mxu1 %vm385_vm1, %v228_v33 }
  0xf0   : > { %v436_v39 = vpop.f32.mrf.mxu0  ;;  %v477_v40 = vpop.f32.mrf.mxu1 }
  0xf1   : > { %v518_v42 = vsel %vm389_vm0, %v436_v39, 0.0  ;;  %v546_v43 = vmul.f32 %v436_v39, %v436_v39  ;;  %v532_v44 = vsel %vm389_vm0, %v477_v40, 0.0  ;;  %v548_v45 = vmul.f32 %v477_v40, %v477_v40 }
  0xf2   : > { %v519_v46 = vrot.slane %v518_v42, 4  ;;  %v533_v47 = vrot.slane %v532_v44, 4  ;;  %v438_v48 = vpop.f32.mrf.mxu0  ;;  %v479_v49 = vpop.f32.mrf.mxu1 }
  0xf3   : > { %v550_v50 = vsel %vm389_vm0, %v546_v43, 0.0  ;;  %v564_v51 = vsel %vm389_vm0, %v548_v45, 0.0  ;;  %v861_v52 = vpack.c.bf16 %v438_v48, %v436_v39  ;;  %v525_v53 = vsel %vm389_vm0, %v438_v48, 0.0 }
  0xf4   : > { %v520_v54 = vadd.f32 %v519_v46, %v518_v42  ;;  %v551_v55 = vrot.slane %v550_v50, 4  ;;  %v534_v56 = vadd.f32 %v533_v47, %v532_v44  ;;  %v565_v57 = vrot.slane %v564_v51, 4  ;;  %v440_v58 = vpop.f32.mrf.mxu0  ;;  %v481_v59 = vpop.f32.mrf.mxu1 }
  0xf5   : > { %v500_v60 = vrot.slane %v861_v52, %v1051_v41  ;;  %v526_v61 = vrot.slane %v525_v53, 4  ;;  %v547_v62 = vmul.f32 %v438_v48, %v438_v48  ;;  %v862_v63 = vpack.c.bf16 %v479_v49, %v477_v40 }
  0xf6   : > { %v521_v0 = vrot.slane %v520_v54, 2  ;;  %v552_v1 = vadd.f32 %v551_v55, %v550_v50  ;;  %v535_v2 = vrot.slane %v534_v56, 2  ;;  %v566_v3 = vadd.f32 %v565_v57, %v564_v51  ;;  %v441_v4 = vpop.f32.mrf.mxu0  ;;  %v482_v5 = vpop.f32.mrf.mxu1 }
  0xf7   : > { %v527_v6 = vadd.f32 %v526_v61, %v525_v53  ;;  %v557_v7 = vsel %vm389_vm0, %v547_v62, 0.0  ;;  %v507_v8 = vrot.slane %v862_v63, %v1051_v41  ;;  %v539_v9 = vsel %vm389_vm0, %v479_v49, 0.0 }
  0xf8   : > { %v522_v10 = vadd.f32 %v521_v0, %v520_v54  ;;  %v553_v11 = vrot.slane %v552_v1, 2  ;;  %v536_v12 = vadd.f32 %v535_v2, %v534_v56  ;;  %v567_v13 = vrot.slane %v566_v3, 2 }
  0xf9   : > { %v528_v14 = vrot.slane %v527_v6, 2  ;;  %v558_v15 = vrot.slane %v557_v7, 4  ;;  %v508_v16 = vcombine.low %v500_v60, %v507_v8  ;;  %v540_v17 = vrot.slane %v539_v9, 4 }
  0xfa   : > { %v523_v18 = vrot.slane %v522_v10, 1  ;;  %v554_v19 = vadd.f32 %v553_v11, %v552_v1  ;;  %v537_v20 = vrot.slane %v536_v12, 1  ;;  %v568_v21 = vadd.f32 %v567_v13, %v566_v3 }
  0xfb   : > { %v529_v22 = vadd.f32 %v528_v14, %v527_v6  ;;  %v559_v23 = vadd.f32 %v558_v15, %v557_v7  ;;  %863 = vst.sshfl [vmem:[%s226_s29] sm:$0x55 pattern:$0x73625140] %v508_v16  ;;  %v541_v24 = vadd.f32 %v540_v17, %v539_v9  ;;  %v549_v25 = vmul.f32 %v479_v49, %v479_v49 }
  0xfc   : > { %v524_v26 = vadd.f32 %v523_v18, %v522_v10  ;;  %v555_v27 = vrot.slane %v554_v19, 1  ;;  %v538_v28 = vadd.f32 %v537_v20, %v536_v12  ;;  %v569_v29 = vrot.slane %v568_v21, 1 }
  0xfd   : > { %v530_v30 = vrot.slane %v529_v22, 1  ;;  %v560_v31 = vrot.slane %v559_v23, 2  ;;  %v542_v32 = vrot.slane %v541_v24, 2  ;;  %v571_v33 = vsel %vm389_vm0, %v549_v25, 0.0 }
  0xfe   : > { %v556_v34 = vadd.f32 %v555_v27, %v554_v19  ;;  %v570_v35 = vadd.f32 %v569_v29, %v568_v21  ;;  %v572_v37 = vrot.slane %v571_v33, 4 }
  0xff   : > { %v531_v38 = vadd.f32 %v530_v30, %v529_v22  ;;  %v561_v39 = vadd.f32 %v560_v31, %v559_v23  ;;  %v543_v40 = vadd.f32 %v542_v32, %v541_v24 }
 0x100   : > { %v573_v42 = vadd.f32 %v572_v37, %v571_v33 }
 0x101   : > { %v562_v43 = vrot.slane %v561_v39, 1  ;;  %v544_v44 = vrot.slane %v543_v40, 1  ;;  %v588_v51 = vcombine.low (%p578_p5), %v524_v26, %v531_v38 }
 0x102   : > { %v574_v45 = vrot.slane %v573_v42, 2 }
 0x103   : > { %v563_v46 = vadd.f32 %v562_v43, %v561_v39  ;;  %v545_v47 = vadd.f32 %v544_v44, %v543_v40  ;;  %v596_v55 = vrot.slane (%p578_p5), %v588_v51, %v1051_v41 }
 0x104   : > { %v575_v48 = vadd.f32 %v574_v45, %v573_v42  ;;  %583 = sbr.rel (!%p578_p5) target bundleno = 275 (0x113), region = 32 }
 0x105   : > { %v589_v52 = vcombine.low (%p578_p5), %v538_v28, %v545_v47  ;;  %v622_v53 = vcombine.low (%p578_p5), %v556_v34, %v563_v46 }
 0x106   : > { %v576_v49 = vrot.slane %v575_v48, 1 }
 0x107   : > { %v603_v56 = vrot.slane (%p578_p5), %v589_v52, %v1051_v41  ;;  %v630_v57 = vrot.slane (%p578_p5), %v622_v53, %v1051_v41 }
 0x108   : > { %v577_v50 = vadd.f32 %v576_v49, %v575_v48 }
 0x109   : > { %v604_v59 = vcombine.low %v596_v55, %v603_v56 }
 0x10a   : > { %v623_v54 = vcombine.low %v570_v35, %v577_v50 }
 0x10b   : > { %v611_v61 = vrot.slane %v604_v59, %v1051_v41 }
 0x10c   : > { %v637_v58 = vrot.slane %v623_v54, %v1051_v41 }
 0x10d   : > { %617 = vst.msk [vmem:[%s1115_s3] sm:$0xf] %vm615_vm2, %v611_v61 }
 0x10e   : > { %v638_v60 = vcombine.low %v630_v57, %v637_v58 }
 0x110   : > { %v645_v62 = vrot.slane %v638_v60, %v1051_v41 }
 0x112   : > { %647 = vst.msk [vmem:[%s1116_s4] sm:$0xf] %vm615_vm2, %v645_v62 }
 0x113 PF: > { %650 = sbr.rel (%p578_p5) target bundleno = 291 (0x123), region = 36 }
 0x118   : > { %v656_v63 = vcombine.low %v524_v26, %v531_v38  ;;  %v657_v0 = vcombine.low %v538_v28, %v545_v47  ;;  %v692_v1 = vcombine.low %v556_v34, %v563_v46  ;;  %v693_v2 = vcombine.low %v570_v35, %v577_v50  ;;  %v651_v8 = vld [vmem:[%s1115_s3] sm:$0xf] }
 0x119   : > { %v687_v11 = vld [vmem:[%s1116_s4] sm:$0xf]  ;;  %vm684_vm3 = vcmp.lt.s32.totalorder %v497_v36, 512 }
 0x11a   : > { %v664_v3 = vrot.slane %v656_v63, %v1051_v41  ;;  %v671_v4 = vrot.slane %v657_v0, %v1051_v41  ;;  %v700_v5 = vrot.slane %v692_v1, %v1051_v41  ;;  %v707_v6 = vrot.slane %v693_v2, %v1051_v41 }
 0x11c   : > { %v672_v7 = vcombine.low %v664_v3, %v671_v4  ;;  %v708_v9 = vcombine.low %v700_v5, %v707_v6 }
 0x11e   : > { %v679_v10 = vrot.slane %v672_v7, %v1051_v41  ;;  %v715_v12 = vrot.slane %v708_v9, %v1051_v41 }
 0x120   : > { %v681_v13 = vadd.f32 %v679_v10, %v651_v8  ;;  %v717_v14 = vadd.f32 %v715_v12, %v687_v11 }
 0x122   : > { %686 = vst.msk [vmem:[%s1115_s3] sm:$0xf] %vm684_vm3, %v681_v13  ;;  %718 = vst.msk [vmem:[%s1116_s4] sm:$0xf] %vm684_vm3, %v717_v14 }
 0x123 PF: > { %s15_s17 = sadd.s32 1, %s957_s17   ;;  %s1117_s15 = smov %s953_s16 }
 0x124   : > { %p12_p6 = scmp.ge.s32.totalorder %s15_s17, 18   ;;  %s1118_s16 = smov %s1120_s18 }
 0x126   :  { %14 = sbr.rel (!%p12_p6) target bundleno = 2 (0x2), region = 85 }

// kernel: generator_forward.9
= control target key start
LH: loop header
LB: loop body
LE: loop exit
PB: predicated region body
PF: predicated region fallthrough
CT: control target
= control target key end

     0   :  { %v40_v0 = vlaneseq  ;;  %s304_s0 = inlined_call_operand.vmem [shape: bf16[32,512], index: 0, kind: input, shape index: {}]   ;;  %s305_s1 = inlined_call_operand.vmem [shape: f32[1,512], index: 1, kind: input, shape index: {}]   ;;  %s306_s2 = inlined_call_operand.vmem [shape: f32[1,512], index: 2, kind: input, shape index: {}]   ;;  %s307_s3 = inlined_call_operand.vmem [shape: bf16[32,512], index: 3, kind: output, shape index: {}]  }
   0x1   :  { %v14_v1 = vld [vmem:[%s304_s0] sm:$0xff]  ;;  %v15_v5 = vld [vmem:[%s304_s0 + $0x8] sm:$0xff]  ;;  %v16_v6 = vld [vmem:[%s304_s0 + $0x10] sm:$0xff] }
   0x2   :  { %v23_v2 = vunpack.c.l.bf16 %v14_v1  ;;  %v24_v3 = vunpack.c.h.bf16 %v14_v1  ;;  %v41_v4 = vshrl.u32 %v40_v0, 7  ;;  %v17_v7 = vld [vmem:[%s304_s0 + $0x18] sm:$0xff]  ;;  %v22_v8 = vld [vmem:[%s305_s1] sm:$0xf]  ;;  %v25_v10 = vunpack.c.l.bf16 %v15_v5  ;;  %v19_v51 = vld [vmem:[%s304_s0 + $0x28] sm:$0xff] }
   0x3   :  { %v76_v9 = vld [vmem:[%s306_s2] sm:$0xf]  ;;  %v26_v11 = vunpack.c.h.bf16 %v15_v5  ;;  %v27_v12 = vunpack.c.l.bf16 %v16_v6  ;;  %v28_v13 = vunpack.c.h.bf16 %v16_v6  ;;  %v29_v19 = vunpack.c.l.bf16 %v17_v7  ;;  %v20_v56 = vld [vmem:[%s304_s0 + $0x30] sm:$0xff]  ;;  %v21_v61 = vld [vmem:[%s304_s0 + $0x38] sm:$0xff] }
   0x4   :  { %v18_v14 = vld [vmem:[%s304_s0 + $0x20] sm:$0xff]  ;;  %v42_v15 = vsub.s32 0, %v41_v4  ;;  %v46_v16 = vsub.s32 1, %v41_v4  ;;  %v50_v17 = vsub.s32 2, %v41_v4  ;;  %v54_v18 = vsub.s32 3, %v41_v4 }
   0x5   :  { %v30_v20 = vunpack.c.h.bf16 %v17_v7  ;;  %v31_v21 = vunpack.c.l.bf16 %v18_v14  ;;  %v32_v22 = vunpack.c.h.bf16 %v18_v14  ;;  %v33_v0 = vunpack.c.l.bf16 %v19_v51 }
   0x6   :  { %v43_v23 = vrot.slane %v22_v8, %v42_v15  ;;  %v47_v24 = vrot.slane %v22_v8, %v46_v16  ;;  %v247_v25 = vrot.slane %v76_v9, %v42_v15  ;;  %v249_v26 = vrot.slane %v76_v9, %v46_v16 }
   0x7   :  { %v51_v27 = vrot.slane %v22_v8, %v50_v17  ;;  %v55_v28 = vrot.slane %v22_v8, %v54_v18  ;;  %v251_v29 = vrot.slane %v76_v9, %v50_v17  ;;  %v253_v30 = vrot.slane %v76_v9, %v54_v18 }
   0x8   :  { %v60_v31 = vmul.f32 %v43_v23, %v23_v2  ;;  %v61_v32 = vmul.f32 %v47_v24, %v24_v3  ;;  %v64_v33 = vmul.f32 %v43_v23, %v27_v12  ;;  %v65_v34 = vmul.f32 %v47_v24, %v28_v13 }
   0x9   :  { %v62_v35 = vmul.f32 %v51_v27, %v25_v10  ;;  %v63_v36 = vmul.f32 %v55_v28, %v26_v11  ;;  %v66_v37 = vmul.f32 %v51_v27, %v29_v19  ;;  %v67_v38 = vmul.f32 %v55_v28, %v30_v20 }
   0xa   :  { %v98_v39 = vadd.f32 %v247_v25, %v60_v31  ;;  %v99_v40 = vadd.f32 %v249_v26, %v61_v32  ;;  %v102_v41 = vadd.f32 %v247_v25, %v64_v33  ;;  %v103_v42 = vadd.f32 %v249_v26, %v65_v34 }
   0xb   :  { %v100_v43 = vadd.f32 %v251_v29, %v62_v35  ;;  %v101_v44 = vadd.f32 %v253_v30, %v63_v36  ;;  %v104_v45 = vadd.f32 %v251_v29, %v66_v37  ;;  %v105_v46 = vadd.f32 %v253_v30, %v67_v38 }
   0xc   :  { %v114_v47 = vmax.f32 %v98_v39, 0.0  ;;  %v115_v48 = vmax.f32 %v99_v40, 0.0  ;;  %v118_v49 = vmax.f32 %v102_v41, 0.0  ;;  %v119_v50 = vmax.f32 %v103_v42, 0.0 }
   0xd   :  { %v116_v52 = vmax.f32 %v100_v43, 0.0  ;;  %v117_v53 = vmax.f32 %v101_v44, 0.0  ;;  %v120_v54 = vmax.f32 %v104_v45, 0.0  ;;  %v121_v55 = vmax.f32 %v105_v46, 0.0 }
   0xe   :  { %v198_v57 = vpack.c.bf16 %v115_v48, %v114_v47  ;;  %v200_v58 = vpack.c.bf16 %v119_v50, %v118_v49  ;;  %v68_v59 = vmul.f32 %v43_v23, %v31_v21  ;;  %v69_v60 = vmul.f32 %v47_v24, %v32_v22 }
   0xf   :  { %v199_v62 = vpack.c.bf16 %v117_v53, %v116_v52  ;;  %v201_v63 = vpack.c.bf16 %v121_v55, %v120_v54  ;;  %v34_v1 = vunpack.c.h.bf16 %v19_v51  ;;  %v35_v4 = vunpack.c.l.bf16 %v20_v56 }
  0x10   :  { %178 = vst [vmem:[%s307_s3] sm:$0xff] %v198_v57  ;;  %180 = vst [vmem:[%s307_s3 + $0x10] sm:$0xff] %v200_v58  ;;  %v106_v2 = vadd.f32 %v247_v25, %v68_v59  ;;  %v107_v3 = vadd.f32 %v249_v26, %v69_v60  ;;  %v36_v5 = vunpack.c.h.bf16 %v20_v56  ;;  %v70_v6 = vmul.f32 %v51_v27, %v33_v0 }
  0x11   :  { %179 = vst [vmem:[%s307_s3 + $0x8] sm:$0xff] %v199_v62  ;;  %181 = vst [vmem:[%s307_s3 + $0x18] sm:$0xff] %v201_v63  ;;  %v71_v7 = vmul.f32 %v55_v28, %v34_v1  ;;  %v37_v8 = vunpack.c.l.bf16 %v21_v61  ;;  %v38_v9 = vunpack.c.h.bf16 %v21_v61  ;;  %v72_v12 = vmul.f32 %v43_v23, %v35_v4 }
  0x12   :  { %v122_v10 = vmax.f32 %v106_v2, 0.0  ;;  %v123_v11 = vmax.f32 %v107_v3, 0.0  ;;  %v73_v13 = vmul.f32 %v47_v24, %v36_v5  ;;  %v108_v14 = vadd.f32 %v251_v29, %v70_v6 }
  0x13   :  { %v109_v15 = vadd.f32 %v253_v30, %v71_v7  ;;  %v74_v16 = vmul.f32 %v51_v27, %v37_v8  ;;  %v75_v17 = vmul.f32 %v55_v28, %v38_v9  ;;  %v110_v19 = vadd.f32 %v247_v25, %v72_v12 }
  0x14   :  { %v202_v18 = vpack.c.bf16 %v123_v11, %v122_v10  ;;  %v111_v20 = vadd.f32 %v249_v26, %v73_v13  ;;  %v124_v21 = vmax.f32 %v108_v14, 0.0 }
  0x15   :  { %v125_v22 = vmax.f32 %v109_v15, 0.0  ;;  %v112_v31 = vadd.f32 %v251_v29, %v74_v16  ;;  %v113_v32 = vadd.f32 %v253_v30, %v75_v17  ;;  %v126_v23 = vmax.f32 %v110_v19, 0.0 }
  0x16   :  { %182 = vst [vmem:[%s307_s3 + $0x20] sm:$0xff] %v202_v18  ;;  %v127_v24 = vmax.f32 %v111_v20, 0.0 }
  0x17   :  { %v203_v33 = vpack.c.bf16 %v125_v22, %v124_v21  ;;  %v128_v27 = vmax.f32 %v112_v31, 0.0  ;;  %v129_v28 = vmax.f32 %v113_v32, 0.0 }
  0x18   :  { %v204_v34 = vpack.c.bf16 %v127_v24, %v126_v23 }
  0x19   :  { %183 = vst [vmem:[%s307_s3 + $0x28] sm:$0xff] %v203_v33  ;;  %v205_v25 = vpack.c.bf16 %v129_v28, %v128_v27 }
  0x1a   :  { %184 = vst [vmem:[%s307_s3 + $0x30] sm:$0xff] %v204_v34 }
  0x1b   :  { %185 = vst [vmem:[%s307_s3 + $0x38] sm:$0xff] %v205_v25 }

// kernel: generator_forward.10
= control target key start
LH: loop header
LB: loop body
LE: loop exit
PB: predicated region body
PF: predicated region fallthrough
CT: control target
= control target key end

     0   :  { %s3473_s15 = smov 0   ;;  %s3475_s16 = smov 0   ;;  %s3887_s0 = inlined_call_operand.vmem [shape: bf16[4,32,2048], index: 0, kind: input, shape index: {}]   ;;  %s3888_s1 = inlined_call_operand.vmem [shape: bf16[4,2048,256], index: 1, kind: input, shape index: {}]   ;;  %s3889_s2 = inlined_call_operand.vmem [shape: bf16[4,32,256], index: 2, kind: output, shape index: {0}]   ;;  %s3890_s3 = inlined_call_operand.vmem [shape: f32[1,256], index: 3, kind: output, shape index: {1}]   ;;  %s3891_s4 = inlined_call_operand.vmem [shape: f32[1,256], index: 4, kind: output, shape index: {2}]  }
   0x1   :  { %s3477_s17 = smov 0  }
   0x2 LB: > { %s27_s18 = sadd.s32 1, %s3440_s16  ;;  %p2702_p0 = scmp.ge.s32.totalorder %s3444_s17, 1  ;;  %s3444_s17 = sphi %s3477_s17, %s15_s17   ;;  %s3440_s16 = sphi %s3475_s16, %s3893_s16   ;;  %s3436_s15 = sphi %s3473_s15, %s3892_s15  }
   0x3   : > { %p29_p1 = scmp.ge.s32.totalorder %s27_s18, 4  ;;  %p189_p2 = scmp.lt.s32.totalorder %s3444_s17, 5 }
   0x5   : > { %s3895_s18 = smov (%p29_p1, %s27_s18), 0  ;;  %p190_p3 = pnand %p2702_p0, %p189_p2 }
   0x6   : > { %p231_p4 = scmp.lt.s32.totalorder (!%p190_p3), %s3436_s15, 3  ;;  %p2481_p5 = scmp.eq.s32.totalorder (!%p190_p3), %s3436_s15, 0 }
   0x7   : > { %193 = sbr.rel (%p190_p3) target bundleno = 527 (0x20f), region = 28 }
   0xc   : > { %s3495_s19 = scalar_select %p231_p4, %s3436_s15, 3 }
   0xe   : > { %s3005_s20 = sshll.u32 %s3495_s19, 11  ;;  %s3004_s24 = sshll.u32 %s3495_s19, 8 }
   0xf   : > { %s3501_s23 = scalar_lea.vmem %s3888_s1, %s3005_s20  ;;  %s3551_s27 = scalar_lea.vmem %s3887_s0, %s3004_s24 }
  0x10   : > { %v3038_v0 = vld [vmem:[%s3501_s23 + $0x74] ss:$8 sps:$4 sm:$0xff]   ;;  %v3042_v2 = vld [vmem:[%s3501_s23 + $0x70] ss:$8 sps:$4 sm:$0xff]   ;;  %v3044_v4 = vld [vmem:[%s3501_s23 + $0x64] ss:$8 sps:$4 sm:$0xff]  }
  0x11   : > { %v3040_v1 = vld [vmem:[%s3501_s23 + $0x174] ss:$8 sps:$4 sm:$0xff]   ;;  %1985 = vmatprep.subr.bf16.mxu0 %v3038_v0  ;;  %v3043_v3 = vld [vmem:[%s3501_s23 + $0x170] ss:$8 sps:$4 sm:$0xff]   ;;  %v3046_v5 = vld [vmem:[%s3501_s23 + $0x164] ss:$8 sps:$4 sm:$0xff]  }
  0x12   : > { %2038 = vmatprep.subr.bf16.mxu1 %v3040_v1  ;;  %1986 = vmatpush1.bf16.msra.mxu0 %v3042_v2  ;;  %v3048_v6 = vld [vmem:[%s3501_s23 + $0x60] ss:$8 sps:$4 sm:$0xff]   ;;  %v3050_v8 = vld [vmem:[%s3501_s23 + $0x54] ss:$8 sps:$4 sm:$0xff]   ;;  %v3054_v10 = vld [vmem:[%s3501_s23 + $0x50] ss:$8 sps:$4 sm:$0xff]  }
  0x13   : > { %2039 = vmatpush1.bf16.msra.mxu1 %v3043_v3  ;;  %1987 = vmatprep.subr.bf16.mxu0 %v3044_v4  ;;  %v3049_v7 = vld [vmem:[%s3501_s23 + $0x160] ss:$8 sps:$4 sm:$0xff]   ;;  %v3052_v9 = vld [vmem:[%s3501_s23 + $0x154] ss:$8 sps:$4 sm:$0xff]   ;;  %v3055_v11 = vld [vmem:[%s3501_s23 + $0x150] ss:$8 sps:$4 sm:$0xff]  }
  0x14   : > { %2040 = vmatprep.subr.bf16.mxu1 %v3046_v5  ;;  %v3056_v12 = vld [vmem:[%s3501_s23 + $0x44] ss:$8 sps:$4 sm:$0xff]   ;;  %v3060_v14 = vld [vmem:[%s3501_s23 + $0x40] ss:$8 sps:$4 sm:$0xff]   ;;  %v3062_v16 = vld [vmem:[%s3501_s23 + $0x34] ss:$8 sps:$4 sm:$0xff]  }
  0x15   : > { %v3058_v13 = vld [vmem:[%s3501_s23 + $0x144] ss:$8 sps:$4 sm:$0xff]   ;;  %v3061_v15 = vld [vmem:[%s3501_s23 + $0x140] ss:$8 sps:$4 sm:$0xff]   ;;  %v3064_v17 = vld [vmem:[%s3501_s23 + $0x134] ss:$8 sps:$4 sm:$0xff]  }
  0x16   : > { %1988 = vmatpush1.bf16.msra.mxu0 %v3048_v6  ;;  %v3066_v18 = vld [vmem:[%s3501_s23 + $0x30] ss:$8 sps:$4 sm:$0xff]   ;;  %v3068_v20 = vld [vmem:[%s3501_s23 + $0x24] ss:$8 sps:$4 sm:$0xff]   ;;  %v3072_v22 = vld [vmem:[%s3501_s23 + $0x20] ss:$8 sps:$4 sm:$0xff]  }
  0x17   : > { %2041 = vmatpush1.bf16.msra.mxu1 %v3049_v7  ;;  %1989 = vmatprep.subr.bf16.mxu0 %v3050_v8  ;;  %v3067_v19 = vld [vmem:[%s3501_s23 + $0x130] ss:$8 sps:$4 sm:$0xff]   ;;  %v3070_v21 = vld [vmem:[%s3501_s23 + $0x124] ss:$8 sps:$4 sm:$0xff]   ;;  %v3073_v23 = vld [vmem:[%s3501_s23 + $0x120] ss:$8 sps:$4 sm:$0xff]  }
  0x18   : > { %2042 = vmatprep.subr.bf16.mxu1 %v3052_v9  ;;  %v3074_v24 = vld [vmem:[%s3501_s23 + $0x14] ss:$8 sps:$4 sm:$0xff]   ;;  %v3078_v26 = vld [vmem:[%s3501_s23 + $0x10] ss:$8 sps:$4 sm:$0xff]   ;;  %v3080_v28 = vld [vmem:[%s3501_s23 + $0x4] ss:$8 sps:$4 sm:$0xff]  }
  0x19   : > { %v3076_v25 = vld [vmem:[%s3501_s23 + $0x114] ss:$8 sps:$4 sm:$0xff]   ;;  %v3079_v27 = vld [vmem:[%s3501_s23 + $0x110] ss:$8 sps:$4 sm:$0xff]   ;;  %v3082_v29 = vld [vmem:[%s3501_s23 + $0x104] ss:$8 sps:$4 sm:$0xff]  }
  0x1a   : > { %1990 = vmatpush1.bf16.msra.mxu0 %v3054_v10  ;;  %v3084_v30 = vld [vmem:[%s3501_s23] ss:$8 sps:$4 sm:$0xff]   ;;  %v3086_v32 = vld [vmem:[%s3501_s23 + $0xf4] ss:$8 sps:$4 sm:$0xff]   ;;  %v3090_v34 = vld [vmem:[%s3501_s23 + $0xf0] ss:$8 sps:$4 sm:$0xff]  }
  0x1b   : > { %2043 = vmatpush1.bf16.msra.mxu1 %v3055_v11  ;;  %1991 = vmatprep.subr.bf16.mxu0 %v3056_v12  ;;  %v3085_v31 = vld [vmem:[%s3501_s23 + $0x100] ss:$8 sps:$4 sm:$0xff]   ;;  %v3088_v33 = vld [vmem:[%s3501_s23 + $0x1f4] ss:$8 sps:$4 sm:$0xff]   ;;  %v3091_v35 = vld [vmem:[%s3501_s23 + $0x1f0] ss:$8 sps:$4 sm:$0xff]  }
  0x1c   : > { %2044 = vmatprep.subr.bf16.mxu1 %v3058_v13  ;;  %v3092_v36 = vld [vmem:[%s3501_s23 + $0xe4] ss:$8 sps:$4 sm:$0xff]   ;;  %v3096_v38 = vld [vmem:[%s3501_s23 + $0xe0] ss:$8 sps:$4 sm:$0xff]   ;;  %v3098_v40 = vld [vmem:[%s3501_s23 + $0xd4] ss:$8 sps:$4 sm:$0xff]  }
  0x1d   : > { %v3094_v37 = vld [vmem:[%s3501_s23 + $0x1e4] ss:$8 sps:$4 sm:$0xff]   ;;  %v3097_v39 = vld [vmem:[%s3501_s23 + $0x1e0] ss:$8 sps:$4 sm:$0xff]   ;;  %v3100_v41 = vld [vmem:[%s3501_s23 + $0x1d4] ss:$8 sps:$4 sm:$0xff]  }
  0x1e   : > { %1992 = vmatpush1.bf16.msra.mxu0 %v3060_v14  ;;  %v3102_v42 = vld [vmem:[%s3501_s23 + $0xd0] ss:$8 sps:$4 sm:$0xff]   ;;  %v3104_v44 = vld [vmem:[%s3501_s23 + $0xc4] ss:$8 sps:$4 sm:$0xff]   ;;  %v3108_v46 = vld [vmem:[%s3501_s23 + $0xc0] ss:$8 sps:$4 sm:$0xff]  }
  0x1f   : > { %2045 = vmatpush1.bf16.msra.mxu1 %v3061_v15  ;;  %1993 = vmatprep.subr.bf16.mxu0 %v3062_v16  ;;  %v3103_v43 = vld [vmem:[%s3501_s23 + $0x1d0] ss:$8 sps:$4 sm:$0xff]   ;;  %v3106_v45 = vld [vmem:[%s3501_s23 + $0x1c4] ss:$8 sps:$4 sm:$0xff]   ;;  %v3109_v47 = vld [vmem:[%s3501_s23 + $0x1c0] ss:$8 sps:$4 sm:$0xff]  }
  0x20   : > { %2046 = vmatprep.subr.bf16.mxu1 %v3064_v17  ;;  %v257_v48 = vld [vmem:[%s3551_s27] sm:$0xff]  ;;  %v258_v50 = vld [vmem:[%s3551_s27 + $0x8] sm:$0xff]  ;;  %v3110_v52 = vld [vmem:[%s3501_s23 + $0xb4] ss:$8 sps:$4 sm:$0xff]   ;;  %s3006_s28 = sshll.u32 %s3495_s19, 5 }
  0x21   : > { %v265_v49 = vld [vmem:[%s3551_s27 + $0x40] sm:$0xff]  ;;  %v266_v51 = vld [vmem:[%s3551_s27 + $0x48] sm:$0xff]  ;;  %v3112_v54 = vld [vmem:[%s3501_s23 + $0x1b4] ss:$8 sps:$4 sm:$0xff]   ;;  %s3850_s5 = scalar_lea.vmem %s3889_s2, %s3006_s28 }
  0x22   : > { %1994 = vmatpush1.bf16.msra.mxu0 %v3066_v18  ;;  %v2710_v53 = vcombine.high %v257_v48, %v265_v49  ;;  %v2712_v55 = vcombine.high %v258_v50, %v266_v51  ;;  %v3114_v56 = vld [vmem:[%s3501_s23 + $0xb0] ss:$8 sps:$4 sm:$0xff]   ;;  %v3116_v58 = vld [vmem:[%s3501_s23 + $0xa4] ss:$8 sps:$4 sm:$0xff]   ;;  %v3120_v60 = vld [vmem:[%s3501_s23 + $0xa0] ss:$8 sps:$4 sm:$0xff]   ;;  %v2709_v8 = vcombine.low %v257_v48, %v265_v49  ;;  %v2711_v9 = vcombine.low %v258_v50, %v266_v51 }
  0x23   : > { %2047 = vmatpush1.bf16.msra.mxu1 %v3067_v19  ;;  %1995 = vmatprep.subr.bf16.mxu0 %v3068_v20  ;;  %v3115_v57 = vld [vmem:[%s3501_s23 + $0x1b0] ss:$8 sps:$4 sm:$0xff]   ;;  %v3118_v59 = vld [vmem:[%s3501_s23 + $0x1a4] ss:$8 sps:$4 sm:$0xff]   ;;  %v3121_v61 = vld [vmem:[%s3501_s23 + $0x1a0] ss:$8 sps:$4 sm:$0xff]  }
  0x24   : > { %2048 = vmatprep.subr.bf16.mxu1 %v3070_v21  ;;  %2017 = vmatprep.mubr.bf16.mxu0 %v2710_v53  ;;  %v3122_v62 = vld [vmem:[%s3501_s23 + $0x94] ss:$8 sps:$4 sm:$0xff]   ;;  %v3126_v0 = vld [vmem:[%s3501_s23 + $0x90] ss:$8 sps:$4 sm:$0xff]   ;;  %v3128_v2 = vld [vmem:[%s3501_s23 + $0x84] ss:$8 sps:$4 sm:$0xff]  }
  0x25   : > { %2070 = vmatprep.mubr.bf16.mxu1 %v2712_v55  ;;  %v3124_v63 = vld [vmem:[%s3501_s23 + $0x194] ss:$8 sps:$4 sm:$0xff]   ;;  %v3127_v1 = vld [vmem:[%s3501_s23 + $0x190] ss:$8 sps:$4 sm:$0xff]   ;;  %v3130_v3 = vld [vmem:[%s3501_s23 + $0x184] ss:$8 sps:$4 sm:$0xff]  }
  0x26   : > { %1996 = vmatpush1.bf16.msra.mxu0 %v3072_v22  ;;  %v3132_v4 = vld [vmem:[%s3501_s23 + $0x80] ss:$8 sps:$4 sm:$0xff]   ;;  %v3136_v6 = vld [vmem:[%s3501_s23 + $0x274] ss:$8 sps:$4 sm:$0xff]   ;;  %v3134_v10 = vld [vmem:[%s3501_s23 + $0x270] ss:$8 sps:$4 sm:$0xff]  }
  0x27   : > { %2049 = vmatpush1.bf16.msra.mxu1 %v3073_v23  ;;  %1997 = vmatprep.subr.bf16.mxu0 %v3074_v24  ;;  %v3133_v5 = vld [vmem:[%s3501_s23 + $0x180] ss:$8 sps:$4 sm:$0xff]   ;;  %v3139_v7 = vld [vmem:[%s3501_s23 + $0x374] ss:$8 sps:$4 sm:$0xff]   ;;  %v3137_v11 = vld [vmem:[%s3501_s23 + $0x370] ss:$8 sps:$4 sm:$0xff]  }
  0x28   : > { %2050 = vmatprep.subr.bf16.mxu1 %v3076_v25  ;;  %v3142_v12 = vld [vmem:[%s3501_s23 + $0x264] ss:$8 sps:$4 sm:$0xff]   ;;  %v3140_v14 = vld [vmem:[%s3501_s23 + $0x260] ss:$8 sps:$4 sm:$0xff]   ;;  %v3148_v16 = vld [vmem:[%s3501_s23 + $0x254] ss:$8 sps:$4 sm:$0xff]  }
  0x29   : > { %v3145_v13 = vld [vmem:[%s3501_s23 + $0x364] ss:$8 sps:$4 sm:$0xff]   ;;  %v3143_v15 = vld [vmem:[%s3501_s23 + $0x360] ss:$8 sps:$4 sm:$0xff]   ;;  %v3151_v17 = vld [vmem:[%s3501_s23 + $0x354] ss:$8 sps:$4 sm:$0xff]  }
  0x2a   : > { %1998 = vmatpush1.bf16.msra.mxu0 %v3078_v26  ;;  %v3146_v18 = vld [vmem:[%s3501_s23 + $0x250] ss:$8 sps:$4 sm:$0xff]   ;;  %v3154_v20 = vld [vmem:[%s3501_s23 + $0x244] ss:$8 sps:$4 sm:$0xff]   ;;  %v3152_v22 = vld [vmem:[%s3501_s23 + $0x240] ss:$8 sps:$4 sm:$0xff]  }
  0x2b   : > { %2051 = vmatpush1.bf16.msra.mxu1 %v3079_v27  ;;  %1999 = vmatprep.subr.bf16.mxu0 %v3080_v28  ;;  %v3149_v19 = vld [vmem:[%s3501_s23 + $0x350] ss:$8 sps:$4 sm:$0xff]   ;;  %v3157_v21 = vld [vmem:[%s3501_s23 + $0x344] ss:$8 sps:$4 sm:$0xff]   ;;  %v3155_v23 = vld [vmem:[%s3501_s23 + $0x340] ss:$8 sps:$4 sm:$0xff]  }
  0x2c   : > { %2052 = vmatprep.subr.bf16.mxu1 %v3082_v29  ;;  %v3160_v24 = vld [vmem:[%s3501_s23 + $0x234] ss:$8 sps:$4 sm:$0xff]   ;;  %v3158_v26 = vld [vmem:[%s3501_s23 + $0x230] ss:$8 sps:$4 sm:$0xff]   ;;  %v273_v28 = vld [vmem:[%s3551_s27 + $0x80] sm:$0xff] }
  0x2d   : > { %v3163_v25 = vld [vmem:[%s3501_s23 + $0x334] ss:$8 sps:$4 sm:$0xff]   ;;  %v3161_v27 = vld [vmem:[%s3501_s23 + $0x330] ss:$8 sps:$4 sm:$0xff]   ;;  %v281_v29 = vld [vmem:[%s3551_s27 + $0xc0] sm:$0xff] }
  0x2e   : > { %2000 = vmatpush1.bf16.msra.mxu0 %v3084_v30  ;;  %v274_v30 = vld [vmem:[%s3551_s27 + $0x88] sm:$0xff]  ;;  %v3618_v48 = vld [vmem:[%s3551_s27 + $0x18] sm:$0xff] }
  0x2f   : > { %2053 = vmatpush1.bf16.msra.mxu1 %v3085_v31  ;;  %2001 = vmatprep.subr.bf16.mxu0 %v3086_v32  ;;  %v282_v31 = vld [vmem:[%s3551_s27 + $0xc8] sm:$0xff]  ;;  %v3623_v50 = vld [vmem:[%s3551_s27 + $0x58] sm:$0xff] }
  0x30   : > { %2054 = vmatprep.subr.bf16.mxu1 %v3088_v33  ;;  %v3166_v32 = vld [vmem:[%s3501_s23 + $0x224] ss:$8 sps:$4 sm:$0xff]   ;;  %v2726_v33 = vcombine.high %v273_v28, %v281_v29  ;;  %v2716_v51 = vcombine.high %v3618_v48, %v3623_v50  ;;  %v3179_v53 = vld [vmem:[%s3501_s23 + $0x300] ss:$8 sps:$4 sm:$0xff]   ;;  %v3187_v55 = vld [vmem:[%s3501_s23 + $0x3f4] ss:$8 sps:$4 sm:$0xff]  }
  0x32   : > { %2002 = vmatpush2.bf16.msra.mxu0 %v3090_v34  ;;  %v2728_v34 = vcombine.high %v274_v30, %v282_v31 }
  0x33   : > { %2055 = vmatpush2.bf16.msra.mxu1 %v3091_v35  ;;  %2003 = vmatprep.subr.bf16.mxu0 %v3092_v36  ;;  %v2725_v35 = vcombine.low %v273_v28, %v281_v29  ;;  %v3169_v36 = vld [vmem:[%s3501_s23 + $0x324] ss:$8 sps:$4 sm:$0xff]   ;;  %v2715_v29 = vcombine.low %v3618_v48, %v3623_v50 }
  0x34   : > { %2056 = vmatprep.subr.bf16.mxu1 %v3094_v37  ;;  %v2727_v37 = vcombine.low %v274_v30, %v282_v31  ;;  %v276_v30 = vld [vmem:[%s3551_s27 + $0x98] sm:$0xff]  ;;  %v3250_v48 = vld [vmem:[%s3501_s23 + $0x444] ss:$8 sps:$4 sm:$0xff]  }
  0x35   : > { %v284_v31 = vld [vmem:[%s3551_s27 + $0xd8] sm:$0xff] }
  0x36   : > { %2004 = vmatpush2.bf16.msra.mxu0 %v3096_v38  ;;  %v3164_v38 = vld [vmem:[%s3501_s23 + $0x220] ss:$8 sps:$4 sm:$0xff]  }
  0x37   : > { %2057 = vmatpush2.bf16.msra.mxu1 %v3097_v39  ;;  %2005 = vmatprep.subr.bf16.mxu0 %v3098_v40  ;;  %v3167_v39 = vld [vmem:[%s3501_s23 + $0x320] ss:$8 sps:$4 sm:$0xff]   ;;  %v3172_v40 = vld [vmem:[%s3501_s23 + $0x214] ss:$8 sps:$4 sm:$0xff]  }
  0x38   : > { %2058 = vmatprep.subr.bf16.mxu1 %v3100_v41  ;;  %v3175_v41 = vld [vmem:[%s3501_s23 + $0x314] ss:$8 sps:$4 sm:$0xff]  }
  0x3a   : > { %2006 = vmatpush2.bf16.msra.mxu0 %v3102_v42  ;;  %v3170_v42 = vld [vmem:[%s3501_s23 + $0x210] ss:$8 sps:$4 sm:$0xff]  }
  0x3b   : > { %2059 = vmatpush2.bf16.msra.mxu1 %v3103_v43  ;;  %2007 = vmatprep.subr.bf16.mxu0 %v3104_v44  ;;  %v3173_v43 = vld [vmem:[%s3501_s23 + $0x310] ss:$8 sps:$4 sm:$0xff]   ;;  %v3178_v44 = vld [vmem:[%s3501_s23 + $0x204] ss:$8 sps:$4 sm:$0xff]  }
  0x3c   : > { %2060 = vmatprep.subr.bf16.mxu1 %v3106_v45  ;;  %v3181_v45 = vld [vmem:[%s3501_s23 + $0x304] ss:$8 sps:$4 sm:$0xff]  }
  0x3e   : > { %2008 = vmatpush2.bf16.msra.mxu0 %v3108_v46  ;;  %v3612_v46 = vld [vmem:[%s3551_s27 + $0x10] sm:$0xff] }
  0x3f   : > { %2061 = vmatpush2.bf16.msra.mxu1 %v3109_v47  ;;  %2009 = vmatprep.subr.bf16.mxu0 %v3110_v52  ;;  %v3615_v47 = vld [vmem:[%s3551_s27 + $0x50] sm:$0xff]  ;;  %v3176_v52 = vld [vmem:[%s3501_s23 + $0x200] ss:$8 sps:$4 sm:$0xff]  }
  0x40   : > { %2062 = vmatprep.subr.bf16.mxu1 %v3112_v54  ;;  %v2714_v49 = vcombine.high %v3612_v46, %v3615_v47  ;;  %v3184_v54 = vld [vmem:[%s3501_s23 + $0x2f4] ss:$8 sps:$4 sm:$0xff]   ;;  %v2713_v28 = vcombine.low %v3612_v46, %v3615_v47  ;;  %v3688_v46 = vld [vmem:[%s3551_s27 + $0x28] sm:$0xff] }
  0x41   : > { %v3691_v47 = vld [vmem:[%s3551_s27 + $0x68] sm:$0xff] }
  0x42   : > { %2010 = vmatpush2.bf16.msra.mxu0 %v3114_v56  ;;  %v3182_v56 = vld [vmem:[%s3501_s23 + $0x2f0] ss:$8 sps:$4 sm:$0xff]  }
  0x43   : > { %2063 = vmatpush2.bf16.msra.mxu1 %v3115_v57  ;;  %2011 = vmatprep.subr.bf16.mxu0 %v3116_v58  ;;  %v3185_v57 = vld [vmem:[%s3501_s23 + $0x3f0] ss:$8 sps:$4 sm:$0xff]   ;;  %v3190_v58 = vld [vmem:[%s3501_s23 + $0x2e4] ss:$8 sps:$4 sm:$0xff]  }
  0x44   : > { %2064 = vmatprep.subr.bf16.mxu1 %v3118_v59  ;;  %v3193_v59 = vld [vmem:[%s3501_s23 + $0x3e4] ss:$8 sps:$4 sm:$0xff]  }
  0x46   : > { %2012 = vmatpush2.bf16.msra.mxu0 %v3120_v60  ;;  %v3188_v60 = vld [vmem:[%s3501_s23 + $0x2e0] ss:$8 sps:$4 sm:$0xff]  }
  0x47   : > { %2065 = vmatpush2.bf16.msra.mxu1 %v3121_v61  ;;  %2013 = vmatprep.subr.bf16.mxu0 %v3122_v62  ;;  %v3191_v61 = vld [vmem:[%s3501_s23 + $0x3e0] ss:$8 sps:$4 sm:$0xff]   ;;  %v3196_v62 = vld [vmem:[%s3501_s23 + $0x2d4] ss:$8 sps:$4 sm:$0xff]  }
  0x48   : > { %2066 = vmatprep.subr.bf16.mxu1 %v3124_v63  ;;  %v3199_v63 = vld [vmem:[%s3501_s23 + $0x3d4] ss:$8 sps:$4 sm:$0xff]  }
  0x4a   : > { %2014 = vmatpush2.bf16.msra.mxu0 %v3126_v0  ;;  %v3194_v0 = vld [vmem:[%s3501_s23 + $0x2d0] ss:$8 sps:$4 sm:$0xff]  }
  0x4b   : > { %2067 = vmatpush2.bf16.msra.mxu1 %v3127_v1  ;;  %2015 = vmatprep.subr.bf16.mxu0 %v3128_v2  ;;  %v3197_v1 = vld [vmem:[%s3501_s23 + $0x3d0] ss:$8 sps:$4 sm:$0xff]   ;;  %v3202_v2 = vld [vmem:[%s3501_s23 + $0x2c4] ss:$8 sps:$4 sm:$0xff]  }
  0x4c   : > { %2068 = vmatprep.subr.bf16.mxu1 %v3130_v3  ;;  %v3205_v3 = vld [vmem:[%s3501_s23 + $0x3c4] ss:$8 sps:$4 sm:$0xff]  }
  0x4e   : > { %2016 = vmatpush2.bf16.msra.mxu0 %v3132_v4  ;;  %v3200_v4 = vld [vmem:[%s3501_s23 + $0x2c0] ss:$8 sps:$4 sm:$0xff]  }
  0x4f   : > { %2069 = vmatpush2.bf16.msra.mxu1 %v3133_v5  ;;  %2091 = vmatprep.subr.bf16.mxu0 %v3136_v6  ;;  %v3203_v5 = vld [vmem:[%s3501_s23 + $0x3c0] ss:$8 sps:$4 sm:$0xff]   ;;  %v3208_v6 = vld [vmem:[%s3501_s23 + $0x2b4] ss:$8 sps:$4 sm:$0xff]  }
  0x50   : > { %2144 = vmatprep.subr.bf16.mxu1 %v3139_v7  ;;  %v3211_v7 = vld [vmem:[%s3501_s23 + $0x3b4] ss:$8 sps:$4 sm:$0xff]  }
  0x51   : > { %2018 = vmatmul.mubr.bf16.vlgmr.msra.gmra.mxu0 %v2709_v8  ;;  %v3206_v8 = vld [vmem:[%s3501_s23 + $0x2b0] ss:$8 sps:$4 sm:$0xff]  }
  0x52   : > { %2071 = vmatmul.mubr.bf16.vlgmr.msra.gmra.mxu1 %v2711_v9  ;;  %2092 = vmatpush1.bf16.msra.mxu0 %v3134_v10  ;;  %v3209_v9 = vld [vmem:[%s3501_s23 + $0x3b0] ss:$8 sps:$4 sm:$0xff]   ;;  %v3214_v10 = vld [vmem:[%s3501_s23 + $0x2a4] ss:$8 sps:$4 sm:$0xff]  }
  0x53   : > { %2145 = vmatpush1.bf16.msra.mxu1 %v3137_v11  ;;  %2093 = vmatprep.subr.bf16.mxu0 %v3142_v12  ;;  %v3217_v11 = vld [vmem:[%s3501_s23 + $0x3a4] ss:$8 sps:$4 sm:$0xff]   ;;  %v3212_v12 = vld [vmem:[%s3501_s23 + $0x2a0] ss:$8 sps:$4 sm:$0xff]  }
  0x54   : > { %2146 = vmatprep.subr.bf16.mxu1 %v3145_v13  ;;  %2027 = vmatprep.mubr.bf16.mxu0 %v2726_v33  ;;  %v3215_v13 = vld [vmem:[%s3501_s23 + $0x3a0] ss:$8 sps:$4 sm:$0xff]   ;;  %v3241_v33 = vld [vmem:[%s3501_s23 + $0x564] ss:$8 sps:$4 sm:$0xff]  }
  0x55   : > { %2080 = vmatprep.mubr.bf16.mxu1 %v2728_v34 }
  0x56   : > { %2094 = vmatpush1.bf16.msra.mxu0 %v3140_v14  ;;  %v3220_v14 = vld [vmem:[%s3501_s23 + $0x294] ss:$8 sps:$4 sm:$0xff]  }
  0x57   : > { %2147 = vmatpush1.bf16.msra.mxu1 %v3143_v15  ;;  %2095 = vmatprep.subr.bf16.mxu0 %v3148_v16  ;;  %v3223_v15 = vld [vmem:[%s3501_s23 + $0x394] ss:$8 sps:$4 sm:$0xff]   ;;  %v3218_v16 = vld [vmem:[%s3501_s23 + $0x290] ss:$8 sps:$4 sm:$0xff]  }
  0x58   : > { %2148 = vmatprep.subr.bf16.mxu1 %v3151_v17  ;;  %v3221_v17 = vld [vmem:[%s3501_s23 + $0x390] ss:$8 sps:$4 sm:$0xff]  }
  0x59   : > { %2028 = vmatmul.mubr.bf16.gmra.mxu0 %v2725_v35  ;;  %v2732_v35 = vcombine.high %v276_v30, %v284_v31 }
  0x5a   : > { %2096 = vmatpush1.bf16.msra.mxu0 %v3146_v18  ;;  %2081 = vmatmul.mubr.bf16.gmra.mxu1 %v2727_v37  ;;  %v3226_v18 = vld [vmem:[%s3501_s23 + $0x284] ss:$8 sps:$4 sm:$0xff]   ;;  %v3239_v37 = vld [vmem:[%s3501_s23 + $0x560] ss:$8 sps:$4 sm:$0xff]  }
  0x5b   : > { %2149 = vmatpush1.bf16.msra.mxu1 %v3149_v19  ;;  %2097 = vmatprep.subr.bf16.mxu0 %v3154_v20  ;;  %v3229_v19 = vld [vmem:[%s3501_s23 + $0x384] ss:$8 sps:$4 sm:$0xff]   ;;  %v3224_v20 = vld [vmem:[%s3501_s23 + $0x280] ss:$8 sps:$4 sm:$0xff]  }
  0x5c   : > { %2150 = vmatprep.subr.bf16.mxu1 %v3157_v21  ;;  %2123 = vmatprep.mubr.bf16.mxu0 %v2714_v49  ;;  %v3227_v21 = vld [vmem:[%s3501_s23 + $0x380] ss:$8 sps:$4 sm:$0xff]   ;;  %v3253_v49 = vld [vmem:[%s3501_s23 + $0x544] ss:$8 sps:$4 sm:$0xff]  }
  0x5d   : > { %2176 = vmatprep.mubr.bf16.mxu1 %v2716_v51  ;;  %v2720_v51 = vcombine.high %v3688_v46, %v3691_v47 }
  0x5e   : > { %2098 = vmatpush1.bf16.msra.mxu0 %v3152_v22  ;;  %v3232_v22 = vld [vmem:[%s3501_s23 + $0x474] ss:$8 sps:$4 sm:$0xff]  }
  0x5f   : > { %2151 = vmatpush1.bf16.msra.mxu1 %v3155_v23  ;;  %2099 = vmatprep.subr.bf16.mxu0 %v3160_v24  ;;  %v3235_v23 = vld [vmem:[%s3501_s23 + $0x574] ss:$8 sps:$4 sm:$0xff]   ;;  %v3230_v24 = vld [vmem:[%s3501_s23 + $0x470] ss:$8 sps:$4 sm:$0xff]  }
  0x60   : > { %2152 = vmatprep.subr.bf16.mxu1 %v3163_v25  ;;  %v3233_v25 = vld [vmem:[%s3501_s23 + $0x570] ss:$8 sps:$4 sm:$0xff]  }
  0x62   : > { %2100 = vmatpush1.bf16.msra.mxu0 %v3158_v26  ;;  %v275_v26 = vld [vmem:[%s3551_s27 + $0x90] sm:$0xff] }
  0x63   : > { %2153 = vmatpush1.bf16.msra.mxu1 %v3161_v27  ;;  %2101 = vmatprep.subr.bf16.mxu0 %v3166_v32  ;;  %v283_v27 = vld [vmem:[%s3551_s27 + $0xd0] sm:$0xff]  ;;  %v3238_v32 = vld [vmem:[%s3501_s23 + $0x464] ss:$8 sps:$4 sm:$0xff]  }
  0x64   : > { %2154 = vmatprep.subr.bf16.mxu1 %v3169_v36  ;;  %v2730_v34 = vcombine.high %v275_v26, %v283_v27  ;;  %v3236_v36 = vld [vmem:[%s3501_s23 + $0x460] ss:$8 sps:$4 sm:$0xff]  }
  0x66   : > { %2102 = vmatpush1.bf16.msra.mxu0 %v3164_v38  ;;  %v3244_v38 = vld [vmem:[%s3501_s23 + $0x454] ss:$8 sps:$4 sm:$0xff]  }
  0x67   : > { %2155 = vmatpush1.bf16.msra.mxu1 %v3167_v39  ;;  %2103 = vmatprep.subr.bf16.mxu0 %v3172_v40  ;;  %v3247_v39 = vld [vmem:[%s3501_s23 + $0x554] ss:$8 sps:$4 sm:$0xff]   ;;  %v3242_v40 = vld [vmem:[%s3501_s23 + $0x450] ss:$8 sps:$4 sm:$0xff]  }
  0x68   : > { %2156 = vmatprep.subr.bf16.mxu1 %v3175_v41  ;;  %v3245_v41 = vld [vmem:[%s3501_s23 + $0x550] ss:$8 sps:$4 sm:$0xff]  }
  0x6a   : > { %2104 = vmatpush1.bf16.msra.mxu0 %v3170_v42  ;;  %v3682_v42 = vld [vmem:[%s3551_s27 + $0x20] sm:$0xff] }
  0x6b   : > { %2157 = vmatpush1.bf16.msra.mxu1 %v3173_v43  ;;  %2105 = vmatprep.subr.bf16.mxu0 %v3178_v44  ;;  %v3685_v43 = vld [vmem:[%s3551_s27 + $0x60] sm:$0xff]  ;;  %v2729_v44 = vcombine.low %v275_v26, %v283_v27 }
  0x6c   : > { %2158 = vmatprep.subr.bf16.mxu1 %v3181_v45  ;;  %v2731_v45 = vcombine.low %v276_v30, %v284_v31  ;;  %v2718_v50 = vcombine.high %v3682_v42, %v3685_v43  ;;  %v3310_v26 = vld [vmem:[%s3501_s23 + $0x4a4] ss:$8 sps:$4 sm:$0xff]   ;;  %v3316_v30 = vld [vmem:[%s3501_s23 + $0x494] ss:$8 sps:$4 sm:$0xff]  }
  0x6d   : > { %v3313_v27 = vld [vmem:[%s3501_s23 + $0x5a4] ss:$8 sps:$4 sm:$0xff]   ;;  %v3319_v31 = vld [vmem:[%s3501_s23 + $0x594] ss:$8 sps:$4 sm:$0xff]  }
  0x6e   : > { %2106 = vmatpush1.bf16.msra.mxu0 %v3176_v52  ;;  %v3248_v52 = vld [vmem:[%s3501_s23 + $0x440] ss:$8 sps:$4 sm:$0xff]  }
  0x6f   : > { %2159 = vmatpush1.bf16.msra.mxu1 %v3179_v53  ;;  %2107 = vmatprep.subr.bf16.mxu0 %v3184_v54  ;;  %v3251_v53 = vld [vmem:[%s3501_s23 + $0x540] ss:$8 sps:$4 sm:$0xff]   ;;  %v3256_v54 = vld [vmem:[%s3501_s23 + $0x434] ss:$8 sps:$4 sm:$0xff]  }
  0x70   : > { %2160 = vmatprep.subr.bf16.mxu1 %v3187_v55  ;;  %v3259_v55 = vld [vmem:[%s3501_s23 + $0x534] ss:$8 sps:$4 sm:$0xff]  }
  0x72   : > { %2108 = vmatpush2.bf16.msra.mxu0 %v3182_v56  ;;  %v3254_v56 = vld [vmem:[%s3501_s23 + $0x430] ss:$8 sps:$4 sm:$0xff]  }
  0x73   : > { %2161 = vmatpush2.bf16.msra.mxu1 %v3185_v57  ;;  %2109 = vmatprep.subr.bf16.mxu0 %v3190_v58  ;;  %v3257_v57 = vld [vmem:[%s3501_s23 + $0x530] ss:$8 sps:$4 sm:$0xff]   ;;  %v3262_v58 = vld [vmem:[%s3501_s23 + $0x424] ss:$8 sps:$4 sm:$0xff]  }
  0x74   : > { %2162 = vmatprep.subr.bf16.mxu1 %v3193_v59  ;;  %v3265_v59 = vld [vmem:[%s3501_s23 + $0x524] ss:$8 sps:$4 sm:$0xff]  }
  0x76   : > { %2110 = vmatpush2.bf16.msra.mxu0 %v3188_v60  ;;  %v3260_v60 = vld [vmem:[%s3501_s23 + $0x420] ss:$8 sps:$4 sm:$0xff]  }
  0x77   : > { %2163 = vmatpush2.bf16.msra.mxu1 %v3191_v61  ;;  %2111 = vmatprep.subr.bf16.mxu0 %v3196_v62  ;;  %v3263_v61 = vld [vmem:[%s3501_s23 + $0x520] ss:$8 sps:$4 sm:$0xff]   ;;  %v3268_v62 = vld [vmem:[%s3501_s23 + $0x414] ss:$8 sps:$4 sm:$0xff]  }
  0x78   : > { %2164 = vmatprep.subr.bf16.mxu1 %v3199_v63  ;;  %v3271_v63 = vld [vmem:[%s3501_s23 + $0x514] ss:$8 sps:$4 sm:$0xff]  }
  0x7a   : > { %2112 = vmatpush2.bf16.msra.mxu0 %v3194_v0  ;;  %v3266_v0 = vld [vmem:[%s3501_s23 + $0x410] ss:$8 sps:$4 sm:$0xff]  }
  0x7b   : > { %2165 = vmatpush2.bf16.msra.mxu1 %v3197_v1  ;;  %2113 = vmatprep.subr.bf16.mxu0 %v3202_v2  ;;  %v3269_v1 = vld [vmem:[%s3501_s23 + $0x510] ss:$8 sps:$4 sm:$0xff]   ;;  %v3274_v2 = vld [vmem:[%s3501_s23 + $0x404] ss:$8 sps:$4 sm:$0xff]  }
  0x7c   : > { %2166 = vmatprep.subr.bf16.mxu1 %v3205_v3  ;;  %v3277_v3 = vld [vmem:[%s3501_s23 + $0x504] ss:$8 sps:$4 sm:$0xff]  }
  0x7e   : > { %2114 = vmatpush2.bf16.msra.mxu0 %v3200_v4  ;;  %v3272_v4 = vld [vmem:[%s3501_s23 + $0x400] ss:$8 sps:$4 sm:$0xff]  }
  0x7f   : > { %2167 = vmatpush2.bf16.msra.mxu1 %v3203_v5  ;;  %2115 = vmatprep.subr.bf16.mxu0 %v3208_v6  ;;  %v3275_v5 = vld [vmem:[%s3501_s23 + $0x500] ss:$8 sps:$4 sm:$0xff]   ;;  %v3280_v6 = vld [vmem:[%s3501_s23 + $0x4f4] ss:$8 sps:$4 sm:$0xff]  }
  0x80   : > { %2168 = vmatprep.subr.bf16.mxu1 %v3211_v7  ;;  %v3283_v7 = vld [vmem:[%s3501_s23 + $0x5f4] ss:$8 sps:$4 sm:$0xff]  }
  0x82   : > { %2116 = vmatpush2.bf16.msra.mxu0 %v3206_v8  ;;  %v3278_v8 = vld [vmem:[%s3501_s23 + $0x4f0] ss:$8 sps:$4 sm:$0xff]  }
  0x83   : > { %2169 = vmatpush2.bf16.msra.mxu1 %v3209_v9  ;;  %2117 = vmatprep.subr.bf16.mxu0 %v3214_v10  ;;  %v3281_v9 = vld [vmem:[%s3501_s23 + $0x5f0] ss:$8 sps:$4 sm:$0xff]   ;;  %v3286_v10 = vld [vmem:[%s3501_s23 + $0x4e4] ss:$8 sps:$4 sm:$0xff]  }
  0x84   : > { %2170 = vmatprep.subr.bf16.mxu1 %v3217_v11  ;;  %v3289_v11 = vld [vmem:[%s3501_s23 + $0x5e4] ss:$8 sps:$4 sm:$0xff]  }
  0x86   : > { %2118 = vmatpush2.bf16.msra.mxu0 %v3212_v12  ;;  %v3284_v12 = vld [vmem:[%s3501_s23 + $0x4e0] ss:$8 sps:$4 sm:$0xff]  }
  0x87   : > { %2171 = vmatpush2.bf16.msra.mxu1 %v3215_v13  ;;  %2119 = vmatprep.subr.bf16.mxu0 %v3220_v14  ;;  %v3287_v13 = vld [vmem:[%s3501_s23 + $0x5e0] ss:$8 sps:$4 sm:$0xff]   ;;  %v3292_v14 = vld [vmem:[%s3501_s23 + $0x4d4] ss:$8 sps:$4 sm:$0xff]  }
  0x88   : > { %2172 = vmatprep.subr.bf16.mxu1 %v3223_v15  ;;  %v3295_v15 = vld [vmem:[%s3501_s23 + $0x5d4] ss:$8 sps:$4 sm:$0xff]  }
  0x8a   : > { %2120 = vmatpush2.bf16.msra.mxu0 %v3218_v16  ;;  %v3290_v16 = vld [vmem:[%s3501_s23 + $0x4d0] ss:$8 sps:$4 sm:$0xff]  }
  0x8b   : > { %2173 = vmatpush2.bf16.msra.mxu1 %v3221_v17  ;;  %2121 = vmatprep.subr.bf16.mxu0 %v3226_v18  ;;  %v3293_v17 = vld [vmem:[%s3501_s23 + $0x5d0] ss:$8 sps:$4 sm:$0xff]   ;;  %v3298_v18 = vld [vmem:[%s3501_s23 + $0x4c4] ss:$8 sps:$4 sm:$0xff]  }
  0x8c   : > { %2174 = vmatprep.subr.bf16.mxu1 %v3229_v19  ;;  %v3301_v19 = vld [vmem:[%s3501_s23 + $0x5c4] ss:$8 sps:$4 sm:$0xff]  }
  0x8e   : > { %2122 = vmatpush2.bf16.msra.mxu0 %v3224_v20  ;;  %v3296_v20 = vld [vmem:[%s3501_s23 + $0x4c0] ss:$8 sps:$4 sm:$0xff]  }
  0x8f   : > { %2175 = vmatpush2.bf16.msra.mxu1 %v3227_v21  ;;  %2197 = vmatprep.subr.bf16.mxu0 %v3232_v22  ;;  %v3299_v21 = vld [vmem:[%s3501_s23 + $0x5c0] ss:$8 sps:$4 sm:$0xff]   ;;  %v3304_v22 = vld [vmem:[%s3501_s23 + $0x4b4] ss:$8 sps:$4 sm:$0xff]  }
  0x90   : > { %2250 = vmatprep.subr.bf16.mxu1 %v3235_v23  ;;  %v3307_v23 = vld [vmem:[%s3501_s23 + $0x5b4] ss:$8 sps:$4 sm:$0xff]  }
  0x91   : > { %2124 = vmatmul.mubr.bf16.vlgmr.msra.gmra.mxu0 %v2713_v28  ;;  %v3308_v28 = vld [vmem:[%s3501_s23 + $0x4a0] ss:$8 sps:$4 sm:$0xff]  }
  0x92   : > { %2177 = vmatmul.mubr.bf16.vlgmr.msra.gmra.mxu1 %v2715_v29  ;;  %2198 = vmatpush1.bf16.msra.mxu0 %v3230_v24  ;;  %v3302_v24 = vld [vmem:[%s3501_s23 + $0x4b0] ss:$8 sps:$4 sm:$0xff]   ;;  %v3311_v29 = vld [vmem:[%s3501_s23 + $0x5a0] ss:$8 sps:$4 sm:$0xff]  }
  0x93   : > { %2251 = vmatpush1.bf16.msra.mxu1 %v3233_v25  ;;  %2199 = vmatprep.subr.bf16.mxu0 %v3238_v32  ;;  %v3305_v25 = vld [vmem:[%s3501_s23 + $0x5b0] ss:$8 sps:$4 sm:$0xff]  }
  0x94   : > { %2252 = vmatprep.subr.bf16.mxu1 %v3241_v33  ;;  %2133 = vmatprep.mubr.bf16.mxu0 %v2730_v34  ;;  %v3314_v32 = vld [vmem:[%s3501_s23 + $0x490] ss:$8 sps:$4 sm:$0xff]   ;;  %v3322_v34 = vld [vmem:[%s3501_s23 + $0x484] ss:$8 sps:$4 sm:$0xff]  }
  0x95   : > { %2186 = vmatprep.mubr.bf16.mxu1 %v2732_v35  ;;  %v3317_v33 = vld [vmem:[%s3501_s23 + $0x590] ss:$8 sps:$4 sm:$0xff]   ;;  %v3325_v35 = vld [vmem:[%s3501_s23 + $0x584] ss:$8 sps:$4 sm:$0xff]  }
  0x96   : > { %2200 = vmatpush1.bf16.msra.mxu0 %v3236_v36  ;;  %v3320_v36 = vld [vmem:[%s3501_s23 + $0x480] ss:$8 sps:$4 sm:$0xff]  }
  0x97   : > { %2253 = vmatpush1.bf16.msra.mxu1 %v3239_v37  ;;  %2201 = vmatprep.subr.bf16.mxu0 %v3244_v38  ;;  %v3323_v37 = vld [vmem:[%s3501_s23 + $0x580] ss:$8 sps:$4 sm:$0xff]   ;;  %v3328_v38 = vld [vmem:[%s3501_s23 + $0x674] ss:$8 sps:$4 sm:$0xff]  }
  0x98   : > { %2254 = vmatprep.subr.bf16.mxu1 %v3247_v39  ;;  %v3331_v39 = vld [vmem:[%s3501_s23 + $0x774] ss:$8 sps:$4 sm:$0xff]  }
  0x99   : > { %2134 = vmatmul.mubr.bf16.gmra.mxu0 %v2729_v44  ;;  %v2719_v44 = vcombine.low %v3688_v46, %v3691_v47  ;;  %v3332_v46 = vld [vmem:[%s3501_s23 + $0x660] ss:$8 sps:$4 sm:$0xff]  }
  0x9a   : > { %2187 = vmatmul.mubr.bf16.gmra.mxu1 %v2731_v45  ;;  %2202 = vmatpush1.bf16.msra.mxu0 %v3242_v40  ;;  %v277_v40 = vld [vmem:[%s3551_s27 + $0xa0] sm:$0xff] }
  0x9b   : > { %2255 = vmatpush1.bf16.msra.mxu1 %v3245_v41  ;;  %2203 = vmatprep.subr.bf16.mxu0 %v3250_v48  ;;  %v2717_v41 = vcombine.low %v3682_v42, %v3685_v43  ;;  %v285_v45 = vld [vmem:[%s3551_s27 + $0xe0] sm:$0xff]  ;;  %v278_v48 = vld [vmem:[%s3551_s27 + $0xa8] sm:$0xff] }
  0x9c   : > { %2256 = vmatprep.subr.bf16.mxu1 %v3253_v49  ;;  %2229 = vmatprep.mubr.bf16.mxu0 %v2718_v50  ;;  %v286_v49 = vld [vmem:[%s3551_s27 + $0xe8] sm:$0xff]  ;;  %v3326_v50 = vld [vmem:[%s3501_s23 + $0x670] ss:$8 sps:$4 sm:$0xff]   ;;  %v2734_v42 = vcombine.high %v277_v40, %v285_v45 }
  0x9d   : > { %2282 = vmatprep.mubr.bf16.mxu1 %v2720_v51  ;;  %v3329_v51 = vld [vmem:[%s3501_s23 + $0x770] ss:$8 sps:$4 sm:$0xff]   ;;  %v2736_v43 = vcombine.high %v278_v48, %v286_v49  ;;  %v3335_v47 = vld [vmem:[%s3501_s23 + $0x760] ss:$8 sps:$4 sm:$0xff]  }
  0x9e   : > { %2204 = vmatpush1.bf16.msra.mxu0 %v3248_v52  ;;  %v3334_v52 = vld [vmem:[%s3501_s23 + $0x664] ss:$8 sps:$4 sm:$0xff]  }
  0x9f   : > { %2257 = vmatpush1.bf16.msra.mxu1 %v3251_v53  ;;  %2205 = vmatprep.subr.bf16.mxu0 %v3256_v54  ;;  %v3337_v53 = vld [vmem:[%s3501_s23 + $0x764] ss:$8 sps:$4 sm:$0xff]   ;;  %v3340_v54 = vld [vmem:[%s3501_s23 + $0x654] ss:$8 sps:$4 sm:$0xff]  }
  0xa0   : > { %2258 = vmatprep.subr.bf16.mxu1 %v3259_v55  ;;  %v3343_v55 = vld [vmem:[%s3501_s23 + $0x754] ss:$8 sps:$4 sm:$0xff]  }
  0xa2   : > { %2206 = vmatpush1.bf16.msra.mxu0 %v3254_v56  ;;  %v3768_v56 = vld [vmem:[%s3551_s27 + $0x30] sm:$0xff] }
  0xa3   : > { %2259 = vmatpush1.bf16.msra.mxu1 %v3257_v57  ;;  %2207 = vmatprep.subr.bf16.mxu0 %v3262_v58  ;;  %v2733_v57 = vcombine.low %v277_v40, %v285_v45  ;;  %v2735_v58 = vcombine.low %v278_v48, %v286_v49  ;;  %v3398_v40 = vld [vmem:[%s3501_s23 + $0x6b0] ss:$8 sps:$4 sm:$0xff]   ;;  %v3409_v45 = vld [vmem:[%s3501_s23 + $0x7a4] ss:$8 sps:$4 sm:$0xff]   ;;  %v3404_v48 = vld [vmem:[%s3501_s23 + $0x6a0] ss:$8 sps:$4 sm:$0xff]  }
  0xa4   : > { %2260 = vmatprep.subr.bf16.mxu1 %v3265_v59  ;;  %v3771_v59 = vld [vmem:[%s3551_s27 + $0x70] sm:$0xff]  ;;  %v3407_v49 = vld [vmem:[%s3501_s23 + $0x7a0] ss:$8 sps:$4 sm:$0xff]  }
  0xa6   : > { %2208 = vmatpush1.bf16.msra.mxu0 %v3260_v60  ;;  %v3774_v60 = vld [vmem:[%s3551_s27 + $0x38] sm:$0xff] }
  0xa7   : > { %2261 = vmatpush1.bf16.msra.mxu1 %v3263_v61  ;;  %2209 = vmatprep.subr.bf16.mxu0 %v3268_v62  ;;  %v3777_v61 = vld [vmem:[%s3551_s27 + $0x78] sm:$0xff] }
  0xa8   : > { %2262 = vmatprep.subr.bf16.mxu1 %v3271_v63  ;;  %v3338_v62 = vld [vmem:[%s3501_s23 + $0x650] ss:$8 sps:$4 sm:$0xff]  }
  0xa9   : > { %v3341_v63 = vld [vmem:[%s3501_s23 + $0x750] ss:$8 sps:$4 sm:$0xff]  }
  0xaa   : > { %2210 = vmatpush1.bf16.msra.mxu0 %v3266_v0  ;;  %v3346_v0 = vld [vmem:[%s3501_s23 + $0x644] ss:$8 sps:$4 sm:$0xff]  }
  0xab   : > { %2263 = vmatpush1.bf16.msra.mxu1 %v3269_v1  ;;  %2211 = vmatprep.subr.bf16.mxu0 %v3274_v2  ;;  %v3349_v1 = vld [vmem:[%s3501_s23 + $0x744] ss:$8 sps:$4 sm:$0xff]   ;;  %v2722_v2 = vcombine.high %v3768_v56, %v3771_v59 }
  0xac   : > { %2264 = vmatprep.subr.bf16.mxu1 %v3277_v3  ;;  %v2724_v3 = vcombine.high %v3774_v60, %v3777_v61 }
  0xae   : > { %2212 = vmatpush1.bf16.msra.mxu0 %v3272_v4  ;;  %v3344_v4 = vld [vmem:[%s3501_s23 + $0x640] ss:$8 sps:$4 sm:$0xff]  }
  0xaf   : > { %2265 = vmatpush1.bf16.msra.mxu1 %v3275_v5  ;;  %2213 = vmatprep.subr.bf16.mxu0 %v3280_v6  ;;  %v3347_v5 = vld [vmem:[%s3501_s23 + $0x740] ss:$8 sps:$4 sm:$0xff]   ;;  %v3352_v6 = vld [vmem:[%s3501_s23 + $0x634] ss:$8 sps:$4 sm:$0xff]  }
  0xb0   : > { %2266 = vmatprep.subr.bf16.mxu1 %v3283_v7  ;;  %v3355_v7 = vld [vmem:[%s3501_s23 + $0x734] ss:$8 sps:$4 sm:$0xff]  }
  0xb2   : > { %2214 = vmatpush2.bf16.msra.mxu0 %v3278_v8  ;;  %v3350_v8 = vld [vmem:[%s3501_s23 + $0x630] ss:$8 sps:$4 sm:$0xff]  }
  0xb3   : > { %2267 = vmatpush2.bf16.msra.mxu1 %v3281_v9  ;;  %2215 = vmatprep.subr.bf16.mxu0 %v3286_v10  ;;  %v3353_v9 = vld [vmem:[%s3501_s23 + $0x730] ss:$8 sps:$4 sm:$0xff]   ;;  %v3358_v10 = vld [vmem:[%s3501_s23 + $0x624] ss:$8 sps:$4 sm:$0xff]  }
  0xb4   : > { %2268 = vmatprep.subr.bf16.mxu1 %v3289_v11  ;;  %v3361_v11 = vld [vmem:[%s3501_s23 + $0x724] ss:$8 sps:$4 sm:$0xff]  }
  0xb6   : > { %2216 = vmatpush2.bf16.msra.mxu0 %v3284_v12  ;;  %v3356_v12 = vld [vmem:[%s3501_s23 + $0x620] ss:$8 sps:$4 sm:$0xff]  }
  0xb7   : > { %2269 = vmatpush2.bf16.msra.mxu1 %v3287_v13  ;;  %2217 = vmatprep.subr.bf16.mxu0 %v3292_v14  ;;  %v3359_v13 = vld [vmem:[%s3501_s23 + $0x720] ss:$8 sps:$4 sm:$0xff]   ;;  %v3364_v14 = vld [vmem:[%s3501_s23 + $0x614] ss:$8 sps:$4 sm:$0xff]  }
  0xb8   : > { %2270 = vmatprep.subr.bf16.mxu1 %v3295_v15  ;;  %v3367_v15 = vld [vmem:[%s3501_s23 + $0x714] ss:$8 sps:$4 sm:$0xff]  }
  0xba   : > { %2218 = vmatpush2.bf16.msra.mxu0 %v3290_v16  ;;  %v3362_v16 = vld [vmem:[%s3501_s23 + $0x610] ss:$8 sps:$4 sm:$0xff]  }
  0xbb   : > { %2271 = vmatpush2.bf16.msra.mxu1 %v3293_v17  ;;  %2219 = vmatprep.subr.bf16.mxu0 %v3298_v18  ;;  %v3365_v17 = vld [vmem:[%s3501_s23 + $0x710] ss:$8 sps:$4 sm:$0xff]   ;;  %v3370_v18 = vld [vmem:[%s3501_s23 + $0x604] ss:$8 sps:$4 sm:$0xff]  }
  0xbc   : > { %2272 = vmatprep.subr.bf16.mxu1 %v3301_v19  ;;  %v3373_v19 = vld [vmem:[%s3501_s23 + $0x704] ss:$8 sps:$4 sm:$0xff]  }
  0xbe   : > { %2220 = vmatpush2.bf16.msra.mxu0 %v3296_v20  ;;  %v3368_v20 = vld [vmem:[%s3501_s23 + $0x600] ss:$8 sps:$4 sm:$0xff]  }
  0xbf   : > { %2273 = vmatpush2.bf16.msra.mxu1 %v3299_v21  ;;  %2221 = vmatprep.subr.bf16.mxu0 %v3304_v22  ;;  %v3371_v21 = vld [vmem:[%s3501_s23 + $0x700] ss:$8 sps:$4 sm:$0xff]   ;;  %v3376_v22 = vld [vmem:[%s3501_s23 + $0x6f4] ss:$8 sps:$4 sm:$0xff]  }
  0xc0   : > { %2274 = vmatprep.subr.bf16.mxu1 %v3307_v23  ;;  %v3379_v23 = vld [vmem:[%s3501_s23 + $0x7f4] ss:$8 sps:$4 sm:$0xff]  }
  0xc2   : > { %2222 = vmatpush2.bf16.msra.mxu0 %v3302_v24  ;;  %v3374_v24 = vld [vmem:[%s3501_s23 + $0x6f0] ss:$8 sps:$4 sm:$0xff]  }
  0xc3   : > { %2275 = vmatpush2.bf16.msra.mxu1 %v3305_v25  ;;  %2223 = vmatprep.subr.bf16.mxu0 %v3310_v26  ;;  %v3377_v25 = vld [vmem:[%s3501_s23 + $0x7f0] ss:$8 sps:$4 sm:$0xff]   ;;  %v3382_v26 = vld [vmem:[%s3501_s23 + $0x6e4] ss:$8 sps:$4 sm:$0xff]  }
  0xc4   : > { %2276 = vmatprep.subr.bf16.mxu1 %v3313_v27  ;;  %v3385_v27 = vld [vmem:[%s3501_s23 + $0x7e4] ss:$8 sps:$4 sm:$0xff]  }
  0xc6   : > { %2224 = vmatpush2.bf16.msra.mxu0 %v3308_v28  ;;  %v3380_v28 = vld [vmem:[%s3501_s23 + $0x6e0] ss:$8 sps:$4 sm:$0xff]  }
  0xc7   : > { %2277 = vmatpush2.bf16.msra.mxu1 %v3311_v29  ;;  %2225 = vmatprep.subr.bf16.mxu0 %v3316_v30  ;;  %v3383_v29 = vld [vmem:[%s3501_s23 + $0x7e0] ss:$8 sps:$4 sm:$0xff]   ;;  %v3388_v30 = vld [vmem:[%s3501_s23 + $0x6d4] ss:$8 sps:$4 sm:$0xff]  }
  0xc8   : > { %2278 = vmatprep.subr.bf16.mxu1 %v3319_v31  ;;  %v3391_v31 = vld [vmem:[%s3501_s23 + $0x7d4] ss:$8 sps:$4 sm:$0xff]  }
  0xca   : > { %2226 = vmatpush2.bf16.msra.mxu0 %v3314_v32  ;;  %v3386_v32 = vld [vmem:[%s3501_s23 + $0x6d0] ss:$8 sps:$4 sm:$0xff]  }
  0xcb   : > { %2279 = vmatpush2.bf16.msra.mxu1 %v3317_v33  ;;  %2227 = vmatprep.subr.bf16.mxu0 %v3322_v34  ;;  %v3389_v33 = vld [vmem:[%s3501_s23 + $0x7d0] ss:$8 sps:$4 sm:$0xff]   ;;  %v3394_v34 = vld [vmem:[%s3501_s23 + $0x6c4] ss:$8 sps:$4 sm:$0xff]  }
  0xcc   : > { %2280 = vmatprep.subr.bf16.mxu1 %v3325_v35  ;;  %v3397_v35 = vld [vmem:[%s3501_s23 + $0x7c4] ss:$8 sps:$4 sm:$0xff]  }
  0xce   : > { %2228 = vmatpush2.bf16.msra.mxu0 %v3320_v36  ;;  %v3392_v36 = vld [vmem:[%s3501_s23 + $0x6c0] ss:$8 sps:$4 sm:$0xff]  }
  0xcf   : > { %2281 = vmatpush2.bf16.msra.mxu1 %v3323_v37  ;;  %2303 = vmatprep.subr.bf16.mxu0 %v3328_v38  ;;  %v3395_v37 = vld [vmem:[%s3501_s23 + $0x7c0] ss:$8 sps:$4 sm:$0xff]   ;;  %v3400_v38 = vld [vmem:[%s3501_s23 + $0x6b4] ss:$8 sps:$4 sm:$0xff]  }
  0xd0   : > { %2356 = vmatprep.subr.bf16.mxu1 %v3331_v39  ;;  %v3403_v39 = vld [vmem:[%s3501_s23 + $0x7b4] ss:$8 sps:$4 sm:$0xff]  }
  0xd1   : > { %2230 = vmatmul.mubr.bf16.vlgmr.msra.gmra.mxu0 %v2717_v41  ;;  %v3401_v41 = vld [vmem:[%s3501_s23 + $0x7b0] ss:$8 sps:$4 sm:$0xff]  }
  0xd2   : > { %2283 = vmatmul.mubr.bf16.vlgmr.msra.gmra.mxu1 %v2719_v44  ;;  %2304 = vmatpush1.bf16.msra.mxu0 %v3326_v50  ;;  %v3406_v44 = vld [vmem:[%s3501_s23 + $0x6a4] ss:$8 sps:$4 sm:$0xff]   ;;  %v3412_v50 = vld [vmem:[%s3501_s23 + $0x694] ss:$8 sps:$4 sm:$0xff]  }
  0xd3   : > { %2357 = vmatpush1.bf16.msra.mxu1 %v3329_v51  ;;  %2305 = vmatprep.subr.bf16.mxu0 %v3334_v52  ;;  %v3415_v51 = vld [vmem:[%s3501_s23 + $0x794] ss:$8 sps:$4 sm:$0xff]   ;;  %v3410_v52 = vld [vmem:[%s3501_s23 + $0x690] ss:$8 sps:$4 sm:$0xff]  }
  0xd4   : > { %2358 = vmatprep.subr.bf16.mxu1 %v3337_v53  ;;  %2239 = vmatprep.mubr.bf16.mxu0 %v2734_v42  ;;  %v3413_v53 = vld [vmem:[%s3501_s23 + $0x790] ss:$8 sps:$4 sm:$0xff]   ;;  %v3418_v42 = vld [vmem:[%s3501_s23 + $0x684] ss:$8 sps:$4 sm:$0xff]  }
  0xd5   : > { %2292 = vmatprep.mubr.bf16.mxu1 %v2736_v43  ;;  %v3421_v43 = vld [vmem:[%s3501_s23 + $0x784] ss:$8 sps:$4 sm:$0xff]  }
  0xd6   : > { %2306 = vmatpush1.bf16.msra.mxu0 %v3332_v46  ;;  %v3416_v46 = vld [vmem:[%s3501_s23 + $0x680] ss:$8 sps:$4 sm:$0xff]  }
  0xd7   : > { %2359 = vmatpush1.bf16.msra.mxu1 %v3335_v47  ;;  %2307 = vmatprep.subr.bf16.mxu0 %v3340_v54  ;;  %v3419_v47 = vld [vmem:[%s3501_s23 + $0x780] ss:$8 sps:$4 sm:$0xff]   ;;  %v279_v54 = vld [vmem:[%s3551_s27 + $0xb0] sm:$0xff] }
  0xd8   : > { %2360 = vmatprep.subr.bf16.mxu1 %v3343_v55  ;;  %v287_v55 = vld [vmem:[%s3551_s27 + $0xf0] sm:$0xff] }
  0xd9   : > { %2240 = vmatmul.mubr.bf16.gmra.mxu0 %v2733_v57  ;;  %v280_v57 = vld [vmem:[%s3551_s27 + $0xb8] sm:$0xff] }
  0xda   : > { %2293 = vmatmul.mubr.bf16.gmra.mxu1 %v2735_v58  ;;  %2308 = vmatpush1.bf16.msra.mxu0 %v3338_v62  ;;  %v288_v58 = vld [vmem:[%s3551_s27 + $0xf8] sm:$0xff]  ;;  %v2721_v62 = vcombine.low %v3768_v56, %v3771_v59 }
  0xdb   : > { %2361 = vmatpush1.bf16.msra.mxu1 %v3341_v63  ;;  %2309 = vmatprep.subr.bf16.mxu0 %v3346_v0  ;;  %v2723_v63 = vcombine.low %v3774_v60, %v3777_v61  ;;  %v2738_v0 = vcombine.high %v279_v54, %v287_v55 }
  0xdc   : > { %2362 = vmatprep.subr.bf16.mxu1 %v3349_v1  ;;  %2335 = vmatprep.mubr.bf16.mxu0 %v2722_v2  ;;  %v2740_v1 = vcombine.high %v280_v57, %v288_v58  ;;  %v2737_v2 = vcombine.low %v279_v54, %v287_v55 }
  0xdd   : > { %2388 = vmatprep.mubr.bf16.mxu1 %v2724_v3  ;;  %v2739_v3 = vcombine.low %v280_v57, %v288_v58 }
  0xde   : > { %2310 = vmatpush1.bf16.msra.mxu0 %v3344_v4 }
  0xdf   : > { %2363 = vmatpush1.bf16.msra.mxu1 %v3347_v5  ;;  %2311 = vmatprep.subr.bf16.mxu0 %v3352_v6 }
  0xe0   : > { %2364 = vmatprep.subr.bf16.mxu1 %v3355_v7 }
  0xe2   : > { %2312 = vmatpush1.bf16.msra.mxu0 %v3350_v8 }
  0xe3   : > { %2365 = vmatpush1.bf16.msra.mxu1 %v3353_v9  ;;  %2313 = vmatprep.subr.bf16.mxu0 %v3358_v10 }
  0xe4   : > { %2366 = vmatprep.subr.bf16.mxu1 %v3361_v11 }
  0xe6   : > { %2314 = vmatpush1.bf16.msra.mxu0 %v3356_v12 }
  0xe7   : > { %2367 = vmatpush1.bf16.msra.mxu1 %v3359_v13  ;;  %2315 = vmatprep.subr.bf16.mxu0 %v3364_v14 }
  0xe8   : > { %2368 = vmatprep.subr.bf16.mxu1 %v3367_v15 }
  0xea   : > { %2316 = vmatpush1.bf16.msra.mxu0 %v3362_v16 }
  0xeb   : > { %2369 = vmatpush1.bf16.msra.mxu1 %v3365_v17  ;;  %2317 = vmatprep.subr.bf16.mxu0 %v3370_v18 }
  0xec   : > { %2370 = vmatprep.subr.bf16.mxu1 %v3373_v19 }
  0xee   : > { %2318 = vmatpush1.bf16.msra.mxu0 %v3368_v20 }
  0xef   : > { %2371 = vmatpush1.bf16.msra.mxu1 %v3371_v21  ;;  %2319 = vmatprep.subr.bf16.mxu0 %v3376_v22 }
  0xf0   : > { %2372 = vmatprep.subr.bf16.mxu1 %v3379_v23 }
  0xf2   : > { %2320 = vmatpush2.bf16.msra.mxu0 %v3374_v24 }
  0xf3   : > { %2373 = vmatpush2.bf16.msra.mxu1 %v3377_v25  ;;  %2321 = vmatprep.subr.bf16.mxu0 %v3382_v26 }
  0xf4   : > { %2374 = vmatprep.subr.bf16.mxu1 %v3385_v27 }
  0xf6   : > { %2322 = vmatpush2.bf16.msra.mxu0 %v3380_v28 }
  0xf7   : > { %2375 = vmatpush2.bf16.msra.mxu1 %v3383_v29  ;;  %2323 = vmatprep.subr.bf16.mxu0 %v3388_v30 }
  0xf8   : > { %2376 = vmatprep.subr.bf16.mxu1 %v3391_v31 }
  0xfa   : > { %2324 = vmatpush2.bf16.msra.mxu0 %v3386_v32 }
  0xfb   : > { %2377 = vmatpush2.bf16.msra.mxu1 %v3389_v33  ;;  %2325 = vmatprep.subr.bf16.mxu0 %v3394_v34 }
  0xfc   : > { %2378 = vmatprep.subr.bf16.mxu1 %v3397_v35 }
  0xfe   : > { %2326 = vmatpush2.bf16.msra.mxu0 %v3392_v36 }
  0xff   : > { %2379 = vmatpush2.bf16.msra.mxu1 %v3395_v37  ;;  %2327 = vmatprep.subr.bf16.mxu0 %v3400_v38 }
 0x100   : > { %2380 = vmatprep.subr.bf16.mxu1 %v3403_v39 }
 0x102   : > { %2328 = vmatpush2.bf16.msra.mxu0 %v3398_v40 }
 0x103   : > { %2381 = vmatpush2.bf16.msra.mxu1 %v3401_v41  ;;  %2329 = vmatprep.subr.bf16.mxu0 %v3406_v44 }
 0x104   : > { %2382 = vmatprep.subr.bf16.mxu1 %v3409_v45 }
 0x106   : > { %2330 = vmatpush2.bf16.msra.mxu0 %v3404_v48 }
 0x107   : > { %2383 = vmatpush2.bf16.msra.mxu1 %v3407_v49  ;;  %2331 = vmatprep.subr.bf16.mxu0 %v3412_v50 }
 0x108   : > { %2384 = vmatprep.subr.bf16.mxu1 %v3415_v51 }
 0x10a   : > { %2332 = vmatpush2.bf16.msra.mxu0 %v3410_v52 }
 0x10b   : > { %2385 = vmatpush2.bf16.msra.mxu1 %v3413_v53  ;;  %2333 = vmatprep.subr.bf16.mxu0 %v3418_v42 }
 0x10c   : > { %2386 = vmatprep.subr.bf16.mxu1 %v3421_v43 }
 0x10e   : > { %2334 = vmatpush2.bf16.msra.mxu0 %v3416_v46 }
 0x10f   : > { %2387 = vmatpush2.bf16.msra.mxu1 %v3419_v47 }
 0x111   : > { %2336 = vmatmul.mubr.bf16.vlgmr.msra.gmra.mxu0 %v2721_v62  ;;  %v2019_v4 = vpop.f32.mrf.mxu0 }
 0x112   : > { %2389 = vmatmul.mubr.bf16.vlgmr.msra.gmra.mxu1 %v2723_v63  ;;  %2345 = vmatprep.mubr.bf16.mxu0 %v2738_v0  ;;  %v2072_v5 = vpop.f32.mrf.mxu1 }
 0x113   : > { %2398 = vmatprep.mubr.bf16.mxu1 %v2740_v1  ;;  %v2021_v6 = vpop.f32.mrf.mxu0  ;;  %v2073_v44 = vadd.f32 %v2072_v5, %v2019_v4 }
 0x114   : > { %v2074_v56 = vpop.f32.mrf.mxu1 }
 0x115   : > { %v2023_v59 = vpop.f32.mrf.mxu0  ;;  %v2075_v45 = vadd.f32 %v2074_v56, %v2021_v6 }
 0x116   : > { %v2076_v7 = vpop.f32.mrf.mxu1 }
 0x117   : > { %v2025_v60 = vpop.f32.mrf.mxu0  ;;  %v2077_v51 = vadd.f32 %v2076_v7, %v2023_v59 }
 0x118   : > { %v2078_v8 = vpop.f32.mrf.mxu1 }
 0x119   : > { %2346 = vmatmul.mubr.bf16.gmra.mxu0 %v2737_v2  ;;  %v2029_v61 = vpop.f32.mrf.mxu0  ;;  %v2079_v53 = vadd.f32 %v2078_v8, %v2025_v60 }
 0x11a   : > { %2399 = vmatmul.mubr.bf16.gmra.mxu1 %v2739_v3  ;;  %v2082_v9 = vpop.f32.mrf.mxu1 }
 0x11b   : > { %v2031_v10 = vpop.f32.mrf.mxu0  ;;  %v2083_v46 = vadd.f32 %v2082_v9, %v2029_v61 }
 0x11c   : > { %v2084_v11 = vpop.f32.mrf.mxu1 }
 0x11d   : > { %v2033_v12 = vpop.f32.mrf.mxu0  ;;  %v2085_v1 = vadd.f32 %v2084_v11, %v2031_v10 }
 0x11e   : > { %v2086_v13 = vpop.f32.mrf.mxu1 }
 0x11f   : > { %v2035_v14 = vpop.f32.mrf.mxu0  ;;  %v2087_v2 = vadd.f32 %v2086_v13, %v2033_v12 }
 0x120   : > { %v2088_v16 = vpop.f32.mrf.mxu1 }
 0x121   : > { %v2089_v59 = vadd.f32 %v2088_v16, %v2035_v14 }
 0x151   : > { %v2125_v15 = vpop.f32.mrf.mxu0 }
 0x152   : > { %v2178_v17 = vpop.f32.mrf.mxu1  ;;  %v2126_v48 = vadd.f32 %v2125_v15, %v2073_v44 }
 0x153   : > { %v2127_v18 = vpop.f32.mrf.mxu0 }
 0x154   : > { %v2180_v19 = vpop.f32.mrf.mxu1  ;;  %v2128_v52 = vadd.f32 %v2127_v18, %v2075_v45  ;;  %v2179_v42 = vadd.f32 %v2178_v17, %v2126_v48 }
 0x155   : > { %v2129_v20 = vpop.f32.mrf.mxu0 }
 0x156   : > { %v2182_v21 = vpop.f32.mrf.mxu1  ;;  %v2130_v43 = vadd.f32 %v2129_v20, %v2077_v51  ;;  %v2181_v55 = vadd.f32 %v2180_v19, %v2128_v52 }
 0x157   : > { %v2131_v22 = vpop.f32.mrf.mxu0 }
 0x158   : > { %v2184_v23 = vpop.f32.mrf.mxu1  ;;  %v2132_v57 = vadd.f32 %v2131_v22, %v2079_v53  ;;  %v2183_v63 = vadd.f32 %v2182_v21, %v2130_v43 }
 0x159   : > { %v2135_v24 = vpop.f32.mrf.mxu0 }
 0x15a   : > { %v2188_v25 = vpop.f32.mrf.mxu1  ;;  %v2136_v62 = vadd.f32 %v2135_v24, %v2083_v46  ;;  %v2185_v5 = vadd.f32 %v2184_v23, %v2132_v57 }
 0x15b   : > { %v2137_v26 = vpop.f32.mrf.mxu0 }
 0x15c   : > { %v2190_v27 = vpop.f32.mrf.mxu1  ;;  %v2138_v7 = vadd.f32 %v2137_v26, %v2085_v1  ;;  %v2189_v60 = vadd.f32 %v2188_v25, %v2136_v62 }
 0x15d   : > { %v2139_v28 = vpop.f32.mrf.mxu0 }
 0x15e   : > { %v2192_v29 = vpop.f32.mrf.mxu1  ;;  %v2140_v61 = vadd.f32 %v2139_v28, %v2087_v2  ;;  %v2191_v13 = vadd.f32 %v2190_v27, %v2138_v7 }
 0x15f   : > { %v2141_v30 = vpop.f32.mrf.mxu0 }
 0x160   : > { %v2194_v31 = vpop.f32.mrf.mxu1  ;;  %v2142_v19 = vadd.f32 %v2141_v30, %v2089_v59  ;;  %v2193_v22 = vadd.f32 %v2192_v29, %v2140_v61 }
 0x162   : > { %v2195_v28 = vadd.f32 %v2194_v31, %v2142_v19 }
 0x191   : > { %v2231_v32 = vpop.f32.mrf.mxu0 }
 0x192   : > { %v2284_v33 = vpop.f32.mrf.mxu1  ;;  %v2232_v58 = vadd.f32 %v2231_v32, %v2179_v42 }
 0x193   : > { %v2233_v34 = vpop.f32.mrf.mxu0 }
 0x194   : > { %v2286_v35 = vpop.f32.mrf.mxu1  ;;  %v2234_v0 = vadd.f32 %v2233_v34, %v2181_v55  ;;  %v2285_v6 = vadd.f32 %v2284_v33, %v2232_v58 }
 0x195   : > { %v2235_v36 = vpop.f32.mrf.mxu0 }
 0x196   : > { %v2288_v37 = vpop.f32.mrf.mxu1  ;;  %v2236_v56 = vadd.f32 %v2235_v36, %v2183_v63  ;;  %v2287_v15 = vadd.f32 %v2286_v35, %v2234_v0 }
 0x197   : > { %v2237_v38 = vpop.f32.mrf.mxu0 }
 0x198   : > { %v2290_v39 = vpop.f32.mrf.mxu1  ;;  %v2238_v17 = vadd.f32 %v2237_v38, %v2185_v5  ;;  %v2289_v11 = vadd.f32 %v2288_v37, %v2236_v56 }
 0x199   : > { %v2241_v40 = vpop.f32.mrf.mxu0 }
 0x19a   : > { %v2294_v41 = vpop.f32.mrf.mxu1  ;;  %v2242_v20 = vadd.f32 %v2241_v40, %v2189_v60  ;;  %v2291_v14 = vadd.f32 %v2290_v39, %v2238_v17 }
 0x19b   : > { %v2243_v49 = vpop.f32.mrf.mxu0 }
 0x19c   : > { %v2296_v50 = vpop.f32.mrf.mxu1  ;;  %v2244_v32 = vadd.f32 %v2243_v49, %v2191_v13  ;;  %v2295_v33 = vadd.f32 %v2294_v41, %v2242_v20 }
 0x19d   : > { %v2245_v47 = vpop.f32.mrf.mxu0 }
 0x19e   : > { %v2298_v54 = vpop.f32.mrf.mxu1  ;;  %v2246_v35 = vadd.f32 %v2245_v47, %v2193_v22  ;;  %v2297_v41 = vadd.f32 %v2296_v50, %v2244_v32 }
 0x19f   : > { %v2247_v3 = vpop.f32.mrf.mxu0 }
 0x1a0   : > { %v2300_v4 = vpop.f32.mrf.mxu1  ;;  %v2248_v39 = vadd.f32 %v2247_v3, %v2195_v28  ;;  %v2299_v49 = vadd.f32 %v2298_v54, %v2246_v35 }
 0x1a2   : > { %v2301_v47 = vadd.f32 %v2300_v4, %v2248_v39 }
 0x1d1   : > { %v2337_v8 = vpop.f32.mrf.mxu0 }
 0x1d2   : > { %v2390_v9 = vpop.f32.mrf.mxu1  ;;  %v2338_v18 = vadd.f32 %v2337_v8, %v2285_v6 }
 0x1d3   : > { %v2339_v21 = vpop.f32.mrf.mxu0 }
 0x1d4   : > { %v2392_v10 = vpop.f32.mrf.mxu1  ;;  %v2340_v12 = vadd.f32 %v2339_v21, %v2287_v15  ;;  %v2391_v16 = vadd.f32 %v2390_v9, %v2338_v18 }
 0x1d5   : > { %v2341_v23 = vpop.f32.mrf.mxu0 }
 0x1d6   : > { %v2394_v24 = vpop.f32.mrf.mxu1  ;;  %v2393_v25 = vadd.f32 %v2392_v10, %v2340_v12  ;;  %v2342_v26 = vadd.f32 %v2341_v23, %v2289_v11  ;;  %v2455_v52 = vmul.f32 %v2391_v16, %v2391_v16 }
 0x1d7   : > { %v2343_v30 = vpop.f32.mrf.mxu0 }
 0x1d8   : > { %v2396_v34 = vpop.f32.mrf.mxu1  ;;  %v3007_v27 = vpack.c.bf16 %v2393_v25, %v2391_v16  ;;  %v2395_v29 = vadd.f32 %v2394_v24, %v2342_v26  ;;  %v2344_v36 = vadd.f32 %v2343_v30, %v2291_v14  ;;  %v2456_v5 = vmul.f32 %v2393_v25, %v2393_v25 }
 0x1d9   : > { %v2347_v37 = vpop.f32.mrf.mxu0 }
 0x1da   : > { %v2400_v38 = vpop.f32.mrf.mxu1  ;;  %2433 = vst [vmem:[%s3850_s5] sm:$0xff] %v3007_v27  ;;  %v2397_v31 = vadd.f32 %v2396_v34, %v2344_v36  ;;  %v2348_v40 = vadd.f32 %v2347_v37, %v2295_v33  ;;  %v2457_v44 = vmul.f32 %v2395_v29, %v2395_v29  ;;  %v2437_v55 = vadd.f32 %v2395_v29, %v2391_v16 }
 0x1db   : > { %v2349_v45 = vpop.f32.mrf.mxu0 }
 0x1dc   : > { %v2402_v48 = vpop.f32.mrf.mxu1  ;;  %v3008_v51 = vpack.c.bf16 %v2397_v31, %v2395_v29  ;;  %v2401_v53 = vadd.f32 %v2400_v38, %v2348_v40  ;;  %v2350_v42 = vadd.f32 %v2349_v45, %v2297_v41  ;;  %v2463_v58 = vadd.f32 %v2457_v44, %v2455_v52 }
 0x1dd   : > { %v2351_v43 = vpop.f32.mrf.mxu0  ;;  %v2458_v62 = vmul.f32 %v2397_v31, %v2397_v31  ;;  %v2446_v1 = vadd.f32 %v2397_v31, %v2393_v25  ;;  %v2493_v40 = vlaneseq (%p2481_p5)  ;;  %v3446_v41 = vmov (%p2481_p5), 1966171168  }
 0x1de   : > { %v2404_v46 = vpop.f32.mrf.mxu1  ;;  %2434 = vst [vmem:[%s3850_s5 + $0x8] sm:$0xff] %v3008_v51  ;;  %v2352_v57 = vadd.f32 %v2351_v43, %v2299_v49  ;;  %v2459_v63 = vmul.f32 %v2401_v53, %v2401_v53  ;;  %v2403_v0 = vadd.f32 %v2402_v48, %v2350_v42  ;;  %v2438_v2 = vadd.f32 %v2437_v55, %v2401_v53 }
 0x1df   : > { %v2353_v50 = vpop.f32.mrf.mxu0  ;;  %v2472_v9 = vadd.f32 %v2458_v62, %v2456_v5  ;;  %v2491_v44 = vunpack.c.l.s4 (%p2481_p5), %v3446_v41  ;;  %v2494_v45 = vshrl.u32 (%p2481_p5), %v2493_v40, 7  ;;  %vm2507_vm0 = vcmp.lt.s32.totalorder (%p2481_p5), %v2493_v40, 256 }
 0x1e0   : > { %v2405_v3 = vadd.f32 %v2404_v46, %v2352_v57  ;;  %v2354_v54 = vadd.f32 %v2353_v50, %v2301_v47  ;;  %v2464_v6 = vadd.f32 %v2463_v58, %v2459_v63  ;;  %v3009_v56 = vpack.c.bf16 %v2403_v0, %v2401_v53  ;;  %v2406_v7 = vpop.f32.mrf.mxu1 }
 0x1e1   : > { %v2460_v59 = vmul.f32 %v2403_v0, %v2403_v0  ;;  %v2447_v4 = vadd.f32 %v2446_v1, %v2403_v0  ;;  %v2492_v49 = vunpack.c.0.s8 (%p2481_p5), %v2491_v44 }
 0x1e2   : > { %v2439_v60 = vadd.f32 %v2438_v2, %v2405_v3  ;;  %v2461_v61 = vmul.f32 %v2405_v3, %v2405_v3  ;;  %v2407_v8 = vadd.f32 %v2406_v7, %v2354_v54  ;;  %2435 = vst [vmem:[%s3850_s5 + $0x10] sm:$0xff] %v3009_v56 }
 0x1e3   : > { %v2473_v20 = vadd.f32 %v2472_v9, %v2460_v59  ;;  %v2495_v52 = vsub.s32 (%p2481_p5), %v2492_v49, %v2494_v45 }
 0x1e4   : > { %v2440_v15 = vrot.slane %v2439_v60, 4  ;;  %v2465_v17 = vadd.f32 %v2464_v6, %v2461_v61  ;;  %v3010_v18 = vpack.c.bf16 %v2407_v8, %v2405_v3  ;;  %v2448_v19 = vadd.f32 %v2447_v4, %v2407_v8 }
 0x1e5   : > { %v2462_v21 = vmul.f32 %v2407_v8, %v2407_v8 }
 0x1e6   : > { %v2441_v10 = vadd.f32 %v2440_v15, %v2439_v60  ;;  %v2466_v11 = vrot.slane %v2465_v17, 4  ;;  %2436 = vst [vmem:[%s3850_s5 + $0x18] sm:$0xff] %v3010_v18  ;;  %v2449_v12 = vrot.slane %v2448_v19, 4 }
 0x1e7   : > { %v2474_v13 = vadd.f32 %v2473_v20, %v2462_v21 }
 0x1e8   : > { %v2442_v22 = vrot.slane %v2441_v10, 2  ;;  %v2467_v23 = vadd.f32 %v2466_v11, %v2465_v17  ;;  %v2450_v24 = vadd.f32 %v2449_v12, %v2448_v19 }
 0x1e9   : > { %v2475_v14 = vrot.slane %v2474_v13, 4 }
 0x1ea   : > { %v2443_v16 = vadd.f32 %v2442_v22, %v2441_v10  ;;  %v2468_v25 = vrot.slane %v2467_v23, 2  ;;  %v2451_v26 = vrot.slane %v2450_v24, 2 }
 0x1eb   : > { %v2476_v28 = vadd.f32 %v2475_v14, %v2474_v13 }
 0x1ec   : > { %v2444_v32 = vrot.slane %v2443_v16, 1  ;;  %v2469_v33 = vadd.f32 %v2468_v25, %v2467_v23  ;;  %v2452_v30 = vadd.f32 %v2451_v26, %v2450_v24 }
 0x1ed   : > { %v2477_v34 = vrot.slane %v2476_v28, 2 }
 0x1ee   : > { %v2445_v35 = vadd.f32 %v2444_v32, %v2443_v16  ;;  %v2470_v27 = vrot.slane %v2469_v33, 1  ;;  %v2453_v29 = vrot.slane %v2452_v30, 1 }
 0x1ef   : > { %v2478_v36 = vadd.f32 %v2477_v34, %v2476_v28  ;;  %2486 = sbr.rel (!%p2481_p5) target bundleno = 508 (0x1fc), region = 32 }
 0x1f0   : > { %v2471_v37 = vadd.f32 %v2470_v27, %v2469_v33  ;;  %v2454_v38 = vadd.f32 %v2453_v29, %v2452_v30 }
 0x1f1   : > { %v2479_v39 = vrot.slane %v2478_v36, 1 }
 0x1f2   : > { %v2489_v48 = vcombine.low (%p2481_p5), %v2445_v35, %v2454_v38 }
 0x1f3   : > { %v2480_v31 = vadd.f32 %v2479_v39, %v2478_v36 }
 0x1f4   : > { %v2496_v53 = vrot.slane %v2489_v48, %v2495_v52 }
 0x1f5   : > { %v2512_v51 = vcombine.low %v2471_v37, %v2480_v31 }
 0x1f6   : > { %v2503_v43 = vrot.slane %v2496_v53, %v2495_v52 }
 0x1f7   : > { %v2519_v42 = vrot.slane %v2512_v51, %v2495_v52 }
 0x1f8   : > { %2509 = vst.msk [vmem:[%s3890_s3] sm:$0x3] %vm2507_vm0, %v2503_v43 }
 0x1f9   : > { %v2526_v46 = vrot.slane %v2519_v42, %v2495_v52 }
 0x1fb   : > { %2528 = vst.msk [vmem:[%s3891_s4] sm:$0x3] %vm2507_vm0, %v2526_v46 }
 0x1fc PF: > { %2531 = sbr.rel (%p2481_p5) target bundleno = 527 (0x20f), region = 36 }
 0x201   : > { %v2539_v47 = vlaneseq  ;;  %v3447_v55 = vmov 1966171168   ;;  %v2535_v62 = vcombine.low %v2445_v35, %v2454_v38  ;;  %v2560_v0 = vcombine.low %v2471_v37, %v2480_v31  ;;  %v2532_v3 = vld [vmem:[%s3890_s3] sm:$0x3] }
 0x202   : > { %v2537_v57 = vunpack.c.l.s4 %v3447_v55  ;;  %v2557_v54 = vld [vmem:[%s3891_s4] sm:$0x3] }
 0x203   : > { %v2540_v58 = vshrl.u32 %v2539_v47, 7  ;;  %vm2554_vm1 = vcmp.lt.s32.totalorder %v2539_v47, 256 }
 0x204   : > { %v2538_v63 = vunpack.c.0.s8 %v2537_v57 }
 0x206   : > { %v2541_v50 = vsub.s32 %v2538_v63, %v2540_v58 }
 0x208   : > { %v2542_v1 = vrot.slane %v2535_v62, %v2541_v50  ;;  %v2567_v2 = vrot.slane %v2560_v0, %v2541_v50 }
 0x20a   : > { %v2549_v5 = vrot.slane %v2542_v1, %v2541_v50  ;;  %v2574_v6 = vrot.slane %v2567_v2, %v2541_v50 }
 0x20c   : > { %v2551_v56 = vadd.f32 %v2549_v5, %v2532_v3  ;;  %v2576_v59 = vadd.f32 %v2574_v6, %v2557_v54 }
 0x20e   : > { %2556 = vst.msk [vmem:[%s3890_s3] sm:$0x3] %vm2554_vm1, %v2551_v56  ;;  %2577 = vst.msk [vmem:[%s3891_s4] sm:$0x3] %vm2554_vm1, %v2576_v59 }
 0x20f PF: > { %s15_s17 = sadd.s32 1, %s3444_s17   ;;  %s3892_s15 = smov %s3440_s16 }
 0x210   : > { %p12_p6 = scmp.ge.s32.totalorder %s15_s17, 6   ;;  %s3893_s16 = smov %s3895_s18 }
 0x212   :  { %14 = sbr.rel (!%p12_p6) target bundleno = 2 (0x2), region = 85 }

// kernel: generator_forward.11
= control target key start
LH: loop header
LB: loop body
LE: loop exit
PB: predicated region body
PF: predicated region fallthrough
CT: control target
= control target key end

     0   :  { %v64_v0 = vlaneseq  ;;  %s524_s0 = inlined_call_operand.vmem [shape: bf16[128,256], index: 0, kind: input, shape index: {}]   ;;  %s525_s1 = inlined_call_operand.vmem [shape: f32[1,256], index: 1, kind: input, shape index: {}]   ;;  %s526_s2 = inlined_call_operand.vmem [shape: f32[1,256], index: 2, kind: input, shape index: {}]   ;;  %s527_s3 = inlined_call_operand.vmem [shape: bf16[128,256], index: 3, kind: output, shape index: {}]  }
   0x1   :  { %v14_v1 = vld [vmem:[%s524_s0] sm:$0xff]  ;;  %v15_v6 = vld [vmem:[%s524_s0 + $0x8] sm:$0xff]  ;;  %v16_v7 = vld [vmem:[%s524_s0 + $0x10] sm:$0xff] }
   0x2   :  { %v30_v2 = vld [vmem:[%s525_s1] sm:$0x3]  ;;  %v31_v3 = vunpack.c.l.bf16 %v14_v1  ;;  %v32_v4 = vunpack.c.h.bf16 %v14_v1  ;;  %v65_v5 = vshrl.u32 %v64_v0, 7  ;;  %v17_v8 = vld [vmem:[%s524_s0 + $0x18] sm:$0xff]  ;;  %v33_v10 = vunpack.c.l.bf16 %v15_v6  ;;  %v19_v15 = vld [vmem:[%s524_s0 + $0x28] sm:$0xff] }
   0x3   :  { %v106_v9 = vld [vmem:[%s526_s2] sm:$0x3]  ;;  %v34_v11 = vunpack.c.h.bf16 %v15_v6  ;;  %v35_v12 = vunpack.c.l.bf16 %v16_v7  ;;  %v36_v13 = vunpack.c.h.bf16 %v16_v7  ;;  %v37_v18 = vunpack.c.l.bf16 %v17_v8  ;;  %v20_v20 = vld [vmem:[%s524_s0 + $0x30] sm:$0xff]  ;;  %v21_v21 = vld [vmem:[%s524_s0 + $0x38] sm:$0xff] }
   0x4   :  { %v18_v14 = vld [vmem:[%s524_s0 + $0x20] sm:$0xff]  ;;  %v66_v16 = vsub.s32 0, %v65_v5  ;;  %v70_v17 = vsub.s32 1, %v65_v5  ;;  %v38_v19 = vunpack.c.h.bf16 %v17_v8  ;;  %v41_v24 = vunpack.c.l.bf16 %v19_v15 }
   0x5   :  { %v39_v22 = vunpack.c.l.bf16 %v18_v14  ;;  %v40_v23 = vunpack.c.h.bf16 %v18_v14  ;;  %v42_v25 = vunpack.c.h.bf16 %v19_v15  ;;  %v43_v30 = vunpack.c.l.bf16 %v20_v20 }
   0x6   :  { %v380_v26 = vrot.slane %v30_v2, %v66_v16  ;;  %v382_v27 = vrot.slane %v30_v2, %v70_v17  ;;  %v384_v28 = vrot.slane %v106_v9, %v66_v16  ;;  %v386_v29 = vrot.slane %v106_v9, %v70_v17 }
   0x7   :  { %v44_v31 = vunpack.c.h.bf16 %v20_v20  ;;  %v45_v32 = vunpack.c.l.bf16 %v21_v21  ;;  %v46_v33 = vunpack.c.h.bf16 %v21_v21 }
   0x8   :  { %v74_v34 = vmul.f32 %v380_v26, %v31_v3  ;;  %v75_v35 = vmul.f32 %v382_v27, %v32_v4  ;;  %v76_v36 = vmul.f32 %v380_v26, %v33_v10  ;;  %v77_v37 = vmul.f32 %v382_v27, %v34_v11  ;;  %v22_v10 = vld [vmem:[%s524_s0 + $0x40] sm:$0xff] }
   0x9   :  { %v78_v38 = vmul.f32 %v380_v26, %v35_v12  ;;  %v79_v39 = vmul.f32 %v382_v27, %v36_v13  ;;  %v80_v40 = vmul.f32 %v380_v26, %v37_v18  ;;  %v81_v41 = vmul.f32 %v382_v27, %v38_v19  ;;  %v23_v19 = vld [vmem:[%s524_s0 + $0x48] sm:$0xff] }
   0xa   :  { %v118_v42 = vadd.f32 %v384_v28, %v74_v34  ;;  %v119_v43 = vadd.f32 %v386_v29, %v75_v35  ;;  %v120_v44 = vadd.f32 %v384_v28, %v76_v36  ;;  %v121_v45 = vadd.f32 %v386_v29, %v77_v37 }
   0xb   :  { %v122_v46 = vadd.f32 %v384_v28, %v78_v38  ;;  %v123_v47 = vadd.f32 %v386_v29, %v79_v39  ;;  %v124_v48 = vadd.f32 %v384_v28, %v80_v40  ;;  %v125_v49 = vadd.f32 %v386_v29, %v81_v41 }
   0xc   :  { %v150_v50 = vmax.f32 %v118_v42, 0.0  ;;  %v151_v51 = vmax.f32 %v119_v43, 0.0  ;;  %v152_v52 = vmax.f32 %v120_v44, 0.0  ;;  %v153_v53 = vmax.f32 %v121_v45, 0.0 }
   0xd   :  { %v154_v54 = vmax.f32 %v122_v46, 0.0  ;;  %v155_v55 = vmax.f32 %v123_v47, 0.0  ;;  %v156_v56 = vmax.f32 %v124_v48, 0.0  ;;  %v157_v57 = vmax.f32 %v125_v49, 0.0 }
   0xe   :  { %v314_v58 = vpack.c.bf16 %v151_v51, %v150_v50  ;;  %v315_v59 = vpack.c.bf16 %v153_v53, %v152_v52  ;;  %v82_v60 = vmul.f32 %v380_v26, %v39_v22  ;;  %v83_v61 = vmul.f32 %v382_v27, %v40_v23  ;;  %v26_v50 = vld [vmem:[%s524_s0 + $0x60] sm:$0xff] }
   0xf   :  { %v316_v62 = vpack.c.bf16 %v155_v55, %v154_v54  ;;  %v317_v63 = vpack.c.bf16 %v157_v57, %v156_v56  ;;  %v84_v0 = vmul.f32 %v380_v26, %v41_v24  ;;  %v85_v1 = vmul.f32 %v382_v27, %v42_v25  ;;  %v24_v24 = vld [vmem:[%s524_s0 + $0x50] sm:$0xff] }
  0x10   :  { %278 = vst [vmem:[%s527_s3] sm:$0xff] %v314_v58  ;;  %279 = vst [vmem:[%s527_s3 + $0x8] sm:$0xff] %v315_v59  ;;  %v126_v2 = vadd.f32 %v384_v28, %v82_v60  ;;  %v127_v3 = vadd.f32 %v386_v29, %v83_v61  ;;  %v86_v4 = vmul.f32 %v380_v26, %v43_v30  ;;  %v47_v23 = vunpack.c.l.bf16 %v22_v10 }
  0x11   :  { %v87_v5 = vmul.f32 %v382_v27, %v44_v31  ;;  %280 = vst [vmem:[%s527_s3 + $0x10] sm:$0xff] %v316_v62  ;;  %281 = vst [vmem:[%s527_s3 + $0x18] sm:$0xff] %v317_v63  ;;  %v128_v6 = vadd.f32 %v384_v28, %v84_v0  ;;  %v129_v7 = vadd.f32 %v386_v29, %v85_v1  ;;  %v49_v36 = vunpack.c.l.bf16 %v23_v19  ;;  %v27_v63 = vld [vmem:[%s524_s0 + $0x68] sm:$0xff] }
  0x12   :  { %v88_v8 = vmul.f32 %v380_v26, %v45_v32  ;;  %v89_v9 = vmul.f32 %v382_v27, %v46_v33  ;;  %v158_v11 = vmax.f32 %v126_v2, 0.0  ;;  %v159_v12 = vmax.f32 %v127_v3, 0.0  ;;  %v25_v33 = vld [vmem:[%s524_s0 + $0x58] sm:$0xff] }
  0x13   :  { %v130_v13 = vadd.f32 %v384_v28, %v86_v4  ;;  %v131_v14 = vadd.f32 %v386_v29, %v87_v5  ;;  %v160_v15 = vmax.f32 %v128_v6, 0.0  ;;  %v161_v16 = vmax.f32 %v129_v7, 0.0  ;;  %v28_v4 = vld [vmem:[%s524_s0 + $0x70] sm:$0xff] }
  0x14   :  { %v132_v17 = vadd.f32 %v384_v28, %v88_v8  ;;  %v133_v18 = vadd.f32 %v386_v29, %v89_v9  ;;  %v318_v20 = vpack.c.bf16 %v159_v12, %v158_v11  ;;  %v48_v32 = vunpack.c.h.bf16 %v22_v10  ;;  %v29_v9 = vld [vmem:[%s524_s0 + $0x78] sm:$0xff] }
  0x15   :  { %v162_v21 = vmax.f32 %v130_v13, 0.0  ;;  %v163_v22 = vmax.f32 %v131_v14, 0.0  ;;  %v319_v25 = vpack.c.bf16 %v161_v16, %v160_v15  ;;  %v90_v35 = vmul.f32 %v380_v26, %v47_v23 }
  0x16   :  { %v164_v30 = vmax.f32 %v132_v17, 0.0  ;;  %v165_v31 = vmax.f32 %v133_v18, 0.0  ;;  %282 = vst [vmem:[%s527_s3 + $0x20] sm:$0xff] %v318_v20  ;;  %v50_v37 = vunpack.c.h.bf16 %v23_v19  ;;  %v91_v39 = vmul.f32 %v382_v27, %v48_v32 }
  0x17   :  { %v320_v34 = vpack.c.bf16 %v163_v22, %v162_v21  ;;  %283 = vst [vmem:[%s527_s3 + $0x28] sm:$0xff] %v319_v25  ;;  %v51_v40 = vunpack.c.l.bf16 %v24_v24  ;;  %v52_v41 = vunpack.c.h.bf16 %v24_v24  ;;  %v134_v42 = vadd.f32 %v384_v28, %v90_v35 }
  0x18   :  { %v321_v38 = vpack.c.bf16 %v165_v31, %v164_v30  ;;  %v92_v43 = vmul.f32 %v380_v26, %v49_v36  ;;  %v93_v44 = vmul.f32 %v382_v27, %v50_v37  ;;  %v53_v45 = vunpack.c.l.bf16 %v25_v33 }
  0x19   :  { %284 = vst [vmem:[%s527_s3 + $0x30] sm:$0xff] %v320_v34  ;;  %v135_v46 = vadd.f32 %v386_v29, %v91_v39  ;;  %v94_v47 = vmul.f32 %v380_v26, %v51_v40  ;;  %v95_v48 = vmul.f32 %v382_v27, %v52_v41  ;;  %v54_v49 = vunpack.c.h.bf16 %v25_v33 }
  0x1a   :  { %285 = vst [vmem:[%s527_s3 + $0x38] sm:$0xff] %v321_v38  ;;  %v166_v51 = vmax.f32 %v134_v42, 0.0  ;;  %v136_v52 = vadd.f32 %v384_v28, %v92_v43  ;;  %v137_v53 = vadd.f32 %v386_v29, %v93_v44  ;;  %v96_v54 = vmul.f32 %v380_v26, %v53_v45 }
  0x1b   :  { %v167_v55 = vmax.f32 %v135_v46, 0.0  ;;  %v138_v56 = vadd.f32 %v384_v28, %v94_v47  ;;  %v139_v57 = vadd.f32 %v386_v29, %v95_v48  ;;  %v97_v58 = vmul.f32 %v382_v27, %v54_v49 }
  0x1c   :  { %v168_v59 = vmax.f32 %v136_v52, 0.0  ;;  %v169_v60 = vmax.f32 %v137_v53, 0.0  ;;  %v140_v61 = vadd.f32 %v384_v28, %v96_v54  ;;  %v55_v62 = vunpack.c.l.bf16 %v26_v50 }
  0x1d   :  { %v322_v0 = vpack.c.bf16 %v167_v55, %v166_v51  ;;  %v170_v1 = vmax.f32 %v138_v56, 0.0  ;;  %v171_v2 = vmax.f32 %v139_v57, 0.0  ;;  %v141_v3 = vadd.f32 %v386_v29, %v97_v58 }
  0x1e   :  { %v323_v5 = vpack.c.bf16 %v169_v60, %v168_v59  ;;  %v172_v6 = vmax.f32 %v140_v61, 0.0  ;;  %v56_v7 = vunpack.c.h.bf16 %v26_v50  ;;  %v98_v8 = vmul.f32 %v380_v26, %v55_v62 }
  0x1f   :  { %286 = vst [vmem:[%s527_s3 + $0x40] sm:$0xff] %v322_v0  ;;  %v324_v10 = vpack.c.bf16 %v171_v2, %v170_v1  ;;  %v173_v11 = vmax.f32 %v141_v3, 0.0  ;;  %v57_v12 = vunpack.c.l.bf16 %v27_v63  ;;  %v58_v13 = vunpack.c.h.bf16 %v27_v63 }
  0x20   :  { %287 = vst [vmem:[%s527_s3 + $0x48] sm:$0xff] %v323_v5  ;;  %v99_v14 = vmul.f32 %v382_v27, %v56_v7  ;;  %v142_v15 = vadd.f32 %v384_v28, %v98_v8  ;;  %v59_v16 = vunpack.c.l.bf16 %v28_v4  ;;  %v60_v17 = vunpack.c.h.bf16 %v28_v4 }
  0x21   :  { %288 = vst [vmem:[%s527_s3 + $0x50] sm:$0xff] %v324_v10  ;;  %v325_v18 = vpack.c.bf16 %v173_v11, %v172_v6  ;;  %v100_v19 = vmul.f32 %v380_v26, %v57_v12  ;;  %v101_v20 = vmul.f32 %v382_v27, %v58_v13  ;;  %v61_v21 = vunpack.c.l.bf16 %v29_v9 }
  0x22   :  { %v143_v22 = vadd.f32 %v386_v29, %v99_v14  ;;  %v174_v23 = vmax.f32 %v142_v15, 0.0  ;;  %v102_v24 = vmul.f32 %v380_v26, %v59_v16  ;;  %v103_v25 = vmul.f32 %v382_v27, %v60_v17 }
  0x23   :  { %289 = vst [vmem:[%s527_s3 + $0x58] sm:$0xff] %v325_v18  ;;  %v144_v30 = vadd.f32 %v384_v28, %v100_v19  ;;  %v145_v31 = vadd.f32 %v386_v29, %v101_v20  ;;  %v62_v32 = vunpack.c.h.bf16 %v29_v9  ;;  %v104_v33 = vmul.f32 %v380_v26, %v61_v21 }
  0x24   :  { %v175_v34 = vmax.f32 %v143_v22, 0.0  ;;  %v146_v35 = vadd.f32 %v384_v28, %v102_v24  ;;  %v147_v36 = vadd.f32 %v386_v29, %v103_v25 }
  0x25   :  { %v176_v37 = vmax.f32 %v144_v30, 0.0  ;;  %v177_v38 = vmax.f32 %v145_v31, 0.0  ;;  %v105_v39 = vmul.f32 %v382_v27, %v62_v32  ;;  %v148_v40 = vadd.f32 %v384_v28, %v104_v33 }
  0x26   :  { %v326_v41 = vpack.c.bf16 %v175_v34, %v174_v23  ;;  %v178_v42 = vmax.f32 %v146_v35, 0.0  ;;  %v179_v43 = vmax.f32 %v147_v36, 0.0 }
  0x27   :  { %v327_v44 = vpack.c.bf16 %v177_v38, %v176_v37  ;;  %v149_v45 = vadd.f32 %v386_v29, %v105_v39  ;;  %v180_v46 = vmax.f32 %v148_v40, 0.0 }
  0x28   :  { %290 = vst [vmem:[%s527_s3 + $0x60] sm:$0xff] %v326_v41  ;;  %v328_v26 = vpack.c.bf16 %v179_v43, %v178_v42 }
  0x29   :  { %291 = vst [vmem:[%s527_s3 + $0x68] sm:$0xff] %v327_v44  ;;  %v181_v47 = vmax.f32 %v149_v45, 0.0 }
  0x2a   :  { %292 = vst [vmem:[%s527_s3 + $0x70] sm:$0xff] %v328_v26 }
  0x2b   :  { %v329_v27 = vpack.c.bf16 %v181_v47, %v180_v46 }
  0x2d   :  { %293 = vst [vmem:[%s527_s3 + $0x78] sm:$0xff] %v329_v27 }

// kernel: generator_forward.13
= control target key start
LH: loop header
LB: loop body
LE: loop exit
PB: predicated region body
PF: predicated region fallthrough
CT: control target
= control target key end

     0   :  { %s1502_s0 = inlined_call_operand.vmem [shape: bf16[512,128], index: 0, kind: input, shape index: {}]   ;;  %s1503_s1 = inlined_call_operand.vmem [shape: f32[1,128], index: 1, kind: input, shape index: {}]   ;;  %s1504_s2 = inlined_call_operand.vmem [shape: f32[1,128], index: 2, kind: input, shape index: {}]   ;;  %s1505_s3 = inlined_call_operand.vmem [shape: bf16[512,128], index: 3, kind: output, shape index: {}]  }
   0x1   :  { %v803_v0 = vld [vmem:[%s1502_s0] sm:$0xff]   ;;  %v1090_v4 = vld [vmem:[%s1502_s0 + $0x8] sm:$0xff]   ;;  %v1091_v5 = vld [vmem:[%s1502_s0 + $0x10] sm:$0xff]  }
   0x2   :  { %v1178_v1 = vld [vmem:[%s1503_s1] ss:$0 sm:$0xff]  ;;  %v804_v2 = vunpack.c.l.bf16 %v803_v0  ;;  %v805_v3 = vunpack.c.h.bf16 %v803_v0  ;;  %v1092_v6 = vld [vmem:[%s1502_s0 + $0x18] sm:$0xff]   ;;  %v808_v8 = vunpack.c.l.bf16 %v1090_v4  ;;  %v809_v9 = vunpack.c.h.bf16 %v1090_v4  ;;  %v1094_v33 = vld [vmem:[%s1502_s0 + $0x28] sm:$0xff]  }
   0x3   :  { %v1192_v7 = vld [vmem:[%s1504_s2] ss:$0 sm:$0xff]  ;;  %v812_v10 = vunpack.c.l.bf16 %v1091_v5  ;;  %v813_v11 = vunpack.c.h.bf16 %v1091_v5  ;;  %v816_v14 = vunpack.c.l.bf16 %v1092_v6  ;;  %v817_v15 = vunpack.c.h.bf16 %v1092_v6  ;;  %v1095_v38 = vld [vmem:[%s1502_s0 + $0x30] sm:$0xff]   ;;  %v1096_v43 = vld [vmem:[%s1502_s0 + $0x38] sm:$0xff]  }
   0x4   :  { %v149_v12 = vmul.f32 %v804_v2, %v1178_v1  ;;  %v150_v13 = vmul.f32 %v805_v3, %v1178_v1  ;;  %v151_v16 = vmul.f32 %v808_v8, %v1178_v1  ;;  %v152_v17 = vmul.f32 %v809_v9, %v1178_v1  ;;  %v1093_v28 = vld [vmem:[%s1502_s0 + $0x20] sm:$0xff]  }
   0x5   :  { %v153_v18 = vmul.f32 %v812_v10, %v1178_v1  ;;  %v154_v19 = vmul.f32 %v813_v11, %v1178_v1  ;;  %v155_v22 = vmul.f32 %v816_v14, %v1178_v1  ;;  %v156_v23 = vmul.f32 %v817_v15, %v1178_v1  ;;  %v1097_v0 = vld [vmem:[%s1502_s0 + $0x40] sm:$0xff]   ;;  %v1098_v11 = vld [vmem:[%s1502_s0 + $0x48] sm:$0xff]  }
   0x6   :  { %v220_v20 = vadd.f32 %v1192_v7, %v149_v12  ;;  %v221_v21 = vadd.f32 %v1192_v7, %v150_v13  ;;  %v222_v24 = vadd.f32 %v1192_v7, %v151_v16  ;;  %v223_v25 = vadd.f32 %v1192_v7, %v152_v17  ;;  %v1099_v16 = vld [vmem:[%s1502_s0 + $0x50] sm:$0xff]  }
   0x7   :  { %v224_v26 = vadd.f32 %v1192_v7, %v153_v18  ;;  %v225_v27 = vadd.f32 %v1192_v7, %v154_v19  ;;  %v226_v31 = vadd.f32 %v1192_v7, %v155_v22  ;;  %v227_v32 = vadd.f32 %v1192_v7, %v156_v23 }
   0x8   :  { %v284_v29 = vmax.f32 %v220_v20, 0.0  ;;  %v285_v30 = vmax.f32 %v221_v21, 0.0  ;;  %v286_v34 = vmax.f32 %v222_v24, 0.0  ;;  %v287_v35 = vmax.f32 %v223_v25, 0.0  ;;  %v1100_v25 = vld [vmem:[%s1502_s0 + $0x58] sm:$0xff]  }
   0x9   :  { %v288_v36 = vmax.f32 %v224_v26, 0.0  ;;  %v289_v37 = vmax.f32 %v225_v27, 0.0  ;;  %v290_v40 = vmax.f32 %v226_v31, 0.0  ;;  %v291_v41 = vmax.f32 %v227_v32, 0.0 }
   0xa   :  { %v933_v39 = vpack.c.bf16 %v285_v30, %v284_v29  ;;  %v820_v42 = vunpack.c.l.bf16 %v1093_v28  ;;  %v938_v44 = vpack.c.bf16 %v287_v35, %v286_v34  ;;  %v821_v46 = vunpack.c.h.bf16 %v1093_v28 }
   0xb   :  { %v943_v45 = vpack.c.bf16 %v289_v37, %v288_v36  ;;  %v824_v47 = vunpack.c.l.bf16 %v1094_v33  ;;  %v948_v48 = vpack.c.bf16 %v291_v41, %v290_v40  ;;  %v825_v50 = vunpack.c.h.bf16 %v1094_v33 }
   0xc   :  { %934 = vst [vmem:[%s1505_s3] sm:$0xff] %v933_v39   ;;  %v157_v49 = vmul.f32 %v820_v42, %v1178_v1  ;;  %v828_v51 = vunpack.c.l.bf16 %v1095_v38  ;;  %1121 = vst [vmem:[%s1505_s3 + $0x8] sm:$0xff] %v938_v44   ;;  %v158_v52 = vmul.f32 %v821_v46, %v1178_v1  ;;  %v829_v54 = vunpack.c.h.bf16 %v1095_v38  ;;  %v1101_v38 = vld [vmem:[%s1502_s0 + $0x60] sm:$0xff]  }
   0xd   :  { %1122 = vst [vmem:[%s1505_s3 + $0x10] sm:$0xff] %v943_v45   ;;  %v159_v53 = vmul.f32 %v824_v47, %v1178_v1  ;;  %v832_v55 = vunpack.c.l.bf16 %v1096_v43  ;;  %1123 = vst [vmem:[%s1505_s3 + $0x18] sm:$0xff] %v948_v48   ;;  %v160_v57 = vmul.f32 %v825_v50, %v1178_v1  ;;  %v833_v59 = vunpack.c.h.bf16 %v1096_v43 }
   0xe   :  { %v228_v56 = vadd.f32 %v1192_v7, %v157_v49  ;;  %v161_v58 = vmul.f32 %v828_v51, %v1178_v1  ;;  %v229_v60 = vadd.f32 %v1192_v7, %v158_v52  ;;  %v162_v62 = vmul.f32 %v829_v54, %v1178_v1  ;;  %v1102_v51 = vld [vmem:[%s1502_s0 + $0x68] sm:$0xff]  }
   0xf   :  { %v230_v61 = vadd.f32 %v1192_v7, %v159_v53  ;;  %v163_v63 = vmul.f32 %v832_v55, %v1178_v1  ;;  %v231_v3 = vadd.f32 %v1192_v7, %v160_v57  ;;  %v164_v5 = vmul.f32 %v833_v59, %v1178_v1 }
  0x10   :  { %v292_v2 = vmax.f32 %v228_v56, 0.0  ;;  %v232_v4 = vadd.f32 %v1192_v7, %v161_v58  ;;  %v293_v6 = vmax.f32 %v229_v60, 0.0  ;;  %v233_v9 = vadd.f32 %v1192_v7, %v162_v62  ;;  %v1103_v60 = vld [vmem:[%s1502_s0 + $0x70] sm:$0xff]  }
  0x11   :  { %v294_v8 = vmax.f32 %v230_v61, 0.0  ;;  %v234_v10 = vadd.f32 %v1192_v7, %v163_v63  ;;  %v295_v12 = vmax.f32 %v231_v3, 0.0  ;;  %v235_v14 = vadd.f32 %v1192_v7, %v164_v5 }
  0x12   :  { %v296_v13 = vmax.f32 %v232_v4, 0.0  ;;  %v836_v15 = vunpack.c.l.bf16 %v1097_v0  ;;  %v953_v17 = vpack.c.bf16 %v293_v6, %v292_v2  ;;  %v297_v18 = vmax.f32 %v233_v9, 0.0  ;;  %v1104_v2 = vld [vmem:[%s1502_s0 + $0x78] sm:$0xff]  }
  0x13   :  { %v298_v19 = vmax.f32 %v234_v10, 0.0  ;;  %v837_v20 = vunpack.c.h.bf16 %v1097_v0  ;;  %v958_v21 = vpack.c.bf16 %v295_v12, %v294_v8  ;;  %v299_v22 = vmax.f32 %v235_v14, 0.0  ;;  %v1105_v12 = vld [vmem:[%s1502_s0 + $0x80] sm:$0xff]  }
  0x14   :  { %v165_v23 = vmul.f32 %v836_v15, %v1178_v1  ;;  %v840_v24 = vunpack.c.l.bf16 %v1098_v11  ;;  %1124 = vst [vmem:[%s1505_s3 + $0x20] sm:$0xff] %v953_v17   ;;  %v963_v26 = vpack.c.bf16 %v297_v18, %v296_v13  ;;  %v841_v28 = vunpack.c.h.bf16 %v1098_v11 }
  0x15   :  { %v166_v27 = vmul.f32 %v837_v20, %v1178_v1  ;;  %v844_v29 = vunpack.c.l.bf16 %v1099_v16  ;;  %1125 = vst [vmem:[%s1505_s3 + $0x28] sm:$0xff] %v958_v21   ;;  %v968_v30 = vpack.c.bf16 %v299_v22, %v298_v19  ;;  %v845_v33 = vunpack.c.h.bf16 %v1099_v16 }
  0x16   :  { %v236_v31 = vadd.f32 %v1192_v7, %v165_v23  ;;  %v167_v32 = vmul.f32 %v840_v24, %v1178_v1  ;;  %1126 = vst [vmem:[%s1505_s3 + $0x30] sm:$0xff] %v963_v26   ;;  %v168_v35 = vmul.f32 %v841_v28, %v1178_v1  ;;  %v848_v37 = vunpack.c.l.bf16 %v1100_v25 }
  0x17   :  { %v237_v34 = vadd.f32 %v1192_v7, %v166_v27  ;;  %v169_v36 = vmul.f32 %v844_v29, %v1178_v1  ;;  %1127 = vst [vmem:[%s1505_s3 + $0x38] sm:$0xff] %v968_v30   ;;  %v170_v41 = vmul.f32 %v845_v33, %v1178_v1  ;;  %v849_v42 = vunpack.c.h.bf16 %v1100_v25  ;;  %v1106_v29 = vld [vmem:[%s1502_s0 + $0x88] sm:$0xff]  }
  0x18   :  { %v300_v39 = vmax.f32 %v236_v31, 0.0  ;;  %v238_v40 = vadd.f32 %v1192_v7, %v167_v32  ;;  %v239_v44 = vadd.f32 %v1192_v7, %v168_v35  ;;  %v171_v46 = vmul.f32 %v848_v37, %v1178_v1 }
  0x19   :  { %v301_v43 = vmax.f32 %v237_v34, 0.0  ;;  %v240_v45 = vadd.f32 %v1192_v7, %v169_v36  ;;  %v241_v48 = vadd.f32 %v1192_v7, %v170_v41  ;;  %v172_v49 = vmul.f32 %v849_v42, %v1178_v1  ;;  %v1107_v34 = vld [vmem:[%s1502_s0 + $0x90] sm:$0xff]  }
  0x1a   :  { %v302_v47 = vmax.f32 %v238_v40, 0.0  ;;  %v852_v50 = vunpack.c.l.bf16 %v1101_v38  ;;  %v303_v53 = vmax.f32 %v239_v44, 0.0  ;;  %v242_v55 = vadd.f32 %v1192_v7, %v171_v46 }
  0x1b   :  { %v973_v52 = vpack.c.bf16 %v301_v43, %v300_v39  ;;  %v304_v54 = vmax.f32 %v240_v45, 0.0  ;;  %v305_v56 = vmax.f32 %v241_v48, 0.0  ;;  %v243_v57 = vadd.f32 %v1192_v7, %v172_v49  ;;  %v1108_v43 = vld [vmem:[%s1502_s0 + $0x98] sm:$0xff]  }
  0x1c   :  { %v853_v58 = vunpack.c.h.bf16 %v1101_v38  ;;  %v173_v59 = vmul.f32 %v852_v50, %v1178_v1  ;;  %v978_v61 = vpack.c.bf16 %v303_v53, %v302_v47  ;;  %v306_v62 = vmax.f32 %v242_v55, 0.0 }
  0x1d   :  { %1128 = vst [vmem:[%s1505_s3 + $0x40] sm:$0xff] %v973_v52   ;;  %v856_v63 = vunpack.c.l.bf16 %v1102_v51  ;;  %v857_v0 = vunpack.c.h.bf16 %v1102_v51  ;;  %v983_v3 = vpack.c.bf16 %v305_v56, %v304_v54  ;;  %v307_v4 = vmax.f32 %v243_v57, 0.0  ;;  %v1109_v56 = vld [vmem:[%s1502_s0 + $0xa0] sm:$0xff]  }
  0x1e   :  { %v174_v5 = vmul.f32 %v853_v58, %v1178_v1  ;;  %v244_v6 = vadd.f32 %v1192_v7, %v173_v59  ;;  %1129 = vst [vmem:[%s1505_s3 + $0x48] sm:$0xff] %v978_v61   ;;  %v860_v10 = vunpack.c.l.bf16 %v1103_v60  ;;  %v861_v11 = vunpack.c.h.bf16 %v1103_v60 }
  0x1f   :  { %v175_v8 = vmul.f32 %v856_v63, %v1178_v1  ;;  %v176_v9 = vmul.f32 %v857_v0, %v1178_v1  ;;  %1130 = vst [vmem:[%s1505_s3 + $0x50] sm:$0xff] %v983_v3   ;;  %v988_v13 = vpack.c.bf16 %v307_v4, %v306_v62  ;;  %v864_v16 = vunpack.c.l.bf16 %v1104_v2 }
  0x20   :  { %v245_v14 = vadd.f32 %v1192_v7, %v174_v5  ;;  %v308_v15 = vmax.f32 %v244_v6, 0.0  ;;  %v177_v19 = vmul.f32 %v860_v10, %v1178_v1  ;;  %v178_v20 = vmul.f32 %v861_v11, %v1178_v1 }
  0x21   :  { %v246_v17 = vadd.f32 %v1192_v7, %v175_v8  ;;  %v247_v18 = vadd.f32 %v1192_v7, %v176_v9  ;;  %1131 = vst [vmem:[%s1505_s3 + $0x58] sm:$0xff] %v988_v13   ;;  %v865_v22 = vunpack.c.h.bf16 %v1104_v2  ;;  %v179_v23 = vmul.f32 %v864_v16, %v1178_v1  ;;  %v1110_v2 = vld [vmem:[%s1502_s0 + $0xa8] sm:$0xff]   ;;  %v1111_v16 = vld [vmem:[%s1502_s0 + $0xb0] sm:$0xff]  }
  0x22   :  { %v309_v21 = vmax.f32 %v245_v14, 0.0  ;;  %v868_v24 = vunpack.c.l.bf16 %v1105_v12  ;;  %v248_v27 = vadd.f32 %v1192_v7, %v177_v19  ;;  %v249_v28 = vadd.f32 %v1192_v7, %v178_v20 }
  0x23   :  { %v310_v25 = vmax.f32 %v246_v17, 0.0  ;;  %v311_v26 = vmax.f32 %v247_v18, 0.0  ;;  %v180_v31 = vmul.f32 %v865_v22, %v1178_v1  ;;  %v250_v32 = vadd.f32 %v1192_v7, %v179_v23 }
  0x24   :  { %v993_v30 = vpack.c.bf16 %v309_v21, %v308_v15  ;;  %v869_v33 = vunpack.c.h.bf16 %v1105_v12  ;;  %v312_v36 = vmax.f32 %v248_v27, 0.0  ;;  %v313_v37 = vmax.f32 %v249_v28, 0.0  ;;  %v1112_v21 = vld [vmem:[%s1502_s0 + $0xb8] sm:$0xff]  }
  0x25   :  { %v998_v35 = vpack.c.bf16 %v311_v26, %v310_v25  ;;  %v181_v38 = vmul.f32 %v868_v24, %v1178_v1  ;;  %v251_v39 = vadd.f32 %v1192_v7, %v180_v31  ;;  %v314_v40 = vmax.f32 %v250_v32, 0.0 }
  0x26   :  { %1132 = vst [vmem:[%s1505_s3 + $0x60] sm:$0xff] %v993_v30   ;;  %v182_v41 = vmul.f32 %v869_v33, %v1178_v1  ;;  %v872_v42 = vunpack.c.l.bf16 %v1106_v29  ;;  %v1003_v44 = vpack.c.bf16 %v313_v37, %v312_v36  ;;  %v873_v46 = vunpack.c.h.bf16 %v1106_v29 }
  0x27   :  { %1133 = vst [vmem:[%s1505_s3 + $0x68] sm:$0xff] %v998_v35   ;;  %v252_v45 = vadd.f32 %v1192_v7, %v181_v38  ;;  %v876_v47 = vunpack.c.l.bf16 %v1107_v34  ;;  %v315_v48 = vmax.f32 %v251_v39, 0.0  ;;  %v877_v51 = vunpack.c.h.bf16 %v1107_v34  ;;  %v1113_v34 = vld [vmem:[%s1502_s0 + $0xc0] sm:$0xff]  }
  0x28   :  { %v253_v49 = vadd.f32 %v1192_v7, %v182_v41  ;;  %v183_v50 = vmul.f32 %v872_v42, %v1178_v1  ;;  %1134 = vst [vmem:[%s1505_s3 + $0x70] sm:$0xff] %v1003_v44   ;;  %v184_v53 = vmul.f32 %v873_v46, %v1178_v1  ;;  %v880_v55 = vunpack.c.l.bf16 %v1108_v43 }
  0x29   :  { %v316_v52 = vmax.f32 %v252_v45, 0.0  ;;  %v185_v54 = vmul.f32 %v876_v47, %v1178_v1  ;;  %v1008_v57 = vpack.c.bf16 %v315_v48, %v314_v40  ;;  %v186_v60 = vmul.f32 %v877_v51, %v1178_v1  ;;  %v1114_v47 = vld [vmem:[%s1502_s0 + $0xc8] sm:$0xff]  }
  0x2a   :  { %v317_v58 = vmax.f32 %v253_v49, 0.0  ;;  %v254_v59 = vadd.f32 %v1192_v7, %v183_v50  ;;  %v255_v61 = vadd.f32 %v1192_v7, %v184_v53  ;;  %v881_v63 = vunpack.c.h.bf16 %v1108_v43 }
  0x2b   :  { %v256_v62 = vadd.f32 %v1192_v7, %v185_v54  ;;  %v187_v0 = vmul.f32 %v880_v55, %v1178_v1  ;;  %1135 = vst [vmem:[%s1505_s3 + $0x78] sm:$0xff] %v1008_v57   ;;  %v257_v5 = vadd.f32 %v1192_v7, %v186_v60  ;;  %v884_v6 = vunpack.c.l.bf16 %v1109_v56 }
  0x2c   :  { %v1013_v3 = vpack.c.bf16 %v317_v58, %v316_v52  ;;  %v318_v4 = vmax.f32 %v254_v59, 0.0  ;;  %v319_v8 = vmax.f32 %v255_v61, 0.0  ;;  %v188_v10 = vmul.f32 %v881_v63, %v1178_v1  ;;  %v1115_v52 = vld [vmem:[%s1502_s0 + $0xd0] sm:$0xff]   ;;  %v1116_v61 = vld [vmem:[%s1502_s0 + $0xd8] sm:$0xff]  }
  0x2d   :  { %v320_v9 = vmax.f32 %v256_v62, 0.0  ;;  %v258_v11 = vadd.f32 %v1192_v7, %v187_v0  ;;  %v321_v12 = vmax.f32 %v257_v5, 0.0  ;;  %v885_v13 = vunpack.c.h.bf16 %v1109_v56 }
  0x2e   :  { %1136 = vst [vmem:[%s1505_s3 + $0x80] sm:$0xff] %v1013_v3   ;;  %v189_v14 = vmul.f32 %v884_v6, %v1178_v1  ;;  %v888_v15 = vunpack.c.l.bf16 %v1110_v2  ;;  %v1018_v17 = vpack.c.bf16 %v319_v8, %v318_v4  ;;  %v259_v18 = vadd.f32 %v1192_v7, %v188_v10 }
  0x2f   :  { %v322_v19 = vmax.f32 %v258_v11, 0.0  ;;  %v889_v20 = vunpack.c.h.bf16 %v1110_v2  ;;  %v1023_v22 = vpack.c.bf16 %v321_v12, %v320_v9  ;;  %v190_v23 = vmul.f32 %v885_v13, %v1178_v1  ;;  %v1117_v12 = vld [vmem:[%s1502_s0 + $0xe0] sm:$0xff]  }
  0x30   :  { %v260_v24 = vadd.f32 %v1192_v7, %v189_v14  ;;  %v191_v25 = vmul.f32 %v888_v15, %v1178_v1  ;;  %1137 = vst [vmem:[%s1505_s3 + $0x88] sm:$0xff] %v1018_v17   ;;  %v323_v26 = vmax.f32 %v259_v18, 0.0  ;;  %v892_v28 = vunpack.c.l.bf16 %v1111_v16 }
  0x31   :  { %v192_v27 = vmul.f32 %v889_v20, %v1178_v1  ;;  %v893_v29 = vunpack.c.h.bf16 %v1111_v16  ;;  %1138 = vst [vmem:[%s1505_s3 + $0x90] sm:$0xff] %v1023_v22   ;;  %v261_v30 = vadd.f32 %v1192_v7, %v190_v23  ;;  %v896_v33 = vunpack.c.l.bf16 %v1112_v21 }
  0x32   :  { %v324_v31 = vmax.f32 %v260_v24, 0.0  ;;  %v262_v32 = vadd.f32 %v1192_v7, %v191_v25  ;;  %v1028_v35 = vpack.c.bf16 %v323_v26, %v322_v19  ;;  %v193_v37 = vmul.f32 %v892_v28, %v1178_v1 }
  0x33   :  { %v263_v36 = vadd.f32 %v1192_v7, %v192_v27  ;;  %v194_v38 = vmul.f32 %v893_v29, %v1178_v1  ;;  %v325_v39 = vmax.f32 %v261_v30, 0.0  ;;  %v897_v41 = vunpack.c.h.bf16 %v1112_v21  ;;  %v1118_v21 = vld [vmem:[%s1502_s0 + $0xe8] sm:$0xff]  }
  0x34   :  { %v326_v40 = vmax.f32 %v262_v32, 0.0  ;;  %v195_v42 = vmul.f32 %v896_v33, %v1178_v1  ;;  %1139 = vst [vmem:[%s1505_s3 + $0x98] sm:$0xff] %v1028_v35   ;;  %v264_v44 = vadd.f32 %v1192_v7, %v193_v37  ;;  %v900_v46 = vunpack.c.l.bf16 %v1113_v34 }
  0x35   :  { %v327_v43 = vmax.f32 %v263_v36, 0.0  ;;  %v265_v45 = vadd.f32 %v1192_v7, %v194_v38  ;;  %v1033_v48 = vpack.c.bf16 %v325_v39, %v324_v31  ;;  %v196_v49 = vmul.f32 %v897_v41, %v1178_v1  ;;  %v1120_v39 = vld [vmem:[%s1502_s0 + $0xf8] sm:$0xff]  }
  0x36   :  { %v266_v50 = vadd.f32 %v1192_v7, %v195_v42  ;;  %v901_v51 = vunpack.c.h.bf16 %v1113_v34  ;;  %v328_v54 = vmax.f32 %v264_v44, 0.0  ;;  %v197_v56 = vmul.f32 %v900_v46, %v1178_v1  ;;  %v1119_v34 = vld [vmem:[%s1502_s0 + $0xf0] sm:$0xff]  }
  0x37   :  { %v1038_v53 = vpack.c.bf16 %v327_v43, %v326_v40  ;;  %v329_v55 = vmax.f32 %v265_v45, 0.0  ;;  %1140 = vst [vmem:[%s1505_s3 + $0xa0] sm:$0xff] %v1033_v48   ;;  %v267_v57 = vadd.f32 %v1192_v7, %v196_v49  ;;  %v904_v60 = vunpack.c.l.bf16 %v1114_v47 }
  0x38   :  { %v330_v58 = vmax.f32 %v266_v50, 0.0  ;;  %v198_v59 = vmul.f32 %v901_v51, %v1178_v1  ;;  %v268_v63 = vadd.f32 %v1192_v7, %v197_v56  ;;  %v905_v0 = vunpack.c.h.bf16 %v1114_v47 }
  0x39   :  { %1141 = vst [vmem:[%s1505_s3 + $0xa8] sm:$0xff] %v1038_v53   ;;  %v1043_v62 = vpack.c.bf16 %v329_v55, %v328_v54  ;;  %v908_v2 = vunpack.c.l.bf16 %v1115_v52  ;;  %v331_v3 = vmax.f32 %v267_v57, 0.0  ;;  %v199_v5 = vmul.f32 %v904_v60, %v1178_v1 }
  0x3a   :  { %v269_v4 = vadd.f32 %v1192_v7, %v198_v59  ;;  %v909_v6 = vunpack.c.h.bf16 %v1115_v52  ;;  %v332_v8 = vmax.f32 %v268_v63, 0.0  ;;  %v200_v9 = vmul.f32 %v905_v0, %v1178_v1 }
  0x3b   :  { %1142 = vst [vmem:[%s1505_s3 + $0xb0] sm:$0xff] %v1043_v62   ;;  %v201_v10 = vmul.f32 %v908_v2, %v1178_v1  ;;  %v912_v11 = vunpack.c.l.bf16 %v1116_v61  ;;  %v1048_v13 = vpack.c.bf16 %v331_v3, %v330_v58  ;;  %v270_v15 = vadd.f32 %v1192_v7, %v199_v5 }
  0x3c   :  { %v333_v14 = vmax.f32 %v269_v4, 0.0  ;;  %v202_v16 = vmul.f32 %v909_v6, %v1178_v1  ;;  %v271_v17 = vadd.f32 %v1192_v7, %v200_v9  ;;  %v913_v19 = vunpack.c.h.bf16 %v1116_v61 }
  0x3d   :  { %v272_v18 = vadd.f32 %v1192_v7, %v201_v10  ;;  %v203_v20 = vmul.f32 %v912_v11, %v1178_v1  ;;  %1143 = vst [vmem:[%s1505_s3 + $0xb8] sm:$0xff] %v1048_v13   ;;  %v334_v23 = vmax.f32 %v270_v15, 0.0  ;;  %v916_v25 = vunpack.c.l.bf16 %v1117_v12 }
  0x3e   :  { %v1053_v22 = vpack.c.bf16 %v333_v14, %v332_v8  ;;  %v273_v24 = vadd.f32 %v1192_v7, %v202_v16  ;;  %v335_v26 = vmax.f32 %v271_v17, 0.0  ;;  %v204_v28 = vmul.f32 %v913_v19, %v1178_v1 }
  0x3f   :  { %v336_v27 = vmax.f32 %v272_v18, 0.0  ;;  %v274_v29 = vadd.f32 %v1192_v7, %v203_v20  ;;  %v917_v31 = vunpack.c.h.bf16 %v1117_v12  ;;  %v205_v32 = vmul.f32 %v916_v25, %v1178_v1 }
  0x40   :  { %1144 = vst [vmem:[%s1505_s3 + $0xc0] sm:$0xff] %v1053_v22   ;;  %v337_v30 = vmax.f32 %v273_v24, 0.0  ;;  %v920_v33 = vunpack.c.l.bf16 %v1118_v21  ;;  %v1058_v35 = vpack.c.bf16 %v335_v26, %v334_v23  ;;  %v275_v36 = vadd.f32 %v1192_v7, %v204_v28 }
  0x41   :  { %v338_v37 = vmax.f32 %v274_v29, 0.0  ;;  %v921_v38 = vunpack.c.h.bf16 %v1118_v21  ;;  %v206_v41 = vmul.f32 %v917_v31, %v1178_v1  ;;  %v276_v42 = vadd.f32 %v1192_v7, %v205_v32 }
  0x42   :  { %v1063_v40 = vpack.c.bf16 %v337_v30, %v336_v27  ;;  %v207_v43 = vmul.f32 %v920_v33, %v1178_v1  ;;  %1145 = vst [vmem:[%s1505_s3 + $0xc8] sm:$0xff] %v1058_v35   ;;  %v339_v44 = vmax.f32 %v275_v36, 0.0  ;;  %v924_v46 = vunpack.c.l.bf16 %v1119_v34 }
  0x43   :  { %v208_v45 = vmul.f32 %v921_v38, %v1178_v1  ;;  %v925_v47 = vunpack.c.h.bf16 %v1119_v34  ;;  %v277_v48 = vadd.f32 %v1192_v7, %v206_v41  ;;  %v340_v49 = vmax.f32 %v276_v42, 0.0 }
  0x44   :  { %1146 = vst [vmem:[%s1505_s3 + $0xd0] sm:$0xff] %v1063_v40   ;;  %v278_v50 = vadd.f32 %v1192_v7, %v207_v43  ;;  %v928_v51 = vunpack.c.l.bf16 %v1120_v39  ;;  %v1068_v52 = vpack.c.bf16 %v339_v44, %v338_v37  ;;  %v209_v54 = vmul.f32 %v924_v46, %v1178_v1 }
  0x45   :  { %v279_v53 = vadd.f32 %v1192_v7, %v208_v45  ;;  %v210_v55 = vmul.f32 %v925_v47, %v1178_v1  ;;  %v341_v56 = vmax.f32 %v277_v48, 0.0  ;;  %v929_v58 = vunpack.c.h.bf16 %v1120_v39 }
  0x46   :  { %v342_v57 = vmax.f32 %v278_v50, 0.0  ;;  %v211_v59 = vmul.f32 %v928_v51, %v1178_v1  ;;  %1147 = vst [vmem:[%s1505_s3 + $0xd8] sm:$0xff] %v1068_v52   ;;  %v280_v61 = vadd.f32 %v1192_v7, %v209_v54 }
  0x47   :  { %v343_v60 = vmax.f32 %v279_v53, 0.0  ;;  %v281_v62 = vadd.f32 %v1192_v7, %v210_v55  ;;  %v1073_v63 = vpack.c.bf16 %v341_v56, %v340_v49  ;;  %v212_v0 = vmul.f32 %v929_v58, %v1178_v1 }
  0x48   :  { %v282_v2 = vadd.f32 %v1192_v7, %v211_v59  ;;  %v344_v4 = vmax.f32 %v280_v61, 0.0 }
  0x49   :  { %v1078_v3 = vpack.c.bf16 %v343_v60, %v342_v57  ;;  %v345_v5 = vmax.f32 %v281_v62, 0.0  ;;  %1148 = vst [vmem:[%s1505_s3 + $0xe0] sm:$0xff] %v1073_v63   ;;  %v283_v6 = vadd.f32 %v1192_v7, %v212_v0 }
  0x4a   :  { %v346_v8 = vmax.f32 %v282_v2, 0.0 }
  0x4b   :  { %1149 = vst [vmem:[%s1505_s3 + $0xe8] sm:$0xff] %v1078_v3   ;;  %v1083_v9 = vpack.c.bf16 %v345_v5, %v344_v4  ;;  %v347_v10 = vmax.f32 %v283_v6, 0.0 }
  0x4d   :  { %1150 = vst [vmem:[%s1505_s3 + $0xf0] sm:$0xff] %v1083_v9   ;;  %v1088_v1 = vpack.c.bf16 %v347_v10, %v346_v8 }
  0x4f   :  { %1151 = vst [vmem:[%s1505_s3 + $0xf8] sm:$0xff] %v1088_v1  }

// kernel: generator_forward.12
= control target key start
LH: loop header
LB: loop body
LE: loop exit
PB: predicated region body
PF: predicated region fallthrough
CT: control target
= control target key end

     0   :  { %s2427_s15 = smov 0   ;;  %s2429_s16 = smov 0   ;;  %s2760_s0 = inlined_call_operand.vmem [shape: bf16[4,128,1024], index: 0, kind: input, shape index: {}]   ;;  %s2761_s1 = inlined_call_operand.vmem [shape: bf16[4,1024,128], index: 1, kind: input, shape index: {}]   ;;  %s2762_s2 = inlined_call_operand.vmem [shape: bf16[4,128,128], index: 2, kind: output, shape index: {0}]   ;;  %s2763_s3 = inlined_call_operand.vmem [shape: f32[1,128], index: 3, kind: output, shape index: {1}]   ;;  %s2764_s4 = inlined_call_operand.vmem [shape: f32[1,128], index: 4, kind: output, shape index: {2}]  }
   0x1   :  { %s2431_s17 = smov 0  }
   0x2 LB: > { %s27_s18 = sadd.s32 1, %s2396_s16  ;;  %p1813_p0 = scmp.ge.s32.totalorder %s2400_s17, 1  ;;  %s2400_s17 = sphi %s2431_s17, %s15_s17   ;;  %s2396_s16 = sphi %s2429_s16, %s2766_s16   ;;  %s2392_s15 = sphi %s2427_s15, %s2765_s15  }
   0x3   : > { %p29_p1 = scmp.ge.s32.totalorder %s27_s18, 4  ;;  %p189_p2 = scmp.lt.s32.totalorder %s2400_s17, 5 }
   0x5   : > { %s2768_s18 = smov (%p29_p1, %s27_s18), 0  ;;  %p190_p3 = pnand %p1813_p0, %p189_p2 }
   0x6   : > { %p230_p4 = scmp.lt.s32.totalorder (!%p190_p3), %s2392_s15, 3  ;;  %p1678_p5 = scmp.eq.s32.totalorder (!%p190_p3), %s2392_s15, 0 }
   0x7   : > { %193 = sbr.rel (%p190_p3) target bundleno = 403 (0x193), region = 28 }
   0xc   : > { %s2449_s19 = scalar_select %p230_p4, %s2392_s15, 3 }
   0xe   : > { %s1967_s20 = sshll.u32 %s2449_s19, 9  ;;  %s1969_s27 = sshll.u32 %s2449_s19, 6 }
   0xf   : > { %s2457_s23 = scalar_lea.vmem %s2761_s1, %s1967_s20  ;;  %s2494_s26 = scalar_lea.vmem %s2760_s0, %s1967_s20 }
  0x10   : > { %v2314_v0 = vld [vmem:[%s2457_s23 + $0x78] sm:$0xff]   ;;  %v2318_v4 = vld [vmem:[%s2457_s23 + $0x70] sm:$0xff]   ;;  %v2322_v8 = vld [vmem:[%s2457_s23 + $0x68] sm:$0xff]   ;;  %s2688_s30 = scalar_lea.vmem %s2762_s2, %s1969_s27 }
  0x11   : > { %v2315_v1 = vld [vmem:[%s2457_s23 + $0xf8] sm:$0xff]   ;;  %2034 = vmatprep.subr.bf16.mxu0 %v2314_v0  ;;  %v2319_v5 = vld [vmem:[%s2457_s23 + $0xf0] sm:$0xff]   ;;  %v2323_v9 = vld [vmem:[%s2457_s23 + $0xe8] sm:$0xff]  }
  0x12   : > { %v2316_v2 = vld [vmem:[%s2457_s23 + $0x38] sm:$0xff]   ;;  %2098 = vmatprep.subr.bf16.mxu1 %v2315_v1  ;;  %v2320_v6 = vld [vmem:[%s2457_s23 + $0x30] sm:$0xff]   ;;  %v2324_v10 = vld [vmem:[%s2457_s23 + $0x28] sm:$0xff]  }
  0x13   : > { %v2317_v3 = vld [vmem:[%s2457_s23 + $0xb8] sm:$0xff]   ;;  %2035 = vmatpush3.bf16.msra.mxu0 %v2316_v2  ;;  %v2321_v7 = vld [vmem:[%s2457_s23 + $0xb0] sm:$0xff]   ;;  %v2325_v11 = vld [vmem:[%s2457_s23 + $0xa8] sm:$0xff]  }
  0x14   : > { %2099 = vmatpush3.bf16.msra.mxu1 %v2317_v3  ;;  %2036 = vmatprep.subr.bf16.mxu0 %v2318_v4  ;;  %v2326_v12 = vld [vmem:[%s2457_s23 + $0x60] sm:$0xff]   ;;  %v2330_v16 = vld [vmem:[%s2457_s23 + $0x58] sm:$0xff]   ;;  %v2334_v20 = vld [vmem:[%s2457_s23 + $0x50] sm:$0xff]  }
  0x15   : > { %2100 = vmatprep.subr.bf16.mxu1 %v2319_v5  ;;  %v2327_v13 = vld [vmem:[%s2457_s23 + $0xe0] sm:$0xff]   ;;  %v2331_v17 = vld [vmem:[%s2457_s23 + $0xd8] sm:$0xff]   ;;  %v2335_v21 = vld [vmem:[%s2457_s23 + $0xd0] sm:$0xff]  }
  0x16   : > { %v2328_v14 = vld [vmem:[%s2457_s23 + $0x20] sm:$0xff]   ;;  %v2332_v18 = vld [vmem:[%s2457_s23 + $0x18] sm:$0xff]   ;;  %v2336_v22 = vld [vmem:[%s2457_s23 + $0x10] sm:$0xff]  }
  0x17   : > { %2037 = vmatpush3.bf16.msra.mxu0 %v2320_v6  ;;  %v2329_v15 = vld [vmem:[%s2457_s23 + $0xa0] sm:$0xff]   ;;  %v2333_v19 = vld [vmem:[%s2457_s23 + $0x98] sm:$0xff]   ;;  %v2337_v23 = vld [vmem:[%s2457_s23 + $0x90] sm:$0xff]  }
  0x18   : > { %2101 = vmatpush3.bf16.msra.mxu1 %v2321_v7  ;;  %2038 = vmatprep.subr.bf16.mxu0 %v2322_v8  ;;  %v2338_v24 = vld [vmem:[%s2457_s23 + $0x48] sm:$0xff]   ;;  %v2342_v28 = vld [vmem:[%s2457_s23 + $0x40] sm:$0xff]   ;;  %v2346_v40 = vld [vmem:[%s2457_s23 + $0x178] sm:$0xff]  }
  0x19   : > { %2102 = vmatprep.subr.bf16.mxu1 %v2323_v9  ;;  %v2339_v25 = vld [vmem:[%s2457_s23 + $0xc8] sm:$0xff]   ;;  %v2343_v29 = vld [vmem:[%s2457_s23 + $0xc0] sm:$0xff]   ;;  %v2347_v41 = vld [vmem:[%s2457_s23 + $0x138] sm:$0xff]  }
  0x1a   : > { %v2340_v26 = vld [vmem:[%s2457_s23 + $0x8] sm:$0xff]   ;;  %v2344_v30 = vld [vmem:[%s2457_s23] sm:$0xff]   ;;  %v2348_v42 = vld [vmem:[%s2457_s23 + $0x1f8] sm:$0xff]  }
  0x1b   : > { %2039 = vmatpush3.bf16.msra.mxu0 %v2324_v10  ;;  %v2341_v27 = vld [vmem:[%s2457_s23 + $0x88] sm:$0xff]   ;;  %v2345_v31 = vld [vmem:[%s2457_s23 + $0x80] sm:$0xff]   ;;  %v2349_v43 = vld [vmem:[%s2457_s23 + $0x1b8] sm:$0xff]  }
  0x1c   : > { %2103 = vmatpush3.bf16.msra.mxu1 %v2325_v11  ;;  %2040 = vmatprep.subr.bf16.mxu0 %v2326_v12  ;;  %v256_v32 = vld [vmem:[%s2494_s26] sm:$0xff]  ;;  %v257_v34 = vld [vmem:[%s2494_s26 + $0x8] sm:$0xff]  ;;  %v2350_v50 = vld [vmem:[%s2457_s23 + $0x170] sm:$0xff]  }
  0x1d   : > { %2104 = vmatprep.subr.bf16.mxu1 %v2327_v13  ;;  %v260_v33 = vld [vmem:[%s2494_s26 + $0x20] sm:$0xff]  ;;  %v261_v37 = vld [vmem:[%s2494_s26 + $0x28] sm:$0xff]  ;;  %v2351_v52 = vld [vmem:[%s2457_s23 + $0x130] sm:$0xff]  }
  0x1e   : > { %v1820_v35 = vcombine.low %v256_v32, %v260_v33  ;;  %v1821_v36 = vcombine.high %v256_v32, %v260_v33  ;;  %v1822_v38 = vcombine.low %v257_v34, %v261_v37  ;;  %v1823_v39 = vcombine.high %v257_v34, %v261_v37  ;;  %v264_v44 = vld [vmem:[%s2494_s26 + $0x40] sm:$0xff]  ;;  %v265_v47 = vld [vmem:[%s2494_s26 + $0x48] sm:$0xff]  ;;  %v2352_v54 = vld [vmem:[%s2457_s23 + $0x1f0] sm:$0xff]  }
  0x1f   : > { %2041 = vmatpush3.bf16.msra.mxu0 %v2328_v14  ;;  %v268_v45 = vld [vmem:[%s2494_s26 + $0x60] sm:$0xff]  ;;  %v269_v48 = vld [vmem:[%s2494_s26 + $0x68] sm:$0xff]  ;;  %v2353_v55 = vld [vmem:[%s2457_s23 + $0x1b0] sm:$0xff]  }
  0x20   : > { %2105 = vmatpush3.bf16.msra.mxu1 %v2329_v15  ;;  %2042 = vmatprep.subr.bf16.mxu0 %v2330_v16  ;;  %v1829_v46 = vcombine.high %v264_v44, %v268_v45  ;;  %v1831_v49 = vcombine.high %v265_v47, %v269_v48  ;;  %v1828_v51 = vcombine.low %v264_v44, %v268_v45  ;;  %v272_v56 = vld [vmem:[%s2494_s26 + $0x80] sm:$0xff]  ;;  %v273_v58 = vld [vmem:[%s2494_s26 + $0x88] sm:$0xff]  ;;  %v2368_v32 = vld [vmem:[%s2457_s23 + $0x1d0] sm:$0xff]  }
  0x21   : > { %2106 = vmatprep.subr.bf16.mxu1 %v2331_v17  ;;  %1184 = vmatprep.mubr.bf16.mxu0 %v1821_v36  ;;  %v1830_v53 = vcombine.low %v265_v47, %v269_v48  ;;  %v276_v57 = vld [vmem:[%s2494_s26 + $0xa0] sm:$0xff]  ;;  %v277_v59 = vld [vmem:[%s2494_s26 + $0xa8] sm:$0xff]  ;;  %v2369_v33 = vld [vmem:[%s2457_s23 + $0x190] sm:$0xff]  }
  0x22   : > { %1281 = vmatprep.mubr.bf16.mxu1 %v1823_v39  ;;  %v1837_v60 = vcombine.high %v272_v56, %v276_v57  ;;  %v1839_v61 = vcombine.high %v273_v58, %v277_v59  ;;  %v2354_v62 = vld [vmem:[%s2457_s23 + $0x168] sm:$0xff]   ;;  %v1836_v2 = vcombine.low %v272_v56, %v276_v57  ;;  %v280_v3 = vld [vmem:[%s2494_s26 + $0xc0] sm:$0xff]  ;;  %v1838_v6 = vcombine.low %v273_v58, %v277_v59 }
  0x23   : > { %2043 = vmatpush3.bf16.msra.mxu0 %v2332_v18  ;;  %v2355_v63 = vld [vmem:[%s2457_s23 + $0x128] sm:$0xff]   ;;  %v284_v4 = vld [vmem:[%s2494_s26 + $0xe0] sm:$0xff]  ;;  %v2362_v18 = vld [vmem:[%s2457_s23 + $0x158] sm:$0xff]  }
  0x24   : > { %2107 = vmatpush3.bf16.msra.mxu1 %v2333_v19  ;;  %2044 = vmatprep.subr.bf16.mxu0 %v2334_v20  ;;  %v2356_v0 = vld [vmem:[%s2457_s23 + $0x1e8] sm:$0xff]   ;;  %v1845_v7 = vcombine.high %v280_v3, %v284_v4  ;;  %v2358_v10 = vld [vmem:[%s2457_s23 + $0x160] sm:$0xff]   ;;  %v1844_v19 = vcombine.low %v280_v3, %v284_v4  ;;  %v2363_v20 = vld [vmem:[%s2457_s23 + $0x118] sm:$0xff]  }
  0x25   : > { %2108 = vmatprep.subr.bf16.mxu1 %v2335_v21  ;;  %v2357_v1 = vld [vmem:[%s2457_s23 + $0x1a8] sm:$0xff]   ;;  %v2359_v11 = vld [vmem:[%s2457_s23 + $0x120] sm:$0xff]  }
  0x26   : > { %v281_v5 = vld [vmem:[%s2494_s26 + $0xc8] sm:$0xff]  ;;  %v2360_v12 = vld [vmem:[%s2457_s23 + $0x1e0] sm:$0xff]  }
  0x27   : > { %2045 = vmatpush3.bf16.msra.mxu0 %v2336_v22  ;;  %v285_v8 = vld [vmem:[%s2494_s26 + $0xe8] sm:$0xff]  ;;  %v2361_v13 = vld [vmem:[%s2457_s23 + $0x1a0] sm:$0xff]  }
  0x28   : > { %2109 = vmatpush3.bf16.msra.mxu1 %v2337_v23  ;;  %2046 = vmatprep.subr.bf16.mxu0 %v2338_v24  ;;  %v1847_v9 = vcombine.high %v281_v5, %v285_v8  ;;  %v288_v14 = vld [vmem:[%s2494_s26 + $0x100] sm:$0xff]  ;;  %v289_v16 = vld [vmem:[%s2494_s26 + $0x108] sm:$0xff]  ;;  %v1846_v21 = vcombine.low %v281_v5, %v285_v8  ;;  %v2364_v23 = vld [vmem:[%s2457_s23 + $0x1d8] sm:$0xff]  }
  0x29   : > { %2110 = vmatprep.subr.bf16.mxu1 %v2339_v25  ;;  %v292_v15 = vld [vmem:[%s2494_s26 + $0x120] sm:$0xff]  ;;  %v293_v17 = vld [vmem:[%s2494_s26 + $0x128] sm:$0xff]  ;;  %v2365_v25 = vld [vmem:[%s2457_s23 + $0x198] sm:$0xff]  }
  0x2a   : > { %v1853_v22 = vcombine.high %v288_v14, %v292_v15  ;;  %v1855_v24 = vcombine.high %v289_v16, %v293_v17  ;;  %v1852_v34 = vcombine.low %v288_v14, %v292_v15  ;;  %v2371_v39 = vld [vmem:[%s2457_s23 + $0x108] sm:$0xff]   ;;  %v2375_v48 = vld [vmem:[%s2457_s23 + $0x100] sm:$0xff]   ;;  %v267_v8 = vld [vmem:[%s2494_s26 + $0x58] sm:$0xff] }
  0x2b   : > { %2047 = vmatpush3.bf16.msra.mxu0 %v2340_v26  ;;  %v296_v26 = vld [vmem:[%s2494_s26 + $0x140] sm:$0xff]  ;;  %v305_v44 = vld [vmem:[%s2494_s26 + $0x188] sm:$0xff]  ;;  %v274_v14 = vld [vmem:[%s2494_s26 + $0x90] sm:$0xff] }
  0x2c   : > { %2111 = vmatpush3.bf16.msra.mxu1 %v2341_v27  ;;  %2048 = vmatprep.subr.bf16.mxu0 %v2342_v28  ;;  %v300_v27 = vld [vmem:[%s2494_s26 + $0x160] sm:$0xff]  ;;  %v2366_v28 = vld [vmem:[%s2457_s23 + $0x150] sm:$0xff]   ;;  %v309_v45 = vld [vmem:[%s2494_s26 + $0x1a8] sm:$0xff] }
  0x2d   : > { %2112 = vmatprep.subr.bf16.mxu1 %v2343_v29  ;;  %v297_v29 = vld [vmem:[%s2494_s26 + $0x148] sm:$0xff]  ;;  %v1861_v36 = vcombine.high %v296_v26, %v300_v27  ;;  %v1860_v47 = vcombine.low %v296_v26, %v300_v27  ;;  %v1870_v59 = vcombine.low %v305_v44, %v309_v45  ;;  %v278_v15 = vld [vmem:[%s2494_s26 + $0xb0] sm:$0xff] }
  0x2e   : > { %v313_v56 = vld [vmem:[%s2494_s26 + $0x1c8] sm:$0xff]  ;;  %v1840_v26 = vcombine.low %v274_v14, %v278_v15 }
  0x2f   : > { %2049 = vmatpush3.bf16.msra.mxu0 %v2344_v30  ;;  %v301_v30 = vld [vmem:[%s2494_s26 + $0x168] sm:$0xff] }
  0x30   : > { %2113 = vmatpush3.bf16.msra.mxu1 %v2345_v31  ;;  %2162 = vmatprep.subr.bf16.mxu0 %v2346_v40  ;;  %v2367_v31 = vld [vmem:[%s2457_s23 + $0x110] sm:$0xff]   ;;  %v1863_v37 = vcombine.high %v297_v29, %v301_v30  ;;  %v2372_v40 = vld [vmem:[%s2457_s23 + $0x1c8] sm:$0xff]  }
  0x31   : > { %2226 = vmatprep.subr.bf16.mxu1 %v2348_v42  ;;  %v308_v42 = vld [vmem:[%s2494_s26 + $0x1a0] sm:$0xff]  ;;  %v317_v57 = vld [vmem:[%s2494_s26 + $0x1e8] sm:$0xff] }
  0x32   : > { %1185 = vmatmul.mubr.bf16.vlgmr.msra.gmra.mxu0 %v1820_v35  ;;  %v1854_v35 = vcombine.low %v289_v16, %v293_v17  ;;  %v1878_v3 = vcombine.low %v313_v56, %v317_v57  ;;  %v275_v16 = vld [vmem:[%s2494_s26 + $0x98] sm:$0xff] }
  0x33   : > { %1282 = vmatmul.mubr.bf16.vlgmr.msra.gmra.mxu1 %v1822_v38  ;;  %2163 = vmatpush3.bf16.msra.mxu0 %v2347_v41  ;;  %v2370_v38 = vld [vmem:[%s2457_s23 + $0x148] sm:$0xff]   ;;  %v304_v41 = vld [vmem:[%s2494_s26 + $0x180] sm:$0xff]  ;;  %v279_v17 = vld [vmem:[%s2494_s26 + $0xb8] sm:$0xff] }
  0x34   : > { %2227 = vmatpush3.bf16.msra.mxu1 %v2349_v43  ;;  %1192 = vmatprep.mubr.bf16.mxu0 %v1829_v46  ;;  %v2373_v43 = vld [vmem:[%s2457_s23 + $0x188] sm:$0xff]   ;;  %v2374_v46 = vld [vmem:[%s2457_s23 + $0x140] sm:$0xff]   ;;  %v1868_v58 = vcombine.low %v304_v41, %v308_v42  ;;  %v1842_v27 = vcombine.low %v275_v16, %v279_v17 }
  0x35   : > { %1289 = vmatprep.mubr.bf16.mxu1 %v1831_v49  ;;  %2164 = vmatprep.subr.bf16.mxu0 %v2350_v50  ;;  %v1862_v49 = vcombine.low %v297_v29, %v301_v30  ;;  %v1869_v50 = vcombine.high %v304_v41, %v308_v42  ;;  %v290_v30 = vld [vmem:[%s2494_s26 + $0x110] sm:$0xff]  ;;  %v303_v41 = vld [vmem:[%s2494_s26 + $0x178] sm:$0xff] }
  0x36   : > { %2228 = vmatprep.subr.bf16.mxu1 %v2352_v54  ;;  %v312_v54 = vld [vmem:[%s2494_s26 + $0x1c0] sm:$0xff] }
  0x37   : > { %2165 = vmatpush3.bf16.msra.mxu0 %v2351_v52  ;;  %v1871_v52 = vcombine.high %v305_v44, %v309_v45 }
  0x38   : > { %2229 = vmatpush3.bf16.msra.mxu1 %v2353_v55  ;;  %2166 = vmatprep.subr.bf16.mxu0 %v2354_v62  ;;  %v316_v55 = vld [vmem:[%s2494_s26 + $0x1e0] sm:$0xff]  ;;  %v258_v62 = vld [vmem:[%s2494_s26 + $0x10] sm:$0xff] }
  0x39   : > { %2230 = vmatprep.subr.bf16.mxu1 %v2356_v0  ;;  %v259_v0 = vld [vmem:[%s2494_s26 + $0x18] sm:$0xff] }
  0x3a   : > { %1193 = vmatmul.mubr.bf16.gmra.mxu0 %v1828_v51  ;;  %v2376_v51 = vld [vmem:[%s2457_s23 + $0x1c0] sm:$0xff]  }
  0x3b   : > { %1290 = vmatmul.mubr.bf16.gmra.mxu1 %v1830_v53  ;;  %1200 = vmatprep.mubr.bf16.mxu0 %v1837_v60  ;;  %v2377_v53 = vld [vmem:[%s2457_s23 + $0x180] sm:$0xff]   ;;  %v1877_v60 = vcombine.high %v312_v54, %v316_v55 }
  0x3c   : > { %1297 = vmatprep.mubr.bf16.mxu1 %v1839_v61  ;;  %2167 = vmatpush3.bf16.msra.mxu0 %v2355_v63  ;;  %v1879_v61 = vcombine.high %v313_v56, %v317_v57  ;;  %v262_v63 = vld [vmem:[%s2494_s26 + $0x30] sm:$0xff]  ;;  %v315_v56 = vld [vmem:[%s2494_s26 + $0x1d8] sm:$0xff] }
  0x3d   : > { %2231 = vmatpush3.bf16.msra.mxu1 %v2357_v1  ;;  %2168 = vmatprep.subr.bf16.mxu0 %v2358_v10  ;;  %v263_v1 = vld [vmem:[%s2494_s26 + $0x38] sm:$0xff]  ;;  %v1825_v4 = vcombine.high %v258_v62, %v262_v63  ;;  %v1824_v10 = vcombine.low %v258_v62, %v262_v63 }
  0x3e   : > { %2232 = vmatprep.subr.bf16.mxu1 %v2360_v12  ;;  %v1827_v5 = vcombine.high %v259_v0, %v263_v1  ;;  %v319_v57 = vld [vmem:[%s2494_s26 + $0x1f8] sm:$0xff] }
  0x3f   : > { %v1882_v63 = vcombine.low %v315_v56, %v319_v57 }
  0x40   : > { %2169 = vmatpush3.bf16.msra.mxu0 %v2359_v11  ;;  %v1826_v11 = vcombine.low %v259_v0, %v263_v1 }
  0x41   : > { %2233 = vmatpush3.bf16.msra.mxu1 %v2361_v13  ;;  %2170 = vmatprep.subr.bf16.mxu0 %v2362_v18 }
  0x42   : > { %1201 = vmatmul.mubr.bf16.gmra.mxu0 %v1836_v2  ;;  %2234 = vmatprep.subr.bf16.mxu1 %v2364_v23  ;;  %v1876_v2 = vcombine.low %v312_v54, %v316_v55  ;;  %v286_v23 = vld [vmem:[%s2494_s26 + $0xf0] sm:$0xff] }
  0x43   : > { %1298 = vmatmul.mubr.bf16.gmra.mxu1 %v1838_v6  ;;  %1208 = vmatprep.mubr.bf16.mxu0 %v1845_v7  ;;  %v266_v6 = vld [vmem:[%s2494_s26 + $0x50] sm:$0xff] }
  0x44   : > { %1305 = vmatprep.mubr.bf16.mxu1 %v1847_v9  ;;  %2171 = vmatpush3.bf16.msra.mxu0 %v2363_v20  ;;  %v270_v7 = vld [vmem:[%s2494_s26 + $0x70] sm:$0xff]  ;;  %v271_v9 = vld [vmem:[%s2494_s26 + $0x78] sm:$0xff]  ;;  %v1841_v20 = vcombine.high %v274_v14, %v278_v15 }
  0x45   : > { %2235 = vmatpush3.bf16.msra.mxu1 %v2365_v25  ;;  %2172 = vmatprep.subr.bf16.mxu0 %v2366_v28  ;;  %v1833_v12 = vcombine.high %v266_v6, %v270_v7  ;;  %v1835_v13 = vcombine.high %v267_v8, %v271_v9  ;;  %v1832_v18 = vcombine.low %v266_v6, %v270_v7  ;;  %v287_v25 = vld [vmem:[%s2494_s26 + $0xf8] sm:$0xff]  ;;  %v314_v54 = vld [vmem:[%s2494_s26 + $0x1d0] sm:$0xff] }
  0x46   : > { %2236 = vmatprep.subr.bf16.mxu1 %v2368_v32  ;;  %v291_v32 = vld [vmem:[%s2494_s26 + $0x118] sm:$0xff]  ;;  %v318_v55 = vld [vmem:[%s2494_s26 + $0x1f0] sm:$0xff] }
  0x47   : > { %v1880_v62 = vcombine.low %v314_v54, %v318_v55 }
  0x48   : > { %2173 = vmatpush3.bf16.msra.mxu0 %v2367_v31  ;;  %v294_v31 = vld [vmem:[%s2494_s26 + $0x130] sm:$0xff] }
  0x49   : > { %2237 = vmatpush3.bf16.msra.mxu1 %v2369_v33  ;;  %2174 = vmatprep.subr.bf16.mxu0 %v2370_v38  ;;  %v295_v33 = vld [vmem:[%s2494_s26 + $0x138] sm:$0xff]  ;;  %v298_v38 = vld [vmem:[%s2494_s26 + $0x150] sm:$0xff]  ;;  %v1856_v42 = vcombine.low %v290_v30, %v294_v31 }
  0x4a   : > { %1209 = vmatmul.mubr.bf16.gmra.mxu0 %v1844_v19  ;;  %2238 = vmatprep.subr.bf16.mxu1 %v2372_v40  ;;  %v1834_v19 = vcombine.low %v267_v8, %v271_v9  ;;  %v299_v40 = vld [vmem:[%s2494_s26 + $0x158] sm:$0xff] }
  0x4b   : > { %1306 = vmatmul.mubr.bf16.gmra.mxu1 %v1846_v21  ;;  %1216 = vmatprep.mubr.bf16.mxu0 %v1853_v22  ;;  %v1843_v21 = vcombine.high %v275_v16, %v279_v17  ;;  %v282_v22 = vld [vmem:[%s2494_s26 + $0xd0] sm:$0xff]  ;;  %v1867_v45 = vcombine.high %v299_v40, %v303_v41 }
  0x4c   : > { %1313 = vmatprep.mubr.bf16.mxu1 %v1855_v24  ;;  %2175 = vmatpush3.bf16.msra.mxu0 %v2371_v39  ;;  %v283_v24 = vld [vmem:[%s2494_s26 + $0xd8] sm:$0xff]  ;;  %v1849_v28 = vcombine.high %v282_v22, %v286_v23  ;;  %v302_v39 = vld [vmem:[%s2494_s26 + $0x170] sm:$0xff] }
  0x4d   : > { %2239 = vmatpush3.bf16.msra.mxu1 %v2373_v43  ;;  %2176 = vmatprep.subr.bf16.mxu0 %v2374_v46  ;;  %v1851_v29 = vcombine.high %v283_v24, %v287_v25  ;;  %v1858_v43 = vcombine.low %v291_v32, %v295_v33  ;;  %v1865_v44 = vcombine.high %v298_v38, %v302_v39  ;;  %v306_v46 = vld [vmem:[%s2494_s26 + $0x190] sm:$0xff] }
  0x4e   : > { %2240 = vmatprep.subr.bf16.mxu1 %v2376_v51  ;;  %v1866_v51 = vcombine.low %v299_v40, %v303_v41 }
  0x50   : > { %2177 = vmatpush3.bf16.msra.mxu0 %v2375_v48  ;;  %v307_v48 = vld [vmem:[%s2494_s26 + $0x198] sm:$0xff] }
  0x51   : > { %2241 = vmatpush3.bf16.msra.mxu1 %v2377_v53 }
  0x52   : > { %1217 = vmatmul.mubr.bf16.gmra.mxu0 %v1852_v34  ;;  %v1848_v34 = vcombine.low %v282_v22, %v286_v23 }
  0x53   : > { %1314 = vmatmul.mubr.bf16.gmra.mxu1 %v1854_v35  ;;  %1224 = vmatprep.mubr.bf16.mxu0 %v1861_v36  ;;  %v1850_v35 = vcombine.low %v283_v24, %v287_v25  ;;  %v1857_v36 = vcombine.high %v290_v30, %v294_v31 }
  0x54   : > { %1321 = vmatprep.mubr.bf16.mxu1 %v1863_v37  ;;  %v1859_v37 = vcombine.high %v291_v32, %v295_v33 }
  0x5a   : > { %1225 = vmatmul.mubr.bf16.gmra.mxu0 %v1860_v47  ;;  %v310_v47 = vld [vmem:[%s2494_s26 + $0x1b0] sm:$0xff] }
  0x5b   : > { %1322 = vmatmul.mubr.bf16.gmra.mxu1 %v1862_v49  ;;  %1232 = vmatprep.mubr.bf16.mxu0 %v1869_v50  ;;  %v311_v49 = vld [vmem:[%s2494_s26 + $0x1b8] sm:$0xff]  ;;  %v1864_v50 = vcombine.low %v298_v38, %v302_v39 }
  0x5c   : > { %1329 = vmatprep.mubr.bf16.mxu1 %v1871_v52  ;;  %v1873_v52 = vcombine.high %v306_v46, %v310_v47  ;;  %v1875_v53 = vcombine.high %v307_v48, %v311_v49 }
  0x62   : > { %1233 = vmatmul.mubr.bf16.gmra.mxu0 %v1868_v58  ;;  %v1872_v58 = vcombine.low %v306_v46, %v310_v47 }
  0x63   : > { %1330 = vmatmul.mubr.bf16.gmra.mxu1 %v1870_v59  ;;  %1240 = vmatprep.mubr.bf16.mxu0 %v1877_v60  ;;  %v1874_v59 = vcombine.low %v307_v48, %v311_v49  ;;  %v1881_v60 = vcombine.high %v314_v54, %v318_v55 }
  0x64   : > { %1337 = vmatprep.mubr.bf16.mxu1 %v1879_v61  ;;  %v1883_v61 = vcombine.high %v315_v56, %v319_v57 }
  0x6a   : > { %1241 = vmatmul.mubr.bf16.gmra.mxu0 %v1876_v2 }
  0x6b   : > { %1338 = vmatmul.mubr.bf16.gmra.mxu1 %v1878_v3  ;;  %1378 = vmatprep.mubr.bf16.mxu0 %v1825_v4 }
  0x6c   : > { %1475 = vmatprep.mubr.bf16.mxu1 %v1827_v5 }
  0x72   : > { %1379 = vmatmul.mubr.bf16.vlgmr.msra.gmra.mxu0 %v1824_v10 }
  0x73   : > { %1476 = vmatmul.mubr.bf16.vlgmr.msra.gmra.mxu1 %v1826_v11  ;;  %1386 = vmatprep.mubr.bf16.mxu0 %v1833_v12 }
  0x74   : > { %1483 = vmatprep.mubr.bf16.mxu1 %v1835_v13 }
  0x7a   : > { %1387 = vmatmul.mubr.bf16.gmra.mxu0 %v1832_v18 }
  0x7b   : > { %1484 = vmatmul.mubr.bf16.gmra.mxu1 %v1834_v19  ;;  %1394 = vmatprep.mubr.bf16.mxu0 %v1841_v20 }
  0x7c   : > { %1491 = vmatprep.mubr.bf16.mxu1 %v1843_v21 }
  0x82   : > { %1395 = vmatmul.mubr.bf16.gmra.mxu0 %v1840_v26 }
  0x83   : > { %1492 = vmatmul.mubr.bf16.gmra.mxu1 %v1842_v27  ;;  %1402 = vmatprep.mubr.bf16.mxu0 %v1849_v28 }
  0x84   : > { %1499 = vmatprep.mubr.bf16.mxu1 %v1851_v29 }
  0x8a   : > { %1403 = vmatmul.mubr.bf16.gmra.mxu0 %v1848_v34 }
  0x8b   : > { %1500 = vmatmul.mubr.bf16.gmra.mxu1 %v1850_v35  ;;  %1410 = vmatprep.mubr.bf16.mxu0 %v1857_v36 }
  0x8c   : > { %1507 = vmatprep.mubr.bf16.mxu1 %v1859_v37 }
  0x92   : > { %1411 = vmatmul.mubr.bf16.gmra.mxu0 %v1856_v42 }
  0x93   : > { %1508 = vmatmul.mubr.bf16.gmra.mxu1 %v1858_v43  ;;  %1418 = vmatprep.mubr.bf16.mxu0 %v1865_v44 }
  0x94   : > { %1515 = vmatprep.mubr.bf16.mxu1 %v1867_v45 }
  0x9a   : > { %1419 = vmatmul.mubr.bf16.gmra.mxu0 %v1864_v50 }
  0x9b   : > { %1516 = vmatmul.mubr.bf16.gmra.mxu1 %v1866_v51  ;;  %1426 = vmatprep.mubr.bf16.mxu0 %v1873_v52 }
  0x9c   : > { %1523 = vmatprep.mubr.bf16.mxu1 %v1875_v53 }
  0xa2   : > { %1427 = vmatmul.mubr.bf16.gmra.mxu0 %v1872_v58 }
  0xa3   : > { %1524 = vmatmul.mubr.bf16.gmra.mxu1 %v1874_v59  ;;  %1434 = vmatprep.mubr.bf16.mxu0 %v1881_v60 }
  0xa4   : > { %1531 = vmatprep.mubr.bf16.mxu1 %v1883_v61 }
  0xaa   : > { %1435 = vmatmul.mubr.bf16.gmra.mxu0 %v1880_v62 }
  0xab   : > { %1532 = vmatmul.mubr.bf16.gmra.mxu1 %v1882_v63 }
  0xf2   : > { %v2050_v0 = vpop.f32.mrf.mxu0 }
  0xf3   : > { %v2114_v1 = vpop.f32.mrf.mxu1 }
  0xf4   : > { %v2051_v2 = vpop.f32.mrf.mxu0 }
  0xf5   : > { %v2052_v3 = vadd.f32 %v2051_v2, %v2050_v0  ;;  %v2115_v4 = vpop.f32.mrf.mxu1 }
  0xf6   : > { %v2116_v5 = vadd.f32 %v2115_v4, %v2114_v1  ;;  %v2594_v6 = vpop.f32.mrf.mxu0 }
  0xf7   : > { %v2596_v7 = vpop.f32.mrf.mxu1 }
  0xf8   : > { %v2598_v8 = vadd.f32 %v2116_v5, %v2052_v3  ;;  %v2600_v9 = vpop.f32.mrf.mxu0 }
  0xf9   : > { %v2602_v10 = vpop.f32.mrf.mxu1 }
  0xfa   : > { %v2056_v11 = vpop.f32.mrf.mxu0 }
  0xfb   : > { %v2120_v12 = vpop.f32.mrf.mxu1 }
  0xfc   : > { %v2057_v13 = vpop.f32.mrf.mxu0 }
  0xfd   : > { %v2058_v14 = vadd.f32 %v2057_v13, %v2056_v11  ;;  %v2121_v15 = vpop.f32.mrf.mxu1 }
  0xfe   : > { %v2122_v16 = vadd.f32 %v2121_v15, %v2120_v12  ;;  %v2604_v17 = vpop.f32.mrf.mxu0 }
  0xff   : > { %v2606_v18 = vpop.f32.mrf.mxu1 }
 0x100   : > { %v2608_v19 = vadd.f32 %v2122_v16, %v2058_v14  ;;  %v2610_v20 = vpop.f32.mrf.mxu0 }
 0x101   : > { %v2612_v21 = vpop.f32.mrf.mxu1 }
 0x102   : > { %v2062_v22 = vpop.f32.mrf.mxu0 }
 0x103   : > { %v2126_v23 = vpop.f32.mrf.mxu1 }
 0x104   : > { %v2063_v24 = vpop.f32.mrf.mxu0 }
 0x105   : > { %v2064_v25 = vadd.f32 %v2063_v24, %v2062_v22  ;;  %v2127_v26 = vpop.f32.mrf.mxu1 }
 0x106   : > { %v2128_v27 = vadd.f32 %v2127_v26, %v2126_v23  ;;  %v2615_v28 = vpop.f32.mrf.mxu0 }
 0x107   : > { %v2617_v29 = vpop.f32.mrf.mxu1 }
 0x108   : > { %v2619_v30 = vadd.f32 %v2128_v27, %v2064_v25  ;;  %v2621_v31 = vpop.f32.mrf.mxu0 }
 0x109   : > { %v2623_v32 = vpop.f32.mrf.mxu1 }
 0x10a   : > { %v2068_v33 = vpop.f32.mrf.mxu0 }
 0x10b   : > { %v2132_v34 = vpop.f32.mrf.mxu1 }
 0x10c   : > { %v2069_v35 = vpop.f32.mrf.mxu0 }
 0x10d   : > { %v2070_v36 = vadd.f32 %v2069_v35, %v2068_v33  ;;  %v2133_v37 = vpop.f32.mrf.mxu1 }
 0x10e   : > { %v2134_v38 = vadd.f32 %v2133_v37, %v2132_v34  ;;  %v2625_v39 = vpop.f32.mrf.mxu0 }
 0x10f   : > { %v2627_v40 = vpop.f32.mrf.mxu1 }
 0x110   : > { %v2629_v41 = vadd.f32 %v2134_v38, %v2070_v36  ;;  %v2631_v42 = vpop.f32.mrf.mxu0 }
 0x111   : > { %v2633_v43 = vpop.f32.mrf.mxu1 }
 0x112   : > { %v2074_v44 = vpop.f32.mrf.mxu0 }
 0x113   : > { %v2138_v45 = vpop.f32.mrf.mxu1 }
 0x114   : > { %v2075_v46 = vpop.f32.mrf.mxu0 }
 0x115   : > { %v2076_v47 = vadd.f32 %v2075_v46, %v2074_v44  ;;  %v2139_v48 = vpop.f32.mrf.mxu1 }
 0x116   : > { %v2140_v49 = vadd.f32 %v2139_v48, %v2138_v45  ;;  %v2635_v50 = vpop.f32.mrf.mxu0  ;;  %v2119_v48 = vadd.f32 %v2602_v10, %v2596_v7  ;;  %v2061_v7 = vadd.f32 %v2610_v20, %v2604_v17  ;;  %v2125_v10 = vadd.f32 %v2612_v21, %v2606_v18 }
 0x117   : > { %v2637_v51 = vpop.f32.mrf.mxu1 }
 0x118   : > { %v2639_v52 = vadd.f32 %v2140_v49, %v2076_v47  ;;  %v2641_v53 = vpop.f32.mrf.mxu0  ;;  %v2055_v47 = vadd.f32 %v2600_v9, %v2594_v6  ;;  %v1295_v18 = vadd.f32 %v2125_v10, %v2061_v7 }
 0x119   : > { %v2643_v54 = vpop.f32.mrf.mxu1 }
 0x11a   : > { %v2080_v55 = vpop.f32.mrf.mxu0 }
 0x11b   : > { %v2144_v56 = vpop.f32.mrf.mxu1 }
 0x11c   : > { %v2081_v57 = vpop.f32.mrf.mxu0 }
 0x11d   : > { %v2082_v58 = vadd.f32 %v2081_v57, %v2080_v55  ;;  %v2145_v59 = vpop.f32.mrf.mxu1 }
 0x11e   : > { %v2146_v60 = vadd.f32 %v2145_v59, %v2144_v56  ;;  %v2645_v61 = vpop.f32.mrf.mxu0 }
 0x11f   : > { %v2647_v62 = vpop.f32.mrf.mxu1 }
 0x120   : > { %v2649_v63 = vadd.f32 %v2146_v60, %v2082_v58  ;;  %v2651_v0 = vpop.f32.mrf.mxu0 }
 0x121   : > { %v2653_v1 = vpop.f32.mrf.mxu1 }
 0x122   : > { %v2086_v2 = vpop.f32.mrf.mxu0 }
 0x123   : > { %v2150_v3 = vpop.f32.mrf.mxu1 }
 0x124   : > { %v2087_v4 = vpop.f32.mrf.mxu0 }
 0x125   : > { %v2088_v5 = vadd.f32 %v2087_v4, %v2086_v2  ;;  %v2151_v11 = vpop.f32.mrf.mxu1  ;;  %v1287_v2 = vadd.f32 %v2119_v48, %v2055_v47 }
 0x126   : > { %v2152_v12 = vadd.f32 %v2151_v11, %v2150_v3  ;;  %v2655_v13 = vpop.f32.mrf.mxu0 }
 0x127   : > { %v2657_v14 = vpop.f32.mrf.mxu1 }
 0x128   : > { %v2659_v15 = vadd.f32 %v2152_v12, %v2088_v5  ;;  %v2661_v16 = vpop.f32.mrf.mxu0 }
 0x129   : > { %v2663_v22 = vpop.f32.mrf.mxu1 }
 0x12a   : > { %v2092_v23 = vpop.f32.mrf.mxu0 }
 0x12b   : > { %v2156_v24 = vpop.f32.mrf.mxu1 }
 0x12c   : > { %v2093_v25 = vpop.f32.mrf.mxu0 }
 0x12d   : > { %v2094_v26 = vadd.f32 %v2093_v25, %v2092_v23  ;;  %v2157_v27 = vpop.f32.mrf.mxu1 }
 0x12e   : > { %v2158_v33 = vadd.f32 %v2157_v27, %v2156_v24  ;;  %v2665_v34 = vpop.f32.mrf.mxu0 }
 0x12f   : > { %v2667_v35 = vpop.f32.mrf.mxu1 }
 0x130   : > { %v2669_v36 = vadd.f32 %v2158_v33, %v2094_v26  ;;  %v2671_v37 = vpop.f32.mrf.mxu0 }
 0x131   : > { %v2673_v38 = vpop.f32.mrf.mxu1 }
 0x132   : > { %v2178_v44 = vpop.f32.mrf.mxu0 }
 0x133   : > { %v2242_v45 = vpop.f32.mrf.mxu1 }
 0x134   : > { %v2179_v46 = vpop.f32.mrf.mxu0 }
 0x135   : > { %v2180_v49 = vadd.f32 %v2179_v46, %v2178_v44  ;;  %v2243_v55 = vpop.f32.mrf.mxu1 }
 0x136   : > { %v2181_v56 = vpop.f32.mrf.mxu0  ;;  %v2244_v59 = vadd.f32 %v2243_v55, %v2242_v45 }
 0x137   : > { %v1381_v57 = vadd.f32 %v2180_v49, %v2598_v8  ;;  %v2245_v58 = vpop.f32.mrf.mxu1 }
 0x138   : > { %v2182_v60 = vpop.f32.mrf.mxu0 }
 0x139   : > { %v2183_v3 = vadd.f32 %v2182_v60, %v2181_v56  ;;  %v2246_v4 = vpop.f32.mrf.mxu1  ;;  %v1478_v5 = vadd.f32 %v2244_v59, %v1381_v57 }
 0x13a   : > { %v2184_v11 = vpop.f32.mrf.mxu0  ;;  %v2247_v23 = vadd.f32 %v2246_v4, %v2245_v58 }
 0x13b   : > { %v1384_v12 = vadd.f32 %v2183_v3, %v1287_v2  ;;  %v2248_v6 = vpop.f32.mrf.mxu1  ;;  %v1641_v26 = vmul.f32 %v1478_v5, %v1478_v5  ;;  %v2067_v3 = vadd.f32 %v2621_v31, %v2615_v28 }
 0x13c   : > { %v2185_v9 = vpop.f32.mrf.mxu0 }
 0x13d   : > { %v1481_v8 = vadd.f32 %v2247_v23, %v1384_v12  ;;  %v2186_v24 = vadd.f32 %v2185_v9, %v2184_v11  ;;  %v2249_v25 = vpop.f32.mrf.mxu1 }
 0x13e   : > { %v2250_v27 = vadd.f32 %v2249_v25, %v2248_v6  ;;  %v2187_v33 = vpop.f32.mrf.mxu0 }
 0x13f   : > { %v1990_v44 = vpack.c.bf16 %v1481_v8, %v1478_v5  ;;  %v1620_v45 = vadd.f32 %v1481_v8, %v1478_v5  ;;  %v1642_v46 = vmul.f32 %v1481_v8, %v1481_v8  ;;  %v1389_v17 = vadd.f32 %v2186_v24, %v2608_v19  ;;  %v2251_v20 = vpop.f32.mrf.mxu1 }
 0x140   : > { %v2188_v47 = vpop.f32.mrf.mxu0  ;;  %v2131_v19 = vadd.f32 %v2623_v32, %v2617_v29 }
 0x141   : > { %1991 = vst [vmem:[%s2688_s30] sm:$0xff] %v1990_v44   ;;  %v1657_v21 = vadd.f32 %v1642_v46, %v1641_v26  ;;  %v1486_v48 = vadd.f32 %v2250_v27, %v1389_v17  ;;  %v2189_v49 = vadd.f32 %v2188_v47, %v2187_v33  ;;  %v2252_v55 = vpop.f32.mrf.mxu1  ;;  %v2073_v47 = vadd.f32 %v2631_v42, %v2625_v39 }
 0x142   : > { %v2190_v56 = vpop.f32.mrf.mxu0  ;;  %v2253_v60 = vadd.f32 %v2252_v55, %v2251_v20  ;;  %v1303_v27 = vadd.f32 %v2131_v19, %v2067_v3 }
 0x143   : > { %v1621_v57 = vadd.f32 %v1620_v45, %v1486_v48  ;;  %v1643_v58 = vmul.f32 %v1486_v48, %v1486_v48  ;;  %v1392_v59 = vadd.f32 %v2189_v49, %v1295_v18  ;;  %v2254_v2 = vpop.f32.mrf.mxu1 }
 0x144   : > { %v2191_v4 = vpop.f32.mrf.mxu0 }
 0x145   : > { %v1658_v5 = vadd.f32 %v1657_v21, %v1643_v58  ;;  %v1489_v11 = vadd.f32 %v2253_v60, %v1392_v59  ;;  %v2192_v12 = vadd.f32 %v2191_v4, %v2190_v56  ;;  %v2255_v23 = vpop.f32.mrf.mxu1 }
 0x146   : > { %v2256_v6 = vadd.f32 %v2255_v23, %v2254_v2  ;;  %v2193_v9 = vpop.f32.mrf.mxu0 }
 0x147   : > { %v1995_v7 = vpack.c.bf16 %v1489_v11, %v1486_v48  ;;  %v1622_v10 = vadd.f32 %v1621_v57, %v1489_v11  ;;  %v1644_v8 = vmul.f32 %v1489_v11, %v1489_v11  ;;  %v1397_v24 = vadd.f32 %v2192_v12, %v2619_v30  ;;  %v2257_v25 = vpop.f32.mrf.mxu1 }
 0x148   : > { %v2194_v26 = vpop.f32.mrf.mxu0  ;;  %v2137_v30 = vadd.f32 %v2633_v43, %v2627_v40 }
 0x149   : > { %2027 = vst [vmem:[%s2688_s30 + $0x8] sm:$0xff] %v1995_v7   ;;  %v1659_v28 = vadd.f32 %v1658_v5, %v1644_v8  ;;  %v1494_v31 = vadd.f32 %v2256_v6, %v1397_v24  ;;  %v2195_v33 = vadd.f32 %v2194_v26, %v2193_v9  ;;  %v2258_v44 = vpop.f32.mrf.mxu1  ;;  %v2079_v7 = vadd.f32 %v2641_v53, %v2635_v50 }
 0x14a   : > { %v2196_v29 = vpop.f32.mrf.mxu0  ;;  %v2259_v17 = vadd.f32 %v2258_v44, %v2257_v25  ;;  %v1311_v19 = vadd.f32 %v2137_v30, %v2073_v47 }
 0x14b   : > { %v1623_v32 = vadd.f32 %v1622_v10, %v1494_v31  ;;  %v1645_v45 = vmul.f32 %v1494_v31, %v1494_v31  ;;  %v1400_v46 = vadd.f32 %v2195_v33, %v1303_v27  ;;  %v2260_v20 = vpop.f32.mrf.mxu1 }
 0x14c   : > { %v2197_v18 = vpop.f32.mrf.mxu0 }
 0x14d   : > { %v1660_v21 = vadd.f32 %v1659_v28, %v1645_v45  ;;  %v1497_v48 = vadd.f32 %v2259_v17, %v1400_v46  ;;  %v2198_v49 = vadd.f32 %v2197_v18, %v2196_v29  ;;  %v2261_v55 = vpop.f32.mrf.mxu1 }
 0x14e   : > { %v2262_v56 = vadd.f32 %v2261_v55, %v2260_v20  ;;  %v2199_v57 = vpop.f32.mrf.mxu0 }
 0x14f   : > { %v2000_v58 = vpack.c.bf16 %v1497_v48, %v1494_v31  ;;  %v1624_v59 = vadd.f32 %v1623_v32, %v1497_v48  ;;  %v1646_v60 = vmul.f32 %v1497_v48, %v1497_v48  ;;  %v1405_v2 = vadd.f32 %v2198_v49, %v2629_v41  ;;  %v2263_v3 = vpop.f32.mrf.mxu1 }
 0x150   : > { %v2200_v4 = vpop.f32.mrf.mxu0  ;;  %v2143_v41 = vadd.f32 %v2643_v54, %v2637_v51  ;;  %v2085_v48 = vadd.f32 %v2651_v0, %v2645_v61 }
 0x151   : > { %2028 = vst [vmem:[%s2688_s30 + $0x10] sm:$0xff] %v2000_v58   ;;  %v1661_v39 = vadd.f32 %v1660_v21, %v1646_v60  ;;  %v1502_v42 = vadd.f32 %v2262_v56, %v1405_v2  ;;  %v2201_v5 = vadd.f32 %v2200_v4, %v2199_v57  ;;  %v2264_v11 = vpop.f32.mrf.mxu1 }
 0x152   : > { %v2202_v40 = vpop.f32.mrf.mxu0  ;;  %v2265_v6 = vadd.f32 %v2264_v11, %v2263_v3  ;;  %v1319_v46 = vadd.f32 %v2143_v41, %v2079_v7 }
 0x153   : > { %v1625_v43 = vadd.f32 %v1624_v59, %v1502_v42  ;;  %v1647_v12 = vmul.f32 %v1502_v42, %v1502_v42  ;;  %v1408_v23 = vadd.f32 %v2201_v5, %v1311_v19  ;;  %v2266_v9 = vpop.f32.mrf.mxu1 }
 0x154   : > { %v2203_v10 = vpop.f32.mrf.mxu0 }
 0x155   : > { %v1662_v8 = vadd.f32 %v1661_v39, %v1647_v12  ;;  %v1505_v24 = vadd.f32 %v2265_v6, %v1408_v23  ;;  %v2204_v25 = vadd.f32 %v2203_v10, %v2202_v40  ;;  %v2267_v26 = vpop.f32.mrf.mxu1 }
 0x156   : > { %v2268_v27 = vadd.f32 %v2267_v26, %v2266_v9  ;;  %v2205_v28 = vpop.f32.mrf.mxu0  ;;  %v2091_v9 = vadd.f32 %v2661_v16, %v2655_v13 }
 0x157   : > { %v2005_v31 = vpack.c.bf16 %v1505_v24, %v1502_v42  ;;  %v1626_v33 = vadd.f32 %v1625_v43, %v1505_v24  ;;  %v1648_v44 = vmul.f32 %v1505_v24, %v1505_v24  ;;  %v1413_v29 = vadd.f32 %v2204_v25, %v2639_v52  ;;  %v2269_v32 = vpop.f32.mrf.mxu1 }
 0x158   : > { %v2206_v45 = vpop.f32.mrf.mxu0  ;;  %v2149_v52 = vadd.f32 %v2653_v1, %v2647_v62 }
 0x159   : > { %2029 = vst [vmem:[%s2688_s30 + $0x18] sm:$0xff] %v2005_v31   ;;  %v1663_v50 = vadd.f32 %v1662_v8, %v1648_v44  ;;  %v1510_v53 = vadd.f32 %v2268_v27, %v1413_v29  ;;  %v2207_v17 = vadd.f32 %v2206_v45, %v2205_v28  ;;  %v2270_v20 = vpop.f32.mrf.mxu1 }
 0x15a   : > { %v2208_v51 = vpop.f32.mrf.mxu0  ;;  %v2271_v30 = vadd.f32 %v2270_v20, %v2269_v32  ;;  %v1327_v5 = vadd.f32 %v2149_v52, %v2085_v48 }
 0x15b   : > { %v1627_v54 = vadd.f32 %v1626_v33, %v1510_v53  ;;  %v1649_v47 = vmul.f32 %v1510_v53, %v1510_v53  ;;  %v1416_v18 = vadd.f32 %v2207_v17, %v1319_v46  ;;  %v2272_v21 = vpop.f32.mrf.mxu1 }
 0x15c   : > { %v2209_v49 = vpop.f32.mrf.mxu0 }
 0x15d   : > { %v1664_v55 = vadd.f32 %v1663_v50, %v1649_v47  ;;  %v1513_v56 = vadd.f32 %v2271_v30, %v1416_v18  ;;  %v2210_v57 = vadd.f32 %v2209_v49, %v2208_v51  ;;  %v2273_v58 = vpop.f32.mrf.mxu1  ;;  %v2097_v51 = vadd.f32 %v2671_v37, %v2665_v34 }
 0x15e   : > { %v2274_v59 = vadd.f32 %v2273_v58, %v2272_v21  ;;  %v2211_v60 = vpop.f32.mrf.mxu0 }
 0x15f   : > { %v2010_v2 = vpack.c.bf16 %v1513_v56, %v1510_v53  ;;  %v1628_v3 = vadd.f32 %v1627_v54, %v1513_v56  ;;  %v1650_v4 = vmul.f32 %v1513_v56, %v1513_v56  ;;  %v1421_v19 = vadd.f32 %v2210_v57, %v2649_v63  ;;  %v2275_v39 = vpop.f32.mrf.mxu1 }
 0x160   : > { %v2212_v42 = vpop.f32.mrf.mxu0  ;;  %v2155_v63 = vadd.f32 %v2663_v22, %v2657_v14 }
 0x161   : > { %2030 = vst [vmem:[%s2688_s30 + $0x20] sm:$0xff] %v2010_v2   ;;  %v1665_v61 = vadd.f32 %v1664_v55, %v1650_v4  ;;  %v1518_v0 = vadd.f32 %v2274_v59, %v1421_v19  ;;  %v2213_v11 = vadd.f32 %v2212_v42, %v2211_v60  ;;  %v2276_v40 = vpop.f32.mrf.mxu1 }
 0x162   : > { %v2214_v62 = vpop.f32.mrf.mxu0  ;;  %v2277_v23 = vadd.f32 %v2276_v40, %v2275_v39  ;;  %v1335_v32 = vadd.f32 %v2155_v63, %v2091_v9 }
 0x163   : > { %v1629_v1 = vadd.f32 %v1628_v3, %v1518_v0  ;;  %v1651_v43 = vmul.f32 %v1518_v0, %v1518_v0  ;;  %v1424_v12 = vadd.f32 %v2213_v11, %v1327_v5  ;;  %v2278_v6 = vpop.f32.mrf.mxu1 }
 0x164   : > { %v2215_v7 = vpop.f32.mrf.mxu0 }
 0x165   : > { %v1666_v10 = vadd.f32 %v1665_v61, %v1651_v43  ;;  %v1521_v41 = vadd.f32 %v2277_v23, %v1424_v12  ;;  %v2216_v8 = vadd.f32 %v2215_v7, %v2214_v62  ;;  %v2279_v24 = vpop.f32.mrf.mxu1 }
 0x166   : > { %v2280_v25 = vadd.f32 %v2279_v24, %v2278_v6  ;;  %v2217_v26 = vpop.f32.mrf.mxu0 }
 0x167   : > { %v2015_v27 = vpack.c.bf16 %v1521_v41, %v1518_v0  ;;  %v1630_v28 = vadd.f32 %v1629_v1, %v1521_v41  ;;  %v1652_v31 = vmul.f32 %v1521_v41, %v1521_v41  ;;  %v1429_v33 = vadd.f32 %v2216_v8, %v2659_v15  ;;  %v2281_v44 = vpop.f32.mrf.mxu1 }
 0x168   : > { %v2218_v29 = vpop.f32.mrf.mxu0  ;;  %v2161_v15 = vadd.f32 %v2673_v38, %v2667_v35 }
 0x169   : > { %2031 = vst [vmem:[%s2688_s30 + $0x28] sm:$0xff] %v2015_v27   ;;  %v1667_v13 = vadd.f32 %v1666_v10, %v1652_v31  ;;  %v1526_v16 = vadd.f32 %v2280_v25, %v1429_v33  ;;  %v2219_v45 = vadd.f32 %v2218_v29, %v2217_v26  ;;  %v2282_v46 = vpop.f32.mrf.mxu1 }
 0x16a   : > { %v2220_v14 = vpop.f32.mrf.mxu0  ;;  %v2283_v17 = vadd.f32 %v2282_v46, %v2281_v44  ;;  %v1343_v34 = vadd.f32 %v2161_v15, %v2097_v51 }
 0x16b   : > { %v1631_v22 = vadd.f32 %v1630_v28, %v1526_v16  ;;  %v1653_v50 = vmul.f32 %v1526_v16, %v1526_v16  ;;  %v1432_v53 = vadd.f32 %v2219_v45, %v1335_v32  ;;  %v2284_v20 = vpop.f32.mrf.mxu1 }
 0x16c   : > { %v2221_v54 = vpop.f32.mrf.mxu0 }
 0x16d   : > { %v1668_v47 = vadd.f32 %v1667_v13, %v1653_v50  ;;  %v1529_v18 = vadd.f32 %v2283_v17, %v1432_v53  ;;  %v2222_v30 = vadd.f32 %v2221_v54, %v2220_v14  ;;  %v2285_v21 = vpop.f32.mrf.mxu1 }
 0x16e   : > { %v2286_v48 = vadd.f32 %v2285_v21, %v2284_v20  ;;  %v2223_v49 = vpop.f32.mrf.mxu0 }
 0x16f   : > { %v2020_v52 = vpack.c.bf16 %v1529_v18, %v1526_v16  ;;  %v1632_v55 = vadd.f32 %v1631_v22, %v1529_v18  ;;  %v1654_v56 = vmul.f32 %v1529_v18, %v1529_v18  ;;  %v1437_v57 = vadd.f32 %v2222_v30, %v2669_v36  ;;  %v2287_v58 = vpop.f32.mrf.mxu1 }
 0x170   : > { %v2224_v59 = vpop.f32.mrf.mxu0 }
 0x171   : > { %2032 = vst [vmem:[%s2688_s30 + $0x30] sm:$0xff] %v2020_v52   ;;  %v1669_v37 = vadd.f32 %v1668_v47, %v1654_v56  ;;  %v1534_v60 = vadd.f32 %v2286_v48, %v1437_v57  ;;  %v2225_v2 = vadd.f32 %v2224_v59, %v2223_v49  ;;  %v2288_v35 = vpop.f32.mrf.mxu1 }
 0x172   : > { %v2289_v19 = vadd.f32 %v2288_v35, %v2287_v58 }
 0x173   : > { %v1633_v38 = vadd.f32 %v1632_v55, %v1534_v60  ;;  %v1655_v3 = vmul.f32 %v1534_v60, %v1534_v60  ;;  %v1440_v4 = vadd.f32 %v2225_v2, %v1343_v34 }
 0x175   : > { %v1670_v39 = vadd.f32 %v1669_v37, %v1655_v3  ;;  %v1537_v42 = vadd.f32 %v2289_v19, %v1440_v4 }
 0x177   : > { %v2025_v5 = vpack.c.bf16 %v1537_v42, %v1534_v60  ;;  %v1634_v61 = vadd.f32 %v1633_v38, %v1537_v42  ;;  %v1656_v0 = vmul.f32 %v1537_v42, %v1537_v42 }
 0x179   : > { %2033 = vst [vmem:[%s2688_s30 + $0x38] sm:$0xff] %v2025_v5   ;;  %v1635_v36 = vrot.slane %v1634_v61, 4  ;;  %v1671_v11 = vadd.f32 %v1670_v39, %v1656_v0 }
 0x17b   : > { %v1636_v40 = vadd.f32 %v1635_v36, %v1634_v61  ;;  %v1672_v62 = vrot.slane %v1671_v11, 4 }
 0x17d   : > { %v1637_v1 = vrot.slane %v1636_v40, 2  ;;  %v1673_v43 = vadd.f32 %v1672_v62, %v1671_v11 }
 0x17f   : > { %v1638_v12 = vadd.f32 %v1637_v1, %v1636_v40  ;;  %v1674_v23 = vrot.slane %v1673_v43, 2 }
 0x181   : > { %v1639_v6 = vrot.slane %v1638_v12, 1  ;;  %v1675_v9 = vadd.f32 %v1674_v23, %v1673_v43  ;;  %1683 = sbr.rel (!%p1678_p5) target bundleno = 392 (0x188), region = 32 }
 0x183   : > { %v1640_v7 = vadd.f32 %v1639_v6, %v1638_v12  ;;  %v1676_v63 = vrot.slane %v1675_v9, 1 }
 0x185   : > { %v1677_v10 = vadd.f32 %v1676_v63, %v1675_v9  ;;  %1684 = vst [vmem:[%s2763_s3] sm:$0x1] (%p1678_p5), %v1640_v7 }
 0x187   : > { %1685 = vst [vmem:[%s2764_s4] sm:$0x1] %v1677_v10 }
 0x188 PF: > { %1688 = sbr.rel (%p1678_p5) target bundleno = 403 (0x193), region = 36 }
 0x18e   : > { %v1689_v41 = vld [vmem:[%s2763_s3] sm:$0x1] }
 0x18f   : > { %v1692_v8 = vld [vmem:[%s2764_s4] sm:$0x1]  ;;  %v1690_v24 = vadd.f32 %v1689_v41, %v1640_v7 }
 0x190   : > { %v1693_v25 = vadd.f32 %v1692_v8, %v1677_v10 }
 0x191   : > { %1691 = vst [vmem:[%s2763_s3] sm:$0x1] %v1690_v24 }
 0x192   : > { %1694 = vst [vmem:[%s2764_s4] sm:$0x1] %v1693_v25 }
 0x193 PF: > { %s15_s17 = sadd.s32 1, %s2400_s17   ;;  %s2765_s15 = smov %s2396_s16 }
 0x194   : > { %p12_p6 = scmp.ge.s32.totalorder %s15_s17, 6   ;;  %s2766_s16 = smov %s2768_s18 }
 0x196   :  { %14 = sbr.rel (!%p12_p6) target bundleno = 2 (0x2), region = 85 }

// kernel: generator_forward.15
= control target key start
LH: loop header
LB: loop body
LE: loop exit
PB: predicated region body
PF: predicated region fallthrough
CT: control target
= control target key end

     0   :  { %s2192_s15 = smov 0   ;;  %s2951_s0 = inlined_call_operand.vmem [shape: bf16[2048,128], index: 0, kind: input, shape index: {}]   ;;  %s2952_s1 = inlined_call_operand.vmem [shape: f32[1,128], index: 1, kind: input, shape index: {}]   ;;  %s2953_s2 = inlined_call_operand.vmem [shape: f32[1,128], index: 2, kind: input, shape index: {}]   ;;  %s2954_s3 = inlined_call_operand.vmem [shape: f32[1,128], index: 3, kind: input, shape index: {}]   ;;  %s2955_s4 = inlined_call_operand.vmem [shape: f32[2048,1], index: 4, kind: output, shape index: {}]  }
   0x1 LB: > { %s1559_s16 = sadd.s32 4294967295, %s2165_s15   ;;  %p1563_p0 = scmp.ge.s32.totalorder %s2165_s15, 1  ;;  %s2165_s15 = sphi %s2192_s15, %s14_s15  }
   0x2   : > { %p163_p1 = scmp.lt.s32.totalorder %s2165_s15, 3 }
   0x4   : > { %p164_p2 = pnand %p1563_p0, %p163_p1 }
   0x5   : > { %s1564_s17 = sshll.u32 (!%p164_p2), %s1559_s16, 7 }
   0x6   : > { %167 = sbr.rel (%p164_p2) target bundleno = 431 (0x1af), region = 36  ;;  %p190_p3 = scmp.lt.s32.totalorder (!%p164_p2), %s1564_s17, 255 }
   0xb   : > { %s2957_s17 = smov (!%p190_p3, %s1564_s17), 255  ;;  %v2211_v0 = vld [vmem:[%s2952_s1] ss:$0 sm:$0xff]  ;;  %vm1374_vm0 = vcmask 7168  }
   0xc   : > { %s1565_s18 = sshll.u32 %s2957_s17, 2  ;;  %v2220_v9 = vld [vmem:[%s2953_s2] ss:$0 sm:$0xff]  ;;  %s1567_s30 = sshll.u32 %s2957_s17, 3 }
   0xd   : > { %s2206_s21 = scalar_lea.vmem %s2951_s0, %s1565_s18  ;;  %v2236_v25 = vld [vmem:[%s2954_s3] ss:$0 sm:$0xff]  ;;  %s2530_s11 = scalar_lea.vmem %s2955_s4, %s1567_s30 }
   0xe   : > { %v1829_v1 = vld [vmem:[%s2206_s21 + $0x8] sm:$0xff]   ;;  %v1574_v2 = vld [vmem:[%s2206_s21] sm:$0xff]   ;;  %v1830_v3 = vld [vmem:[%s2206_s21 + $0x10] sm:$0xff]  }
   0xf   : > { %v1579_v4 = vunpack.c.l.bf16 %v1829_v1  ;;  %v1575_v5 = vunpack.c.l.bf16 %v1574_v2  ;;  %v1580_v6 = vunpack.c.h.bf16 %v1829_v1  ;;  %v1576_v7 = vunpack.c.h.bf16 %v1574_v2  ;;  %v1831_v8 = vld [vmem:[%s2206_s21 + $0x18] sm:$0xff]   ;;  %v1832_v33 = vld [vmem:[%s2206_s21 + $0x20] sm:$0xff]   ;;  %v1833_v34 = vld [vmem:[%s2206_s21 + $0x28] sm:$0xff]  }
  0x10   : > { %v1584_v10 = vunpack.c.h.bf16 %v1830_v3  ;;  %v1583_v11 = vunpack.c.l.bf16 %v1830_v3  ;;  %v1588_v12 = vunpack.c.h.bf16 %v1831_v8  ;;  %v1587_v13 = vunpack.c.l.bf16 %v1831_v8  ;;  %v1834_v47 = vld [vmem:[%s2206_s21 + $0x30] sm:$0xff]   ;;  %v1835_v56 = vld [vmem:[%s2206_s21 + $0x38] sm:$0xff]   ;;  %v1836_v8 = vld [vmem:[%s2206_s21 + $0x40] sm:$0xff]  }
  0x11   : > { %v466_v14 = vmul.f32 %v1579_v4, %v2211_v0  ;;  %v464_v15 = vmul.f32 %v1575_v5, %v2211_v0  ;;  %v467_v16 = vmul.f32 %v1580_v6, %v2211_v0  ;;  %v465_v17 = vmul.f32 %v1576_v7, %v2211_v0 }
  0x12   : > { %v469_v18 = vmul.f32 %v1584_v10, %v2211_v0  ;;  %v468_v19 = vmul.f32 %v1583_v11, %v2211_v0  ;;  %v471_v20 = vmul.f32 %v1588_v12, %v2211_v0  ;;  %v470_v28 = vmul.f32 %v1587_v13, %v2211_v0 }
  0x13   : > { %v601_v21 = vadd.f32 %v2220_v9, %v466_v14  ;;  %v599_v22 = vadd.f32 %v2220_v9, %v464_v15  ;;  %v602_v23 = vadd.f32 %v2220_v9, %v467_v16  ;;  %v600_v24 = vadd.f32 %v2220_v9, %v465_v17 }
  0x14   : > { %v604_v26 = vadd.f32 %v2220_v9, %v469_v18  ;;  %v603_v27 = vadd.f32 %v2220_v9, %v468_v19  ;;  %v606_v38 = vadd.f32 %v2220_v9, %v471_v20  ;;  %v605_v42 = vadd.f32 %v2220_v9, %v470_v28  ;;  %v1837_v20 = vld [vmem:[%s2206_s21 + $0x48] sm:$0xff]   ;;  %v1838_v28 = vld [vmem:[%s2206_s21 + $0x50] sm:$0xff]  }
  0x15   : > { %v729_v29 = vmax.f32 %v601_v21, 0.0  ;;  %v727_v30 = vmax.f32 %v599_v22, 0.0  ;;  %v730_v31 = vmax.f32 %v602_v23, 0.0  ;;  %v728_v32 = vmax.f32 %v600_v24, 0.0 }
  0x16   : > { %v732_v37 = vmax.f32 %v604_v26, 0.0  ;;  %v731_v41 = vmax.f32 %v603_v27, 0.0  ;;  %v1592_v43 = vunpack.c.h.bf16 %v1832_v33  ;;  %v1591_v44 = vunpack.c.l.bf16 %v1832_v33 }
  0x17   : > { %v864_v35 = vmul.f32 %v2236_v25, %v729_v29  ;;  %v862_v36 = vmul.f32 %v2236_v25, %v727_v30  ;;  %v865_v39 = vmul.f32 %v2236_v25, %v730_v31  ;;  %v863_v40 = vmul.f32 %v2236_v25, %v728_v32 }
  0x18   : > { %v1596_v45 = vunpack.c.h.bf16 %v1833_v34  ;;  %v1595_v46 = vunpack.c.l.bf16 %v1833_v34  ;;  %v867_v48 = vmul.f32 %v2236_v25, %v732_v37  ;;  %v734_v49 = vmax.f32 %v606_v38, 0.0 }
  0x19   : > { %994 = vadd.xlane.f32.xlu1 %v864_v35  ;;  %990 = vadd.xlane.f32.xlu0 %v862_v36  ;;  %v473_v50 = vmul.f32 %v1592_v43, %v2211_v0  ;;  %v472_v51 = vmul.f32 %v1591_v44, %v2211_v0  ;;  %v866_v52 = vmul.f32 %v2236_v25, %v731_v41  ;;  %v1600_v54 = vunpack.c.h.bf16 %v1834_v47 }
  0x1a   : > { %v475_v53 = vmul.f32 %v1596_v45, %v2211_v0  ;;  %v1599_v55 = vunpack.c.l.bf16 %v1834_v47  ;;  %v733_v57 = vmax.f32 %v605_v42, 0.0  ;;  %v474_v60 = vmul.f32 %v1595_v46, %v2211_v0 }
  0x1b   : > { %v608_v58 = vadd.f32 %v2220_v9, %v473_v50  ;;  %v607_v59 = vadd.f32 %v2220_v9, %v472_v51  ;;  %v1604_v61 = vunpack.c.h.bf16 %v1835_v56  ;;  %v1603_v62 = vunpack.c.l.bf16 %v1835_v56 }
  0x1c   : > { %v869_v63 = vmul.f32 %v2236_v25, %v734_v49  ;;  %v610_v1 = vadd.f32 %v2220_v9, %v475_v53  ;;  %v477_v2 = vmul.f32 %v1600_v54, %v2211_v0  ;;  %v476_v3 = vmul.f32 %v1599_v55, %v2211_v0  ;;  %v1840_v54 = vld [vmem:[%s2206_s21 + $0x60] sm:$0xff]  }
  0x1d   : > { %996 = vadd.xlane.f32.xlu1 %v865_v39  ;;  %992 = vadd.xlane.f32.xlu0 %v863_v40  ;;  %v868_v4 = vmul.f32 %v2236_v25, %v733_v57  ;;  %v736_v5 = vmax.f32 %v608_v58, 0.0  ;;  %v735_v6 = vmax.f32 %v607_v59, 0.0  ;;  %v609_v7 = vadd.f32 %v2220_v9, %v474_v60  ;;  %v1839_v39 = vld [vmem:[%s2206_s21 + $0x58] sm:$0xff]  }
  0x1e   : > { %v479_v10 = vmul.f32 %v1604_v61, %v2211_v0  ;;  %v478_v11 = vmul.f32 %v1603_v62, %v2211_v0  ;;  %v738_v12 = vmax.f32 %v610_v1, 0.0  ;;  %v612_v13 = vadd.f32 %v2220_v9, %v477_v2  ;;  %v1841_v2 = vld [vmem:[%s2206_s21 + $0x68] sm:$0xff]  }
  0x1f   : > { %v611_v14 = vadd.f32 %v2220_v9, %v476_v3  ;;  %v1608_v15 = vunpack.c.h.bf16 %v1836_v8  ;;  %v871_v16 = vmul.f32 %v2236_v25, %v736_v5  ;;  %v870_v17 = vmul.f32 %v2236_v25, %v735_v6 }
  0x20   : > { %v737_v18 = vmax.f32 %v609_v7, 0.0  ;;  %v1607_v19 = vunpack.c.l.bf16 %v1836_v8  ;;  %v614_v21 = vadd.f32 %v2220_v9, %v479_v10  ;;  %v613_v22 = vadd.f32 %v2220_v9, %v478_v11 }
  0x21   : > { %1000 = vadd.xlane.f32.xlu1 %v867_v48  ;;  %998 = vadd.xlane.f32.xlu0 %v866_v52  ;;  %v873_v23 = vmul.f32 %v2236_v25, %v738_v12  ;;  %v740_v24 = vmax.f32 %v612_v13, 0.0  ;;  %v739_v26 = vmax.f32 %v611_v14, 0.0  ;;  %v481_v27 = vmul.f32 %v1608_v15, %v2211_v0  ;;  %v1842_v14 = vld [vmem:[%s2206_s21 + $0x70] sm:$0xff]  }
  0x22   : > { %v872_v29 = vmul.f32 %v2236_v25, %v737_v18  ;;  %v480_v30 = vmul.f32 %v1607_v19, %v2211_v0  ;;  %v1612_v31 = vunpack.c.h.bf16 %v1837_v20  ;;  %v1611_v32 = vunpack.c.l.bf16 %v1837_v20 }
  0x23   : > { %v742_v33 = vmax.f32 %v614_v21, 0.0  ;;  %v1616_v34 = vunpack.c.h.bf16 %v1838_v28  ;;  %v875_v35 = vmul.f32 %v2236_v25, %v740_v24  ;;  %v874_v36 = vmul.f32 %v2236_v25, %v739_v26  ;;  %v1843_v21 = vld [vmem:[%s2206_s21 + $0x78] sm:$0xff]  }
  0x24   : > { %v616_v37 = vadd.f32 %v2220_v9, %v481_v27  ;;  %v1615_v38 = vunpack.c.l.bf16 %v1838_v28  ;;  %v741_v40 = vmax.f32 %v613_v22, 0.0  ;;  %v615_v41 = vadd.f32 %v2220_v9, %v480_v30 }
  0x25   : > { %1004 = vadd.xlane.f32.xlu1 %v869_v63  ;;  %1002 = vadd.xlane.f32.xlu0 %v868_v4  ;;  %v483_v42 = vmul.f32 %v1612_v31, %v2211_v0  ;;  %v482_v43 = vmul.f32 %v1611_v32, %v2211_v0  ;;  %v485_v44 = vmul.f32 %v1616_v34, %v2211_v0  ;;  %v1620_v45 = vunpack.c.h.bf16 %v1839_v39 }
  0x26   : > { %v877_v46 = vmul.f32 %v2236_v25, %v742_v33  ;;  %v744_v47 = vmax.f32 %v616_v37, 0.0  ;;  %v484_v48 = vmul.f32 %v1615_v38, %v2211_v0  ;;  %v1619_v49 = vunpack.c.l.bf16 %v1839_v39  ;;  %v1844_v37 = vld [vmem:[%s2206_s21 + $0x80] sm:$0xff]  }
  0x27   : > { %v876_v50 = vmul.f32 %v2236_v25, %v741_v40  ;;  %v743_v51 = vmax.f32 %v615_v41, 0.0  ;;  %v618_v52 = vadd.f32 %v2220_v9, %v483_v42  ;;  %v617_v53 = vadd.f32 %v2220_v9, %v482_v43 }
  0x28   : > { %v620_v55 = vadd.f32 %v2220_v9, %v485_v44  ;;  %v487_v56 = vmul.f32 %v1620_v45, %v2211_v0  ;;  %v879_v57 = vmul.f32 %v2236_v25, %v744_v47  ;;  %v619_v58 = vadd.f32 %v2220_v9, %v484_v48  ;;  %v1845_v48 = vld [vmem:[%s2206_s21 + $0x88] sm:$0xff]  }
  0x29   : > { %1008 = vadd.xlane.f32.xlu1 %v871_v16  ;;  %1006 = vadd.xlane.f32.xlu0 %v870_v17  ;;  %v486_v59 = vmul.f32 %v1619_v49, %v2211_v0  ;;  %v1624_v60 = vunpack.c.h.bf16 %v1840_v54  ;;  %v878_v61 = vmul.f32 %v2236_v25, %v743_v51  ;;  %v746_v62 = vmax.f32 %v618_v52, 0.0 }
  0x2a   : > { %v745_v63 = vmax.f32 %v617_v53, 0.0  ;;  %v1623_v1 = vunpack.c.l.bf16 %v1840_v54  ;;  %v748_v3 = vmax.f32 %v620_v55, 0.0  ;;  %v622_v4 = vadd.f32 %v2220_v9, %v487_v56  ;;  %v1846_v55 = vld [vmem:[%s2206_s21 + $0x90] sm:$0xff]  }
  0x2b   : > { %v747_v5 = vmax.f32 %v619_v58, 0.0  ;;  %v621_v6 = vadd.f32 %v2220_v9, %v486_v59  ;;  %v489_v7 = vmul.f32 %v1624_v60, %v2211_v0  ;;  %v1628_v8 = vunpack.c.h.bf16 %v1841_v2 }
  0x2c   : > { %v881_v10 = vmul.f32 %v2236_v25, %v746_v62  ;;  %v880_v11 = vmul.f32 %v2236_v25, %v745_v63  ;;  %v488_v12 = vmul.f32 %v1623_v1, %v2211_v0  ;;  %v1627_v13 = vunpack.c.l.bf16 %v1841_v2 }
  0x2d   : > { %1012 = vadd.xlane.f32.xlu1 %v873_v23  ;;  %1010 = vadd.xlane.f32.xlu0 %v872_v29  ;;  %v883_v15 = vmul.f32 %v2236_v25, %v748_v3  ;;  %v750_v16 = vmax.f32 %v622_v4, 0.0  ;;  %v624_v17 = vadd.f32 %v2220_v9, %v489_v7  ;;  %v491_v18 = vmul.f32 %v1628_v8, %v2211_v0  ;;  %v1847_v3 = vld [vmem:[%s2206_s21 + $0x98] sm:$0xff]  }
  0x2e   : > { %v1632_v19 = vunpack.c.h.bf16 %v1842_v14  ;;  %v1631_v20 = vunpack.c.l.bf16 %v1842_v14  ;;  %v882_v22 = vmul.f32 %v2236_v25, %v747_v5  ;;  %v749_v23 = vmax.f32 %v621_v6, 0.0 }
  0x2f   : > { %v623_v24 = vadd.f32 %v2220_v9, %v488_v12  ;;  %v490_v26 = vmul.f32 %v1627_v13, %v2211_v0  ;;  %v1636_v27 = vunpack.c.h.bf16 %v1843_v21  ;;  %v1635_v28 = vunpack.c.l.bf16 %v1843_v21 }
  0x30   : > { %v752_v29 = vmax.f32 %v624_v17, 0.0  ;;  %v626_v30 = vadd.f32 %v2220_v9, %v491_v18  ;;  %v493_v31 = vmul.f32 %v1632_v19, %v2211_v0  ;;  %v492_v32 = vmul.f32 %v1631_v20, %v2211_v0  ;;  %v1848_v19 = vld [vmem:[%s2206_s21 + $0xa0] sm:$0xff]  }
  0x31   : > { %1016 = vadd.xlane.f32.xlu1 %v875_v35  ;;  %1014 = vadd.xlane.f32.xlu0 %v874_v36  ;;  %v885_v33 = vmul.f32 %v2236_v25, %v750_v16  ;;  %v884_v34 = vmul.f32 %v2236_v25, %v749_v23  ;;  %v751_v35 = vmax.f32 %v623_v24, 0.0  ;;  %v625_v36 = vadd.f32 %v2220_v9, %v490_v26 }
  0x32   : > { %v495_v38 = vmul.f32 %v1636_v27, %v2211_v0  ;;  %v494_v39 = vmul.f32 %v1635_v28, %v2211_v0  ;;  %v887_v40 = vmul.f32 %v2236_v25, %v752_v29  ;;  %v754_v41 = vmax.f32 %v626_v30, 0.0 }
  0x33   : > { %v628_v42 = vadd.f32 %v2220_v9, %v493_v31  ;;  %v627_v43 = vadd.f32 %v2220_v9, %v492_v32  ;;  %v886_v44 = vmul.f32 %v2236_v25, %v751_v35  ;;  %v753_v45 = vmax.f32 %v625_v36, 0.0  ;;  %v1849_v31 = vld [vmem:[%s2206_s21 + $0xa8] sm:$0xff]  }
  0x34   : > { %v1639_v47 = vunpack.c.l.bf16 %v1844_v37  ;;  %v630_v49 = vadd.f32 %v2220_v9, %v495_v38  ;;  %v889_v51 = vmul.f32 %v2236_v25, %v754_v41  ;;  %v1644_v54 = vunpack.c.h.bf16 %v1845_v48 }
  0x35   : > { %1020 = vadd.xlane.f32.xlu1 %v877_v46  ;;  %1018 = vadd.xlane.f32.xlu0 %v876_v50  ;;  %v1640_v46 = vunpack.c.h.bf16 %v1844_v37  ;;  %v629_v50 = vadd.f32 %v2220_v9, %v494_v39  ;;  %v756_v52 = vmax.f32 %v628_v42, 0.0  ;;  %v755_v53 = vmax.f32 %v627_v43, 0.0  ;;  %v1850_v42 = vld [vmem:[%s2206_s21 + $0xb0] sm:$0xff]  }
  0x36   : > { %v888_v56 = vmul.f32 %v2236_v25, %v753_v45  ;;  %v496_v58 = vmul.f32 %v1639_v47, %v2211_v0  ;;  %v1643_v59 = vunpack.c.l.bf16 %v1845_v48  ;;  %v758_v60 = vmax.f32 %v630_v49, 0.0  ;;  %v1851_v49 = vld [vmem:[%s2206_s21 + $0xb8] sm:$0xff]  }
  0x37   : > { %v891_v62 = vmul.f32 %v2236_v25, %v756_v52  ;;  %v890_v63 = vmul.f32 %v2236_v25, %v755_v53  ;;  %v499_v1 = vmul.f32 %v1644_v54, %v2211_v0  ;;  %v1647_v2 = vunpack.c.l.bf16 %v1846_v55 }
  0x38   : > { %v757_v4 = vmax.f32 %v629_v50, 0.0  ;;  %v631_v6 = vadd.f32 %v2220_v9, %v496_v58  ;;  %v498_v7 = vmul.f32 %v1643_v59, %v2211_v0  ;;  %v1651_v14 = vunpack.c.l.bf16 %v1847_v3 }
  0x39   : > { %1024 = vadd.xlane.f32.xlu1 %v879_v57  ;;  %1022 = vadd.xlane.f32.xlu0 %v878_v61  ;;  %v497_v57 = vmul.f32 %v1640_v46, %v2211_v0  ;;  %v1648_v61 = vunpack.c.h.bf16 %v1846_v55  ;;  %v634_v12 = vadd.f32 %v2220_v9, %v499_v1  ;;  %v500_v13 = vmul.f32 %v1647_v2, %v2211_v0  ;;  %v1852_v1 = vld [vmem:[%s2206_s21 + $0xc0] sm:$0xff]  }
  0x3a   : > { %v759_v17 = vmax.f32 %v631_v6, 0.0  ;;  %v633_v18 = vadd.f32 %v2220_v9, %v498_v7  ;;  %v502_v24 = vmul.f32 %v1651_v14, %v2211_v0  ;;  %v1656_v26 = vunpack.c.h.bf16 %v1848_v19 }
  0x3b   : > { %v632_v5 = vadd.f32 %v2220_v9, %v497_v57  ;;  %v501_v8 = vmul.f32 %v1648_v61, %v2211_v0  ;;  %v635_v23 = vadd.f32 %v2220_v9, %v500_v13  ;;  %v1655_v30 = vunpack.c.l.bf16 %v1848_v19  ;;  %v1853_v13 = vld [vmem:[%s2206_s21 + $0xc8] sm:$0xff]  }
  0x3c   : > { %v894_v28 = vmul.f32 %v2236_v25, %v759_v17  ;;  %v761_v29 = vmax.f32 %v633_v18, 0.0  ;;  %v637_v36 = vadd.f32 %v2220_v9, %v502_v24  ;;  %v505_v37 = vmul.f32 %v1656_v26, %v2211_v0 }
  0x3d   : > { %1028 = vadd.xlane.f32.xlu1 %v881_v10  ;;  %1026 = vadd.xlane.f32.xlu0 %v880_v11  ;;  %v1652_v10 = vunpack.c.h.bf16 %v1847_v3  ;;  %v893_v11 = vmul.f32 %v2236_v25, %v758_v60  ;;  %v760_v16 = vmax.f32 %v632_v5, 0.0  ;;  %v636_v20 = vadd.f32 %v2220_v9, %v501_v8 }
  0x3e   : > { %v763_v35 = vmax.f32 %v635_v23, 0.0  ;;  %v896_v38 = vmul.f32 %v2236_v25, %v761_v29  ;;  %v504_v39 = vmul.f32 %v1655_v30, %v2211_v0  ;;  %v1659_v41 = vunpack.c.l.bf16 %v1849_v31 }
  0x3f   : > { %v503_v21 = vmul.f32 %v1652_v10, %v2211_v0  ;;  %v895_v27 = vmul.f32 %v2236_v25, %v760_v16  ;;  %v764_v32 = vmax.f32 %v636_v20, 0.0  ;;  %v640_v46 = vadd.f32 %v2220_v9, %v505_v37  ;;  %v1854_v20 = vld [vmem:[%s2206_s21 + $0xd0] sm:$0xff]  }
  0x40   : > { %v898_v45 = vmul.f32 %v2236_v25, %v763_v35  ;;  %v1664_v47 = vunpack.c.h.bf16 %v1850_v42  ;;  %v1663_v48 = vunpack.c.l.bf16 %v1850_v42  ;;  %v765_v50 = vmax.f32 %v637_v36, 0.0 }
  0x41   : > { %1032 = vadd.xlane.f32.xlu1 %v883_v15  ;;  %1030 = vadd.xlane.f32.xlu0 %v882_v22  ;;  %v892_v15 = vmul.f32 %v2236_v25, %v757_v4  ;;  %v762_v22 = vmax.f32 %v634_v12, 0.0  ;;  %v899_v43 = vmul.f32 %v2236_v25, %v764_v32  ;;  %v506_v53 = vmul.f32 %v1659_v41, %v2211_v0  ;;  %v1855_v32 = vld [vmem:[%s2206_s21 + $0xd8] sm:$0xff]  }
  0x42   : > { %v1668_v54 = vunpack.c.h.bf16 %v1851_v49  ;;  %v1667_v55 = vunpack.c.l.bf16 %v1851_v49  ;;  %v768_v57 = vmax.f32 %v640_v46, 0.0  ;;  %v509_v58 = vmul.f32 %v1664_v47, %v2211_v0  ;;  %v1856_v47 = vld [vmem:[%s2206_s21 + $0xe0] sm:$0xff]  }
  0x43   : > { %v508_v59 = vmul.f32 %v1663_v48, %v2211_v0  ;;  %v900_v60 = vmul.f32 %v2236_v25, %v765_v50  ;;  %v1672_v7 = vunpack.c.h.bf16 %v1852_v1  ;;  %v1671_v12 = vunpack.c.l.bf16 %v1852_v1 }
  0x44   : > { %v511_v2 = vmul.f32 %v1668_v54, %v2211_v0  ;;  %v510_v3 = vmul.f32 %v1667_v55, %v2211_v0  ;;  %v903_v4 = vmul.f32 %v2236_v25, %v768_v57  ;;  %v644_v5 = vadd.f32 %v2220_v9, %v509_v58  ;;  %v1857_v58 = vld [vmem:[%s2206_s21 + $0xe8] sm:$0xff]  }
  0x45   : > { %1036 = vadd.xlane.f32.xlu1 %v885_v33  ;;  %1034 = vadd.xlane.f32.xlu0 %v884_v34  ;;  %v638_v33 = vadd.f32 %v2220_v9, %v503_v21  ;;  %v897_v34 = vmul.f32 %v2236_v25, %v762_v22  ;;  %v643_v6 = vadd.f32 %v2220_v9, %v508_v59  ;;  %v1676_v19 = vunpack.c.h.bf16 %v1853_v13 }
  0x46   : > { %v646_v14 = vadd.f32 %v2220_v9, %v511_v2  ;;  %v772_v16 = vmax.f32 %v644_v5, 0.0  ;;  %v513_v18 = vmul.f32 %v1672_v7, %v2211_v0  ;;  %v512_v23 = vmul.f32 %v1671_v12, %v2211_v0 }
  0x47   : > { %v771_v17 = vmax.f32 %v643_v6, 0.0  ;;  %v1675_v24 = vunpack.c.l.bf16 %v1853_v13  ;;  %v515_v30 = vmul.f32 %v1676_v19, %v2211_v0  ;;  %v1683_v42 = vunpack.c.l.bf16 %v1855_v32  ;;  %v1858_v6 = vld [vmem:[%s2206_s21 + $0xf0] sm:$0xff]  }
  0x48   : > { %v774_v26 = vmax.f32 %v646_v14, 0.0  ;;  %v648_v29 = vadd.f32 %v2220_v9, %v513_v18  ;;  %v647_v35 = vadd.f32 %v2220_v9, %v512_v23  ;;  %v1687_v57 = vunpack.c.l.bf16 %v1856_v47  ;;  %v1859_v14 = vld [vmem:[%s2206_s21 + $0xf8] sm:$0xff]  }
  0x49   : > { %1040 = vadd.xlane.f32.xlu1 %v887_v40  ;;  %1038 = vadd.xlane.f32.xlu0 %v886_v44  ;;  %v1660_v40 = vunpack.c.h.bf16 %v1849_v31  ;;  %v766_v44 = vmax.f32 %v638_v33, 0.0  ;;  %v1679_v31 = vunpack.c.l.bf16 %v1854_v20  ;;  %v906_v33 = vmul.f32 %v2236_v25, %v771_v17 }
  0x4a   : > { %v514_v36 = vmul.f32 %v1675_v24, %v2211_v0  ;;  %v1692_v1 = vunpack.c.h.bf16 %v1857_v58  ;;  %v1691_v5 = vunpack.c.l.bf16 %v1857_v58  ;;  %v1696_v12 = vunpack.c.h.bf16 %v1858_v6 }
  0x4b   : > { %v507_v52 = vmul.f32 %v1660_v40, %v2211_v0  ;;  %v650_v40 = vadd.f32 %v2220_v9, %v515_v30  ;;  %v516_v41 = vmul.f32 %v1679_v31, %v2211_v0  ;;  %v1695_v13 = vunpack.c.l.bf16 %v1858_v6  ;;  %v1860_v30 = vld [vmem:[%s2206_s21 + $0x100] sm:$0xff]  }
  0x4c   : > { %v649_v46 = vadd.f32 %v2220_v9, %v514_v36  ;;  %v522_v18 = vmul.f32 %v1691_v5, %v2211_v0  ;;  %v1700_v19 = vunpack.c.h.bf16 %v1859_v14  ;;  %v525_v23 = vmul.f32 %v1696_v12, %v2211_v0  ;;  %v1864_v12 = vld [vmem:[%s2206_s21 + $0x120] sm:$0xff]  }
  0x4d   : > { %1044 = vadd.xlane.f32.xlu1 %v889_v51  ;;  %1042 = vadd.xlane.f32.xlu0 %v888_v56  ;;  %v639_v51 = vadd.f32 %v2220_v9, %v504_v39  ;;  %v901_v56 = vmul.f32 %v2236_v25, %v766_v44  ;;  %v776_v39 = vmax.f32 %v648_v29, 0.0  ;;  %v524_v24 = vmul.f32 %v1695_v13, %v2211_v0 }
  0x4e   : > { %v777_v55 = vmax.f32 %v649_v46, 0.0  ;;  %v657_v29 = vadd.f32 %v2220_v9, %v522_v18  ;;  %v527_v31 = vmul.f32 %v1700_v19, %v2211_v0  ;;  %v1704_v36 = vunpack.c.h.bf16 %v1860_v30 }
  0x4f   : > { %v767_v61 = vmax.f32 %v639_v51, 0.0  ;;  %v911_v50 = vmul.f32 %v2236_v25, %v776_v39  ;;  %v778_v51 = vmax.f32 %v650_v40, 0.0  ;;  %v1703_v40 = vunpack.c.l.bf16 %v1860_v30 }
  0x50   : > { %v912_v2 = vmul.f32 %v2236_v25, %v777_v55  ;;  %v785_v39 = vmax.f32 %v657_v29, 0.0  ;;  %v1720_v18 = vunpack.c.h.bf16 %v1864_v12 }
  0x51   : > { %1048 = vadd.xlane.f32.xlu1 %v891_v62  ;;  %1046 = vadd.xlane.f32.xlu0 %v890_v63  ;;  %v642_v62 = vadd.f32 %v2220_v9, %v507_v52  ;;  %v641_v63 = vadd.f32 %v2220_v9, %v506_v53  ;;  %v902_v8 = vmul.f32 %v2236_v25, %v767_v61 }
  0x52   : > { %v651_v52 = vadd.f32 %v2220_v9, %v516_v41  ;;  %v518_v53 = vmul.f32 %v1683_v42, %v2211_v0  ;;  %v913_v61 = vmul.f32 %v2236_v25, %v778_v51  ;;  %v1861_v41 = vld [vmem:[%s2206_s21 + $0x108] sm:$0xff]   ;;  %v662_v42 = vadd.f32 %v2220_v9, %v527_v31  ;;  %v1866_v31 = vld [vmem:[%s2206_s21 + $0x130] sm:$0xff]  }
  0x53   : > { %v770_v10 = vmax.f32 %v642_v62, 0.0  ;;  %v1708_v51 = vunpack.c.h.bf16 %v1861_v41  ;;  %v537_v29 = vmul.f32 %v1720_v18, %v2211_v0  ;;  %v2505_v18 = vld [vmem:[%s2952_s1] ss:$0 sm:$0xff] }
  0x54   : > { %v779_v62 = vmax.f32 %v651_v52, 0.0  ;;  %v1707_v52 = vunpack.c.l.bf16 %v1861_v41 }
  0x55   : > { %1052 = vadd.xlane.f32.xlu1 %v893_v11  ;;  %1050 = vadd.xlane.f32.xlu0 %v892_v15  ;;  %v769_v11 = vmax.f32 %v641_v63, 0.0  ;;  %v645_v15 = vadd.f32 %v2220_v9, %v510_v3  ;;  %v905_v21 = vmul.f32 %v2236_v25, %v770_v10  ;;  %v653_v63 = vadd.f32 %v2220_v9, %v518_v53 }
  0x56   : > { %v914_v10 = vmul.f32 %v2236_v25, %v779_v62  ;;  %v790_v53 = vmax.f32 %v662_v42, 0.0  ;;  %v531_v62 = vmul.f32 %v1708_v51, %v2211_v0  ;;  %v1867_v42 = vld [vmem:[%s2206_s21 + $0x138] sm:$0xff]  }
  0x57   : > { %v904_v22 = vmul.f32 %v2236_v25, %v769_v11  ;;  %v523_v11 = vmul.f32 %v1692_v1, %v2211_v0 }
  0x59   : > { %1056 = vadd.xlane.f32.xlu1 %v895_v27  ;;  %1054 = vadd.xlane.f32.xlu0 %v894_v28  ;;  %v1680_v27 = vunpack.c.h.bf16 %v1854_v20  ;;  %v907_v28 = vmul.f32 %v2236_v25, %v772_v16  ;;  %v1699_v20 = vunpack.c.l.bf16 %v1859_v14 }
  0x5b   : > { %v517_v37 = vmul.f32 %v1680_v27, %v2211_v0 }
  0x5d   : > { %1060 = vadd.xlane.f32.xlu1 %v897_v34  ;;  %1058 = vadd.xlane.f32.xlu0 %v896_v38  ;;  %v773_v34 = vmax.f32 %v645_v15, 0.0  ;;  %v1684_v38 = vunpack.c.h.bf16 %v1855_v32  ;;  %v652_v48 = vadd.f32 %v2220_v9, %v517_v37  ;;  %v781_v15 = vmax.f32 %v653_v63, 0.0 }
  0x5e   : > { %v526_v32 = vmul.f32 %v1699_v20, %v2211_v0  ;;  %v530_v63 = vmul.f32 %v1707_v52, %v2211_v0  ;;  %v1731_v52 = vunpack.c.l.bf16 %v1867_v42 }
  0x5f   : > { %v908_v44 = vmul.f32 %v2236_v25, %v773_v34  ;;  %v519_v49 = vmul.f32 %v1684_v38, %v2211_v0  ;;  %v780_v59 = vmax.f32 %v652_v48, 0.0  ;;  %v660_v34 = vadd.f32 %v2220_v9, %v525_v23  ;;  %v1862_v48 = vld [vmem:[%s2206_s21 + $0x110] sm:$0xff]   ;;  %v1865_v23 = vld [vmem:[%s2206_s21 + $0x128] sm:$0xff]  }
  0x60   : > { %v1711_v58 = vunpack.c.l.bf16 %v1862_v48  ;;  %v1724_v30 = vunpack.c.h.bf16 %v1865_v23 }
  0x61   : > { %1064 = vadd.xlane.f32.xlu1 %v899_v43  ;;  %1062 = vadd.xlane.f32.xlu0 %v898_v45  ;;  %v909_v43 = vmul.f32 %v2236_v25, %v774_v26  ;;  %v775_v45 = vmax.f32 %v647_v35, 0.0  ;;  %v915_v7 = vmul.f32 %v2236_v25, %v780_v59  ;;  %v916_v26 = vmul.f32 %v2236_v25, %v781_v15  ;;  %v1863_v59 = vld [vmem:[%s2206_s21 + $0x118] sm:$0xff]  }
  0x62   : > { %v659_v35 = vadd.f32 %v2220_v9, %v524_v24  ;;  %v532_v5 = vmul.f32 %v1711_v58, %v2211_v0  ;;  %v1715_v6 = vunpack.c.l.bf16 %v1863_v59  ;;  %v539_v41 = vmul.f32 %v1724_v30, %v2211_v0 }
  0x63   : > { %v910_v54 = vmul.f32 %v2236_v25, %v775_v45  ;;  %v788_v45 = vmax.f32 %v660_v34, 0.0 }
  0x64   : > { %v787_v46 = vmax.f32 %v659_v35, 0.0  ;;  %v1723_v35 = vunpack.c.l.bf16 %v1865_v23  ;;  %v674_v51 = vadd.f32 %v2220_v9, %v539_v41 }
  0x65   : > { %1068 = vadd.xlane.f32.xlu1 %v901_v56  ;;  %1066 = vadd.xlane.f32.xlu0 %v900_v60  ;;  %v1688_v56 = vunpack.c.h.bf16 %v1856_v47  ;;  %v654_v60 = vadd.f32 %v2220_v9, %v519_v49  ;;  %v529_v47 = vmul.f32 %v1704_v36, %v2211_v0  ;;  %v920_v49 = vmul.f32 %v2236_v25, %v785_v39 }
  0x66   : > { %v923_v55 = vmul.f32 %v2236_v25, %v788_v45  ;;  %v1728_v36 = vunpack.c.h.bf16 %v1866_v31 }
  0x67   : > { %v521_v3 = vmul.f32 %v1688_v56, %v2211_v0  ;;  %v922_v56 = vmul.f32 %v2236_v25, %v787_v46  ;;  %v538_v46 = vmul.f32 %v1723_v35, %v2211_v0 }
  0x69   : > { %1072 = vadd.xlane.f32.xlu1 %v903_v4  ;;  %1070 = vadd.xlane.f32.xlu0 %v902_v8  ;;  %v520_v4 = vmul.f32 %v1687_v57, %v2211_v0  ;;  %v782_v8 = vmax.f32 %v654_v60, 0.0  ;;  %v656_v16 = vadd.f32 %v2220_v9, %v521_v3  ;;  %v664_v57 = vadd.f32 %v2220_v9, %v529_v47 }
  0x6a   : > { %v925_v3 = vmul.f32 %v2236_v25, %v790_v53  ;;  %v541_v47 = vmul.f32 %v1728_v36, %v2211_v0 }
  0x6b   : > { %v655_v17 = vadd.f32 %v2220_v9, %v520_v4  ;;  %v784_v27 = vmax.f32 %v656_v16, 0.0  ;;  %v792_v4 = vmax.f32 %v664_v57, 0.0  ;;  %v667_v16 = vadd.f32 %v2220_v9, %v532_v5 }
  0x6d   : > { %1076 = vadd.xlane.f32.xlu1 %v905_v21  ;;  %1074 = vadd.xlane.f32.xlu0 %v904_v22  ;;  %v917_v21 = vmul.f32 %v2236_v25, %v782_v8  ;;  %v658_v22 = vadd.f32 %v2220_v9, %v523_v11  ;;  %v919_v37 = vmul.f32 %v2236_v25, %v784_v27  ;;  %v795_v27 = vmax.f32 %v667_v16, 0.0  ;;  %v1870_v16 = vld [vmem:[%s2206_s21 + $0x150] sm:$0xff]  }
  0x6e   : > { %v665_v11 = vadd.f32 %v2220_v9, %v530_v63  ;;  %v927_v15 = vmul.f32 %v2236_v25, %v792_v4 }
  0x71   : > { %1080 = vadd.xlane.f32.xlu1 %v907_v28  ;;  %1078 = vadd.xlane.f32.xlu0 %v906_v33  ;;  %v783_v28 = vmax.f32 %v655_v17, 0.0  ;;  %v786_v33 = vmax.f32 %v658_v22, 0.0  ;;  %v534_v17 = vmul.f32 %v1715_v6, %v2211_v0  ;;  %v1719_v22 = vunpack.c.l.bf16 %v1864_v12 }
  0x73   : > { %v918_v38 = vmul.f32 %v2236_v25, %v783_v28  ;;  %v669_v28 = vadd.f32 %v2220_v9, %v534_v17  ;;  %v536_v34 = vmul.f32 %v1719_v22, %v2211_v0 }
  0x75   : > { %1084 = vadd.xlane.f32.xlu1 %v909_v43  ;;  %1082 = vadd.xlane.f32.xlu0 %v908_v44  ;;  %v661_v43 = vadd.f32 %v2220_v9, %v526_v32  ;;  %v921_v44 = vmul.f32 %v2236_v25, %v786_v33  ;;  %v671_v45 = vadd.f32 %v2220_v9, %v536_v34 }
  0x77   : > { %v789_v60 = vmax.f32 %v661_v43, 0.0  ;;  %v930_v43 = vmul.f32 %v2236_v25, %v795_v27 }
  0x79   : > { %1088 = vadd.xlane.f32.xlu1 %v911_v50  ;;  %1086 = vadd.xlane.f32.xlu0 %v910_v54  ;;  %v528_v50 = vmul.f32 %v1703_v40, %v2211_v0  ;;  %v1712_v54 = vunpack.c.h.bf16 %v1862_v48  ;;  %v672_v40 = vadd.f32 %v2220_v9, %v537_v29 }
  0x7b   : > { %v533_v1 = vmul.f32 %v1712_v54, %v2211_v0 }
  0x7d   : > { %1092 = vadd.xlane.f32.xlu1 %v913_v61  ;;  %1090 = vadd.xlane.f32.xlu0 %v912_v2  ;;  %v663_v61 = vadd.f32 %v2220_v9, %v528_v50  ;;  %v1716_v2 = vunpack.c.h.bf16 %v1863_v59  ;;  %v668_v13 = vadd.f32 %v2220_v9, %v533_v1  ;;  %v800_v50 = vmax.f32 %v672_v40, 0.0  ;;  %v1868_v59 = vld [vmem:[%s2206_s21 + $0x140] sm:$0xff]  }
  0x7e   : > { %v802_v1 = vmax.f32 %v674_v51, 0.0  ;;  %v1736_v5 = vunpack.c.h.bf16 %v1868_v59  ;;  %v1735_v6 = vunpack.c.l.bf16 %v1868_v59 }
  0x7f   : > { %v791_v8 = vmax.f32 %v663_v61, 0.0  ;;  %v535_v14 = vmul.f32 %v1716_v2, %v2211_v0  ;;  %v796_v24 = vmax.f32 %v668_v13, 0.0  ;;  %v935_v63 = vmul.f32 %v2236_v25, %v800_v50  ;;  %v1872_v50 = vld [vmem:[%s2206_s21 + $0x160] sm:$0xff]  }
  0x80   : > { %v542_v2 = vmul.f32 %v1731_v52, %v2211_v0  ;;  %v1752_v59 = vunpack.c.h.bf16 %v1872_v50 }
  0x81   : > { %1096 = vadd.xlane.f32.xlu1 %v915_v7  ;;  %1094 = vadd.xlane.f32.xlu0 %v914_v10  ;;  %v924_v7 = vmul.f32 %v2236_v25, %v789_v60  ;;  %v666_v10 = vadd.f32 %v2220_v9, %v531_v62  ;;  %v926_v19 = vmul.f32 %v2236_v25, %v791_v8 }
  0x82   : > { %v676_v60 = vadd.f32 %v2220_v9, %v541_v47 }
  0x83   : > { %v794_v20 = vmax.f32 %v666_v10, 0.0 }
  0x85   : > { %1100 = vadd.xlane.f32.xlu1 %v917_v21  ;;  %1098 = vadd.xlane.f32.xlu0 %v916_v26  ;;  %v793_v21 = vmax.f32 %v665_v11, 0.0  ;;  %v670_v26 = vadd.f32 %v2220_v9, %v535_v14  ;;  %v929_v32 = vmul.f32 %v2236_v25, %v794_v20  ;;  %v804_v11 = vmax.f32 %v676_v60, 0.0 }
  0x86   : > { %v677_v14 = vadd.f32 %v2220_v9, %v542_v2  ;;  %v544_v20 = vmul.f32 %v2505_v18, %v1735_v6 }
  0x87   : > { %v928_v33 = vmul.f32 %v2236_v25, %v793_v21  ;;  %v798_v39 = vmax.f32 %v670_v26, 0.0  ;;  %v1743_v26 = vunpack.c.l.bf16 %v1870_v16  ;;  %v939_v27 = vmul.f32 %v2236_v25, %v804_v11 }
  0x89   : > { %1104 = vadd.xlane.f32.xlu1 %v919_v37  ;;  %1102 = vadd.xlane.f32.xlu0 %v918_v38  ;;  %v1727_v37 = vunpack.c.l.bf16 %v1866_v31  ;;  %v931_v38 = vmul.f32 %v2236_v25, %v796_v24  ;;  %v933_v53 = vmul.f32 %v2236_v25, %v798_v39  ;;  %v1744_v24 = vunpack.c.h.bf16 %v1870_v16  ;;  %v1871_v31 = vld [vmem:[%s2206_s21 + $0x158] sm:$0xff]  }
  0x8a   : > { %v548_v39 = vmul.f32 %v2505_v18, %v1743_v26  ;;  %v1748_v40 = vunpack.c.h.bf16 %v1871_v31 }
  0x8b   : > { %v540_v48 = vmul.f32 %v1727_v37, %v2211_v0 }
  0x8d   : > { %1108 = vadd.xlane.f32.xlu1 %v921_v44  ;;  %1106 = vadd.xlane.f32.xlu0 %v920_v49  ;;  %v797_v44 = vmax.f32 %v669_v28, 0.0  ;;  %v1732_v49 = vunpack.c.h.bf16 %v1867_v42  ;;  %v675_v61 = vadd.f32 %v2220_v9, %v540_v48  ;;  %v2514_v28 = vld [vmem:[%s2954_s3] ss:$0 sm:$0xff] }
  0x8f   : > { %v932_v54 = vmul.f32 %v2236_v25, %v797_v44  ;;  %v543_v62 = vmul.f32 %v1732_v49, %v2211_v0  ;;  %v803_v12 = vmax.f32 %v675_v61, 0.0  ;;  %v937_v0 = vmul.f32 %v2236_v25, %v802_v1 }
  0x90   : > { %v1747_v44 = vunpack.c.l.bf16 %v1871_v31  ;;  %v1751_v1 = vunpack.c.l.bf16 %v1872_v50 }
  0x91   : > { %1112 = vadd.xlane.f32.xlu1 %v923_v55  ;;  %1110 = vadd.xlane.f32.xlu0 %v922_v56  ;;  %v799_v55 = vmax.f32 %v671_v45, 0.0  ;;  %v673_v56 = vadd.f32 %v2220_v9, %v538_v46  ;;  %v678_v13 = vadd.f32 %v2220_v9, %v543_v62  ;;  %v938_v29 = vmul.f32 %v2514_v28, %v803_v12 }
  0x92   : > { %v553_v12 = vmul.f32 %v2505_v18, %v1752_v59 }
  0x93   : > { %v801_v4 = vmax.f32 %v673_v56, 0.0  ;;  %v806_v9 = vmax.f32 %v678_v13, 0.0  ;;  %v1874_v13 = vld [vmem:[%s2206_s21 + $0x170] sm:$0xff]  }
  0x95   : > { %1116 = vadd.xlane.f32.xlu1 %v925_v3  ;;  %1114 = vadd.xlane.f32.xlu0 %v924_v7  ;;  %v934_v3 = vmul.f32 %v2236_v25, %v799_v55  ;;  %v1869_v7 = vld [vmem:[%s2206_s21 + $0x148] sm:$0xff]   ;;  %v936_v17 = vmul.f32 %v2236_v25, %v801_v4  ;;  %v941_v42 = vmul.f32 %v2514_v28, %v806_v9 }
  0x96   : > { %v1739_v21 = vunpack.c.l.bf16 %v1869_v7  ;;  %v551_v55 = vmul.f32 %v2505_v18, %v1748_v40  ;;  %v1873_v4 = vld [vmem:[%s2206_s21 + $0x168] sm:$0xff]  }
  0x97   : > { %v1756_v16 = vunpack.c.h.bf16 %v1873_v4 }
  0x98   : > { %v546_v35 = vmul.f32 %v2505_v18, %v1739_v21 }
  0x99   : > { %1120 = vadd.xlane.f32.xlu1 %v927_v15  ;;  %1118 = vadd.xlane.f32.xlu0 %v926_v19  ;;  %v1740_v15 = vunpack.c.h.bf16 %v1869_v7  ;;  %v545_v19 = vmul.f32 %v2505_v18, %v1736_v5 }
  0x9b   : > { %v547_v30 = vmul.f32 %v2505_v18, %v1740_v15  ;;  %v552_v15 = vmul.f32 %v2505_v18, %v1751_v1  ;;  %v1877_v1 = vld [vmem:[%s2206_s21 + $0x188] sm:$0xff]  }
  0x9d   : > { %1124 = vadd.xlane.f32.xlu1 %v929_v32  ;;  %1122 = vadd.xlane.f32.xlu0 %v928_v33  ;;  %v805_v32 = vmax.f32 %v677_v14, 0.0  ;;  %v2522_v33 = vld [vmem:[%s2953_s2] ss:$0 sm:$0xff] }
  0x9e   : > { %v680_v25 = vadd.f32 %v2522_v33, %v545_v19  ;;  %v679_v34 = vadd.f32 %v2522_v33, %v544_v20  ;;  %v681_v49 = vadd.f32 %v2522_v33, %v546_v35  ;;  %v686_v7 = vadd.f32 %v2522_v33, %v551_v55 }
  0x9f   : > { %v940_v46 = vmul.f32 %v2514_v28, %v805_v32  ;;  %v687_v32 = vadd.f32 %v2522_v33, %v552_v15 }
  0xa0   : > { %v808_v47 = vmax.f32 %v680_v25, 0.0  ;;  %v807_v48 = vmax.f32 %v679_v34, 0.0  ;;  %v814_v21 = vmax.f32 %v686_v7, 0.0  ;;  %v555_v25 = vmul.f32 %v2505_v18, %v1756_v16 }
  0xa1   : > { %1128 = vadd.xlane.f32.xlu1 %v931_v38  ;;  %1126 = vadd.xlane.f32.xlu0 %v930_v43  ;;  %v549_v38 = vmul.f32 %v2505_v18, %v1744_v24  ;;  %v682_v43 = vadd.f32 %v2522_v33, %v547_v30  ;;  %v1771_v16 = vunpack.c.l.bf16 %v1877_v1 }
  0xa2   : > { %v995_v57 = vpop.xlane.xlu1 %994  ;;  %v991_v58 = vpop.xlane.xlu0 %990  ;;  %v943_v61 = vmul.f32 %v2514_v28, %v808_v47  ;;  %v942_v62 = vmul.f32 %v2514_v28, %v807_v48  ;;  %v690_v47 = vadd.f32 %v2522_v33, %v555_v25 }
  0xa3   : > { %1900 = vtanh.f32 %v995_v57  ;;  %v810_v57 = vmax.f32 %v682_v43, 0.0  ;;  %v562_v25 = vmul.f32 %v2505_v18, %v1771_v16 }
  0xa4   : > { %1902 = vtanh.f32 %v991_v58  ;;  %v550_v58 = vmul.f32 %v2505_v18, %v1747_v44 }
  0xa5   : > { %1132 = vadd.xlane.f32.xlu1 %v933_v53  ;;  %1130 = vadd.xlane.f32.xlu0 %v932_v54  ;;  %v684_v53 = vadd.f32 %v2522_v33, %v549_v38  ;;  %v683_v54 = vadd.f32 %v2522_v33, %v548_v39 }
  0xa6   : > { %v997_v8 = vpop.xlane.xlu1 %996  ;;  %v993_v10 = vpop.xlane.xlu0 %992  ;;  %v685_v11 = vadd.f32 %v2522_v33, %v550_v58 }
  0xa7   : > { %1904 = vtanh.f32 %v997_v8  ;;  %v812_v5 = vmax.f32 %v684_v53, 0.0  ;;  %v811_v6 = vmax.f32 %v683_v54, 0.0 }
  0xa8   : > { %1906 = vtanh.f32 %v993_v10  ;;  %v945_v10 = vmul.f32 %v2514_v28, %v810_v57  ;;  %v813_v31 = vmax.f32 %v685_v11, 0.0  ;;  %v1772_v11 = vunpack.c.h.bf16 %v1877_v1 }
  0xa9   : > { %1136 = vadd.xlane.f32.xlu1 %v935_v63  ;;  %1134 = vadd.xlane.f32.xlu0 %v934_v3  ;;  %v809_v63 = vmax.f32 %v681_v49, 0.0  ;;  %v947_v24 = vmul.f32 %v2514_v28, %v812_v5  ;;  %v946_v26 = vmul.f32 %v2514_v28, %v811_v6  ;;  %v1876_v49 = vld [vmem:[%s2206_s21 + $0x180] sm:$0xff]  }
  0xaa   : > { %v1001_v22 = vpop.xlane.xlu1 %1000  ;;  %v999_v23 = vpop.xlane.xlu0 %998  ;;  %v1768_v58 = vunpack.c.h.bf16 %v1876_v49 }
  0xab   : > { %1908 = vtanh.f32 %v1001_v22  ;;  %v944_v14 = vmul.f32 %v2514_v28, %v809_v63  ;;  %v1760_v22 = vunpack.c.h.bf16 %v1874_v13  ;;  %v1767_v63 = vunpack.c.l.bf16 %v1876_v49 }
  0xac   : > { %1910 = vtanh.f32 %v999_v23  ;;  %v1759_v23 = vunpack.c.l.bf16 %v1874_v13 }
  0xad   : > { %1140 = vadd.xlane.f32.xlu1 %v937_v0  ;;  %1138 = vadd.xlane.f32.xlu0 %v936_v17  ;;  %v1755_v17 = vunpack.c.l.bf16 %v1873_v4  ;;  %v560_v15 = vmul.f32 %v2505_v18, %v1767_v63  ;;  %v1881_v63 = vld [vmem:[%s2206_s21 + $0x1a8] sm:$0xff]  }
  0xae   : > { %v1005_v36 = vpop.xlane.xlu1 %1004  ;;  %v1003_v37 = vpop.xlane.xlu0 %1002  ;;  %v556_v38 = vmul.f32 %v2505_v18, %v1759_v23 }
  0xaf   : > { %1912 = vtanh.f32 %v1005_v36  ;;  %v554_v34 = vmul.f32 %v2505_v18, %v1755_v17 }
  0xb0   : > { %v1901_v41 = vpop.eup %1900  ;;  %1914 = vtanh.f32 %v1003_v37  ;;  %v557_v37 = vmul.f32 %v2505_v18, %v1760_v22  ;;  %v691_v53 = vadd.f32 %v2522_v33, %v556_v38 }
  0xb1   : > { %v1903_v45 = vpop.eup %1902  ;;  %1377 = vst.msk [vmem:[%s2530_s11 + $0x10] sm:$0xff] %vm1374_vm0, %v1901_v41  ;;  %1144 = vadd.xlane.f32.xlu1 %v939_v27  ;;  %1142 = vadd.xlane.f32.xlu0 %v938_v29  ;;  %v688_v27 = vadd.f32 %v2522_v33, %v553_v12  ;;  %v1875_v29 = vld [vmem:[%s2206_s21 + $0x178] sm:$0xff]   ;;  %v949_v41 = vmul.f32 %v2514_v28, %v814_v21  ;;  %v1878_v12 = vld [vmem:[%s2206_s21 + $0x190] sm:$0xff]  }
  0xb2   : > { %1375 = vst.msk [vmem:[%s2530_s11] sm:$0xff] %vm1374_vm0, %v1903_v45  ;;  %v1009_v51 = vpop.xlane.xlu1 %1008  ;;  %v1007_v52 = vpop.xlane.xlu0 %1006  ;;  %v1764_v39 = vunpack.c.h.bf16 %v1875_v29  ;;  %v1763_v43 = vunpack.c.l.bf16 %v1875_v29  ;;  %v948_v45 = vmul.f32 %v2514_v28, %v813_v31  ;;  %v689_v48 = vadd.f32 %v2522_v33, %v554_v34 }
  0xb3   : > { %1916 = vtanh.f32 %v1009_v51  ;;  %v819_v5 = vmax.f32 %v691_v53, 0.0  ;;  %v1776_v21 = vunpack.c.h.bf16 %v1878_v12  ;;  %v1775_v22 = vunpack.c.l.bf16 %v1878_v12 }
  0xb4   : > { %v1905_v56 = vpop.eup %1904  ;;  %1918 = vtanh.f32 %v1007_v52  ;;  %v692_v52 = vadd.f32 %v2522_v33, %v557_v37  ;;  %v559_v54 = vmul.f32 %v2505_v18, %v1764_v39  ;;  %v558_v57 = vmul.f32 %v2505_v18, %v1763_v43 }
  0xb5   : > { %v1907_v60 = vpop.eup %1906  ;;  %1378 = vst.msk [vmem:[%s2530_s11 + $0x18] sm:$0xff] %vm1374_vm0, %v1905_v56  ;;  %1148 = vadd.xlane.f32.xlu1 %v941_v42  ;;  %1146 = vadd.xlane.f32.xlu0 %v940_v46  ;;  %v816_v42 = vmax.f32 %v688_v27, 0.0  ;;  %v815_v46 = vmax.f32 %v687_v32, 0.0  ;;  %v1879_v27 = vld [vmem:[%s2206_s21 + $0x198] sm:$0xff]   ;;  %v695_v32 = vadd.f32 %v2522_v33, %v560_v15  ;;  %v564_v37 = vmul.f32 %v2505_v18, %v1775_v22 }
  0xb6   : > { %1376 = vst.msk [vmem:[%s2530_s11 + $0x8] sm:$0xff] %vm1374_vm0, %v1907_v60  ;;  %v1013_v2 = vpop.xlane.xlu1 %1012  ;;  %v1011_v3 = vpop.xlane.xlu0 %1010  ;;  %v820_v4 = vmax.f32 %v692_v52, 0.0  ;;  %v694_v6 = vadd.f32 %v2522_v33, %v559_v54  ;;  %v1780_v38 = vunpack.c.h.bf16 %v1879_v27  ;;  %v1787_v15 = vunpack.c.l.bf16 %v1881_v63 }
  0xb7   : > { %1920 = vtanh.f32 %v1013_v2  ;;  %v951_v56 = vmul.f32 %v2514_v28, %v816_v42  ;;  %v950_v60 = vmul.f32 %v2514_v28, %v815_v46  ;;  %v1779_v42 = vunpack.c.l.bf16 %v1879_v27 }
  0xb8   : > { %v1909_v8 = vpop.eup %1908  ;;  %1922 = vtanh.f32 %v1011_v3  ;;  %v823_v46 = vmax.f32 %v695_v32, 0.0  ;;  %v699_v52 = vadd.f32 %v2522_v33, %v564_v37  ;;  %v567_v53 = vmul.f32 %v2505_v18, %v1780_v38 }
  0xb9   : > { %v1911_v0 = vpop.eup %1910  ;;  %1380 = vst.msk [vmem:[%s2530_s11 + $0x28] sm:$0xff] %vm1374_vm0, %v1909_v8  ;;  %1152 = vadd.xlane.f32.xlu1 %v943_v61  ;;  %1150 = vadd.xlane.f32.xlu0 %v942_v62  ;;  %v818_v61 = vmax.f32 %v690_v47, 0.0  ;;  %v817_v62 = vmax.f32 %v689_v48, 0.0  ;;  %v693_v8 = vadd.f32 %v2522_v33, %v558_v57  ;;  %v697_v47 = vadd.f32 %v2522_v33, %v562_v25 }
  0xba   : > { %1379 = vst.msk [vmem:[%s2530_s11 + $0x20] sm:$0xff] %vm1374_vm0, %v1911_v0  ;;  %v1017_v19 = vpop.xlane.xlu1 %1016  ;;  %v1015_v20 = vpop.xlane.xlu0 %1014  ;;  %v566_v57 = vmul.f32 %v2505_v18, %v1779_v42  ;;  %v570_v32 = vmul.f32 %v2505_v18, %v1787_v15 }
  0xbb   : > { %1924 = vtanh.f32 %v1017_v19  ;;  %v953_v0 = vmul.f32 %v2514_v28, %v818_v61  ;;  %v821_v31 = vmax.f32 %v693_v8, 0.0 }
  0xbc   : > { %v1913_v9 = vpop.eup %1912  ;;  %1926 = vtanh.f32 %v1015_v20  ;;  %v822_v20 = vmax.f32 %v694_v6, 0.0  ;;  %v701_v8 = vadd.f32 %v2522_v33, %v566_v57 }
  0xbd   : > { %v1915_v30 = vpop.eup %1914  ;;  %1382 = vst.msk [vmem:[%s2530_s11 + $0x38] sm:$0xff] %vm1374_vm0, %v1913_v9  ;;  %1156 = vadd.xlane.f32.xlu1 %v945_v10  ;;  %1154 = vadd.xlane.f32.xlu0 %v944_v14  ;;  %v561_v10 = vmul.f32 %v2505_v18, %v1768_v58  ;;  %v952_v14 = vmul.f32 %v2514_v28, %v817_v62 }
  0xbe   : > { %1381 = vst.msk [vmem:[%s2530_s11 + $0x30] sm:$0xff] %vm1374_vm0, %v1915_v30  ;;  %v1021_v35 = vpop.xlane.xlu1 %1020  ;;  %v1019_v36 = vpop.xlane.xlu0 %1018  ;;  %v955_v9 = vmul.f32 %v2514_v28, %v820_v4  ;;  %v954_v30 = vmul.f32 %v2514_v28, %v819_v5  ;;  %v827_v4 = vmax.f32 %v699_v52, 0.0  ;;  %v702_v5 = vadd.f32 %v2522_v33, %v567_v53 }
  0xbf   : > { %1928 = vtanh.f32 %v1021_v35 }
  0xc0   : > { %v1917_v40 = vpop.eup %1916  ;;  %1930 = vtanh.f32 %v1019_v36  ;;  %v565_v36 = vmul.f32 %v2505_v18, %v1776_v21 }
  0xc1   : > { %v1919_v44 = vpop.eup %1918  ;;  %1384 = vst.msk [vmem:[%s2530_s11 + $0x48] sm:$0xff] %vm1374_vm0, %v1917_v40  ;;  %1160 = vadd.xlane.f32.xlu1 %v947_v24  ;;  %1158 = vadd.xlane.f32.xlu0 %v946_v26  ;;  %v696_v24 = vadd.f32 %v2522_v33, %v561_v10  ;;  %v563_v26 = vmul.f32 %v2505_v18, %v1772_v11  ;;  %v1788_v10 = vunpack.c.h.bf16 %v1881_v63  ;;  %v1882_v11 = vld [vmem:[%s2206_s21 + $0x1b0] sm:$0xff]  }
  0xc2   : > { %1383 = vst.msk [vmem:[%s2530_s11 + $0x40] sm:$0xff] %vm1374_vm0, %v1919_v44  ;;  %v1025_v50 = vpop.xlane.xlu1 %1024  ;;  %v1023_v51 = vpop.xlane.xlu0 %1022  ;;  %v957_v44 = vmul.f32 %v2514_v28, %v822_v20  ;;  %v1792_v20 = vunpack.c.h.bf16 %v1882_v11  ;;  %v1791_v21 = vunpack.c.l.bf16 %v1882_v11 }
  0xc3   : > { %1932 = vtanh.f32 %v1025_v50  ;;  %v824_v40 = vmax.f32 %v696_v24, 0.0  ;;  %v1880_v50 = vld [vmem:[%s2206_s21 + $0x1a0] sm:$0xff]   ;;  %v571_v24 = vmul.f32 %v2505_v18, %v1788_v10  ;;  %v1886_v10 = vld [vmem:[%s2206_s21 + $0x1d0] sm:$0xff]  }
  0xc4   : > { %v1921_v55 = vpop.eup %1920  ;;  %1934 = vtanh.f32 %v1023_v51  ;;  %v700_v51 = vadd.f32 %v2522_v33, %v565_v36  ;;  %v1784_v61 = vunpack.c.h.bf16 %v1880_v50  ;;  %v1783_v62 = vunpack.c.l.bf16 %v1880_v50 }
  0xc5   : > { %v1923_v59 = vpop.eup %1922  ;;  %1386 = vst.msk [vmem:[%s2530_s11 + $0x58] sm:$0xff] %vm1374_vm0, %v1921_v55  ;;  %1164 = vadd.xlane.f32.xlu1 %v949_v41  ;;  %1162 = vadd.xlane.f32.xlu0 %v948_v45  ;;  %v698_v41 = vadd.f32 %v2522_v33, %v563_v26  ;;  %v956_v45 = vmul.f32 %v2514_v28, %v821_v31  ;;  %v1883_v26 = vld [vmem:[%s2206_s21 + $0x1b8] sm:$0xff]  }
  0xc6   : > { %1385 = vst.msk [vmem:[%s2530_s11 + $0x50] sm:$0xff] %vm1374_vm0, %v1923_v59  ;;  %v1029_v2 = vpop.xlane.xlu1 %1028  ;;  %v1027_v3 = vpop.xlane.xlu0 %1026  ;;  %v959_v55 = vmul.f32 %v2514_v28, %v824_v40  ;;  %v958_v59 = vmul.f32 %v2514_v28, %v823_v46  ;;  %v572_v36 = vmul.f32 %v2505_v18, %v1791_v21  ;;  %v1796_v37 = vunpack.c.h.bf16 %v1883_v26  ;;  %v1887_v21 = vld [vmem:[%s2206_s21 + $0x1d8] sm:$0xff]  }
  0xc7   : > { %1936 = vtanh.f32 %v1029_v2  ;;  %v706_v40 = vadd.f32 %v2522_v33, %v571_v24  ;;  %v705_v46 = vadd.f32 %v2522_v33, %v570_v32  ;;  %v1807_v24 = vunpack.c.l.bf16 %v1886_v10 }
  0xc8   : > { %v1925_v7 = vpop.eup %1924  ;;  %1938 = vtanh.f32 %v1027_v3  ;;  %v828_v3 = vmax.f32 %v700_v51, 0.0  ;;  %v707_v51 = vadd.f32 %v2522_v33, %v572_v36  ;;  %v575_v52 = vmul.f32 %v2505_v18, %v1796_v37 }
  0xc9   : > { %v1927_v13 = vpop.eup %1926  ;;  %1388 = vst.msk [vmem:[%s2530_s11 + $0x68] sm:$0xff] %vm1374_vm0, %v1925_v7  ;;  %1168 = vadd.xlane.f32.xlu1 %v951_v56  ;;  %1166 = vadd.xlane.f32.xlu0 %v950_v60  ;;  %v826_v56 = vmax.f32 %v698_v41, 0.0  ;;  %v825_v60 = vmax.f32 %v697_v47, 0.0  ;;  %v1795_v41 = vunpack.c.l.bf16 %v1883_v26  ;;  %v1884_v47 = vld [vmem:[%s2206_s21 + $0x1c0] sm:$0xff]   ;;  %v1811_v36 = vunpack.c.l.bf16 %v1887_v21 }
  0xca   : > { %1387 = vst.msk [vmem:[%s2530_s11 + $0x60] sm:$0xff] %vm1374_vm0, %v1927_v13  ;;  %v1033_v17 = vpop.xlane.xlu1 %1032  ;;  %v1031_v19 = vpop.xlane.xlu0 %1030 }
  0xcb   : > { %1940 = vtanh.f32 %v1033_v17  ;;  %v961_v7 = vmul.f32 %v2514_v28, %v826_v56  ;;  %v960_v13 = vmul.f32 %v2514_v28, %v825_v60  ;;  %v1800_v56 = vunpack.c.h.bf16 %v1884_v47 }
  0xcc   : > { %v1929_v23 = vpop.eup %1928  ;;  %1942 = vtanh.f32 %v1031_v19  ;;  %v830_v19 = vmax.f32 %v702_v5, 0.0  ;;  %v833_v60 = vmax.f32 %v705_v46, 0.0  ;;  %v1888_v46 = vld [vmem:[%s2206_s21 + $0x1e0] sm:$0xff]  }
  0xcd   : > { %v1931_v29 = vpop.eup %1930  ;;  %1390 = vst.msk [vmem:[%s2530_s11 + $0x78] sm:$0xff] %vm1374_vm0, %v1929_v23  ;;  %1172 = vadd.xlane.f32.xlu1 %v953_v0  ;;  %1170 = vadd.xlane.f32.xlu0 %v952_v14  ;;  %v569_v0 = vmul.f32 %v2505_v18, %v1784_v61  ;;  %v568_v14 = vmul.f32 %v2505_v18, %v1783_v62  ;;  %v1799_v61 = vunpack.c.l.bf16 %v1884_v47 }
  0xce   : > { %1389 = vst.msk [vmem:[%s2530_s11 + $0x70] sm:$0xff] %vm1374_vm0, %v1931_v29  ;;  %v1037_v34 = vpop.xlane.xlu1 %1036  ;;  %v1035_v35 = vpop.xlane.xlu0 %1034  ;;  %v963_v23 = vmul.f32 %v2514_v28, %v828_v3  ;;  %v829_v29 = vmax.f32 %v701_v8, 0.0  ;;  %v835_v3 = vmax.f32 %v707_v51, 0.0  ;;  %v577_v8 = vmul.f32 %v2505_v18, %v1800_v56 }
  0xcf   : > { %1944 = vtanh.f32 %v1037_v34  ;;  %v703_v31 = vadd.f32 %v2522_v33, %v568_v14  ;;  %v582_v51 = vmul.f32 %v2505_v18, %v1811_v36 }
  0xd0   : > { %v1933_v39 = vpop.eup %1932  ;;  %1946 = vtanh.f32 %v1035_v35  ;;  %v573_v35 = vmul.f32 %v2505_v18, %v1792_v20  ;;  %v1808_v20 = vunpack.c.h.bf16 %v1886_v10 }
  0xd1   : > { %v1935_v43 = vpop.eup %1934  ;;  %1392 = vst.msk [vmem:[%s2530_s11 + $0x88] sm:$0xff] %vm1374_vm0, %v1933_v39  ;;  %1176 = vadd.xlane.f32.xlu1 %v955_v9  ;;  %1174 = vadd.xlane.f32.xlu0 %v954_v30  ;;  %v962_v9 = vmul.f32 %v2514_v28, %v827_v4  ;;  %v704_v30 = vadd.f32 %v2522_v33, %v569_v0 }
  0xd2   : > { %1391 = vst.msk [vmem:[%s2530_s11 + $0x80] sm:$0xff] %vm1374_vm0, %v1935_v43  ;;  %v1041_v48 = vpop.xlane.xlu1 %1040  ;;  %v1039_v49 = vpop.xlane.xlu0 %1038  ;;  %v965_v39 = vmul.f32 %v2514_v28, %v830_v19  ;;  %v964_v43 = vmul.f32 %v2514_v28, %v829_v29  ;;  %v708_v50 = vadd.f32 %v2522_v33, %v573_v35  ;;  %v710_v4 = vadd.f32 %v2522_v33, %v575_v52 }
  0xd3   : > { %1948 = vtanh.f32 %v1041_v48  ;;  %v581_v35 = vmul.f32 %v2505_v18, %v1808_v20 }
  0xd4   : > { %v1937_v54 = vpop.eup %1936  ;;  %1950 = vtanh.f32 %v1039_v49  ;;  %v838_v19 = vmax.f32 %v710_v4, 0.0 }
  0xd5   : > { %v1939_v58 = vpop.eup %1938  ;;  %1394 = vst.msk [vmem:[%s2530_s11 + $0x98] sm:$0xff] %vm1374_vm0, %v1937_v54  ;;  %1180 = vadd.xlane.f32.xlu1 %v957_v44  ;;  %1178 = vadd.xlane.f32.xlu0 %v956_v45  ;;  %v832_v44 = vmax.f32 %v704_v30, 0.0  ;;  %v831_v45 = vmax.f32 %v703_v31, 0.0  ;;  %v834_v54 = vmax.f32 %v706_v40, 0.0  ;;  %v580_v40 = vmul.f32 %v2505_v18, %v1807_v24 }
  0xd6   : > { %1393 = vst.msk [vmem:[%s2530_s11 + $0x90] sm:$0xff] %vm1374_vm0, %v1939_v58  ;;  %v1045_v1 = vpop.xlane.xlu1 %1044  ;;  %v1043_v2 = vpop.xlane.xlu0 %1042 }
  0xd7   : > { %1952 = vtanh.f32 %v1045_v1  ;;  %v967_v58 = vmul.f32 %v2514_v28, %v832_v44  ;;  %v1885_v1 = vld [vmem:[%s2206_s21 + $0x1c8] sm:$0xff]  }
  0xd8   : > { %v1941_v6 = vpop.eup %1940  ;;  %1954 = vtanh.f32 %v1043_v2  ;;  %v836_v2 = vmax.f32 %v708_v50, 0.0  ;;  %v1804_v0 = vunpack.c.h.bf16 %v1885_v1  ;;  %v1803_v14 = vunpack.c.l.bf16 %v1885_v1 }
  0xd9   : > { %v1943_v12 = vpop.eup %1942  ;;  %1396 = vst.msk [vmem:[%s2530_s11 + $0xa8] sm:$0xff] %vm1374_vm0, %v1941_v6  ;;  %1184 = vadd.xlane.f32.xlu1 %v959_v55  ;;  %1182 = vadd.xlane.f32.xlu0 %v958_v59  ;;  %v574_v55 = vmul.f32 %v2505_v18, %v1795_v41  ;;  %v966_v59 = vmul.f32 %v2514_v28, %v831_v45 }
  0xda   : > { %1395 = vst.msk [vmem:[%s2530_s11 + $0xa0] sm:$0xff] %vm1374_vm0, %v1943_v12  ;;  %v1049_v16 = vpop.xlane.xlu1 %1048  ;;  %v1047_v17 = vpop.xlane.xlu0 %1046  ;;  %v969_v6 = vmul.f32 %v2514_v28, %v834_v54  ;;  %v968_v12 = vmul.f32 %v2514_v28, %v833_v60  ;;  %v579_v30 = vmul.f32 %v2505_v18, %v1804_v0  ;;  %v578_v31 = vmul.f32 %v2505_v18, %v1803_v14 }
  0xdb   : > { %1956 = vtanh.f32 %v1049_v16  ;;  %v716_v50 = vadd.f32 %v2522_v33, %v581_v35  ;;  %v715_v54 = vadd.f32 %v2522_v33, %v580_v40  ;;  %v1815_v60 = vunpack.c.l.bf16 %v1888_v46 }
  0xdc   : > { %v1945_v22 = vpop.eup %1944  ;;  %1958 = vtanh.f32 %v1047_v17  ;;  %v971_v17 = vmul.f32 %v2514_v28, %v836_v2  ;;  %v714_v44 = vadd.f32 %v2522_v33, %v579_v30  ;;  %v713_v45 = vadd.f32 %v2522_v33, %v578_v31 }
  0xdd   : > { %v1947_v27 = vpop.eup %1946  ;;  %1398 = vst.msk [vmem:[%s2530_s11 + $0xb8] sm:$0xff] %vm1374_vm0, %v1945_v22  ;;  %1188 = vadd.xlane.f32.xlu1 %v961_v7  ;;  %1186 = vadd.xlane.f32.xlu0 %v960_v13  ;;  %v709_v7 = vadd.f32 %v2522_v33, %v574_v55  ;;  %v576_v13 = vmul.f32 %v2505_v18, %v1799_v61  ;;  %v1816_v55 = vunpack.c.h.bf16 %v1888_v46  ;;  %v1889_v61 = vld [vmem:[%s2206_s21 + $0x1e8] sm:$0xff]   ;;  %v844_v2 = vmax.f32 %v716_v50, 0.0 }
  0xde   : > { %1397 = vst.msk [vmem:[%s2530_s11 + $0xb0] sm:$0xff] %vm1374_vm0, %v1947_v27  ;;  %v1053_v25 = vpop.xlane.xlu1 %1052  ;;  %v1051_v34 = vpop.xlane.xlu0 %1050  ;;  %v1819_v0 = vunpack.c.l.bf16 %v1889_v61 }
  0xdf   : > { %1960 = vtanh.f32 %v1053_v25  ;;  %v837_v27 = vmax.f32 %v709_v7, 0.0  ;;  %v711_v29 = vadd.f32 %v2522_v33, %v576_v13  ;;  %v1820_v7 = vunpack.c.h.bf16 %v1889_v61 }
  0xe0   : > { %v1949_v38 = vpop.eup %1948  ;;  %1962 = vtanh.f32 %v1051_v34  ;;  %v1812_v34 = vunpack.c.h.bf16 %v1887_v21  ;;  %v584_v13 = vmul.f32 %v2505_v18, %v1815_v60 }
  0xe1   : > { %v1951_v42 = vpop.eup %1950  ;;  %1400 = vst.msk [vmem:[%s2530_s11 + $0xc8] sm:$0xff] %vm1374_vm0, %v1949_v38  ;;  %1192 = vadd.xlane.f32.xlu1 %v963_v23  ;;  %1190 = vadd.xlane.f32.xlu0 %v962_v9  ;;  %v970_v23 = vmul.f32 %v2514_v28, %v835_v3  ;;  %v712_v9 = vadd.f32 %v2522_v33, %v577_v8  ;;  %v1890_v8 = vld [vmem:[%s2206_s21 + $0x1f0] sm:$0xff]  }
  0xe2   : > { %1399 = vst.msk [vmem:[%s2530_s11 + $0xc0] sm:$0xff] %vm1374_vm0, %v1951_v42  ;;  %v1057_v48 = vpop.xlane.xlu1 %1056  ;;  %v1055_v49 = vpop.xlane.xlu0 %1054  ;;  %v973_v38 = vmul.f32 %v2514_v28, %v838_v19  ;;  %v972_v42 = vmul.f32 %v2514_v28, %v837_v27  ;;  %v717_v3 = vadd.f32 %v2522_v33, %v582_v51  ;;  %v1824_v20 = vunpack.c.h.bf16 %v1890_v8 }
  0xe3   : > { %1964 = vtanh.f32 %v1057_v48  ;;  %v719_v27 = vadd.f32 %v2522_v33, %v584_v13 }
  0xe4   : > { %v1953_v53 = vpop.eup %1952  ;;  %1966 = vtanh.f32 %v1055_v49  ;;  %v583_v49 = vmul.f32 %v2505_v18, %v1812_v34  ;;  %v845_v19 = vmax.f32 %v717_v3, 0.0  ;;  %v589_v35 = vmul.f32 %v2505_v18, %v1824_v20 }
  0xe5   : > { %v1955_v57 = vpop.eup %1954  ;;  %1402 = vst.msk [vmem:[%s2530_s11 + $0xd8] sm:$0xff] %vm1374_vm0, %v1953_v53  ;;  %1196 = vadd.xlane.f32.xlu1 %v965_v39  ;;  %1194 = vadd.xlane.f32.xlu0 %v964_v43  ;;  %v840_v39 = vmax.f32 %v712_v9, 0.0  ;;  %v839_v43 = vmax.f32 %v711_v29, 0.0  ;;  %v1823_v9 = vunpack.c.l.bf16 %v1890_v8  ;;  %v586_v29 = vmul.f32 %v2505_v18, %v1819_v0 }
  0xe6   : > { %1401 = vst.msk [vmem:[%s2530_s11 + $0xd0] sm:$0xff] %vm1374_vm0, %v1955_v57  ;;  %v1061_v62 = vpop.xlane.xlu1 %1060  ;;  %v1059_v63 = vpop.xlane.xlu0 %1058  ;;  %v718_v1 = vadd.f32 %v2522_v33, %v583_v49  ;;  %v980_v34 = vmul.f32 %v2514_v28, %v845_v19 }
  0xe7   : > { %1968 = vtanh.f32 %v1061_v62  ;;  %v975_v53 = vmul.f32 %v2514_v28, %v840_v39  ;;  %v974_v57 = vmul.f32 %v2514_v28, %v839_v43  ;;  %v588_v39 = vmul.f32 %v2505_v18, %v1823_v9 }
  0xe8   : > { %v1957_v5 = vpop.eup %1956  ;;  %1970 = vtanh.f32 %v1059_v63 }
  0xe9   : > { %v1959_v11 = vpop.eup %1958  ;;  %1404 = vst.msk [vmem:[%s2530_s11 + $0xe8] sm:$0xff] %vm1374_vm0, %v1957_v5  ;;  %1200 = vadd.xlane.f32.xlu1 %v967_v58  ;;  %1198 = vadd.xlane.f32.xlu0 %v966_v59  ;;  %v842_v58 = vmax.f32 %v714_v44, 0.0  ;;  %v841_v59 = vmax.f32 %v713_v45, 0.0  ;;  %v843_v5 = vmax.f32 %v715_v54, 0.0  ;;  %v723_v51 = vadd.f32 %v2522_v33, %v588_v39 }
  0xea   : > { %1403 = vst.msk [vmem:[%s2530_s11 + $0xe0] sm:$0xff] %vm1374_vm0, %v1959_v11  ;;  %v1065_v15 = vpop.xlane.xlu1 %1064  ;;  %v1063_v16 = vpop.xlane.xlu0 %1062 }
  0xeb   : > { %1972 = vtanh.f32 %v1065_v15  ;;  %v977_v11 = vmul.f32 %v2514_v28, %v842_v58 }
  0xec   : > { %v1961_v22 = vpop.eup %1960  ;;  %1974 = vtanh.f32 %v1063_v16  ;;  %v846_v16 = vmax.f32 %v718_v1, 0.0 }
  0xed   : > { %v1963_v26 = vpop.eup %1962  ;;  %1406 = vst.msk [vmem:[%s2530_s11 + $0xf8] sm:$0xff] %vm1374_vm0, %v1961_v22  ;;  %1204 = vadd.xlane.f32.xlu1 %v969_v6  ;;  %1202 = vadd.xlane.f32.xlu0 %v968_v12  ;;  %v585_v6 = vmul.f32 %v2505_v18, %v1816_v55  ;;  %v976_v12 = vmul.f32 %v2514_v28, %v841_v59 }
  0xee   : > { %1405 = vst.msk [vmem:[%s2530_s11 + $0xf0] sm:$0xff] %vm1374_vm0, %v1963_v26  ;;  %v1069_v32 = vpop.xlane.xlu1 %1068  ;;  %v1067_v25 = vpop.xlane.xlu0 %1066  ;;  %v978_v26 = vmul.f32 %v2514_v28, %v843_v5 }
  0xef   : > { %1976 = vtanh.f32 %v1069_v32  ;;  %v720_v22 = vadd.f32 %v2522_v33, %v585_v6  ;;  %v1891_v32 = vld [vmem:[%s2206_s21 + $0x1f8] sm:$0xff]  }
  0xf0   : > { %v1965_v37 = vpop.eup %1964  ;;  %1978 = vtanh.f32 %v1067_v25  ;;  %v981_v25 = vmul.f32 %v2514_v28, %v846_v16  ;;  %v1828_v43 = vunpack.c.h.bf16 %v1891_v32  ;;  %v1827_v44 = vunpack.c.l.bf16 %v1891_v32 }
  0xf1   : > { %v1967_v41 = vpop.eup %1966  ;;  %1408 = vst.msk [vmem:[%s2530_s11 + $0x108] sm:$0xff] %vm1374_vm0, %v1965_v37  ;;  %1208 = vadd.xlane.f32.xlu1 %v971_v17  ;;  %1206 = vadd.xlane.f32.xlu0 %v970_v23  ;;  %v979_v17 = vmul.f32 %v2514_v28, %v844_v2  ;;  %v587_v23 = vmul.f32 %v2505_v18, %v1820_v7  ;;  %v848_v37 = vmax.f32 %v720_v22, 0.0 }
  0xf2   : > { %1407 = vst.msk [vmem:[%s2530_s11 + $0x100] sm:$0xff] %vm1374_vm0, %v1967_v41  ;;  %v1073_v47 = vpop.xlane.xlu1 %1072  ;;  %v1071_v48 = vpop.xlane.xlu0 %1070  ;;  %v847_v41 = vmax.f32 %v719_v27, 0.0  ;;  %v591_v55 = vmul.f32 %v2505_v18, %v1828_v43 }
  0xf3   : > { %1980 = vtanh.f32 %v1073_v47  ;;  %v724_v47 = vadd.f32 %v2522_v33, %v589_v35  ;;  %v983_v49 = vmul.f32 %v2514_v28, %v848_v37 }
  0xf4   : > { %v1969_v52 = vpop.eup %1968  ;;  %1982 = vtanh.f32 %v1071_v48  ;;  %v726_v1 = vadd.f32 %v2522_v33, %v591_v55 }
  0xf5   : > { %v1971_v56 = vpop.eup %1970  ;;  %1410 = vst.msk [vmem:[%s2530_s11 + $0x118] sm:$0xff] %vm1374_vm0, %v1969_v52  ;;  %1212 = vadd.xlane.f32.xlu1 %v973_v38  ;;  %1210 = vadd.xlane.f32.xlu0 %v972_v42  ;;  %v722_v38 = vadd.f32 %v2522_v33, %v587_v23  ;;  %v721_v42 = vadd.f32 %v2522_v33, %v586_v29  ;;  %v852_v61 = vmax.f32 %v724_v47, 0.0 }
  0xf6   : > { %1409 = vst.msk [vmem:[%s2530_s11 + $0x110] sm:$0xff] %vm1374_vm0, %v1971_v56  ;;  %v1077_v62 = vpop.xlane.xlu1 %1076  ;;  %v1075_v63 = vpop.xlane.xlu0 %1074  ;;  %v590_v56 = vmul.f32 %v2505_v18, %v1827_v44  ;;  %v851_v18 = vmax.f32 %v723_v51, 0.0 }
  0xf7   : > { %1984 = vtanh.f32 %v1077_v62  ;;  %v850_v50 = vmax.f32 %v722_v38, 0.0  ;;  %v849_v54 = vmax.f32 %v721_v42, 0.0  ;;  %v987_v7 = vmul.f32 %v2514_v28, %v852_v61 }
  0xf8   : > { %v1973_v4 = vpop.eup %1972  ;;  %1986 = vtanh.f32 %v1075_v63  ;;  %v725_v2 = vadd.f32 %v2522_v33, %v590_v56  ;;  %v986_v8 = vmul.f32 %v2514_v28, %v851_v18 }
  0xf9   : > { %v1975_v10 = vpop.eup %1974  ;;  %1412 = vst.msk [vmem:[%s2530_s11 + $0x128] sm:$0xff] %vm1374_vm0, %v1973_v4  ;;  %1216 = vadd.xlane.f32.xlu1 %v975_v53  ;;  %1214 = vadd.xlane.f32.xlu0 %v974_v57  ;;  %v982_v53 = vmul.f32 %v2514_v28, %v847_v41  ;;  %v985_v60 = vmul.f32 %v2514_v28, %v850_v50 }
  0xfa   : > { %1411 = vst.msk [vmem:[%s2530_s11 + $0x120] sm:$0xff] %vm1374_vm0, %v1975_v10  ;;  %v1081_v14 = vpop.xlane.xlu1 %1080  ;;  %v1079_v15 = vpop.xlane.xlu0 %1078  ;;  %v984_v63 = vmul.f32 %v2514_v28, %v849_v54  ;;  %v854_v10 = vmax.f32 %v726_v1, 0.0  ;;  %v853_v33 = vmax.f32 %v725_v2, 0.0 }
  0xfb   : > { %1988 = vtanh.f32 %v1081_v14 }
  0xfc   : > { %v1977_v21 = vpop.eup %1976  ;;  %1990 = vtanh.f32 %v1079_v15  ;;  %v989_v14 = vmul.f32 %v2514_v28, %v854_v10  ;;  %v988_v15 = vmul.f32 %v2514_v28, %v853_v33 }
  0xfd   : > { %v1979_v24 = vpop.eup %1978  ;;  %1414 = vst.msk [vmem:[%s2530_s11 + $0x138] sm:$0xff] %vm1374_vm0, %v1977_v21  ;;  %1220 = vadd.xlane.f32.xlu1 %v977_v11  ;;  %1218 = vadd.xlane.f32.xlu0 %v976_v12 }
  0xfe   : > { %1413 = vst.msk [vmem:[%s2530_s11 + $0x130] sm:$0xff] %vm1374_vm0, %v1979_v24  ;;  %v1085_v30 = vpop.xlane.xlu1 %1084  ;;  %v1083_v31 = vpop.xlane.xlu0 %1082 }
  0xff   : > { %1992 = vtanh.f32 %v1085_v30 }
 0x100   : > { %v1981_v36 = vpop.eup %1980  ;;  %1994 = vtanh.f32 %v1083_v31 }
 0x101   : > { %v1983_v40 = vpop.eup %1982  ;;  %1416 = vst.msk [vmem:[%s2530_s11 + $0x148] sm:$0xff] %vm1374_vm0, %v1981_v36  ;;  %1224 = vadd.xlane.f32.xlu1 %v979_v17  ;;  %1222 = vadd.xlane.f32.xlu0 %v978_v26 }
 0x102   : > { %1415 = vst.msk [vmem:[%s2530_s11 + $0x140] sm:$0xff] %vm1374_vm0, %v1983_v40  ;;  %v1089_v45 = vpop.xlane.xlu1 %1088  ;;  %v1087_v46 = vpop.xlane.xlu0 %1086 }
 0x103   : > { %1996 = vtanh.f32 %v1089_v45 }
 0x104   : > { %v1985_v48 = vpop.eup %1984  ;;  %1998 = vtanh.f32 %v1087_v46 }
 0x105   : > { %v1987_v52 = vpop.eup %1986  ;;  %1418 = vst.msk [vmem:[%s2530_s11 + $0x158] sm:$0xff] %vm1374_vm0, %v1985_v48  ;;  %1228 = vadd.xlane.f32.xlu1 %v981_v25  ;;  %1226 = vadd.xlane.f32.xlu0 %v980_v34 }
 0x106   : > { %1417 = vst.msk [vmem:[%s2530_s11 + $0x150] sm:$0xff] %vm1374_vm0, %v1987_v52  ;;  %v1093_v57 = vpop.xlane.xlu1 %1092  ;;  %v1091_v58 = vpop.xlane.xlu0 %1090 }
 0x107   : > { %2000 = vtanh.f32 %v1093_v57 }
 0x108   : > { %v1989_v59 = vpop.eup %1988  ;;  %2002 = vtanh.f32 %v1091_v58 }
 0x109   : > { %v1991_v62 = vpop.eup %1990  ;;  %1420 = vst.msk [vmem:[%s2530_s11 + $0x168] sm:$0xff] %vm1374_vm0, %v1989_v59  ;;  %1232 = vadd.xlane.f32.xlu1 %v983_v49  ;;  %1230 = vadd.xlane.f32.xlu0 %v982_v53 }
 0x10a   : > { %1419 = vst.msk [vmem:[%s2530_s11 + $0x160] sm:$0xff] %vm1374_vm0, %v1991_v62  ;;  %v1097_v3 = vpop.xlane.xlu1 %1096  ;;  %v1095_v4 = vpop.xlane.xlu0 %1094 }
 0x10b   : > { %2004 = vtanh.f32 %v1097_v3 }
 0x10c   : > { %v1993_v5 = vpop.eup %1992  ;;  %2006 = vtanh.f32 %v1095_v4 }
 0x10d   : > { %v1995_v6 = vpop.eup %1994  ;;  %1422 = vst.msk [vmem:[%s2530_s11 + $0x178] sm:$0xff] %vm1374_vm0, %v1993_v5  ;;  %1236 = vadd.xlane.f32.xlu1 %v985_v60  ;;  %1234 = vadd.xlane.f32.xlu0 %v984_v63 }
 0x10e   : > { %1421 = vst.msk [vmem:[%s2530_s11 + $0x170] sm:$0xff] %vm1374_vm0, %v1995_v6  ;;  %v1101_v11 = vpop.xlane.xlu1 %1100  ;;  %v1099_v12 = vpop.xlane.xlu0 %1098 }
 0x10f   : > { %2008 = vtanh.f32 %v1101_v11 }
 0x110   : > { %v1997_v13 = vpop.eup %1996  ;;  %2010 = vtanh.f32 %v1099_v12 }
 0x111   : > { %v1999_v0 = vpop.eup %1998  ;;  %1424 = vst.msk [vmem:[%s2530_s11 + $0x188] sm:$0xff] %vm1374_vm0, %v1997_v13  ;;  %1240 = vadd.xlane.f32.xlu1 %v987_v7  ;;  %1238 = vadd.xlane.f32.xlu0 %v986_v8 }
 0x112   : > { %1423 = vst.msk [vmem:[%s2530_s11 + $0x180] sm:$0xff] %vm1374_vm0, %v1999_v0  ;;  %v1105_v16 = vpop.xlane.xlu1 %1104  ;;  %v1103_v17 = vpop.xlane.xlu0 %1102 }
 0x113   : > { %2012 = vtanh.f32 %v1105_v16 }
 0x114   : > { %v2001_v19 = vpop.eup %2000  ;;  %2014 = vtanh.f32 %v1103_v17 }
 0x115   : > { %v2003_v20 = vpop.eup %2002  ;;  %1426 = vst.msk [vmem:[%s2530_s11 + $0x198] sm:$0xff] %vm1374_vm0, %v2001_v19  ;;  %1244 = vadd.xlane.f32.xlu1 %v989_v14  ;;  %1242 = vadd.xlane.f32.xlu0 %v988_v15 }
 0x116   : > { %1425 = vst.msk [vmem:[%s2530_s11 + $0x190] sm:$0xff] %vm1374_vm0, %v2003_v20  ;;  %v1109_v21 = vpop.xlane.xlu1 %1108  ;;  %v1107_v28 = vpop.xlane.xlu0 %1106 }
 0x117   : > { %2016 = vtanh.f32 %v1109_v21 }
 0x118   : > { %v2005_v22 = vpop.eup %2004  ;;  %2018 = vtanh.f32 %v1107_v28 }
 0x119   : > { %v2007_v23 = vpop.eup %2006  ;;  %1428 = vst.msk [vmem:[%s2530_s11 + $0x1a8] sm:$0xff] %vm1374_vm0, %v2005_v22 }
 0x11a   : > { %1427 = vst.msk [vmem:[%s2530_s11 + $0x1a0] sm:$0xff] %vm1374_vm0, %v2007_v23  ;;  %v1113_v9 = vpop.xlane.xlu1 %1112  ;;  %v1111_v24 = vpop.xlane.xlu0 %1110 }
 0x11b   : > { %2020 = vtanh.f32 %v1113_v9 }
 0x11c   : > { %v2009_v26 = vpop.eup %2008  ;;  %2022 = vtanh.f32 %v1111_v24 }
 0x11d   : > { %v2011_v27 = vpop.eup %2010  ;;  %1430 = vst.msk [vmem:[%s2530_s11 + $0x1b8] sm:$0xff] %vm1374_vm0, %v2009_v26 }
 0x11e   : > { %1429 = vst.msk [vmem:[%s2530_s11 + $0x1b0] sm:$0xff] %vm1374_vm0, %v2011_v27  ;;  %v1117_v29 = vpop.xlane.xlu1 %1116  ;;  %v1115_v30 = vpop.xlane.xlu0 %1114 }
 0x11f   : > { %2024 = vtanh.f32 %v1117_v29 }
 0x120   : > { %v2013_v31 = vpop.eup %2012  ;;  %2026 = vtanh.f32 %v1115_v30 }
 0x121   : > { %v2015_v32 = vpop.eup %2014  ;;  %1432 = vst.msk [vmem:[%s2530_s11 + $0x1c8] sm:$0xff] %vm1374_vm0, %v2013_v31 }
 0x122   : > { %1431 = vst.msk [vmem:[%s2530_s11 + $0x1c0] sm:$0xff] %vm1374_vm0, %v2015_v32  ;;  %v1121_v25 = vpop.xlane.xlu1 %1120  ;;  %v1119_v34 = vpop.xlane.xlu0 %1118 }
 0x123   : > { %2028 = vtanh.f32 %v1121_v25 }
 0x124   : > { %v2017_v35 = vpop.eup %2016  ;;  %2030 = vtanh.f32 %v1119_v34 }
 0x125   : > { %v2019_v36 = vpop.eup %2018  ;;  %1434 = vst.msk [vmem:[%s2530_s11 + $0x1d8] sm:$0xff] %vm1374_vm0, %v2017_v35 }
 0x126   : > { %1433 = vst.msk [vmem:[%s2530_s11 + $0x1d0] sm:$0xff] %vm1374_vm0, %v2019_v36  ;;  %v1125_v37 = vpop.xlane.xlu1 %1124  ;;  %v1123_v38 = vpop.xlane.xlu0 %1122 }
 0x127   : > { %2032 = vtanh.f32 %v1125_v37 }
 0x128   : > { %v2021_v39 = vpop.eup %2020  ;;  %2034 = vtanh.f32 %v1123_v38 }
 0x129   : > { %v2023_v40 = vpop.eup %2022  ;;  %1436 = vst.msk [vmem:[%s2530_s11 + $0x1e8] sm:$0xff] %vm1374_vm0, %v2021_v39 }
 0x12a   : > { %1435 = vst.msk [vmem:[%s2530_s11 + $0x1e0] sm:$0xff] %vm1374_vm0, %v2023_v40  ;;  %v1129_v41 = vpop.xlane.xlu1 %1128  ;;  %v1127_v42 = vpop.xlane.xlu0 %1126 }
 0x12b   : > { %2036 = vtanh.f32 %v1129_v41 }
 0x12c   : > { %v2025_v43 = vpop.eup %2024  ;;  %2038 = vtanh.f32 %v1127_v42 }
 0x12d   : > { %v2027_v44 = vpop.eup %2026  ;;  %1438 = vst.msk [vmem:[%s2530_s11 + $0x1f8] sm:$0xff] %vm1374_vm0, %v2025_v43 }
 0x12e   : > { %1437 = vst.msk [vmem:[%s2530_s11 + $0x1f0] sm:$0xff] %vm1374_vm0, %v2027_v44  ;;  %v1133_v45 = vpop.xlane.xlu1 %1132  ;;  %v1131_v46 = vpop.xlane.xlu0 %1130 }
 0x12f   : > { %2040 = vtanh.f32 %v1133_v45 }
 0x130   : > { %v2029_v47 = vpop.eup %2028  ;;  %2042 = vtanh.f32 %v1131_v46 }
 0x131   : > { %v2031_v48 = vpop.eup %2030  ;;  %1440 = vst.msk [vmem:[%s2530_s11 + $0x208] sm:$0xff] %vm1374_vm0, %v2029_v47 }
 0x132   : > { %1439 = vst.msk [vmem:[%s2530_s11 + $0x200] sm:$0xff] %vm1374_vm0, %v2031_v48  ;;  %v1137_v49 = vpop.xlane.xlu1 %1136  ;;  %v1135_v50 = vpop.xlane.xlu0 %1134 }
 0x133   : > { %2044 = vtanh.f32 %v1137_v49 }
 0x134   : > { %v2033_v51 = vpop.eup %2032  ;;  %2046 = vtanh.f32 %v1135_v50 }
 0x135   : > { %v2035_v52 = vpop.eup %2034  ;;  %1442 = vst.msk [vmem:[%s2530_s11 + $0x218] sm:$0xff] %vm1374_vm0, %v2033_v51 }
 0x136   : > { %1441 = vst.msk [vmem:[%s2530_s11 + $0x210] sm:$0xff] %vm1374_vm0, %v2035_v52  ;;  %v1141_v53 = vpop.xlane.xlu1 %1140  ;;  %v1139_v54 = vpop.xlane.xlu0 %1138 }
 0x137   : > { %2048 = vtanh.f32 %v1141_v53 }
 0x138   : > { %v2037_v55 = vpop.eup %2036  ;;  %2050 = vtanh.f32 %v1139_v54 }
 0x139   : > { %v2039_v56 = vpop.eup %2038  ;;  %1444 = vst.msk [vmem:[%s2530_s11 + $0x228] sm:$0xff] %vm1374_vm0, %v2037_v55 }
 0x13a   : > { %1443 = vst.msk [vmem:[%s2530_s11 + $0x220] sm:$0xff] %vm1374_vm0, %v2039_v56  ;;  %v1145_v57 = vpop.xlane.xlu1 %1144  ;;  %v1143_v58 = vpop.xlane.xlu0 %1142 }
 0x13b   : > { %2052 = vtanh.f32 %v1145_v57 }
 0x13c   : > { %v2041_v59 = vpop.eup %2040  ;;  %2054 = vtanh.f32 %v1143_v58 }
 0x13d   : > { %v2043_v60 = vpop.eup %2042  ;;  %1446 = vst.msk [vmem:[%s2530_s11 + $0x238] sm:$0xff] %vm1374_vm0, %v2041_v59 }
 0x13e   : > { %1445 = vst.msk [vmem:[%s2530_s11 + $0x230] sm:$0xff] %vm1374_vm0, %v2043_v60  ;;  %v1149_v61 = vpop.xlane.xlu1 %1148  ;;  %v1147_v62 = vpop.xlane.xlu0 %1146 }
 0x13f   : > { %2056 = vtanh.f32 %v1149_v61 }
 0x140   : > { %v2045_v63 = vpop.eup %2044  ;;  %2058 = vtanh.f32 %v1147_v62 }
 0x141   : > { %v2047_v18 = vpop.eup %2046  ;;  %1448 = vst.msk [vmem:[%s2530_s11 + $0x248] sm:$0xff] %vm1374_vm0, %v2045_v63 }
 0x142   : > { %1447 = vst.msk [vmem:[%s2530_s11 + $0x240] sm:$0xff] %vm1374_vm0, %v2047_v18  ;;  %v1153_v1 = vpop.xlane.xlu1 %1152  ;;  %v1151_v2 = vpop.xlane.xlu0 %1150 }
 0x143   : > { %2060 = vtanh.f32 %v1153_v1 }
 0x144   : > { %v2049_v3 = vpop.eup %2048  ;;  %2062 = vtanh.f32 %v1151_v2 }
 0x145   : > { %v2051_v4 = vpop.eup %2050  ;;  %1450 = vst.msk [vmem:[%s2530_s11 + $0x258] sm:$0xff] %vm1374_vm0, %v2049_v3 }
 0x146   : > { %1449 = vst.msk [vmem:[%s2530_s11 + $0x250] sm:$0xff] %vm1374_vm0, %v2051_v4  ;;  %v1157_v5 = vpop.xlane.xlu1 %1156  ;;  %v1155_v6 = vpop.xlane.xlu0 %1154 }
 0x147   : > { %2064 = vtanh.f32 %v1157_v5 }
 0x148   : > { %v2053_v7 = vpop.eup %2052  ;;  %2066 = vtanh.f32 %v1155_v6 }
 0x149   : > { %v2055_v8 = vpop.eup %2054  ;;  %1452 = vst.msk [vmem:[%s2530_s11 + $0x268] sm:$0xff] %vm1374_vm0, %v2053_v7 }
 0x14a   : > { %1451 = vst.msk [vmem:[%s2530_s11 + $0x260] sm:$0xff] %vm1374_vm0, %v2055_v8  ;;  %v1161_v10 = vpop.xlane.xlu1 %1160  ;;  %v1159_v33 = vpop.xlane.xlu0 %1158 }
 0x14b   : > { %2068 = vtanh.f32 %v1161_v10 }
 0x14c   : > { %v2057_v11 = vpop.eup %2056  ;;  %2070 = vtanh.f32 %v1159_v33 }
 0x14d   : > { %v2059_v12 = vpop.eup %2058  ;;  %1454 = vst.msk [vmem:[%s2530_s11 + $0x278] sm:$0xff] %vm1374_vm0, %v2057_v11 }
 0x14e   : > { %1453 = vst.msk [vmem:[%s2530_s11 + $0x270] sm:$0xff] %vm1374_vm0, %v2059_v12  ;;  %v1165_v13 = vpop.xlane.xlu1 %1164  ;;  %v1163_v0 = vpop.xlane.xlu0 %1162 }
 0x14f   : > { %2072 = vtanh.f32 %v1165_v13 }
 0x150   : > { %v2061_v14 = vpop.eup %2060  ;;  %2074 = vtanh.f32 %v1163_v0 }
 0x151   : > { %v2063_v15 = vpop.eup %2062  ;;  %1456 = vst.msk [vmem:[%s2530_s11 + $0x288] sm:$0xff] %vm1374_vm0, %v2061_v14 }
 0x152   : > { %1455 = vst.msk [vmem:[%s2530_s11 + $0x280] sm:$0xff] %vm1374_vm0, %v2063_v15  ;;  %v1169_v16 = vpop.xlane.xlu1 %1168  ;;  %v1167_v17 = vpop.xlane.xlu0 %1166 }
 0x153   : > { %2076 = vtanh.f32 %v1169_v16 }
 0x154   : > { %v2065_v19 = vpop.eup %2064  ;;  %2078 = vtanh.f32 %v1167_v17 }
 0x155   : > { %v2067_v20 = vpop.eup %2066  ;;  %1458 = vst.msk [vmem:[%s2530_s11 + $0x298] sm:$0xff] %vm1374_vm0, %v2065_v19 }
 0x156   : > { %1457 = vst.msk [vmem:[%s2530_s11 + $0x290] sm:$0xff] %vm1374_vm0, %v2067_v20  ;;  %v1173_v21 = vpop.xlane.xlu1 %1172  ;;  %v1171_v28 = vpop.xlane.xlu0 %1170 }
 0x157   : > { %2080 = vtanh.f32 %v1173_v21 }
 0x158   : > { %v2069_v22 = vpop.eup %2068  ;;  %2082 = vtanh.f32 %v1171_v28 }
 0x159   : > { %v2071_v23 = vpop.eup %2070  ;;  %1460 = vst.msk [vmem:[%s2530_s11 + $0x2a8] sm:$0xff] %vm1374_vm0, %v2069_v22 }
 0x15a   : > { %1459 = vst.msk [vmem:[%s2530_s11 + $0x2a0] sm:$0xff] %vm1374_vm0, %v2071_v23  ;;  %v1177_v9 = vpop.xlane.xlu1 %1176  ;;  %v1175_v24 = vpop.xlane.xlu0 %1174 }
 0x15b   : > { %2084 = vtanh.f32 %v1177_v9 }
 0x15c   : > { %v2073_v26 = vpop.eup %2072  ;;  %2086 = vtanh.f32 %v1175_v24 }
 0x15d   : > { %v2075_v27 = vpop.eup %2074  ;;  %1462 = vst.msk [vmem:[%s2530_s11 + $0x2b8] sm:$0xff] %vm1374_vm0, %v2073_v26 }
 0x15e   : > { %1461 = vst.msk [vmem:[%s2530_s11 + $0x2b0] sm:$0xff] %vm1374_vm0, %v2075_v27  ;;  %v1181_v29 = vpop.xlane.xlu1 %1180  ;;  %v1179_v30 = vpop.xlane.xlu0 %1178 }
 0x15f   : > { %2088 = vtanh.f32 %v1181_v29 }
 0x160   : > { %v2077_v31 = vpop.eup %2076  ;;  %2090 = vtanh.f32 %v1179_v30 }
 0x161   : > { %v2079_v32 = vpop.eup %2078  ;;  %1464 = vst.msk [vmem:[%s2530_s11 + $0x2c8] sm:$0xff] %vm1374_vm0, %v2077_v31 }
 0x162   : > { %1463 = vst.msk [vmem:[%s2530_s11 + $0x2c0] sm:$0xff] %vm1374_vm0, %v2079_v32  ;;  %v1185_v25 = vpop.xlane.xlu1 %1184  ;;  %v1183_v34 = vpop.xlane.xlu0 %1182 }
 0x163   : > { %2092 = vtanh.f32 %v1185_v25 }
 0x164   : > { %v2081_v35 = vpop.eup %2080  ;;  %2094 = vtanh.f32 %v1183_v34 }
 0x165   : > { %v2083_v36 = vpop.eup %2082  ;;  %1466 = vst.msk [vmem:[%s2530_s11 + $0x2d8] sm:$0xff] %vm1374_vm0, %v2081_v35 }
 0x166   : > { %1465 = vst.msk [vmem:[%s2530_s11 + $0x2d0] sm:$0xff] %vm1374_vm0, %v2083_v36  ;;  %v1189_v37 = vpop.xlane.xlu1 %1188  ;;  %v1187_v38 = vpop.xlane.xlu0 %1186 }
 0x167   : > { %2096 = vtanh.f32 %v1189_v37 }
 0x168   : > { %v2085_v39 = vpop.eup %2084  ;;  %2098 = vtanh.f32 %v1187_v38 }
 0x169   : > { %v2087_v40 = vpop.eup %2086  ;;  %1468 = vst.msk [vmem:[%s2530_s11 + $0x2e8] sm:$0xff] %vm1374_vm0, %v2085_v39 }
 0x16a   : > { %1467 = vst.msk [vmem:[%s2530_s11 + $0x2e0] sm:$0xff] %vm1374_vm0, %v2087_v40  ;;  %v1193_v41 = vpop.xlane.xlu1 %1192  ;;  %v1191_v42 = vpop.xlane.xlu0 %1190 }
 0x16b   : > { %2100 = vtanh.f32 %v1193_v41 }
 0x16c   : > { %v2089_v43 = vpop.eup %2088  ;;  %2102 = vtanh.f32 %v1191_v42 }
 0x16d   : > { %v2091_v44 = vpop.eup %2090  ;;  %1470 = vst.msk [vmem:[%s2530_s11 + $0x2f8] sm:$0xff] %vm1374_vm0, %v2089_v43 }
 0x16e   : > { %1469 = vst.msk [vmem:[%s2530_s11 + $0x2f0] sm:$0xff] %vm1374_vm0, %v2091_v44  ;;  %v1197_v45 = vpop.xlane.xlu1 %1196  ;;  %v1195_v46 = vpop.xlane.xlu0 %1194 }
 0x16f   : > { %2104 = vtanh.f32 %v1197_v45 }
 0x170   : > { %v2093_v47 = vpop.eup %2092  ;;  %2106 = vtanh.f32 %v1195_v46 }
 0x171   : > { %v2095_v48 = vpop.eup %2094  ;;  %1472 = vst.msk [vmem:[%s2530_s11 + $0x308] sm:$0xff] %vm1374_vm0, %v2093_v47 }
 0x172   : > { %1471 = vst.msk [vmem:[%s2530_s11 + $0x300] sm:$0xff] %vm1374_vm0, %v2095_v48  ;;  %v1201_v49 = vpop.xlane.xlu1 %1200  ;;  %v1199_v50 = vpop.xlane.xlu0 %1198 }
 0x173   : > { %2108 = vtanh.f32 %v1201_v49 }
 0x174   : > { %v2097_v51 = vpop.eup %2096  ;;  %2110 = vtanh.f32 %v1199_v50 }
 0x175   : > { %v2099_v52 = vpop.eup %2098  ;;  %1474 = vst.msk [vmem:[%s2530_s11 + $0x318] sm:$0xff] %vm1374_vm0, %v2097_v51 }
 0x176   : > { %1473 = vst.msk [vmem:[%s2530_s11 + $0x310] sm:$0xff] %vm1374_vm0, %v2099_v52  ;;  %v1205_v53 = vpop.xlane.xlu1 %1204  ;;  %v1203_v54 = vpop.xlane.xlu0 %1202 }
 0x177   : > { %2112 = vtanh.f32 %v1205_v53 }
 0x178   : > { %v2101_v55 = vpop.eup %2100  ;;  %2114 = vtanh.f32 %v1203_v54 }
 0x179   : > { %v2103_v56 = vpop.eup %2102  ;;  %1476 = vst.msk [vmem:[%s2530_s11 + $0x328] sm:$0xff] %vm1374_vm0, %v2101_v55 }
 0x17a   : > { %1475 = vst.msk [vmem:[%s2530_s11 + $0x320] sm:$0xff] %vm1374_vm0, %v2103_v56  ;;  %v1209_v57 = vpop.xlane.xlu1 %1208  ;;  %v1207_v58 = vpop.xlane.xlu0 %1206 }
 0x17b   : > { %2116 = vtanh.f32 %v1209_v57 }
 0x17c   : > { %v2105_v59 = vpop.eup %2104  ;;  %2118 = vtanh.f32 %v1207_v58 }
 0x17d   : > { %v2107_v60 = vpop.eup %2106  ;;  %1478 = vst.msk [vmem:[%s2530_s11 + $0x338] sm:$0xff] %vm1374_vm0, %v2105_v59 }
 0x17e   : > { %1477 = vst.msk [vmem:[%s2530_s11 + $0x330] sm:$0xff] %vm1374_vm0, %v2107_v60  ;;  %v1213_v61 = vpop.xlane.xlu1 %1212  ;;  %v1211_v62 = vpop.xlane.xlu0 %1210 }
 0x17f   : > { %2120 = vtanh.f32 %v1213_v61 }
 0x180   : > { %v2109_v63 = vpop.eup %2108  ;;  %2122 = vtanh.f32 %v1211_v62 }
 0x181   : > { %v2111_v18 = vpop.eup %2110  ;;  %1480 = vst.msk [vmem:[%s2530_s11 + $0x348] sm:$0xff] %vm1374_vm0, %v2109_v63 }
 0x182   : > { %1479 = vst.msk [vmem:[%s2530_s11 + $0x340] sm:$0xff] %vm1374_vm0, %v2111_v18  ;;  %v1217_v1 = vpop.xlane.xlu1 %1216  ;;  %v1215_v2 = vpop.xlane.xlu0 %1214 }
 0x183   : > { %2124 = vtanh.f32 %v1217_v1 }
 0x184   : > { %v2113_v3 = vpop.eup %2112  ;;  %2126 = vtanh.f32 %v1215_v2 }
 0x185   : > { %v2115_v4 = vpop.eup %2114  ;;  %1482 = vst.msk [vmem:[%s2530_s11 + $0x358] sm:$0xff] %vm1374_vm0, %v2113_v3 }
 0x186   : > { %1481 = vst.msk [vmem:[%s2530_s11 + $0x350] sm:$0xff] %vm1374_vm0, %v2115_v4  ;;  %v1221_v5 = vpop.xlane.xlu1 %1220  ;;  %v1219_v6 = vpop.xlane.xlu0 %1218 }
 0x187   : > { %2128 = vtanh.f32 %v1221_v5 }
 0x188   : > { %v2117_v7 = vpop.eup %2116  ;;  %2130 = vtanh.f32 %v1219_v6 }
 0x189   : > { %v2119_v8 = vpop.eup %2118  ;;  %1484 = vst.msk [vmem:[%s2530_s11 + $0x368] sm:$0xff] %vm1374_vm0, %v2117_v7 }
 0x18a   : > { %1483 = vst.msk [vmem:[%s2530_s11 + $0x360] sm:$0xff] %vm1374_vm0, %v2119_v8  ;;  %v1225_v10 = vpop.xlane.xlu1 %1224  ;;  %v1223_v33 = vpop.xlane.xlu0 %1222 }
 0x18b   : > { %2132 = vtanh.f32 %v1225_v10 }
 0x18c   : > { %v2121_v11 = vpop.eup %2120  ;;  %2134 = vtanh.f32 %v1223_v33 }
 0x18d   : > { %v2123_v12 = vpop.eup %2122  ;;  %1486 = vst.msk [vmem:[%s2530_s11 + $0x378] sm:$0xff] %vm1374_vm0, %v2121_v11 }
 0x18e   : > { %1485 = vst.msk [vmem:[%s2530_s11 + $0x370] sm:$0xff] %vm1374_vm0, %v2123_v12  ;;  %v1229_v13 = vpop.xlane.xlu1 %1228  ;;  %v1227_v0 = vpop.xlane.xlu0 %1226 }
 0x18f   : > { %2136 = vtanh.f32 %v1229_v13 }
 0x190   : > { %v2125_v14 = vpop.eup %2124  ;;  %2138 = vtanh.f32 %v1227_v0 }
 0x191   : > { %v2127_v15 = vpop.eup %2126  ;;  %1488 = vst.msk [vmem:[%s2530_s11 + $0x388] sm:$0xff] %vm1374_vm0, %v2125_v14 }
 0x192   : > { %1487 = vst.msk [vmem:[%s2530_s11 + $0x380] sm:$0xff] %vm1374_vm0, %v2127_v15  ;;  %v1233_v16 = vpop.xlane.xlu1 %1232  ;;  %v1231_v17 = vpop.xlane.xlu0 %1230 }
 0x193   : > { %2140 = vtanh.f32 %v1233_v16 }
 0x194   : > { %v2129_v19 = vpop.eup %2128  ;;  %2142 = vtanh.f32 %v1231_v17 }
 0x195   : > { %v2131_v20 = vpop.eup %2130  ;;  %1490 = vst.msk [vmem:[%s2530_s11 + $0x398] sm:$0xff] %vm1374_vm0, %v2129_v19 }
 0x196   : > { %1489 = vst.msk [vmem:[%s2530_s11 + $0x390] sm:$0xff] %vm1374_vm0, %v2131_v20  ;;  %v1237_v21 = vpop.xlane.xlu1 %1236  ;;  %v1235_v28 = vpop.xlane.xlu0 %1234 }
 0x197   : > { %2144 = vtanh.f32 %v1237_v21 }
 0x198   : > { %v2133_v22 = vpop.eup %2132  ;;  %2146 = vtanh.f32 %v1235_v28 }
 0x199   : > { %v2135_v23 = vpop.eup %2134  ;;  %1492 = vst.msk [vmem:[%s2530_s11 + $0x3a8] sm:$0xff] %vm1374_vm0, %v2133_v22 }
 0x19a   : > { %1491 = vst.msk [vmem:[%s2530_s11 + $0x3a0] sm:$0xff] %vm1374_vm0, %v2135_v23  ;;  %v1241_v9 = vpop.xlane.xlu1 %1240  ;;  %v1239_v24 = vpop.xlane.xlu0 %1238 }
 0x19b   : > { %2148 = vtanh.f32 %v1241_v9 }
 0x19c   : > { %v2137_v26 = vpop.eup %2136  ;;  %2150 = vtanh.f32 %v1239_v24 }
 0x19d   : > { %v2139_v27 = vpop.eup %2138  ;;  %1494 = vst.msk [vmem:[%s2530_s11 + $0x3b8] sm:$0xff] %vm1374_vm0, %v2137_v26 }
 0x19e   : > { %1493 = vst.msk [vmem:[%s2530_s11 + $0x3b0] sm:$0xff] %vm1374_vm0, %v2139_v27  ;;  %v1245_v29 = vpop.xlane.xlu1 %1244  ;;  %v1243_v30 = vpop.xlane.xlu0 %1242 }
 0x19f   : > { %2152 = vtanh.f32 %v1245_v29 }
 0x1a0   : > { %v2141_v31 = vpop.eup %2140  ;;  %2154 = vtanh.f32 %v1243_v30 }
 0x1a1   : > { %v2143_v32 = vpop.eup %2142  ;;  %1496 = vst.msk [vmem:[%s2530_s11 + $0x3c8] sm:$0xff] %vm1374_vm0, %v2141_v31 }
 0x1a2   : > { %1495 = vst.msk [vmem:[%s2530_s11 + $0x3c0] sm:$0xff] %vm1374_vm0, %v2143_v32 }
 0x1a4   : > { %v2145_v25 = vpop.eup %2144 }
 0x1a5   : > { %v2147_v34 = vpop.eup %2146  ;;  %1498 = vst.msk [vmem:[%s2530_s11 + $0x3d8] sm:$0xff] %vm1374_vm0, %v2145_v25 }
 0x1a6   : > { %1497 = vst.msk [vmem:[%s2530_s11 + $0x3d0] sm:$0xff] %vm1374_vm0, %v2147_v34 }
 0x1a8   : > { %v2149_v35 = vpop.eup %2148 }
 0x1a9   : > { %v2151_v36 = vpop.eup %2150  ;;  %1500 = vst.msk [vmem:[%s2530_s11 + $0x3e8] sm:$0xff] %vm1374_vm0, %v2149_v35 }
 0x1aa   : > { %1499 = vst.msk [vmem:[%s2530_s11 + $0x3e0] sm:$0xff] %vm1374_vm0, %v2151_v36 }
 0x1ac   : > { %v2153_v37 = vpop.eup %2152 }
 0x1ad   : > { %v2155_v38 = vpop.eup %2154  ;;  %1502 = vst.msk [vmem:[%s2530_s11 + $0x3f8] sm:$0xff] %vm1374_vm0, %v2153_v37 }
 0x1ae   : > { %1501 = vst.msk [vmem:[%s2530_s11 + $0x3f0] sm:$0xff] %vm1374_vm0, %v2155_v38 }
 0x1af PF: > { %s14_s15 = sadd.s32 1, %s2165_s15  }
 0x1b0   : > { %p11_p4 = scmp.ge.s32.totalorder %s14_s15, 4  }
 0x1b2   :  { %13 = sbr.rel (!%p11_p4) target bundleno = 1 (0x1), region = 66 }

// kernel: generator_forward.14
= control target key start
LH: loop header
LB: loop body
LE: loop exit
PB: predicated region body
PF: predicated region fallthrough
CT: control target
= control target key end

     0   :  { %s3307_s15 = smov 0   ;;  %s3309_s16 = smov 0   ;;  %s3740_s0 = inlined_call_operand.vmem [shape: bf16[4,512,512], index: 0, kind: input, shape index: {}]   ;;  %s3741_s1 = inlined_call_operand.vmem [shape: bf16[4,512,128], index: 1, kind: input, shape index: {}]   ;;  %s3742_s2 = inlined_call_operand.vmem [shape: bf16[4,512,128], index: 2, kind: output, shape index: {0}]   ;;  %s3743_s3 = inlined_call_operand.vmem [shape: f32[1,128], index: 3, kind: output, shape index: {1}]   ;;  %s3744_s4 = inlined_call_operand.vmem [shape: f32[1,128], index: 4, kind: output, shape index: {2}]  }
   0x1   :  { %s3311_s17 = smov 0  }
   0x2 LB: > { %s27_s18 = sadd.s32 1, %s3275_s16  ;;  %p2515_p0 = scmp.ge.s32.totalorder %s3279_s17, 1  ;;  %s3279_s17 = sphi %s3311_s17, %s15_s17   ;;  %s3275_s16 = sphi %s3309_s16, %s3746_s16   ;;  %s3271_s15 = sphi %s3307_s15, %s3745_s15  }
   0x3   : > { %p29_p1 = scmp.ge.s32.totalorder %s27_s18, 4  ;;  %p189_p2 = scmp.lt.s32.totalorder %s3279_s17, 5 }
   0x5   : > { %s3748_s18 = smov (%p29_p1, %s27_s18), 0  ;;  %p190_p3 = pnand %p2515_p0, %p189_p2 }
   0x6   : > { %p230_p4 = scmp.lt.s32.totalorder (!%p190_p3), %s3271_s15, 3  ;;  %p2380_p5 = scmp.eq.s32.totalorder (!%p190_p3), %s3271_s15, 0 }
   0x7   : > { %193 = sbr.rel (%p190_p3) target bundleno = 556 (0x22c), region = 28 }
   0xc   : > { %v3281_v0 = vmov 0   ;;  %s3331_s19 = scalar_select %p230_p4, %s3271_s15, 3 }
   0xd   : > { %1280 = vmatprep.subr.bf16.mxu0 %v3281_v0  ;;  %1569 = vmatprep.subr.bf16.mxu1 %v3281_v0 }
   0xe   : > { %s2750_s20 = sshll.u32 %s3331_s19, 8  ;;  %s2749_s24 = sshll.u32 %s3331_s19, 10 }
   0xf   : > { %s3339_s23 = scalar_lea.vmem %s3741_s1, %s2750_s20  ;;  %s3375_s27 = scalar_lea.vmem %s3740_s0, %s2749_s24 }
  0x10   : > { %v3033_v1 = vld [vmem:[%s3339_s23 + $0x38] sm:$0xff]   ;;  %v3035_v3 = vld [vmem:[%s3339_s23 + $0x30] sm:$0xff]   ;;  %v3037_v5 = vld [vmem:[%s3339_s23 + $0x28] sm:$0xff]   ;;  %s3520_s30 = scalar_lea.vmem %s3742_s2, %s2750_s20 }
  0x11   : > { %v3034_v2 = vld [vmem:[%s3339_s23 + $0xb8] sm:$0xff]   ;;  %1281 = vmatpush1.bf16.msra.mxu0 %v3033_v1  ;;  %v3036_v4 = vld [vmem:[%s3339_s23 + $0xb0] sm:$0xff]   ;;  %v3038_v6 = vld [vmem:[%s3339_s23 + $0xa8] sm:$0xff]  }
  0x12   : > { %1570 = vmatpush1.bf16.msra.mxu1 %v3034_v2  ;;  %1282 = vmatprep.subr.bf16.mxu0 %v3281_v0  ;;  %v3039_v7 = vld [vmem:[%s3339_s23 + $0x20] sm:$0xff]   ;;  %v3041_v9 = vld [vmem:[%s3339_s23 + $0x18] sm:$0xff]   ;;  %v3043_v11 = vld [vmem:[%s3339_s23 + $0x10] sm:$0xff]  }
  0x13   : > { %1571 = vmatprep.subr.bf16.mxu1 %v3281_v0  ;;  %v3040_v8 = vld [vmem:[%s3339_s23 + $0xa0] sm:$0xff]   ;;  %v3042_v10 = vld [vmem:[%s3339_s23 + $0x98] sm:$0xff]   ;;  %v3044_v12 = vld [vmem:[%s3339_s23 + $0x90] sm:$0xff]  }
  0x14   : > { %v3045_v13 = vld [vmem:[%s3339_s23 + $0x8] sm:$0xff]   ;;  %v3047_v15 = vld [vmem:[%s3339_s23] sm:$0xff]   ;;  %v3049_v17 = vld [vmem:[%s3339_s23 + $0x78] sm:$0xff]  }
  0x15   : > { %1283 = vmatpush1.bf16.msra.mxu0 %v3035_v3  ;;  %v3046_v14 = vld [vmem:[%s3339_s23 + $0x88] sm:$0xff]   ;;  %v3048_v16 = vld [vmem:[%s3339_s23 + $0x80] sm:$0xff]   ;;  %v3050_v18 = vld [vmem:[%s3339_s23 + $0xf8] sm:$0xff]  }
  0x16   : > { %1572 = vmatpush1.bf16.msra.mxu1 %v3036_v4  ;;  %1284 = vmatprep.subr.bf16.mxu0 %v3281_v0  ;;  %v3067_v19 = vld [vmem:[%s3375_s27 + $0x4] ss:$16 sps:$4 sm:$0xff]   ;;  %v3070_v21 = vld [vmem:[%s3375_s27 + $0xc] ss:$16 sps:$4 sm:$0xff]   ;;  %v3065_v35 = vld [vmem:[%s3375_s27] ss:$16 sps:$4 sm:$0xff]  }
  0x17   : > { %1573 = vmatprep.subr.bf16.mxu1 %v3281_v0  ;;  %v3051_v20 = vld [vmem:[%s3339_s23 + $0x70] sm:$0xff]   ;;  %1312 = vmatprep.mubr.bf16.mxu0 %v3067_v19  ;;  %v3053_v23 = vld [vmem:[%s3339_s23 + $0x68] sm:$0xff]   ;;  %v3055_v25 = vld [vmem:[%s3339_s23 + $0x60] sm:$0xff]  }
  0x18   : > { %v3052_v22 = vld [vmem:[%s3339_s23 + $0xf0] sm:$0xff]   ;;  %1601 = vmatprep.mubr.bf16.mxu1 %v3070_v21  ;;  %v3054_v24 = vld [vmem:[%s3339_s23 + $0xe8] sm:$0xff]   ;;  %v3056_v26 = vld [vmem:[%s3339_s23 + $0xe0] sm:$0xff]  }
  0x19   : > { %1285 = vmatpush1.bf16.msra.mxu0 %v3037_v5  ;;  %v3057_v27 = vld [vmem:[%s3339_s23 + $0x58] sm:$0xff]   ;;  %v3059_v29 = vld [vmem:[%s3339_s23 + $0x50] sm:$0xff]   ;;  %v3061_v31 = vld [vmem:[%s3339_s23 + $0x48] sm:$0xff]  }
  0x1a   : > { %1574 = vmatpush1.bf16.msra.mxu1 %v3038_v6  ;;  %1286 = vmatprep.subr.bf16.mxu0 %v3281_v0  ;;  %v3058_v28 = vld [vmem:[%s3339_s23 + $0xd8] sm:$0xff]   ;;  %v3060_v30 = vld [vmem:[%s3339_s23 + $0xd0] sm:$0xff]   ;;  %v3062_v32 = vld [vmem:[%s3339_s23 + $0xc8] sm:$0xff]  }
  0x1b   : > { %1575 = vmatprep.subr.bf16.mxu1 %v3281_v0  ;;  %v3063_v33 = vld [vmem:[%s3339_s23 + $0x40] sm:$0xff]   ;;  %v3068_v36 = vld [vmem:[%s3375_s27 + $0x8] ss:$16 sps:$4 sm:$0xff]   ;;  %v3073_v38 = vld [vmem:[%s3375_s27 + $0x2c] ss:$16 sps:$4 sm:$0xff]  }
  0x1c   : > { %v3064_v34 = vld [vmem:[%s3339_s23 + $0xc0] sm:$0xff]   ;;  %v3076_v40 = vld [vmem:[%s3375_s27 + $0x28] ss:$16 sps:$4 sm:$0xff]   ;;  %v3079_v42 = vld [vmem:[%s3375_s27 + $0x4c] ss:$16 sps:$4 sm:$0xff]  }
  0x1d   : > { %1287 = vmatpush1.bf16.msra.mxu0 %v3039_v7  ;;  %v3071_v37 = vld [vmem:[%s3375_s27 + $0x24] ss:$16 sps:$4 sm:$0xff]   ;;  %v3075_v39 = vld [vmem:[%s3375_s27 + $0x20] ss:$16 sps:$4 sm:$0xff]   ;;  %v3082_v44 = vld [vmem:[%s3375_s27 + $0x48] ss:$16 sps:$4 sm:$0xff]  }
  0x1e   : > { %1576 = vmatpush1.bf16.msra.mxu1 %v3040_v8  ;;  %1288 = vmatprep.subr.bf16.mxu0 %v3281_v0  ;;  %v3077_v41 = vld [vmem:[%s3375_s27 + $0x44] ss:$16 sps:$4 sm:$0xff]   ;;  %v3081_v43 = vld [vmem:[%s3375_s27 + $0x40] ss:$16 sps:$4 sm:$0xff]   ;;  %v3085_v46 = vld [vmem:[%s3375_s27 + $0x6c] ss:$16 sps:$4 sm:$0xff]  }
  0x1f   : > { %1577 = vmatprep.subr.bf16.mxu1 %v3281_v0  ;;  %v3083_v45 = vld [vmem:[%s3375_s27 + $0x64] ss:$16 sps:$4 sm:$0xff]   ;;  %v3087_v47 = vld [vmem:[%s3375_s27 + $0x60] ss:$16 sps:$4 sm:$0xff]   ;;  %v3088_v48 = vld [vmem:[%s3375_s27 + $0x68] ss:$16 sps:$4 sm:$0xff]  }
  0x20   : > { %v3089_v49 = vld [vmem:[%s3375_s27 + $0x84] ss:$16 sps:$4 sm:$0xff]   ;;  %v3091_v50 = vld [vmem:[%s3375_s27 + $0x8c] ss:$16 sps:$4 sm:$0xff]   ;;  %v3093_v51 = vld [vmem:[%s3375_s27 + $0x80] ss:$16 sps:$4 sm:$0xff]  }
  0x21   : > { %1289 = vmatpush1.bf16.msra.mxu0 %v3041_v9  ;;  %v3094_v52 = vld [vmem:[%s3375_s27 + $0x88] ss:$16 sps:$4 sm:$0xff]   ;;  %v3095_v53 = vld [vmem:[%s3375_s27 + $0xa4] ss:$16 sps:$4 sm:$0xff]   ;;  %v3097_v54 = vld [vmem:[%s3375_s27 + $0xac] ss:$16 sps:$4 sm:$0xff]  }
  0x22   : > { %1578 = vmatpush1.bf16.msra.mxu1 %v3042_v10  ;;  %1290 = vmatprep.subr.bf16.mxu0 %v3281_v0  ;;  %v3099_v55 = vld [vmem:[%s3375_s27 + $0xa0] ss:$16 sps:$4 sm:$0xff]   ;;  %v3100_v56 = vld [vmem:[%s3375_s27 + $0xa8] ss:$16 sps:$4 sm:$0xff]   ;;  %v3101_v57 = vld [vmem:[%s3375_s27 + $0xc4] ss:$16 sps:$4 sm:$0xff]  }
  0x23   : > { %1579 = vmatprep.subr.bf16.mxu1 %v3281_v0  ;;  %v3103_v58 = vld [vmem:[%s3375_s27 + $0xcc] ss:$16 sps:$4 sm:$0xff]   ;;  %v3105_v59 = vld [vmem:[%s3375_s27 + $0xc0] ss:$16 sps:$4 sm:$0xff]   ;;  %v3106_v60 = vld [vmem:[%s3375_s27 + $0xc8] ss:$16 sps:$4 sm:$0xff]  }
  0x24   : > { %v3107_v61 = vld [vmem:[%s3375_s27 + $0xe4] ss:$16 sps:$4 sm:$0xff]   ;;  %v3109_v62 = vld [vmem:[%s3375_s27 + $0xec] ss:$16 sps:$4 sm:$0xff]   ;;  %v3111_v63 = vld [vmem:[%s3375_s27 + $0xe0] ss:$16 sps:$4 sm:$0xff]  }
  0x25   : > { %1291 = vmatpush1.bf16.msra.mxu0 %v3043_v11  ;;  %v3113_v1 = vld [vmem:[%s3375_s27 + $0x104] ss:$16 sps:$4 sm:$0xff]   ;;  %v3115_v2 = vld [vmem:[%s3375_s27 + $0x10c] ss:$16 sps:$4 sm:$0xff]   ;;  %v3117_v3 = vld [vmem:[%s3375_s27 + $0x100] ss:$16 sps:$4 sm:$0xff]  }
  0x26   : > { %1580 = vmatpush1.bf16.msra.mxu1 %v3044_v12  ;;  %1292 = vmatprep.subr.bf16.mxu0 %v3281_v0  ;;  %v3118_v4 = vld [vmem:[%s3375_s27 + $0x108] ss:$16 sps:$4 sm:$0xff]   ;;  %v3119_v5 = vld [vmem:[%s3375_s27 + $0x124] ss:$16 sps:$4 sm:$0xff]   ;;  %v3121_v6 = vld [vmem:[%s3375_s27 + $0x12c] ss:$16 sps:$4 sm:$0xff]  }
  0x27   : > { %1581 = vmatprep.subr.bf16.mxu1 %v3281_v0  ;;  %v3123_v7 = vld [vmem:[%s3375_s27 + $0x120] ss:$16 sps:$4 sm:$0xff]   ;;  %v3124_v8 = vld [vmem:[%s3375_s27 + $0x128] ss:$16 sps:$4 sm:$0xff]   ;;  %v3125_v9 = vld [vmem:[%s3375_s27 + $0x144] ss:$16 sps:$4 sm:$0xff]  }
  0x28   : > { %v3127_v10 = vld [vmem:[%s3375_s27 + $0x14c] ss:$16 sps:$4 sm:$0xff]   ;;  %v3129_v11 = vld [vmem:[%s3375_s27 + $0x140] ss:$16 sps:$4 sm:$0xff]   ;;  %v3130_v12 = vld [vmem:[%s3375_s27 + $0x148] ss:$16 sps:$4 sm:$0xff]  }
  0x29   : > { %1293 = vmatpush1.bf16.msra.mxu0 %v3045_v13  ;;  %v3131_v13 = vld [vmem:[%s3375_s27 + $0x164] ss:$16 sps:$4 sm:$0xff]   ;;  %v3141_v19 = vld [vmem:[%s3375_s27 + $0x180] ss:$16 sps:$4 sm:$0xff]  }
  0x2a   : > { %1582 = vmatpush1.bf16.msra.mxu1 %v3046_v14  ;;  %1294 = vmatprep.subr.bf16.mxu0 %v3281_v0  ;;  %v3133_v14 = vld [vmem:[%s3375_s27 + $0x16c] ss:$16 sps:$4 sm:$0xff]   ;;  %v3143_v21 = vld [vmem:[%s3375_s27 + $0x1a4] ss:$16 sps:$4 sm:$0xff]  }
  0x2b   : > { %1583 = vmatprep.subr.bf16.mxu1 %v3281_v0 }
  0x2d   : > { %1295 = vmatpush1.bf16.msra.mxu0 %v3047_v15  ;;  %v3135_v15 = vld [vmem:[%s3375_s27 + $0x160] ss:$16 sps:$4 sm:$0xff]  }
  0x2e   : > { %1584 = vmatpush1.bf16.msra.mxu1 %v3048_v16  ;;  %1296 = vmatprep.subr.bf16.mxu0 %v3281_v0  ;;  %v3136_v16 = vld [vmem:[%s3375_s27 + $0x168] ss:$16 sps:$4 sm:$0xff]  }
  0x2f   : > { %1585 = vmatprep.subr.bf16.mxu1 %v3281_v0 }
  0x31   : > { %1297 = vmatpush2.bf16.msra.mxu0 %v3049_v17  ;;  %v3137_v17 = vld [vmem:[%s3375_s27 + $0x184] ss:$16 sps:$4 sm:$0xff]  }
  0x32   : > { %1586 = vmatpush2.bf16.msra.mxu1 %v3050_v18  ;;  %1298 = vmatprep.subr.bf16.mxu0 %v3281_v0  ;;  %v3139_v18 = vld [vmem:[%s3375_s27 + $0x18c] ss:$16 sps:$4 sm:$0xff]  }
  0x33   : > { %1587 = vmatprep.subr.bf16.mxu1 %v3281_v0 }
  0x35   : > { %1299 = vmatpush2.bf16.msra.mxu0 %v3051_v20  ;;  %v3142_v20 = vld [vmem:[%s3375_s27 + $0x188] ss:$16 sps:$4 sm:$0xff]  }
  0x36   : > { %1588 = vmatpush2.bf16.msra.mxu1 %v3052_v22  ;;  %1300 = vmatprep.subr.bf16.mxu0 %v3281_v0  ;;  %v3145_v22 = vld [vmem:[%s3375_s27 + $0x1ac] ss:$16 sps:$4 sm:$0xff]  }
  0x37   : > { %1589 = vmatprep.subr.bf16.mxu1 %v3281_v0 }
  0x39   : > { %1301 = vmatpush2.bf16.msra.mxu0 %v3053_v23  ;;  %v3147_v23 = vld [vmem:[%s3375_s27 + $0x1a0] ss:$16 sps:$4 sm:$0xff]  }
  0x3a   : > { %1590 = vmatpush2.bf16.msra.mxu1 %v3054_v24  ;;  %1302 = vmatprep.subr.bf16.mxu0 %v3281_v0  ;;  %v3148_v24 = vld [vmem:[%s3375_s27 + $0x1a8] ss:$16 sps:$4 sm:$0xff]  }
  0x3b   : > { %1591 = vmatprep.subr.bf16.mxu1 %v3281_v0 }
  0x3d   : > { %1303 = vmatpush2.bf16.msra.mxu0 %v3055_v25  ;;  %v3149_v25 = vld [vmem:[%s3375_s27 + $0x1c4] ss:$16 sps:$4 sm:$0xff]  }
  0x3e   : > { %1592 = vmatpush2.bf16.msra.mxu1 %v3056_v26  ;;  %1304 = vmatprep.subr.bf16.mxu0 %v3281_v0  ;;  %v3151_v26 = vld [vmem:[%s3375_s27 + $0x1cc] ss:$16 sps:$4 sm:$0xff]  }
  0x3f   : > { %1593 = vmatprep.subr.bf16.mxu1 %v3281_v0 }
  0x41   : > { %1305 = vmatpush2.bf16.msra.mxu0 %v3057_v27  ;;  %v3153_v27 = vld [vmem:[%s3375_s27 + $0x1c0] ss:$16 sps:$4 sm:$0xff]  }
  0x42   : > { %1594 = vmatpush2.bf16.msra.mxu1 %v3058_v28  ;;  %1306 = vmatprep.subr.bf16.mxu0 %v3281_v0  ;;  %v3154_v28 = vld [vmem:[%s3375_s27 + $0x1c8] ss:$16 sps:$4 sm:$0xff]  }
  0x43   : > { %1595 = vmatprep.subr.bf16.mxu1 %v3281_v0 }
  0x45   : > { %1307 = vmatpush2.bf16.msra.mxu0 %v3059_v29  ;;  %v3155_v29 = vld [vmem:[%s3375_s27 + $0x1e4] ss:$16 sps:$4 sm:$0xff]  }
  0x46   : > { %1596 = vmatpush2.bf16.msra.mxu1 %v3060_v30  ;;  %1308 = vmatprep.subr.bf16.mxu0 %v3281_v0  ;;  %v3157_v30 = vld [vmem:[%s3375_s27 + $0x1ec] ss:$16 sps:$4 sm:$0xff]  }
  0x47   : > { %1597 = vmatprep.subr.bf16.mxu1 %v3281_v0 }
  0x49   : > { %1309 = vmatpush2.bf16.msra.mxu0 %v3061_v31  ;;  %v3159_v31 = vld [vmem:[%s3375_s27 + $0x1e0] ss:$16 sps:$4 sm:$0xff]  }
  0x4a   : > { %1598 = vmatpush2.bf16.msra.mxu1 %v3062_v32  ;;  %1310 = vmatprep.subr.bf16.mxu0 %v3281_v0  ;;  %v3160_v32 = vld [vmem:[%s3375_s27 + $0x1e8] ss:$16 sps:$4 sm:$0xff]  }
  0x4b   : > { %1599 = vmatprep.subr.bf16.mxu1 %v3281_v0  ;;  %v3112_v0 = vld [vmem:[%s3375_s27 + $0xe8] ss:$16 sps:$4 sm:$0xff]  }
  0x4d   : > { %1311 = vmatpush2.bf16.msra.mxu0 %v3063_v33  ;;  %v3161_v33 = vld [vmem:[%s3375_s27 + $0x204] ss:$16 sps:$4 sm:$0xff]  }
  0x4e   : > { %1600 = vmatpush2.bf16.msra.mxu1 %v3064_v34  ;;  %v3163_v34 = vld [vmem:[%s3375_s27 + $0x20c] ss:$16 sps:$4 sm:$0xff]  }
  0x50   : > { %1313 = vmatmul.mubr.bf16.vlgmr.msra.gmra.mxu0 %v3065_v35  ;;  %v3165_v35 = vld [vmem:[%s3375_s27 + $0x200] ss:$16 sps:$4 sm:$0xff]  }
  0x51   : > { %1602 = vmatmul.mubr.bf16.vlgmr.msra.gmra.mxu1 %v3068_v36  ;;  %1320 = vmatprep.mubr.bf16.mxu0 %v3071_v37  ;;  %v3166_v36 = vld [vmem:[%s3375_s27 + $0x208] ss:$16 sps:$4 sm:$0xff]   ;;  %v3167_v37 = vld [vmem:[%s3375_s27 + $0x224] ss:$16 sps:$4 sm:$0xff]  }
  0x52   : > { %1609 = vmatprep.mubr.bf16.mxu1 %v3073_v38  ;;  %v3169_v38 = vld [vmem:[%s3375_s27 + $0x22c] ss:$16 sps:$4 sm:$0xff]  }
  0x58   : > { %1321 = vmatmul.mubr.bf16.gmra.mxu0 %v3075_v39  ;;  %v3171_v39 = vld [vmem:[%s3375_s27 + $0x220] ss:$16 sps:$4 sm:$0xff]  }
  0x59   : > { %1610 = vmatmul.mubr.bf16.gmra.mxu1 %v3076_v40  ;;  %1328 = vmatprep.mubr.bf16.mxu0 %v3077_v41  ;;  %v3172_v40 = vld [vmem:[%s3375_s27 + $0x228] ss:$16 sps:$4 sm:$0xff]   ;;  %v3173_v41 = vld [vmem:[%s3375_s27 + $0x244] ss:$16 sps:$4 sm:$0xff]  }
  0x5a   : > { %1617 = vmatprep.mubr.bf16.mxu1 %v3079_v42  ;;  %v3175_v42 = vld [vmem:[%s3375_s27 + $0x24c] ss:$16 sps:$4 sm:$0xff]  }
  0x60   : > { %1329 = vmatmul.mubr.bf16.gmra.mxu0 %v3081_v43  ;;  %v3177_v43 = vld [vmem:[%s3375_s27 + $0x240] ss:$16 sps:$4 sm:$0xff]  }
  0x61   : > { %1618 = vmatmul.mubr.bf16.gmra.mxu1 %v3082_v44  ;;  %1336 = vmatprep.mubr.bf16.mxu0 %v3083_v45  ;;  %v3178_v44 = vld [vmem:[%s3375_s27 + $0x248] ss:$16 sps:$4 sm:$0xff]   ;;  %v3179_v45 = vld [vmem:[%s3375_s27 + $0x264] ss:$16 sps:$4 sm:$0xff]  }
  0x62   : > { %1625 = vmatprep.mubr.bf16.mxu1 %v3085_v46  ;;  %v3181_v46 = vld [vmem:[%s3375_s27 + $0x26c] ss:$16 sps:$4 sm:$0xff]  }
  0x68   : > { %1337 = vmatmul.mubr.bf16.gmra.mxu0 %v3087_v47  ;;  %v3183_v47 = vld [vmem:[%s3375_s27 + $0x260] ss:$16 sps:$4 sm:$0xff]  }
  0x69   : > { %1626 = vmatmul.mubr.bf16.gmra.mxu1 %v3088_v48  ;;  %1344 = vmatprep.mubr.bf16.mxu0 %v3089_v49  ;;  %v3184_v48 = vld [vmem:[%s3375_s27 + $0x268] ss:$16 sps:$4 sm:$0xff]   ;;  %v3185_v49 = vld [vmem:[%s3375_s27 + $0x284] ss:$16 sps:$4 sm:$0xff]  }
  0x6a   : > { %1633 = vmatprep.mubr.bf16.mxu1 %v3091_v50  ;;  %v3187_v50 = vld [vmem:[%s3375_s27 + $0x28c] ss:$16 sps:$4 sm:$0xff]  }
  0x70   : > { %1345 = vmatmul.mubr.bf16.gmra.mxu0 %v3093_v51  ;;  %v3189_v51 = vld [vmem:[%s3375_s27 + $0x280] ss:$16 sps:$4 sm:$0xff]  }
  0x71   : > { %1634 = vmatmul.mubr.bf16.gmra.mxu1 %v3094_v52  ;;  %1352 = vmatprep.mubr.bf16.mxu0 %v3095_v53  ;;  %v3190_v52 = vld [vmem:[%s3375_s27 + $0x288] ss:$16 sps:$4 sm:$0xff]   ;;  %v3191_v53 = vld [vmem:[%s3375_s27 + $0x2a4] ss:$16 sps:$4 sm:$0xff]  }
  0x72   : > { %1641 = vmatprep.mubr.bf16.mxu1 %v3097_v54  ;;  %v3193_v54 = vld [vmem:[%s3375_s27 + $0x2ac] ss:$16 sps:$4 sm:$0xff]  }
  0x78   : > { %1353 = vmatmul.mubr.bf16.gmra.mxu0 %v3099_v55  ;;  %v3195_v55 = vld [vmem:[%s3375_s27 + $0x2a0] ss:$16 sps:$4 sm:$0xff]  }
  0x79   : > { %1642 = vmatmul.mubr.bf16.gmra.mxu1 %v3100_v56  ;;  %1360 = vmatprep.mubr.bf16.mxu0 %v3101_v57  ;;  %v3196_v56 = vld [vmem:[%s3375_s27 + $0x2a8] ss:$16 sps:$4 sm:$0xff]   ;;  %v3197_v57 = vld [vmem:[%s3375_s27 + $0x2c4] ss:$16 sps:$4 sm:$0xff]  }
  0x7a   : > { %1649 = vmatprep.mubr.bf16.mxu1 %v3103_v58  ;;  %v3199_v58 = vld [vmem:[%s3375_s27 + $0x2cc] ss:$16 sps:$4 sm:$0xff]  }
  0x80   : > { %1361 = vmatmul.mubr.bf16.gmra.mxu0 %v3105_v59  ;;  %v3201_v59 = vld [vmem:[%s3375_s27 + $0x2c0] ss:$16 sps:$4 sm:$0xff]  }
  0x81   : > { %1650 = vmatmul.mubr.bf16.gmra.mxu1 %v3106_v60  ;;  %1368 = vmatprep.mubr.bf16.mxu0 %v3107_v61  ;;  %v3202_v60 = vld [vmem:[%s3375_s27 + $0x2c8] ss:$16 sps:$4 sm:$0xff]   ;;  %v3203_v61 = vld [vmem:[%s3375_s27 + $0x2e4] ss:$16 sps:$4 sm:$0xff]  }
  0x82   : > { %1657 = vmatprep.mubr.bf16.mxu1 %v3109_v62  ;;  %v3205_v62 = vld [vmem:[%s3375_s27 + $0x2ec] ss:$16 sps:$4 sm:$0xff]  }
  0x88   : > { %1369 = vmatmul.mubr.bf16.gmra.mxu0 %v3111_v63  ;;  %v3207_v63 = vld [vmem:[%s3375_s27 + $0x2e0] ss:$16 sps:$4 sm:$0xff]  }
  0x89   : > { %1658 = vmatmul.mubr.bf16.gmra.mxu1 %v3112_v0  ;;  %1376 = vmatprep.mubr.bf16.mxu0 %v3113_v1  ;;  %v3208_v0 = vld [vmem:[%s3375_s27 + $0x2e8] ss:$16 sps:$4 sm:$0xff]   ;;  %v3209_v1 = vld [vmem:[%s3375_s27 + $0x304] ss:$16 sps:$4 sm:$0xff]  }
  0x8a   : > { %1665 = vmatprep.mubr.bf16.mxu1 %v3115_v2  ;;  %v3211_v2 = vld [vmem:[%s3375_s27 + $0x30c] ss:$16 sps:$4 sm:$0xff]  }
  0x90   : > { %1377 = vmatmul.mubr.bf16.gmra.mxu0 %v3117_v3  ;;  %v3213_v3 = vld [vmem:[%s3375_s27 + $0x300] ss:$16 sps:$4 sm:$0xff]  }
  0x91   : > { %1666 = vmatmul.mubr.bf16.gmra.mxu1 %v3118_v4  ;;  %1384 = vmatprep.mubr.bf16.mxu0 %v3119_v5  ;;  %v3214_v4 = vld [vmem:[%s3375_s27 + $0x308] ss:$16 sps:$4 sm:$0xff]   ;;  %v3215_v5 = vld [vmem:[%s3375_s27 + $0x324] ss:$16 sps:$4 sm:$0xff]  }
  0x92   : > { %1673 = vmatprep.mubr.bf16.mxu1 %v3121_v6  ;;  %v3217_v6 = vld [vmem:[%s3375_s27 + $0x32c] ss:$16 sps:$4 sm:$0xff]  }
  0x98   : > { %1385 = vmatmul.mubr.bf16.gmra.mxu0 %v3123_v7 }
  0x99   : > { %1674 = vmatmul.mubr.bf16.gmra.mxu1 %v3124_v8  ;;  %1392 = vmatprep.mubr.bf16.mxu0 %v3125_v9 }
  0x9a   : > { %1681 = vmatprep.mubr.bf16.mxu1 %v3127_v10 }
  0xa0   : > { %1393 = vmatmul.mubr.bf16.gmra.mxu0 %v3129_v11 }
  0xa1   : > { %1682 = vmatmul.mubr.bf16.gmra.mxu1 %v3130_v12  ;;  %1400 = vmatprep.mubr.bf16.mxu0 %v3131_v13  ;;  %v3219_v13 = vld [vmem:[%s3375_s27 + $0x320] ss:$16 sps:$4 sm:$0xff]  }
  0xa2   : > { %1689 = vmatprep.mubr.bf16.mxu1 %v3133_v14 }
  0xa8   : > { %1401 = vmatmul.mubr.bf16.gmra.mxu0 %v3135_v15  ;;  %v3220_v15 = vld [vmem:[%s3375_s27 + $0x328] ss:$16 sps:$4 sm:$0xff]  }
  0xa9   : > { %1690 = vmatmul.mubr.bf16.gmra.mxu1 %v3136_v16  ;;  %1408 = vmatprep.mubr.bf16.mxu0 %v3137_v17  ;;  %v3221_v16 = vld [vmem:[%s3375_s27 + $0x344] ss:$16 sps:$4 sm:$0xff]  }
  0xaa   : > { %1697 = vmatprep.mubr.bf16.mxu1 %v3139_v18 }
  0xb0   : > { %1409 = vmatmul.mubr.bf16.gmra.mxu0 %v3141_v19  ;;  %v3223_v19 = vld [vmem:[%s3375_s27 + $0x34c] ss:$16 sps:$4 sm:$0xff]  }
  0xb1   : > { %1698 = vmatmul.mubr.bf16.gmra.mxu1 %v3142_v20  ;;  %1416 = vmatprep.mubr.bf16.mxu0 %v3143_v21 }
  0xb2   : > { %1705 = vmatprep.mubr.bf16.mxu1 %v3145_v22 }
  0xb8   : > { %1417 = vmatmul.mubr.bf16.gmra.mxu0 %v3147_v23 }
  0xb9   : > { %1706 = vmatmul.mubr.bf16.gmra.mxu1 %v3148_v24  ;;  %1424 = vmatprep.mubr.bf16.mxu0 %v3149_v25 }
  0xba   : > { %1713 = vmatprep.mubr.bf16.mxu1 %v3151_v26 }
  0xc0   : > { %1425 = vmatmul.mubr.bf16.gmra.mxu0 %v3153_v27 }
  0xc1   : > { %1714 = vmatmul.mubr.bf16.gmra.mxu1 %v3154_v28  ;;  %1432 = vmatprep.mubr.bf16.mxu0 %v3155_v29 }
  0xc2   : > { %1721 = vmatprep.mubr.bf16.mxu1 %v3157_v30 }
  0xc8   : > { %1433 = vmatmul.mubr.bf16.gmra.mxu0 %v3159_v31 }
  0xc9   : > { %1722 = vmatmul.mubr.bf16.gmra.mxu1 %v3160_v32  ;;  %1440 = vmatprep.mubr.bf16.mxu0 %v3161_v33 }
  0xca   : > { %1729 = vmatprep.mubr.bf16.mxu1 %v3163_v34  ;;  %v3225_v34 = vld [vmem:[%s3375_s27 + $0x340] ss:$16 sps:$4 sm:$0xff]  }
  0xd0   : > { %1441 = vmatmul.mubr.bf16.gmra.mxu0 %v3165_v35 }
  0xd1   : > { %1730 = vmatmul.mubr.bf16.gmra.mxu1 %v3166_v36  ;;  %1448 = vmatprep.mubr.bf16.mxu0 %v3167_v37  ;;  %v3226_v36 = vld [vmem:[%s3375_s27 + $0x348] ss:$16 sps:$4 sm:$0xff]   ;;  %v3227_v37 = vld [vmem:[%s3375_s27 + $0x364] ss:$16 sps:$4 sm:$0xff]  }
  0xd2   : > { %1737 = vmatprep.mubr.bf16.mxu1 %v3169_v38 }
  0xd8   : > { %1449 = vmatmul.mubr.bf16.gmra.mxu0 %v3171_v39 }
  0xd9   : > { %1738 = vmatmul.mubr.bf16.gmra.mxu1 %v3172_v40  ;;  %1456 = vmatprep.mubr.bf16.mxu0 %v3173_v41  ;;  %v3229_v41 = vld [vmem:[%s3375_s27 + $0x36c] ss:$16 sps:$4 sm:$0xff]  }
  0xda   : > { %1745 = vmatprep.mubr.bf16.mxu1 %v3175_v42 }
  0xe0   : > { %1457 = vmatmul.mubr.bf16.gmra.mxu0 %v3177_v43 }
  0xe1   : > { %1746 = vmatmul.mubr.bf16.gmra.mxu1 %v3178_v44  ;;  %1464 = vmatprep.mubr.bf16.mxu0 %v3179_v45 }
  0xe2   : > { %1753 = vmatprep.mubr.bf16.mxu1 %v3181_v46 }
  0xe8   : > { %1465 = vmatmul.mubr.bf16.gmra.mxu0 %v3183_v47 }
  0xe9   : > { %1754 = vmatmul.mubr.bf16.gmra.mxu1 %v3184_v48  ;;  %1472 = vmatprep.mubr.bf16.mxu0 %v3185_v49 }
  0xea   : > { %1761 = vmatprep.mubr.bf16.mxu1 %v3187_v50 }
  0xf0   : > { %1473 = vmatmul.mubr.bf16.gmra.mxu0 %v3189_v51 }
  0xf1   : > { %1762 = vmatmul.mubr.bf16.gmra.mxu1 %v3190_v52  ;;  %1480 = vmatprep.mubr.bf16.mxu0 %v3191_v53 }
  0xf2   : > { %1769 = vmatprep.mubr.bf16.mxu1 %v3193_v54 }
  0xf8   : > { %1481 = vmatmul.mubr.bf16.gmra.mxu0 %v3195_v55  ;;  %v3231_v55 = vld [vmem:[%s3375_s27 + $0x360] ss:$16 sps:$4 sm:$0xff]  }
  0xf9   : > { %1770 = vmatmul.mubr.bf16.gmra.mxu1 %v3196_v56  ;;  %1488 = vmatprep.mubr.bf16.mxu0 %v3197_v57  ;;  %v3232_v57 = vld [vmem:[%s3375_s27 + $0x368] ss:$16 sps:$4 sm:$0xff]  }
  0xfa   : > { %1777 = vmatprep.mubr.bf16.mxu1 %v3199_v58  ;;  %v3235_v58 = vld [vmem:[%s3375_s27 + $0x384] ss:$16 sps:$4 sm:$0xff]  }
 0x100   : > { %1489 = vmatmul.mubr.bf16.gmra.mxu0 %v3201_v59 }
 0x101   : > { %1778 = vmatmul.mubr.bf16.gmra.mxu1 %v3202_v60  ;;  %1496 = vmatprep.mubr.bf16.mxu0 %v3203_v61 }
 0x102   : > { %1785 = vmatprep.mubr.bf16.mxu1 %v3205_v62  ;;  %v3238_v62 = vld [vmem:[%s3375_s27 + $0x38c] ss:$16 sps:$4 sm:$0xff]  }
 0x108   : > { %1497 = vmatmul.mubr.bf16.gmra.mxu0 %v3207_v63 }
 0x109   : > { %1786 = vmatmul.mubr.bf16.gmra.mxu1 %v3208_v0  ;;  %1504 = vmatprep.mubr.bf16.mxu0 %v3209_v1 }
 0x10a   : > { %1793 = vmatprep.mubr.bf16.mxu1 %v3211_v2 }
 0x110   : > { %v1314_v7 = vpop.f32.mrf.mxu0  ;;  %1505 = vmatmul.mubr.bf16.gmra.mxu0 %v3213_v3 }
 0x111   : > { %v1603_v8 = vpop.f32.mrf.mxu1  ;;  %1794 = vmatmul.mubr.bf16.gmra.mxu1 %v3214_v4  ;;  %1512 = vmatprep.mubr.bf16.mxu0 %v3215_v5 }
 0x112   : > { %v1316_v9 = vpop.f32.mrf.mxu0  ;;  %1801 = vmatprep.mubr.bf16.mxu1 %v3217_v6  ;;  %v1604_v11 = vadd.f32 %v1603_v8, %v1314_v7 }
 0x113   : > { %v1605_v10 = vpop.f32.mrf.mxu1 }
 0x114   : > { %v1317_v12 = vpop.f32.mrf.mxu0  ;;  %v2247_v21 = vmul.f32 %v1604_v11, %v1604_v11 }
 0x115   : > { %v1606_v14 = vpop.f32.mrf.mxu1 }
 0x116   : > { %v1607_v17 = vadd.f32 %v1606_v14, %v1317_v12  ;;  %v1319_v18 = vpop.f32.mrf.mxu0  ;;  %v3233_v12 = vld [vmem:[%s3375_s27 + $0x380] ss:$16 sps:$4 sm:$0xff]   ;;  %v3236_v14 = vld [vmem:[%s3375_s27 + $0x388] ss:$16 sps:$4 sm:$0xff]  }
 0x117   : > { %v1608_v20 = vpop.f32.mrf.mxu1 }
 0x118   : > { %v2820_v22 = vpack.c.bf16 %v1607_v17, %v1604_v11  ;;  %v2178_v23 = vadd.f32 %v1607_v17, %v1604_v11  ;;  %v2248_v24 = vmul.f32 %v1607_v17, %v1607_v17  ;;  %v1322_v25 = vpop.f32.mrf.mxu0  ;;  %1513 = vmatmul.mubr.bf16.gmra.mxu0 %v3219_v13 }
 0x119   : > { %v1611_v26 = vpop.f32.mrf.mxu1  ;;  %1802 = vmatmul.mubr.bf16.gmra.mxu1 %v3220_v15  ;;  %1520 = vmatprep.mubr.bf16.mxu0 %v3221_v16  ;;  %v3241_v15 = vld [vmem:[%s3375_s27 + $0x3a4] ss:$16 sps:$4 sm:$0xff]  }
 0x11a   : > { %2821 = vst [vmem:[%s3520_s30] sm:$0xff] %v2820_v22   ;;  %v2311_v27 = vadd.f32 %v2248_v24, %v2247_v21  ;;  %v1612_v28 = vadd.f32 %v1611_v26, %v1322_v25  ;;  %v1324_v29 = vpop.f32.mrf.mxu0  ;;  %1809 = vmatprep.mubr.bf16.mxu1 %v3223_v19  ;;  %v3244_v19 = vld [vmem:[%s3375_s27 + $0x3ac] ss:$16 sps:$4 sm:$0xff]  }
 0x11b   : > { %v1613_v30 = vpop.f32.mrf.mxu1 }
 0x11c   : > { %v2179_v31 = vadd.f32 %v2178_v23, %v1612_v28  ;;  %v2249_v32 = vmul.f32 %v1612_v28, %v1612_v28  ;;  %v1325_v33 = vpop.f32.mrf.mxu0 }
 0x11d   : > { %v1614_v35 = vpop.f32.mrf.mxu1 }
 0x11e   : > { %v2312_v38 = vadd.f32 %v2311_v27, %v2249_v32  ;;  %v1615_v39 = vadd.f32 %v1614_v35, %v1325_v33  ;;  %v1327_v40 = vpop.f32.mrf.mxu0  ;;  %v3239_v33 = vld [vmem:[%s3375_s27 + $0x3a0] ss:$16 sps:$4 sm:$0xff]   ;;  %v3242_v35 = vld [vmem:[%s3375_s27 + $0x3a8] ss:$16 sps:$4 sm:$0xff]  }
 0x11f   : > { %v1616_v42 = vpop.f32.mrf.mxu1  ;;  %v3250_v40 = vld [vmem:[%s3375_s27 + $0x3cc] ss:$16 sps:$4 sm:$0xff]  }
 0x120   : > { %v2825_v43 = vpack.c.bf16 %v1615_v39, %v1612_v28  ;;  %v2180_v44 = vadd.f32 %v2179_v31, %v1615_v39  ;;  %v2250_v45 = vmul.f32 %v1615_v39, %v1615_v39  ;;  %v1330_v46 = vpop.f32.mrf.mxu0  ;;  %1521 = vmatmul.mubr.bf16.gmra.mxu0 %v3225_v34 }
 0x121   : > { %v1619_v47 = vpop.f32.mrf.mxu1  ;;  %1810 = vmatmul.mubr.bf16.gmra.mxu1 %v3226_v36  ;;  %1528 = vmatprep.mubr.bf16.mxu0 %v3227_v37  ;;  %v3247_v36 = vld [vmem:[%s3375_s27 + $0x3c4] ss:$16 sps:$4 sm:$0xff]  }
 0x122   : > { %2977 = vst [vmem:[%s3520_s30 + $0x8] sm:$0xff] %v2825_v43   ;;  %v2313_v48 = vadd.f32 %v2312_v38, %v2250_v45  ;;  %v1620_v49 = vadd.f32 %v1619_v47, %v1330_v46  ;;  %v1332_v50 = vpop.f32.mrf.mxu0  ;;  %1817 = vmatprep.mubr.bf16.mxu1 %v3229_v41 }
 0x123   : > { %v1621_v51 = vpop.f32.mrf.mxu1 }
 0x124   : > { %v2181_v52 = vadd.f32 %v2180_v44, %v1620_v49  ;;  %v2251_v53 = vmul.f32 %v1620_v49, %v1620_v49  ;;  %v1333_v54 = vpop.f32.mrf.mxu0 }
 0x125   : > { %v1622_v56 = vpop.f32.mrf.mxu1 }
 0x126   : > { %v2314_v59 = vadd.f32 %v2313_v48, %v2251_v53  ;;  %v1623_v60 = vadd.f32 %v1622_v56, %v1333_v54  ;;  %v1335_v61 = vpop.f32.mrf.mxu0  ;;  %v3245_v54 = vld [vmem:[%s3375_s27 + $0x3c0] ss:$16 sps:$4 sm:$0xff]   ;;  %v3248_v56 = vld [vmem:[%s3375_s27 + $0x3c8] ss:$16 sps:$4 sm:$0xff]  }
 0x127   : > { %v1624_v63 = vpop.f32.mrf.mxu1  ;;  %v3256_v61 = vld [vmem:[%s3375_s27 + $0x3ec] ss:$16 sps:$4 sm:$0xff]  }
 0x128   : > { %v2830_v0 = vpack.c.bf16 %v1623_v60, %v1620_v49  ;;  %v2182_v1 = vadd.f32 %v2181_v52, %v1623_v60  ;;  %v2252_v2 = vmul.f32 %v1623_v60, %v1623_v60  ;;  %v1338_v3 = vpop.f32.mrf.mxu0  ;;  %1529 = vmatmul.mubr.bf16.gmra.mxu0 %v3231_v55 }
 0x129   : > { %v1627_v4 = vpop.f32.mrf.mxu1  ;;  %1818 = vmatmul.mubr.bf16.gmra.mxu1 %v3232_v57  ;;  %1536 = vmatprep.mubr.bf16.mxu0 %v3235_v58  ;;  %v3253_v57 = vld [vmem:[%s3375_s27 + $0x3e4] ss:$16 sps:$4 sm:$0xff]  }
 0x12a   : > { %2978 = vst [vmem:[%s3520_s30 + $0x10] sm:$0xff] %v2830_v0   ;;  %v2315_v5 = vadd.f32 %v2314_v59, %v2252_v2  ;;  %v1628_v6 = vadd.f32 %v1627_v4, %v1338_v3  ;;  %v1340_v7 = vpop.f32.mrf.mxu0  ;;  %1825 = vmatprep.mubr.bf16.mxu1 %v3238_v62 }
 0x12b   : > { %v1629_v8 = vpop.f32.mrf.mxu1 }
 0x12c   : > { %v2183_v9 = vadd.f32 %v2182_v1, %v1628_v6  ;;  %v2253_v10 = vmul.f32 %v1628_v6, %v1628_v6  ;;  %v1341_v11 = vpop.f32.mrf.mxu0 }
 0x12d   : > { %v1630_v13 = vpop.f32.mrf.mxu1 }
 0x12e   : > { %v2316_v16 = vadd.f32 %v2315_v5, %v2253_v10  ;;  %v1631_v17 = vadd.f32 %v1630_v13, %v1341_v11  ;;  %v1343_v18 = vpop.f32.mrf.mxu0  ;;  %v3251_v11 = vld [vmem:[%s3375_s27 + $0x3e0] ss:$16 sps:$4 sm:$0xff]   ;;  %v3254_v13 = vld [vmem:[%s3375_s27 + $0x3e8] ss:$16 sps:$4 sm:$0xff]  }
 0x12f   : > { %v1632_v20 = vpop.f32.mrf.mxu1 }
 0x130   : > { %v2835_v21 = vpack.c.bf16 %v1631_v17, %v1628_v6  ;;  %v2184_v22 = vadd.f32 %v2183_v9, %v1631_v17  ;;  %v2254_v23 = vmul.f32 %v1631_v17, %v1631_v17  ;;  %v1346_v24 = vpop.f32.mrf.mxu0  ;;  %1537 = vmatmul.mubr.bf16.gmra.mxu0 %v3233_v12 }
 0x131   : > { %v1635_v25 = vpop.f32.mrf.mxu1  ;;  %1826 = vmatmul.mubr.bf16.gmra.mxu1 %v3236_v14  ;;  %1544 = vmatprep.mubr.bf16.mxu0 %v3241_v15 }
 0x132   : > { %2979 = vst [vmem:[%s3520_s30 + $0x18] sm:$0xff] %v2835_v21   ;;  %v2317_v26 = vadd.f32 %v2316_v16, %v2254_v23  ;;  %v1636_v27 = vadd.f32 %v1635_v25, %v1346_v24  ;;  %v1348_v28 = vpop.f32.mrf.mxu0  ;;  %1833 = vmatprep.mubr.bf16.mxu1 %v3244_v19 }
 0x133   : > { %v1637_v29 = vpop.f32.mrf.mxu1 }
 0x134   : > { %v2185_v30 = vadd.f32 %v2184_v22, %v1636_v27  ;;  %v2255_v31 = vmul.f32 %v1636_v27, %v1636_v27  ;;  %v1349_v32 = vpop.f32.mrf.mxu0 }
 0x135   : > { %v1638_v34 = vpop.f32.mrf.mxu1 }
 0x136   : > { %v2318_v37 = vadd.f32 %v2317_v26, %v2255_v31  ;;  %v1639_v38 = vadd.f32 %v1638_v34, %v1349_v32  ;;  %v1351_v39 = vpop.f32.mrf.mxu0 }
 0x137   : > { %v1640_v41 = vpop.f32.mrf.mxu1 }
 0x138   : > { %v2840_v42 = vpack.c.bf16 %v1639_v38, %v1636_v27  ;;  %v2186_v43 = vadd.f32 %v2185_v30, %v1639_v38  ;;  %v2256_v44 = vmul.f32 %v1639_v38, %v1639_v38  ;;  %v1354_v45 = vpop.f32.mrf.mxu0  ;;  %1545 = vmatmul.mubr.bf16.gmra.mxu0 %v3239_v33 }
 0x139   : > { %v1643_v46 = vpop.f32.mrf.mxu1  ;;  %1834 = vmatmul.mubr.bf16.gmra.mxu1 %v3242_v35  ;;  %1552 = vmatprep.mubr.bf16.mxu0 %v3247_v36 }
 0x13a   : > { %2980 = vst [vmem:[%s3520_s30 + $0x20] sm:$0xff] %v2840_v42   ;;  %v2319_v47 = vadd.f32 %v2318_v37, %v2256_v44  ;;  %v1644_v48 = vadd.f32 %v1643_v46, %v1354_v45  ;;  %v1356_v49 = vpop.f32.mrf.mxu0  ;;  %1841 = vmatprep.mubr.bf16.mxu1 %v3250_v40 }
 0x13b   : > { %v1645_v50 = vpop.f32.mrf.mxu1 }
 0x13c   : > { %v2187_v51 = vadd.f32 %v2186_v43, %v1644_v48  ;;  %v2257_v52 = vmul.f32 %v1644_v48, %v1644_v48  ;;  %v1357_v53 = vpop.f32.mrf.mxu0 }
 0x13d   : > { %v1646_v55 = vpop.f32.mrf.mxu1 }
 0x13e   : > { %v2320_v58 = vadd.f32 %v2319_v47, %v2257_v52  ;;  %v1647_v59 = vadd.f32 %v1646_v55, %v1357_v53  ;;  %v1359_v60 = vpop.f32.mrf.mxu0 }
 0x13f   : > { %v1648_v62 = vpop.f32.mrf.mxu1 }
 0x140   : > { %v2845_v63 = vpack.c.bf16 %v1647_v59, %v1644_v48  ;;  %v2188_v0 = vadd.f32 %v2187_v51, %v1647_v59  ;;  %v2258_v1 = vmul.f32 %v1647_v59, %v1647_v59  ;;  %v1362_v2 = vpop.f32.mrf.mxu0  ;;  %1553 = vmatmul.mubr.bf16.gmra.mxu0 %v3245_v54 }
 0x141   : > { %v1651_v3 = vpop.f32.mrf.mxu1  ;;  %1842 = vmatmul.mubr.bf16.gmra.mxu1 %v3248_v56  ;;  %1560 = vmatprep.mubr.bf16.mxu0 %v3253_v57 }
 0x142   : > { %2981 = vst [vmem:[%s3520_s30 + $0x28] sm:$0xff] %v2845_v63   ;;  %v2321_v4 = vadd.f32 %v2320_v58, %v2258_v1  ;;  %v1652_v5 = vadd.f32 %v1651_v3, %v1362_v2  ;;  %v1364_v6 = vpop.f32.mrf.mxu0  ;;  %1849 = vmatprep.mubr.bf16.mxu1 %v3256_v61 }
 0x143   : > { %v1653_v7 = vpop.f32.mrf.mxu1 }
 0x144   : > { %v2189_v8 = vadd.f32 %v2188_v0, %v1652_v5  ;;  %v2259_v9 = vmul.f32 %v1652_v5, %v1652_v5  ;;  %v1365_v10 = vpop.f32.mrf.mxu0 }
 0x145   : > { %v1654_v12 = vpop.f32.mrf.mxu1 }
 0x146   : > { %v2322_v14 = vadd.f32 %v2321_v4, %v2259_v9  ;;  %v1655_v15 = vadd.f32 %v1654_v12, %v1365_v10  ;;  %v1367_v16 = vpop.f32.mrf.mxu0 }
 0x147   : > { %v1656_v17 = vpop.f32.mrf.mxu1 }
 0x148   : > { %v2850_v18 = vpack.c.bf16 %v1655_v15, %v1652_v5  ;;  %v2190_v19 = vadd.f32 %v2189_v8, %v1655_v15  ;;  %v2260_v20 = vmul.f32 %v1655_v15, %v1655_v15  ;;  %v1370_v21 = vpop.f32.mrf.mxu0  ;;  %1561 = vmatmul.mubr.bf16.gmra.mxu0 %v3251_v11 }
 0x149   : > { %v1659_v22 = vpop.f32.mrf.mxu1  ;;  %1850 = vmatmul.mubr.bf16.gmra.mxu1 %v3254_v13 }
 0x14a   : > { %2982 = vst [vmem:[%s3520_s30 + $0x30] sm:$0xff] %v2850_v18   ;;  %v2323_v23 = vadd.f32 %v2322_v14, %v2260_v20  ;;  %v1660_v24 = vadd.f32 %v1659_v22, %v1370_v21  ;;  %v1372_v25 = vpop.f32.mrf.mxu0 }
 0x14b   : > { %v1661_v26 = vpop.f32.mrf.mxu1 }
 0x14c   : > { %v2191_v27 = vadd.f32 %v2190_v19, %v1660_v24  ;;  %v2261_v28 = vmul.f32 %v1660_v24, %v1660_v24  ;;  %v1373_v29 = vpop.f32.mrf.mxu0 }
 0x14d   : > { %v1662_v30 = vpop.f32.mrf.mxu1 }
 0x14e   : > { %v2324_v31 = vadd.f32 %v2323_v23, %v2261_v28  ;;  %v1663_v32 = vadd.f32 %v1662_v30, %v1373_v29  ;;  %v1375_v33 = vpop.f32.mrf.mxu0 }
 0x14f   : > { %v1664_v34 = vpop.f32.mrf.mxu1 }
 0x150   : > { %v2855_v35 = vpack.c.bf16 %v1663_v32, %v1660_v24  ;;  %v2192_v36 = vadd.f32 %v2191_v27, %v1663_v32  ;;  %v2262_v37 = vmul.f32 %v1663_v32, %v1663_v32  ;;  %v1378_v38 = vpop.f32.mrf.mxu0 }
 0x151   : > { %v1667_v39 = vpop.f32.mrf.mxu1 }
 0x152   : > { %2983 = vst [vmem:[%s3520_s30 + $0x38] sm:$0xff] %v2855_v35   ;;  %v2325_v40 = vadd.f32 %v2324_v31, %v2262_v37  ;;  %v1668_v41 = vadd.f32 %v1667_v39, %v1378_v38  ;;  %v1380_v42 = vpop.f32.mrf.mxu0 }
 0x153   : > { %v1669_v43 = vpop.f32.mrf.mxu1 }
 0x154   : > { %v2193_v44 = vadd.f32 %v2192_v36, %v1668_v41  ;;  %v2263_v45 = vmul.f32 %v1668_v41, %v1668_v41  ;;  %v1381_v46 = vpop.f32.mrf.mxu0 }
 0x155   : > { %v1670_v47 = vpop.f32.mrf.mxu1 }
 0x156   : > { %v2326_v48 = vadd.f32 %v2325_v40, %v2263_v45  ;;  %v1671_v49 = vadd.f32 %v1670_v47, %v1381_v46  ;;  %v1383_v50 = vpop.f32.mrf.mxu0 }
 0x157   : > { %v1672_v51 = vpop.f32.mrf.mxu1 }
 0x158   : > { %v2860_v52 = vpack.c.bf16 %v1671_v49, %v1668_v41  ;;  %v2194_v53 = vadd.f32 %v2193_v44, %v1671_v49  ;;  %v2264_v54 = vmul.f32 %v1671_v49, %v1671_v49  ;;  %v1386_v55 = vpop.f32.mrf.mxu0 }
 0x159   : > { %v1675_v56 = vpop.f32.mrf.mxu1 }
 0x15a   : > { %2984 = vst [vmem:[%s3520_s30 + $0x40] sm:$0xff] %v2860_v52   ;;  %v2327_v57 = vadd.f32 %v2326_v48, %v2264_v54  ;;  %v1676_v58 = vadd.f32 %v1675_v56, %v1386_v55  ;;  %v1388_v59 = vpop.f32.mrf.mxu0 }
 0x15b   : > { %v1677_v60 = vpop.f32.mrf.mxu1 }
 0x15c   : > { %v2195_v61 = vadd.f32 %v2194_v53, %v1676_v58  ;;  %v2265_v62 = vmul.f32 %v1676_v58, %v1676_v58  ;;  %v1389_v63 = vpop.f32.mrf.mxu0 }
 0x15d   : > { %v1678_v0 = vpop.f32.mrf.mxu1 }
 0x15e   : > { %v2328_v1 = vadd.f32 %v2327_v57, %v2265_v62  ;;  %v1679_v2 = vadd.f32 %v1678_v0, %v1389_v63  ;;  %v1391_v3 = vpop.f32.mrf.mxu0 }
 0x15f   : > { %v1680_v4 = vpop.f32.mrf.mxu1 }
 0x160   : > { %v2865_v5 = vpack.c.bf16 %v1679_v2, %v1676_v58  ;;  %v2196_v6 = vadd.f32 %v2195_v61, %v1679_v2  ;;  %v2266_v7 = vmul.f32 %v1679_v2, %v1679_v2  ;;  %v1394_v8 = vpop.f32.mrf.mxu0 }
 0x161   : > { %v1683_v9 = vpop.f32.mrf.mxu1 }
 0x162   : > { %2985 = vst [vmem:[%s3520_s30 + $0x48] sm:$0xff] %v2865_v5   ;;  %v2329_v10 = vadd.f32 %v2328_v1, %v2266_v7  ;;  %v1684_v11 = vadd.f32 %v1683_v9, %v1394_v8  ;;  %v1396_v12 = vpop.f32.mrf.mxu0 }
 0x163   : > { %v1685_v13 = vpop.f32.mrf.mxu1 }
 0x164   : > { %v2197_v14 = vadd.f32 %v2196_v6, %v1684_v11  ;;  %v2267_v15 = vmul.f32 %v1684_v11, %v1684_v11  ;;  %v1397_v16 = vpop.f32.mrf.mxu0 }
 0x165   : > { %v1686_v17 = vpop.f32.mrf.mxu1 }
 0x166   : > { %v2330_v18 = vadd.f32 %v2329_v10, %v2267_v15  ;;  %v1687_v19 = vadd.f32 %v1686_v17, %v1397_v16  ;;  %v1399_v20 = vpop.f32.mrf.mxu0 }
 0x167   : > { %v1688_v21 = vpop.f32.mrf.mxu1 }
 0x168   : > { %v2870_v22 = vpack.c.bf16 %v1687_v19, %v1684_v11  ;;  %v2198_v23 = vadd.f32 %v2197_v14, %v1687_v19  ;;  %v2268_v24 = vmul.f32 %v1687_v19, %v1687_v19  ;;  %v1402_v25 = vpop.f32.mrf.mxu0 }
 0x169   : > { %v1691_v26 = vpop.f32.mrf.mxu1 }
 0x16a   : > { %2986 = vst [vmem:[%s3520_s30 + $0x50] sm:$0xff] %v2870_v22   ;;  %v2331_v27 = vadd.f32 %v2330_v18, %v2268_v24  ;;  %v1692_v28 = vadd.f32 %v1691_v26, %v1402_v25  ;;  %v1404_v29 = vpop.f32.mrf.mxu0 }
 0x16b   : > { %v1693_v30 = vpop.f32.mrf.mxu1 }
 0x16c   : > { %v2199_v31 = vadd.f32 %v2198_v23, %v1692_v28  ;;  %v2269_v32 = vmul.f32 %v1692_v28, %v1692_v28  ;;  %v1405_v33 = vpop.f32.mrf.mxu0 }
 0x16d   : > { %v1694_v34 = vpop.f32.mrf.mxu1 }
 0x16e   : > { %v2332_v35 = vadd.f32 %v2331_v27, %v2269_v32  ;;  %v1695_v36 = vadd.f32 %v1694_v34, %v1405_v33  ;;  %v1407_v37 = vpop.f32.mrf.mxu0 }
 0x16f   : > { %v1696_v38 = vpop.f32.mrf.mxu1 }
 0x170   : > { %v2875_v39 = vpack.c.bf16 %v1695_v36, %v1692_v28  ;;  %v2200_v40 = vadd.f32 %v2199_v31, %v1695_v36  ;;  %v2270_v41 = vmul.f32 %v1695_v36, %v1695_v36  ;;  %v1410_v42 = vpop.f32.mrf.mxu0 }
 0x171   : > { %v1699_v43 = vpop.f32.mrf.mxu1 }
 0x172   : > { %2987 = vst [vmem:[%s3520_s30 + $0x58] sm:$0xff] %v2875_v39   ;;  %v2333_v44 = vadd.f32 %v2332_v35, %v2270_v41  ;;  %v1700_v45 = vadd.f32 %v1699_v43, %v1410_v42  ;;  %v1412_v46 = vpop.f32.mrf.mxu0 }
 0x173   : > { %v1701_v47 = vpop.f32.mrf.mxu1 }
 0x174   : > { %v2201_v48 = vadd.f32 %v2200_v40, %v1700_v45  ;;  %v2271_v49 = vmul.f32 %v1700_v45, %v1700_v45  ;;  %v1413_v50 = vpop.f32.mrf.mxu0 }
 0x175   : > { %v1702_v51 = vpop.f32.mrf.mxu1 }
 0x176   : > { %v2334_v52 = vadd.f32 %v2333_v44, %v2271_v49  ;;  %v1703_v53 = vadd.f32 %v1702_v51, %v1413_v50  ;;  %v1415_v54 = vpop.f32.mrf.mxu0 }
 0x177   : > { %v1704_v55 = vpop.f32.mrf.mxu1 }
 0x178   : > { %v2880_v56 = vpack.c.bf16 %v1703_v53, %v1700_v45  ;;  %v2202_v57 = vadd.f32 %v2201_v48, %v1703_v53  ;;  %v2272_v58 = vmul.f32 %v1703_v53, %v1703_v53  ;;  %v1418_v59 = vpop.f32.mrf.mxu0 }
 0x179   : > { %v1707_v60 = vpop.f32.mrf.mxu1 }
 0x17a   : > { %2988 = vst [vmem:[%s3520_s30 + $0x60] sm:$0xff] %v2880_v56   ;;  %v2335_v61 = vadd.f32 %v2334_v52, %v2272_v58  ;;  %v1708_v62 = vadd.f32 %v1707_v60, %v1418_v59  ;;  %v1420_v63 = vpop.f32.mrf.mxu0 }
 0x17b   : > { %v1709_v0 = vpop.f32.mrf.mxu1 }
 0x17c   : > { %v2203_v1 = vadd.f32 %v2202_v57, %v1708_v62  ;;  %v2273_v2 = vmul.f32 %v1708_v62, %v1708_v62  ;;  %v1421_v3 = vpop.f32.mrf.mxu0 }
 0x17d   : > { %v1710_v4 = vpop.f32.mrf.mxu1 }
 0x17e   : > { %v2336_v5 = vadd.f32 %v2335_v61, %v2273_v2  ;;  %v1711_v6 = vadd.f32 %v1710_v4, %v1421_v3  ;;  %v1423_v7 = vpop.f32.mrf.mxu0 }
 0x17f   : > { %v1712_v8 = vpop.f32.mrf.mxu1 }
 0x180   : > { %v2885_v9 = vpack.c.bf16 %v1711_v6, %v1708_v62  ;;  %v2204_v10 = vadd.f32 %v2203_v1, %v1711_v6  ;;  %v2274_v11 = vmul.f32 %v1711_v6, %v1711_v6  ;;  %v1426_v12 = vpop.f32.mrf.mxu0 }
 0x181   : > { %v1715_v13 = vpop.f32.mrf.mxu1 }
 0x182   : > { %2989 = vst [vmem:[%s3520_s30 + $0x68] sm:$0xff] %v2885_v9   ;;  %v2337_v14 = vadd.f32 %v2336_v5, %v2274_v11  ;;  %v1716_v15 = vadd.f32 %v1715_v13, %v1426_v12  ;;  %v1428_v16 = vpop.f32.mrf.mxu0 }
 0x183   : > { %v1717_v17 = vpop.f32.mrf.mxu1 }
 0x184   : > { %v2205_v18 = vadd.f32 %v2204_v10, %v1716_v15  ;;  %v2275_v19 = vmul.f32 %v1716_v15, %v1716_v15  ;;  %v1429_v20 = vpop.f32.mrf.mxu0 }
 0x185   : > { %v1718_v21 = vpop.f32.mrf.mxu1 }
 0x186   : > { %v2338_v22 = vadd.f32 %v2337_v14, %v2275_v19  ;;  %v1719_v23 = vadd.f32 %v1718_v21, %v1429_v20  ;;  %v1431_v24 = vpop.f32.mrf.mxu0 }
 0x187   : > { %v1720_v25 = vpop.f32.mrf.mxu1 }
 0x188   : > { %v2890_v26 = vpack.c.bf16 %v1719_v23, %v1716_v15  ;;  %v2206_v27 = vadd.f32 %v2205_v18, %v1719_v23  ;;  %v2276_v28 = vmul.f32 %v1719_v23, %v1719_v23  ;;  %v1434_v29 = vpop.f32.mrf.mxu0 }
 0x189   : > { %v1723_v30 = vpop.f32.mrf.mxu1 }
 0x18a   : > { %2990 = vst [vmem:[%s3520_s30 + $0x70] sm:$0xff] %v2890_v26   ;;  %v2339_v31 = vadd.f32 %v2338_v22, %v2276_v28  ;;  %v1724_v32 = vadd.f32 %v1723_v30, %v1434_v29  ;;  %v1436_v33 = vpop.f32.mrf.mxu0 }
 0x18b   : > { %v1725_v34 = vpop.f32.mrf.mxu1 }
 0x18c   : > { %v2207_v35 = vadd.f32 %v2206_v27, %v1724_v32  ;;  %v2277_v36 = vmul.f32 %v1724_v32, %v1724_v32  ;;  %v1437_v37 = vpop.f32.mrf.mxu0 }
 0x18d   : > { %v1726_v38 = vpop.f32.mrf.mxu1 }
 0x18e   : > { %v1727_v39 = vadd.f32 %v1726_v38, %v1437_v37  ;;  %v1439_v40 = vpop.f32.mrf.mxu0  ;;  %v2340_v42 = vadd.f32 %v2339_v31, %v2277_v36 }
 0x18f   : > { %v1728_v41 = vpop.f32.mrf.mxu1 }
 0x190   : > { %v2895_v43 = vpack.c.bf16 %v1727_v39, %v1724_v32  ;;  %v3559_v44 = vadd.f32 %v2207_v35, %v1727_v39  ;;  %v2278_v45 = vmul.f32 %v1727_v39, %v1727_v39  ;;  %v1442_v46 = vpop.f32.mrf.mxu0 }
 0x191   : > { %v1731_v47 = vpop.f32.mrf.mxu1 }
 0x192   : > { %2991 = vst [vmem:[%s3520_s30 + $0x78] sm:$0xff] %v2895_v43   ;;  %v3562_v48 = vadd.f32 %v2340_v42, %v2278_v45  ;;  %v1444_v49 = vpop.f32.mrf.mxu0  ;;  %v3564_v53 = vadd.f32 %v1731_v47, %v1442_v46 }
 0x193   : > { %v1733_v50 = vpop.f32.mrf.mxu1 }
 0x194   : > { %v1445_v51 = vpop.f32.mrf.mxu0 }
 0x195   : > { %v1734_v52 = vpop.f32.mrf.mxu1 }
 0x196   : > { %v3566_v54 = vadd.f32 %v1734_v52, %v1445_v51  ;;  %v1447_v55 = vpop.f32.mrf.mxu0 }
 0x197   : > { %v1736_v56 = vpop.f32.mrf.mxu1 }
 0x198   : > { %v2900_v57 = vpack.c.bf16 %v3566_v54, %v3564_v53  ;;  %v1450_v58 = vpop.f32.mrf.mxu0 }
 0x199   : > { %v1739_v59 = vpop.f32.mrf.mxu1 }
 0x19a   : > { %2992 = vst [vmem:[%s3520_s30 + $0x80] sm:$0xff] %v2900_v57   ;;  %v1452_v60 = vpop.f32.mrf.mxu0  ;;  %v3571_v0 = vadd.f32 %v1739_v59, %v1450_v58 }
 0x19b   : > { %v1741_v61 = vpop.f32.mrf.mxu1 }
 0x19c   : > { %v1453_v62 = vpop.f32.mrf.mxu0 }
 0x19d   : > { %v1742_v63 = vpop.f32.mrf.mxu1 }
 0x19e   : > { %v3573_v1 = vadd.f32 %v1742_v63, %v1453_v62  ;;  %v1455_v2 = vpop.f32.mrf.mxu0 }
 0x19f   : > { %v1744_v3 = vpop.f32.mrf.mxu1 }
 0x1a0   : > { %v2905_v4 = vpack.c.bf16 %v3573_v1, %v3571_v0  ;;  %v1458_v5 = vpop.f32.mrf.mxu0 }
 0x1a1   : > { %v1747_v6 = vpop.f32.mrf.mxu1 }
 0x1a2   : > { %2993 = vst [vmem:[%s3520_s30 + $0x88] sm:$0xff] %v2905_v4   ;;  %v1460_v7 = vpop.f32.mrf.mxu0  ;;  %v3579_v11 = vadd.f32 %v1747_v6, %v1458_v5 }
 0x1a3   : > { %v1749_v8 = vpop.f32.mrf.mxu1 }
 0x1a4   : > { %v1461_v9 = vpop.f32.mrf.mxu0 }
 0x1a5   : > { %v1750_v10 = vpop.f32.mrf.mxu1 }
 0x1a6   : > { %v3581_v12 = vadd.f32 %v1750_v10, %v1461_v9  ;;  %v1463_v13 = vpop.f32.mrf.mxu0 }
 0x1a7   : > { %v1752_v14 = vpop.f32.mrf.mxu1  ;;  %v2279_v13 = vmul.f32 %v3564_v53, %v3564_v53 }
 0x1a8   : > { %v2910_v15 = vpack.c.bf16 %v3581_v12, %v3579_v11  ;;  %v1466_v16 = vpop.f32.mrf.mxu0 }
 0x1a9   : > { %v1755_v17 = vpop.f32.mrf.mxu1 }
 0x1aa   : > { %2994 = vst [vmem:[%s3520_s30 + $0x90] sm:$0xff] %v2910_v15   ;;  %v1468_v18 = vpop.f32.mrf.mxu0  ;;  %v3586_v22 = vadd.f32 %v1755_v17, %v1466_v16  ;;  %v2280_v17 = vmul.f32 %v3566_v54, %v3566_v54 }
 0x1ab   : > { %v1757_v19 = vpop.f32.mrf.mxu1 }
 0x1ac   : > { %v1469_v20 = vpop.f32.mrf.mxu0  ;;  %v2209_v19 = vadd.f32 %v3559_v44, %v3564_v53 }
 0x1ad   : > { %v1758_v21 = vpop.f32.mrf.mxu1 }
 0x1ae   : > { %v3588_v23 = vadd.f32 %v1758_v21, %v1469_v20  ;;  %v1471_v24 = vpop.f32.mrf.mxu0  ;;  %v2342_v21 = vadd.f32 %v3562_v48, %v2279_v13 }
 0x1af   : > { %v1760_v25 = vpop.f32.mrf.mxu1  ;;  %v2281_v24 = vmul.f32 %v3571_v0, %v3571_v0 }
 0x1b0   : > { %v2915_v26 = vpack.c.bf16 %v3588_v23, %v3586_v22  ;;  %v1474_v27 = vpop.f32.mrf.mxu0 }
 0x1b1   : > { %v1763_v28 = vpop.f32.mrf.mxu1 }
 0x1b2   : > { %2995 = vst [vmem:[%s3520_s30 + $0x98] sm:$0xff] %v2915_v26   ;;  %v1476_v29 = vpop.f32.mrf.mxu0  ;;  %v3593_v33 = vadd.f32 %v1763_v28, %v1474_v27  ;;  %v2210_v26 = vadd.f32 %v2209_v19, %v3566_v54  ;;  %v2343_v28 = vadd.f32 %v2342_v21, %v2280_v17 }
 0x1b3   : > { %v1765_v30 = vpop.f32.mrf.mxu1  ;;  %v2282_v29 = vmul.f32 %v3573_v1, %v3573_v1 }
 0x1b4   : > { %v1477_v31 = vpop.f32.mrf.mxu0 }
 0x1b5   : > { %v1766_v32 = vpop.f32.mrf.mxu1 }
 0x1b6   : > { %v3595_v34 = vadd.f32 %v1766_v32, %v1477_v31  ;;  %v1479_v35 = vpop.f32.mrf.mxu0  ;;  %v2211_v31 = vadd.f32 %v2210_v26, %v3571_v0  ;;  %v2344_v32 = vadd.f32 %v2343_v28, %v2281_v24  ;;  %v2284_v0 = vmul.f32 %v3581_v12, %v3581_v12 }
 0x1b7   : > { %v1768_v36 = vpop.f32.mrf.mxu1  ;;  %v2283_v35 = vmul.f32 %v3579_v11, %v3579_v11 }
 0x1b8   : > { %v2920_v37 = vpack.c.bf16 %v3595_v34, %v3593_v33  ;;  %v1482_v38 = vpop.f32.mrf.mxu0  ;;  %v2212_v54 = vadd.f32 %v2211_v31, %v3573_v1 }
 0x1b9   : > { %v1771_v39 = vpop.f32.mrf.mxu1 }
 0x1ba   : > { %2996 = vst [vmem:[%s3520_s30 + $0xa0] sm:$0xff] %v2920_v37   ;;  %v1484_v40 = vpop.f32.mrf.mxu0  ;;  %v3600_v45 = vadd.f32 %v1771_v39, %v1482_v38  ;;  %v2345_v39 = vadd.f32 %v2344_v32, %v2282_v29 }
 0x1bb   : > { %v1773_v41 = vpop.f32.mrf.mxu1 }
 0x1bc   : > { %v1485_v42 = vpop.f32.mrf.mxu0  ;;  %v2213_v41 = vadd.f32 %v2212_v54, %v3579_v11  ;;  %v2289_v13 = vmul.f32 %v3600_v45, %v3600_v45 }
 0x1bd   : > { %v1774_v43 = vpop.f32.mrf.mxu1 }
 0x1be   : > { %v3602_v46 = vadd.f32 %v1774_v43, %v1485_v42  ;;  %v1487_v47 = vpop.f32.mrf.mxu0  ;;  %v2346_v43 = vadd.f32 %v2345_v39, %v2283_v35  ;;  %v2214_v1 = vadd.f32 %v2213_v41, %v3581_v12 }
 0x1bf   : > { %v1776_v49 = vpop.f32.mrf.mxu1  ;;  %v2285_v47 = vmul.f32 %v3586_v22, %v3586_v22 }
 0x1c0   : > { %v2925_v50 = vpack.c.bf16 %v3602_v46, %v3600_v45  ;;  %v1490_v51 = vpop.f32.mrf.mxu0  ;;  %v2290_v17 = vmul.f32 %v3602_v46, %v3602_v46 }
 0x1c1   : > { %v1779_v52 = vpop.f32.mrf.mxu1 }
 0x1c2   : > { %2997 = vst [vmem:[%s3520_s30 + $0xa8] sm:$0xff] %v2925_v50   ;;  %v1492_v55 = vpop.f32.mrf.mxu0  ;;  %v3607_v59 = vadd.f32 %v1779_v52, %v1490_v51  ;;  %v2347_v51 = vadd.f32 %v2346_v43, %v2284_v0  ;;  %v2286_v52 = vmul.f32 %v3588_v23, %v3588_v23 }
 0x1c3   : > { %v1781_v56 = vpop.f32.mrf.mxu1 }
 0x1c4   : > { %v1493_v57 = vpop.f32.mrf.mxu0  ;;  %v2215_v56 = vadd.f32 %v2214_v1, %v3586_v22  ;;  %v2288_v22 = vmul.f32 %v3595_v34, %v3595_v34 }
 0x1c5   : > { %v1782_v58 = vpop.f32.mrf.mxu1 }
 0x1c6   : > { %v3609_v60 = vadd.f32 %v1782_v58, %v1493_v57  ;;  %v1495_v61 = vpop.f32.mrf.mxu0  ;;  %v2216_v12 = vadd.f32 %v2215_v56, %v3588_v23 }
 0x1c7   : > { %v1784_v62 = vpop.f32.mrf.mxu1  ;;  %v2348_v61 = vadd.f32 %v2347_v51, %v2285_v47 }
 0x1c8   : > { %v2930_v63 = vpack.c.bf16 %v3609_v60, %v3607_v59  ;;  %v1498_v2 = vpop.f32.mrf.mxu0  ;;  %v2287_v62 = vmul.f32 %v3593_v33, %v3593_v33 }
 0x1c9   : > { %v1787_v3 = vpop.f32.mrf.mxu1 }
 0x1ca   : > { %2998 = vst [vmem:[%s3520_s30 + $0xb0] sm:$0xff] %v2930_v63   ;;  %v1500_v4 = vpop.f32.mrf.mxu0  ;;  %v3614_v8 = vadd.f32 %v1787_v3, %v1498_v2 }
 0x1cb   : > { %v1789_v5 = vpop.f32.mrf.mxu1  ;;  %v2349_v4 = vadd.f32 %v2348_v61, %v2286_v52 }
 0x1cc   : > { %v1501_v6 = vpop.f32.mrf.mxu0  ;;  %v2293_v35 = vmul.f32 %v3614_v8, %v3614_v8 }
 0x1cd   : > { %v1790_v7 = vpop.f32.mrf.mxu1 }
 0x1ce   : > { %v3616_v9 = vadd.f32 %v1790_v7, %v1501_v6  ;;  %v1503_v10 = vpop.f32.mrf.mxu0  ;;  %v2217_v6 = vadd.f32 %v2216_v12, %v3593_v33 }
 0x1cf   : > { %v1792_v14 = vpop.f32.mrf.mxu1  ;;  %v2350_v10 = vadd.f32 %v2349_v4, %v2287_v62 }
 0x1d0   : > { %v2935_v15 = vpack.c.bf16 %v3616_v9, %v3614_v8  ;;  %v1506_v16 = vpop.f32.mrf.mxu0  ;;  %v2218_v23 = vadd.f32 %v2217_v6, %v3595_v34 }
 0x1d1   : > { %v1795_v18 = vpop.f32.mrf.mxu1 }
 0x1d2   : > { %2999 = vst [vmem:[%s3520_s30 + $0xb8] sm:$0xff] %v2935_v15   ;;  %v1508_v20 = vpop.f32.mrf.mxu0  ;;  %v3634_v44 = vadd.f32 %v1795_v18, %v1506_v16  ;;  %v2351_v16 = vadd.f32 %v2350_v10, %v2288_v22  ;;  %v2219_v19 = vadd.f32 %v2218_v23, %v3600_v45 }
 0x1d3   : > { %v1797_v25 = vpop.f32.mrf.mxu1 }
 0x1d4   : > { %v1509_v27 = vpop.f32.mrf.mxu0  ;;  %v2352_v24 = vadd.f32 %v2351_v16, %v2289_v13  ;;  %v2291_v25 = vmul.f32 %v3607_v59, %v3607_v59  ;;  %v2220_v34 = vadd.f32 %v2219_v19, %v3602_v46  ;;  %v2295_v43 = vmul.f32 %v3634_v44, %v3634_v44 }
 0x1d5   : > { %v1798_v30 = vpop.f32.mrf.mxu1 }
 0x1d6   : > { %v3636_v53 = vadd.f32 %v1798_v30, %v1509_v27  ;;  %v1511_v48 = vpop.f32.mrf.mxu0  ;;  %v2353_v29 = vadd.f32 %v2352_v24, %v2290_v17  ;;  %v2292_v30 = vmul.f32 %v3609_v60, %v3609_v60  ;;  %v2221_v45 = vadd.f32 %v2220_v34, %v3607_v59 }
 0x1d7   : > { %v1800_v36 = vpop.f32.mrf.mxu1 }
 0x1d8   : > { %v2940_v37 = vpack.c.bf16 %v3636_v53, %v3634_v44  ;;  %v1514_v38 = vpop.f32.mrf.mxu0  ;;  %v2354_v32 = vadd.f32 %v2353_v29, %v2291_v25  ;;  %v2222_v54 = vadd.f32 %v2221_v45, %v3609_v60  ;;  %v2296_v51 = vmul.f32 %v3636_v53, %v3636_v53 }
 0x1d9   : > { %v1803_v40 = vpop.f32.mrf.mxu1 }
 0x1da   : > { %3000 = vst [vmem:[%s3520_s30 + $0xc0] sm:$0xff] %v2940_v37   ;;  %v1516_v42 = vpop.f32.mrf.mxu0  ;;  %v3653_v57 = vadd.f32 %v1803_v40, %v1514_v38  ;;  %v2355_v37 = vadd.f32 %v2354_v32, %v2292_v30  ;;  %v2294_v38 = vmul.f32 %v3616_v9, %v3616_v9  ;;  %v2223_v0 = vadd.f32 %v2222_v54, %v3614_v8 }
 0x1db   : > { %v1805_v49 = vpop.f32.mrf.mxu1 }
 0x1dc   : > { %v1517_v50 = vpop.f32.mrf.mxu0  ;;  %v2356_v42 = vadd.f32 %v2355_v37, %v2293_v35  ;;  %v2224_v49 = vadd.f32 %v2223_v0, %v3616_v9 }
 0x1dd   : > { %v1806_v55 = vpop.f32.mrf.mxu1 }
 0x1de   : > { %v3655_v11 = vadd.f32 %v1806_v55, %v1517_v50  ;;  %v1519_v58 = vpop.f32.mrf.mxu0  ;;  %v2357_v50 = vadd.f32 %v2356_v42, %v2294_v38  ;;  %v2225_v55 = vadd.f32 %v2224_v49, %v3634_v44 }
 0x1df   : > { %v1808_v63 = vpop.f32.mrf.mxu1  ;;  %v2297_v58 = vmul.f32 %v3653_v57, %v3653_v57 }
 0x1e0   : > { %v2945_v2 = vpack.c.bf16 %v3655_v11, %v3653_v57  ;;  %v1522_v3 = vpop.f32.mrf.mxu0  ;;  %v2358_v56 = vadd.f32 %v2357_v50, %v2295_v43  ;;  %v2226_v62 = vadd.f32 %v2225_v55, %v3636_v53  ;;  %v2298_v12 = vmul.f32 %v3655_v11, %v3655_v11 }
 0x1e1   : > { %v1811_v5 = vpop.f32.mrf.mxu1 }
 0x1e2   : > { %3001 = vst [vmem:[%s3520_s30 + $0xc8] sm:$0xff] %v2945_v2   ;;  %v1524_v7 = vpop.f32.mrf.mxu0  ;;  %v1812_v20 = vadd.f32 %v1811_v5, %v1522_v3  ;;  %v2359_v9 = vadd.f32 %v2358_v56, %v2296_v51  ;;  %v2227_v3 = vadd.f32 %v2226_v62, %v3653_v57 }
 0x1e3   : > { %v1813_v14 = vpop.f32.mrf.mxu1 }
 0x1e4   : > { %v1525_v15 = vpop.f32.mrf.mxu0  ;;  %v2360_v5 = vadd.f32 %v2359_v9, %v2297_v58  ;;  %v2299_v6 = vmul.f32 %v1812_v20, %v1812_v20  ;;  %v2228_v10 = vadd.f32 %v2227_v3, %v3655_v11 }
 0x1e5   : > { %v1814_v18 = vpop.f32.mrf.mxu1 }
 0x1e6   : > { %v3672_v33 = vadd.f32 %v1814_v18, %v1525_v15  ;;  %v1527_v21 = vpop.f32.mrf.mxu0  ;;  %v2361_v53 = vadd.f32 %v2360_v5, %v2298_v12  ;;  %v2229_v16 = vadd.f32 %v2228_v10, %v1812_v20 }
 0x1e7   : > { %v1816_v26 = vpop.f32.mrf.mxu1 }
 0x1e8   : > { %v2950_v27 = vpack.c.bf16 %v3672_v33, %v1812_v20  ;;  %v1530_v28 = vpop.f32.mrf.mxu0  ;;  %v2300_v23 = vmul.f32 %v3672_v33, %v3672_v33  ;;  %v2362_v18 = vadd.f32 %v2361_v53, %v2299_v6  ;;  %v2230_v19 = vadd.f32 %v2229_v16, %v3672_v33 }
 0x1e9   : > { %v1819_v31 = vpop.f32.mrf.mxu1 }
 0x1ea   : > { %3002 = vst [vmem:[%s3520_s30 + $0xd0] sm:$0xff] %v2950_v27   ;;  %v1532_v48 = vpop.f32.mrf.mxu0  ;;  %v1820_v40 = vadd.f32 %v1819_v31, %v1530_v28  ;;  %v2363_v25 = vadd.f32 %v2362_v18, %v2300_v23 }
 0x1eb   : > { %v1821_v36 = vpop.f32.mrf.mxu1 }
 0x1ec   : > { %v1533_v46 = vpop.f32.mrf.mxu0  ;;  %v2301_v21 = vmul.f32 %v1820_v40, %v1820_v40  ;;  %v2231_v11 = vadd.f32 %v2230_v19, %v1820_v40 }
 0x1ed   : > { %v1822_v39 = vpop.f32.mrf.mxu1 }
 0x1ee   : > { %v1823_v59 = vadd.f32 %v1822_v39, %v1533_v46  ;;  %v1535_v41 = vpop.f32.mrf.mxu0  ;;  %v2364_v31 = vadd.f32 %v2363_v25, %v2301_v21 }
 0x1ef   : > { %v1824_v47 = vpop.f32.mrf.mxu1 }
 0x1f0   : > { %v2955_v60 = vpack.c.bf16 %v1823_v59, %v1820_v40  ;;  %v1538_v1 = vpop.f32.mrf.mxu0  ;;  %v2302_v34 = vmul.f32 %v1823_v59, %v1823_v59  ;;  %v2232_v45 = vadd.f32 %v2231_v11, %v1823_v59 }
 0x1f1   : > { %v1827_v52 = vpop.f32.mrf.mxu1 }
 0x1f2   : > { %3003 = vst [vmem:[%s3520_s30 + $0xd8] sm:$0xff] %v2955_v60   ;;  %v1540_v8 = vpop.f32.mrf.mxu0  ;;  %v1828_v4 = vadd.f32 %v1827_v52, %v1538_v1  ;;  %v2365_v36 = vadd.f32 %v2364_v31, %v2302_v34 }
 0x1f3   : > { %v1829_v61 = vpop.f32.mrf.mxu1 }
 0x1f4   : > { %v1541_v63 = vpop.f32.mrf.mxu0  ;;  %v2303_v20 = vmul.f32 %v1828_v4, %v1828_v4  ;;  %v2233_v54 = vadd.f32 %v2232_v45, %v1828_v4 }
 0x1f5   : > { %v1830_v2 = vpop.f32.mrf.mxu1 }
 0x1f6   : > { %v1831_v44 = vadd.f32 %v1830_v2, %v1541_v63  ;;  %v1543_v22 = vpop.f32.mrf.mxu0  ;;  %v2366_v38 = vadd.f32 %v2365_v36, %v2303_v20 }
 0x1f7   : > { %v1832_v7 = vpop.f32.mrf.mxu1 }
 0x1f8   : > { %v2960_v13 = vpack.c.bf16 %v1831_v44, %v1828_v4  ;;  %v1546_v14 = vpop.f32.mrf.mxu0  ;;  %v2304_v33 = vmul.f32 %v1831_v44, %v1831_v44  ;;  %v2234_v39 = vadd.f32 %v2233_v54, %v1831_v44 }
 0x1f9   : > { %v1835_v15 = vpop.f32.mrf.mxu1 }
 0x1fa   : > { %3004 = vst [vmem:[%s3520_s30 + $0xe0] sm:$0xff] %v2960_v13   ;;  %v1548_v17 = vpop.f32.mrf.mxu0  ;;  %v1836_v27 = vadd.f32 %v1835_v15, %v1546_v14  ;;  %v2367_v43 = vadd.f32 %v2366_v38, %v2304_v33 }
 0x1fb   : > { %v1837_v57 = vpop.f32.mrf.mxu1 }
 0x1fc   : > { %v1549_v24 = vpop.f32.mrf.mxu0  ;;  %v2305_v0 = vmul.f32 %v1836_v27, %v1836_v27  ;;  %v2235_v47 = vadd.f32 %v2234_v39, %v1836_v27 }
 0x1fd   : > { %v1838_v26 = vpop.f32.mrf.mxu1 }
 0x1fe   : > { %v1839_v28 = vadd.f32 %v1838_v26, %v1549_v24  ;;  %v1551_v29 = vpop.f32.mrf.mxu0  ;;  %v2368_v50 = vadd.f32 %v2367_v43, %v2305_v0 }
 0x1ff   : > { %v1840_v30 = vpop.f32.mrf.mxu1 }
 0x200   : > { %v2965_v48 = vpack.c.bf16 %v1839_v28, %v1836_v27  ;;  %v1554_v32 = vpop.f32.mrf.mxu0  ;;  %v2306_v59 = vmul.f32 %v1839_v28, %v1839_v28  ;;  %v2236_v51 = vadd.f32 %v2235_v47, %v1839_v28 }
 0x201   : > { %v1843_v35 = vpop.f32.mrf.mxu1 }
 0x202   : > { %3005 = vst [vmem:[%s3520_s30 + $0xe8] sm:$0xff] %v2965_v48   ;;  %v1556_v46 = vpop.f32.mrf.mxu0  ;;  %v1844_v40 = vadd.f32 %v1843_v35, %v1554_v32  ;;  %v2369_v58 = vadd.f32 %v2368_v50, %v2306_v59 }
 0x203   : > { %v1845_v37 = vpop.f32.mrf.mxu1 }
 0x204   : > { %v1557_v41 = vpop.f32.mrf.mxu0  ;;  %v2307_v52 = vmul.f32 %v1844_v40, %v1844_v40  ;;  %v2237_v61 = vadd.f32 %v2236_v51, %v1844_v40 }
 0x205   : > { %v1846_v42 = vpop.f32.mrf.mxu1 }
 0x206   : > { %v1847_v49 = vadd.f32 %v1846_v42, %v1557_v41  ;;  %v1559_v60 = vpop.f32.mrf.mxu0  ;;  %v2370_v2 = vadd.f32 %v2369_v58, %v2307_v52 }
 0x207   : > { %v1848_v1 = vpop.f32.mrf.mxu1 }
 0x208   : > { %v2970_v55 = vpack.c.bf16 %v1847_v49, %v1844_v40  ;;  %v1562_v8 = vpop.f32.mrf.mxu0  ;;  %v2308_v62 = vmul.f32 %v1847_v49, %v1847_v49  ;;  %v2238_v3 = vadd.f32 %v2237_v61, %v1847_v49 }
 0x209   : > { %v1851_v56 = vpop.f32.mrf.mxu1 }
 0x20a   : > { %3006 = vst [vmem:[%s3520_s30 + $0xf0] sm:$0xff] %v2970_v55   ;;  %v1852_v63 = vadd.f32 %v1851_v56, %v1562_v8  ;;  %v1564_v9 = vpop.f32.mrf.mxu0  ;;  %v2371_v5 = vadd.f32 %v2370_v2, %v2308_v62 }
 0x20b   : > { %v1853_v12 = vpop.f32.mrf.mxu1 }
 0x20c   : > { %v2309_v4 = vmul.f32 %v1852_v63, %v1852_v63  ;;  %v1565_v44 = vpop.f32.mrf.mxu0  ;;  %v2239_v6 = vadd.f32 %v2238_v3, %v1852_v63 }
 0x20d   : > { %v1854_v22 = vpop.f32.mrf.mxu1 }
 0x20e   : > { %v1855_v7 = vadd.f32 %v1854_v22, %v1565_v44  ;;  %v1567_v10 = vpop.f32.mrf.mxu0  ;;  %v2372_v14 = vadd.f32 %v2371_v5, %v2309_v4 }
 0x20f   : > { %v1856_v13 = vpop.f32.mrf.mxu1 }
 0x210   : > { %v2975_v53 = vpack.c.bf16 %v1855_v7, %v1852_v63  ;;  %v2240_v23 = vadd.f32 %v2239_v6, %v1855_v7  ;;  %v2310_v15 = vmul.f32 %v1855_v7, %v1855_v7 }
 0x212   : > { %3007 = vst [vmem:[%s3520_s30 + $0xf8] sm:$0xff] %v2975_v53   ;;  %v2241_v16 = vrot.slane %v2240_v23, 4  ;;  %v2373_v17 = vadd.f32 %v2372_v14, %v2310_v15 }
 0x214   : > { %v2242_v18 = vadd.f32 %v2241_v16, %v2240_v23  ;;  %v2374_v57 = vrot.slane %v2373_v17, 4 }
 0x216   : > { %v2243_v19 = vrot.slane %v2242_v18, 2  ;;  %v2375_v21 = vadd.f32 %v2374_v57, %v2373_v17 }
 0x218   : > { %v2244_v24 = vadd.f32 %v2243_v19, %v2242_v18  ;;  %v2376_v25 = vrot.slane %v2375_v21, 2 }
 0x21a   : > { %v2245_v26 = vrot.slane %v2244_v24, 1  ;;  %v2377_v11 = vadd.f32 %v2376_v25, %v2375_v21  ;;  %2385 = sbr.rel (!%p2380_p5) target bundleno = 545 (0x221), region = 32 }
 0x21c   : > { %v2246_v34 = vadd.f32 %v2245_v26, %v2244_v24  ;;  %v2378_v27 = vrot.slane %v2377_v11, 1 }
 0x21e   : > { %v2379_v28 = vadd.f32 %v2378_v27, %v2377_v11  ;;  %2386 = vst [vmem:[%s3743_s3] sm:$0x1] (%p2380_p5), %v2246_v34 }
 0x220   : > { %2387 = vst [vmem:[%s3744_s4] sm:$0x1] %v2379_v28 }
 0x221 PF: > { %2390 = sbr.rel (%p2380_p5) target bundleno = 556 (0x22c), region = 36 }
 0x227   : > { %v2391_v29 = vld [vmem:[%s3743_s3] sm:$0x1] }
 0x228   : > { %v2394_v30 = vld [vmem:[%s3744_s4] sm:$0x1]  ;;  %v2392_v31 = vadd.f32 %v2391_v29, %v2246_v34 }
 0x229   : > { %v2395_v45 = vadd.f32 %v2394_v30, %v2379_v28 }
 0x22a   : > { %2393 = vst [vmem:[%s3743_s3] sm:$0x1] %v2392_v31 }
 0x22b   : > { %2396 = vst [vmem:[%s3744_s4] sm:$0x1] %v2395_v45 }
 0x22c PF: > { %s15_s17 = sadd.s32 1, %s3279_s17   ;;  %s3745_s15 = smov %s3275_s16 }
 0x22d   : > { %p12_p6 = scmp.ge.s32.totalorder %s15_s17, 6   ;;  %s3746_s16 = smov %s3748_s18 }
 0x22f   :  { %14 = sbr.rel (!%p12_p6) target bundleno = 2 (0x2), region = 85 }

</bundles_post_ra>
